<compile_context>
chip_gen: v6e
topology: v6e:2x2x1
jax: 0.10.0
libtpu: 0.0.40
codegen_flags: <defaults>
</compile_context>

<pallas_src>
import functools
import math

import jax
import jax.numpy as jnp
import numpy as np
from jax.experimental import pallas as pl
from jax.experimental.pallas import tpu as pltpu


# ------------------------------ Fused kernel ---------------------------------

def _fused_generator_kernel(*refs, num_layers, hidden_dim, seq_len, batch,
                            padding_value, conditional):
    H = hidden_dim
    S = seq_len
    f32 = jnp.float32

    # ---- unpack refs: inputs, output, scratch -------------------------------
    i = 0
    lens_ref = refs[i]; i += 1                 # (B, 1) int32
    z_ref = refs[i]; i += 1                    # (B, S, Z_dim) f32
    layers = []
    for _ in range(num_layers):
        layers.append((refs[i], refs[i + 1], refs[i + 2]))   # (3,in,H),(3,H,H),(4,1,H)
        i += 3
    if conditional:
        d_ref, l_ref, cwd_ref, cwl_ref, cb_ref, gw2_ref = refs[i:i + 6]
        i += 6
    gw1_ref, gb_ref = refs[i], refs[i + 1]
    i += 2
    out_ref = refs[i]                          # (B, S, H) f32 output
    xbuf = refs[i + 1]                         # (S, H) f32 VMEM scratch (staged layer rows)

    pad = f32(padding_value)
    lens = lens_ref[...]                       # (B, 1) int32, loaded once
    gw1 = gw1_ref[...]                         # (H, H)
    gb = gb_ref[...]                           # (1, H)

    if conditional:
        # gen_linear(cat(H_o, cond_emb)) == H_o @ W1 + (cond_emb @ W2 + b).
        # The conditional term is time-invariant -> compute once per batch row.
        cond = (jnp.dot(d_ref[...], cwd_ref[...], preferred_element_type=f32)
                + jnp.dot(l_ref[...], cwl_ref[...], preferred_element_type=f32)
                + cb_ref[...])                                                   # (B, H)
        base_all = jnp.dot(cond, gw2_ref[...], preferred_element_type=f32) + gb  # (B, H)

    # TODO(synk): History / add_history > 0 path (extra weight split) not implemented.

    # Sequences are independent; process each batch row with 2-D, leading-axis
    # indexing only (robust lowering). For large B one would instead vectorize
    # the recurrence across batch and shard it over v7x's two TensorCores.
    for bi in range(batch):
        len_b = lens[bi:bi + 1, :]                               # (1, 1) int32
        for li, (wih_ref, whh_ref, bias_ref) in enumerate(layers):
            last = li == num_layers - 1
            # Layer input: raw noise for layer 0, previous layer's staged output after.
            x_in = z_ref[bi] if li == 0 else xbuf[...]           # (S, in_dim)

            # Input-to-hidden projections for ALL time steps at once (off the
            # serial chain), per lane-aligned gate; r/z biases pre-combined.
            gi_r = jnp.dot(x_in, wih_ref[0], preferred_element_type=f32) + bias_ref[0]
            gi_z = jnp.dot(x_in, wih_ref[1], preferred_element_type=f32) + bias_ref[1]
            gi_n = jnp.dot(x_in, wih_ref[2], preferred_element_type=f32) + bias_ref[2]
            w_hr, w_hz, w_hn = whh_ref[0], whh_ref[1], whh_ref[2]
            b_hn = bias_ref[3]

            h = jnp.zeros((1, H), f32)
            for t in range(S):                 # static unroll (S == max_seq_len)
                gh_r = jnp.dot(h, w_hr, preferred_element_type=f32)
                gh_z = jnp.dot(h, w_hz, preferred_element_type=f32)
                gh_n = jnp.dot(h, w_hn, preferred_element_type=f32)
                r = jax.nn.sigmoid(gi_r[t:t + 1, :] + gh_r)
                zg = jax.nn.sigmoid(gi_z[t:t + 1, :] + gh_z)
                n = jnp.tanh(gi_n[t:t + 1, :] + r * (gh_n + b_hn))
                h_new = (1.0 - zg) * n + zg * h

                valid = len_b > t                               # pack_padded semantics
                h = jnp.where(valid, h_new, h)                  # freeze state past T[bi]
                # Stage this step's output row in VMEM; the last layer also
                # applies the padding_value fill (pad_packed_sequence).
                xbuf[t:t + 1, :] = jnp.where(valid, h_new, pad) if last else h

        # gen_linear over all time steps of this sequence: one (S,H)x(H,H) dot,
        # then a single lane-dense store of the whole (S, H) slab.
        base = base_all[bi:bi + 1, :] if conditional else gb     # (1, H)
        out_ref[bi] = jnp.dot(xbuf[...], gw1, preferred_element_type=f32) + base


# --------------------------- Parameter construction ---------------------------

def _xavier_uniform(key, out_features, in_features):
    bound = math.sqrt(6.0 / (in_features + out_features))
    return jax.random.uniform(key, (out_features, in_features), jnp.float32,
                              -bound, bound)


def init_params(key, Z_dim, hidden_dim, num_layers, dynamic_dim, label_dim,
                conditional):
    """Mirrors the PyTorch init, reorganized into kernel-friendly layouts."""
    H = hidden_dim
    params = {"gru": []}
    for layer in range(num_layers):
        in_dim = Z_dim if layer == 0 else H
        key, k_ih, k_hh = jax.random.split(key, 3)
        w_ih = _xavier_uniform(k_ih, 3 * H, in_dim)     # (3H, in): xavier_uniform_
        w_hh = _xavier_uniform(k_hh, 3 * H, H)          # (3H, H):  xavier_uniform_
        b_ih = jnp.ones((3 * H,), jnp.float32)          # bias_ih.fill_(1)
        b_hh = jnp.zeros((3 * H,), jnp.float32)         # bias_hh.fill_(0)
        # Per-gate (r, z, n), transposed, lane-aligned: (3, in, H) / (3, H, H).
        wih_g = jnp.stack([w_ih[g * H:(g + 1) * H, :].T for g in range(3)], axis=0)
        whh_g = jnp.stack([w_hh[g * H:(g + 1) * H, :].T for g in range(3)], axis=0)
        # Biases: [b_ir+b_hr, b_iz+b_hz, b_in, b_hn] -> (4, 1, H).
        bias = jnp.stack([
            (b_ih[0:H] + b_hh[0:H]).reshape(1, H),
            (b_ih[H:2 * H] + b_hh[H:2 * H]).reshape(1, H),
            b_ih[2 * H:3 * H].reshape(1, H),
            b_hh[2 * H:3 * H].reshape(1, H),
        ], axis=0)
        params["gru"].append((wih_g, whh_g, bias))

    lin_in = 2 * H if conditional else H
    key, k_lin, k_cond = jax.random.split(key, 3)
    w_gen = _xavier_uniform(k_lin, H, lin_in)           # gen_linear: xavier, bias 0
    params["gen_w1"] = w_gen[:, :H].T                   # (H, H): acts on GRU output
    params["gen_b"] = jnp.zeros((1, H), jnp.float32)
    if conditional:
        params["gen_w2"] = w_gen[:, H:2 * H].T          # (H, H): acts on cond embedding
        w_cond = _xavier_uniform(k_cond, H, dynamic_dim + label_dim)
        params["cond_wd"] = w_cond[:, :dynamic_dim].T   # (Dd, H)
        params["cond_wl"] = w_cond[:, dynamic_dim:].T   # (Ld, H)
        params["cond_b"] = jnp.zeros((1, H), jnp.float32)
    return params


# --------------------------------- Forward -----------------------------------

def generator_rnn_forward(params, Z, T, D=None, L=None, History=None, *,
                          hidden_dim, padding_value, max_seq_len):
    """Z: (B, S, Z_dim), T: (B,) int lengths, D: (B, Dd), L: (B, Ld)."""
    B, S, _ = Z.shape
    assert S == max_seq_len, "total_length in pad_packed_sequence == max_seq_len"
    if (D is None) != (L is None):
        raise ValueError("D and L must both be provided or both be None "
                         "(torch.cat((D, L), 1) would fail otherwise).")
    if History is not None:
        # TODO(synk): add_history > 0 path (History concat + wider gen_linear).
        raise NotImplementedError("History / add_history path not implemented.")
    conditional = D is not None

    lens = T.reshape(B, 1).astype(jnp.int32)
    inputs = [lens, Z.astype(jnp.float32)]
    for wih, whh, bias in params["gru"]:
        inputs += [wih, whh, bias]
    if conditional:
        inputs += [D.astype(jnp.float32), L.astype(jnp.float32),
                   params["cond_wd"], params["cond_wl"], params["cond_b"],
                   params["gen_w2"]]
    inputs += [params["gen_w1"], params["gen_b"]]

    kernel = functools.partial(
        _fused_generator_kernel,
        num_layers=len(params["gru"]),
        hidden_dim=hidden_dim,
        seq_len=S,
        batch=B,
        padding_value=float(padding_value),
        conditional=conditional,
    )
    return pl.pallas_call(
        kernel,
        out_shape=jax.ShapeDtypeStruct((B, S, hidden_dim), jnp.float32),
        scratch_shapes=[pltpu.VMEM((S, hidden_dim), jnp.float32)],
    )(*inputs)


# ------------------------ Pure-JAX reference (checking) -----------------------

def _reference_forward(params, Z, T, D, L, hidden_dim, padding_value):
    B, S, _ = Z.shape
    H = hidden_dim
    x = Z.astype(jnp.float32)
    lens = T.astype(jnp.int32)
    for wih, whh, bias in params["gru"]:
        w_ir, w_iz, w_in = wih[0], wih[1], wih[2]
        w_hr, w_hz, w_hn = whh[0], whh[1], whh[2]
        b_r, b_z, b_in_, b_hn = bias[0], bias[1], bias[2], bias[3]
        h = jnp.zeros((B, H), jnp.float32)
        outs = []
        for t in range(S):
            xt = x[:, t, :]
            r = jax.nn.sigmoid(xt @ w_ir + h @ w_hr + b_r)
            z = jax.nn.sigmoid(xt @ w_iz + h @ w_hz + b_z)
            n = jnp.tanh(xt @ w_in + b_in_ + r * (h @ w_hn + b_hn))
            h_new = (1.0 - z) * n + z * h
            valid = (t < lens)[:, None]
            h = jnp.where(valid, h_new, h)
            outs.append(jnp.where(valid, h_new, jnp.float32(padding_value)))
        x = jnp.stack(outs, axis=1)                               # (B, S, H)
    cond = D @ params["cond_wd"] + L @ params["cond_wl"] + params["cond_b"]
    base = cond @ params["gen_w2"] + params["gen_b"]              # (B, H)
    return x @ params["gen_w1"] + base[:, None, :]


# ----------------------------------- Main -------------------------------------

if __name__ == "__main__":
    # Small config consistent with the module's forward (conditional=True, no history).
    B, S = 2, 8
    Z_dim = 4
    hidden_dim = 32
    num_layers = 2
    dynamic_dim = 3
    label_dim = 5
    padding_value = 0.0
    max_seq_len = S
    conditional = True

    key = jax.random.PRNGKey(0)
    k_params, k_z, k_d, k_l = jax.random.split(key, 4)

    params = init_params(k_params, Z_dim, hidden_dim, num_layers,
                         dynamic_dim, label_dim, conditional)

    Z = jax.random.normal(k_z, (B, S, Z_dim), jnp.float32)
    T = jnp.array([8, 5], jnp.int32)                 # per-batch sequence lengths
    D = jax.random.normal(k_d, (B, dynamic_dim), jnp.float32)
    L = jax.random.normal(k_l, (B, label_dim), jnp.float32)

    fwd = jax.jit(functools.partial(generator_rnn_forward,
                                    hidden_dim=hidden_dim,
                                    padding_value=padding_value,
                                    max_seq_len=max_seq_len))
    H = fwd(params, Z, T, D=D, L=L)
    H = jax.block_until_ready(H)

    assert H.shape == (B, S, hidden_dim)
    assert H.dtype == jnp.float32

    # Cross-check against a plain-JAX reference of the same forward pass.
    H_ref = jax.block_until_ready(
        _reference_forward(params, Z, T, D, L, hidden_dim, padding_value))
    np.testing.assert_allclose(np.asarray(H), np.asarray(H_ref),
                               rtol=2e-3, atol=2e-3)

    print("KERNEL_OK")
</pallas_src>

<mosaic_0001>
module attributes {stable_mosaic.version = 11 : i64} {
  func.func @_fused_generator_kernel(%arg0: memref<2x1xi32, #tpu.memory_space<vmem>>, %arg1: memref<2x8x4xf32, #tpu.memory_space<vmem>>, %arg2: memref<3x4x32xf32, #tpu.memory_space<vmem>>, %arg3: memref<3x32x32xf32, #tpu.memory_space<vmem>>, %arg4: memref<4x1x32xf32, #tpu.memory_space<vmem>>, %arg5: memref<3x32x32xf32, #tpu.memory_space<vmem>>, %arg6: memref<3x32x32xf32, #tpu.memory_space<vmem>>, %arg7: memref<4x1x32xf32, #tpu.memory_space<vmem>>, %arg8: memref<2x3xf32, #tpu.memory_space<vmem>>, %arg9: memref<2x5xf32, #tpu.memory_space<vmem>>, %arg10: memref<3x32xf32, #tpu.memory_space<vmem>>, %arg11: memref<5x32xf32, #tpu.memory_space<vmem>>, %arg12: memref<1x32xf32, #tpu.memory_space<vmem>>, %arg13: memref<32x32xf32, #tpu.memory_space<vmem>>, %arg14: memref<32x32xf32, #tpu.memory_space<vmem>>, %arg15: memref<1x32xf32, #tpu.memory_space<vmem>>, %arg16: memref<2x8x32xf32, #tpu.memory_space<vmem>>, %arg17: memref<8x32xf32, #tpu.memory_space<vmem>>) attributes {dimension_semantics = [], scalar_prefetch = 0 : i64, scratch_operands = 1 : i64, tpu.core_type = #tpu.core_type<tc>} {
    %c0 = arith.constant 0 : index
    %c0_0 = arith.constant 0 : index
    %0 = vector.load %arg0[%c0, %c0_0] : memref<2x1xi32, #tpu.memory_space<vmem>>, vector<2x1xi32>
    %c0_1 = arith.constant 0 : index
    %c0_2 = arith.constant 0 : index
    %1 = vector.load %arg14[%c0_1, %c0_2] : memref<32x32xf32, #tpu.memory_space<vmem>>, vector<32x32xf32>
    %c0_3 = arith.constant 0 : index
    %c0_4 = arith.constant 0 : index
    %2 = vector.load %arg15[%c0_3, %c0_4] : memref<1x32xf32, #tpu.memory_space<vmem>>, vector<1x32xf32>
    %c0_5 = arith.constant 0 : index
    %c0_6 = arith.constant 0 : index
    %3 = vector.load %arg8[%c0_5, %c0_6] : memref<2x3xf32, #tpu.memory_space<vmem>>, vector<2x3xf32>
    %c0_7 = arith.constant 0 : index
    %c0_8 = arith.constant 0 : index
    %4 = vector.load %arg10[%c0_7, %c0_8] : memref<3x32xf32, #tpu.memory_space<vmem>>, vector<3x32xf32>
    %cst = arith.constant dense<0.000000e+00> : vector<2x32xf32>
    %5 = tpu.matmul %3, %4, %cst {dimension_numbers = #tpu.dot_dimension_numbers<[1], [0], [0], [1], [0, 0, 1, 1], [], []>} : vector<2x3xf32>, vector<3x32xf32>, vector<2x32xf32> -> vector<2x32xf32>
    %c0_9 = arith.constant 0 : index
    %c0_10 = arith.constant 0 : index
    %6 = vector.load %arg9[%c0_9, %c0_10] : memref<2x5xf32, #tpu.memory_space<vmem>>, vector<2x5xf32>
    %c0_11 = arith.constant 0 : index
    %c0_12 = arith.constant 0 : index
    %7 = vector.load %arg11[%c0_11, %c0_12] : memref<5x32xf32, #tpu.memory_space<vmem>>, vector<5x32xf32>
    %cst_13 = arith.constant dense<0.000000e+00> : vector<2x32xf32>
    %8 = tpu.matmul %6, %7, %cst_13 {dimension_numbers = #tpu.dot_dimension_numbers<[1], [0], [0], [1], [0, 0, 1, 1], [], []>} : vector<2x5xf32>, vector<5x32xf32>, vector<2x32xf32> -> vector<2x32xf32>
    %9 = arith.addf %5, %8 : vector<2x32xf32>
    %c0_14 = arith.constant 0 : index
    %c0_15 = arith.constant 0 : index
    %10 = vector.load %arg12[%c0_14, %c0_15] : memref<1x32xf32, #tpu.memory_space<vmem>>, vector<1x32xf32>
    %11 = vector.broadcast %10 : vector<1x32xf32> to vector<2x32xf32>
    %12 = arith.addf %9, %11 : vector<2x32xf32>
    %c0_16 = arith.constant 0 : index
    %c0_17 = arith.constant 0 : index
    %13 = vector.load %arg13[%c0_16, %c0_17] : memref<32x32xf32, #tpu.memory_space<vmem>>, vector<32x32xf32>
    %cst_18 = arith.constant dense<0.000000e+00> : vector<2x32xf32>
    %14 = tpu.matmul %12, %13, %cst_18 {dimension_numbers = #tpu.dot_dimension_numbers<[1], [0], [0], [1], [0, 0, 1, 1], [], []>} : vector<2x32xf32>, vector<32x32xf32>, vector<2x32xf32> -> vector<2x32xf32>
    %15 = vector.broadcast %2 : vector<1x32xf32> to vector<2x32xf32>
    %16 = arith.addf %14, %15 : vector<2x32xf32>
    %17 = vector.extract_strided_slice %0 {offsets = [0, 0], sizes = [1, 1], strides = [1, 1]} : vector<2x1xi32> to vector<1x1xi32>
    %c0_19 = arith.constant 0 : index
    %c0_20 = arith.constant 0 : index
    %c0_21 = arith.constant 0 : index
    %18 = vector.load %arg1[%c0_19, %c0_20, %c0_21] : memref<2x8x4xf32, #tpu.memory_space<vmem>>, vector<1x8x4xf32>
    %19 = vector.shape_cast %18 : vector<1x8x4xf32> to vector<8x4xf32>
    %c0_22 = arith.constant 0 : index
    %c0_23 = arith.constant 0 : index
    %c0_24 = arith.constant 0 : index
    %20 = vector.load %arg2[%c0_22, %c0_23, %c0_24] : memref<3x4x32xf32, #tpu.memory_space<vmem>>, vector<1x4x32xf32>
    %21 = vector.shape_cast %20 : vector<1x4x32xf32> to vector<4x32xf32>
    %cst_25 = arith.constant dense<0.000000e+00> : vector<8x32xf32>
    %22 = tpu.matmul %19, %21, %cst_25 {dimension_numbers = #tpu.dot_dimension_numbers<[1], [0], [0], [1], [0, 0, 1, 1], [], []>} : vector<8x4xf32>, vector<4x32xf32>, vector<8x32xf32> -> vector<8x32xf32>
    %c0_26 = arith.constant 0 : index
    %c0_27 = arith.constant 0 : index
    %c0_28 = arith.constant 0 : index
    %23 = vector.load %arg4[%c0_26, %c0_27, %c0_28] : memref<4x1x32xf32, #tpu.memory_space<vmem>>, vector<1x1x32xf32>
    %24 = vector.shape_cast %23 : vector<1x1x32xf32> to vector<1x32xf32>
    %25 = vector.broadcast %24 : vector<1x32xf32> to vector<8x32xf32>
    %26 = arith.addf %22, %25 : vector<8x32xf32>
    %c1 = arith.constant 1 : index
    %c0_29 = arith.constant 0 : index
    %c0_30 = arith.constant 0 : index
    %27 = vector.load %arg2[%c1, %c0_29, %c0_30] : memref<3x4x32xf32, #tpu.memory_space<vmem>>, vector<1x4x32xf32>
    %28 = vector.shape_cast %27 : vector<1x4x32xf32> to vector<4x32xf32>
    %cst_31 = arith.constant dense<0.000000e+00> : vector<8x32xf32>
    %29 = tpu.matmul %19, %28, %cst_31 {dimension_numbers = #tpu.dot_dimension_numbers<[1], [0], [0], [1], [0, 0, 1, 1], [], []>} : vector<8x4xf32>, vector<4x32xf32>, vector<8x32xf32> -> vector<8x32xf32>
    %c1_32 = arith.constant 1 : index
    %c0_33 = arith.constant 0 : index
    %c0_34 = arith.constant 0 : index
    %30 = vector.load %arg4[%c1_32, %c0_33, %c0_34] : memref<4x1x32xf32, #tpu.memory_space<vmem>>, vector<1x1x32xf32>
    %31 = vector.shape_cast %30 : vector<1x1x32xf32> to vector<1x32xf32>
    %32 = vector.broadcast %31 : vector<1x32xf32> to vector<8x32xf32>
    %33 = arith.addf %29, %32 : vector<8x32xf32>
    %c2 = arith.constant 2 : index
    %c0_35 = arith.constant 0 : index
    %c0_36 = arith.constant 0 : index
    %34 = vector.load %arg2[%c2, %c0_35, %c0_36] : memref<3x4x32xf32, #tpu.memory_space<vmem>>, vector<1x4x32xf32>
    %35 = vector.shape_cast %34 : vector<1x4x32xf32> to vector<4x32xf32>
    %cst_37 = arith.constant dense<0.000000e+00> : vector<8x32xf32>
    %36 = tpu.matmul %19, %35, %cst_37 {dimension_numbers = #tpu.dot_dimension_numbers<[1], [0], [0], [1], [0, 0, 1, 1], [], []>} : vector<8x4xf32>, vector<4x32xf32>, vector<8x32xf32> -> vector<8x32xf32>
    %c2_38 = arith.constant 2 : index
    %c0_39 = arith.constant 0 : index
    %c0_40 = arith.constant 0 : index
    %37 = vector.load %arg4[%c2_38, %c0_39, %c0_40] : memref<4x1x32xf32, #tpu.memory_space<vmem>>, vector<1x1x32xf32>
    %38 = vector.shape_cast %37 : vector<1x1x32xf32> to vector<1x32xf32>
    %39 = vector.broadcast %38 : vector<1x32xf32> to vector<8x32xf32>
    %40 = arith.addf %36, %39 : vector<8x32xf32>
    %c0_41 = arith.constant 0 : index
    %c0_42 = arith.constant 0 : index
    %c0_43 = arith.constant 0 : index
    %41 = vector.load %arg3[%c0_41, %c0_42, %c0_43] : memref<3x32x32xf32, #tpu.memory_space<vmem>>, vector<1x32x32xf32>
    %42 = vector.shape_cast %41 : vector<1x32x32xf32> to vector<32x32xf32>
    %c1_44 = arith.constant 1 : index
    %c0_45 = arith.constant 0 : index
    %c0_46 = arith.constant 0 : index
    %43 = vector.load %arg3[%c1_44, %c0_45, %c0_46] : memref<3x32x32xf32, #tpu.memory_space<vmem>>, vector<1x32x32xf32>
    %44 = vector.shape_cast %43 : vector<1x32x32xf32> to vector<32x32xf32>
    %c2_47 = arith.constant 2 : index
    %c0_48 = arith.constant 0 : index
    %c0_49 = arith.constant 0 : index
    %45 = vector.load %arg3[%c2_47, %c0_48, %c0_49] : memref<3x32x32xf32, #tpu.memory_space<vmem>>, vector<1x32x32xf32>
    %46 = vector.shape_cast %45 : vector<1x32x32xf32> to vector<32x32xf32>
    %c3 = arith.constant 3 : index
    %c0_50 = arith.constant 0 : index
    %c0_51 = arith.constant 0 : index
    %47 = vector.load %arg4[%c3, %c0_50, %c0_51] : memref<4x1x32xf32, #tpu.memory_space<vmem>>, vector<1x1x32xf32>
    %48 = vector.shape_cast %47 : vector<1x1x32xf32> to vector<1x32xf32>
    %cst_52 = arith.constant 0.000000e+00 : f32
    %49 = vector.broadcast %cst_52 : f32 to vector<1x32xf32>
    %cst_53 = arith.constant dense<0.000000e+00> : vector<1x32xf32>
    %50 = tpu.matmul %49, %42, %cst_53 {dimension_numbers = #tpu.dot_dimension_numbers<[1], [0], [0], [1], [0, 0, 1, 1], [], []>} : vector<1x32xf32>, vector<32x32xf32>, vector<1x32xf32> -> vector<1x32xf32>
    %cst_54 = arith.constant dense<0.000000e+00> : vector<1x32xf32>
    %51 = tpu.matmul %49, %44, %cst_54 {dimension_numbers = #tpu.dot_dimension_numbers<[1], [0], [0], [1], [0, 0, 1, 1], [], []>} : vector<1x32xf32>, vector<32x32xf32>, vector<1x32xf32> -> vector<1x32xf32>
    %cst_55 = arith.constant dense<0.000000e+00> : vector<1x32xf32>
    %52 = tpu.matmul %49, %46, %cst_55 {dimension_numbers = #tpu.dot_dimension_numbers<[1], [0], [0], [1], [0, 0, 1, 1], [], []>} : vector<1x32xf32>, vector<32x32xf32>, vector<1x32xf32> -> vector<1x32xf32>
    %53 = vector.extract_strided_slice %26 {offsets = [0, 0], sizes = [1, 32], strides = [1, 1]} : vector<8x32xf32> to vector<1x32xf32>
    %54 = arith.addf %53, %50 : vector<1x32xf32>
    %55 = arith.negf %54 : vector<1x32xf32>
    %56 = math.exp %55 : vector<1x32xf32>
    %cst_56 = arith.constant 1.000000e+00 : f32
    %57 = vector.broadcast %cst_56 : f32 to vector<1x32xf32>
    %58 = arith.addf %57, %56 : vector<1x32xf32>
    %59 = arith.divf %57, %58 : vector<1x32xf32>
    %60 = vector.extract_strided_slice %33 {offsets = [0, 0], sizes = [1, 32], strides = [1, 1]} : vector<8x32xf32> to vector<1x32xf32>
    %61 = arith.addf %60, %51 : vector<1x32xf32>
    %62 = arith.negf %61 : vector<1x32xf32>
    %63 = math.exp %62 : vector<1x32xf32>
    %cst_57 = arith.constant 1.000000e+00 : f32
    %64 = vector.broadcast %cst_57 : f32 to vector<1x32xf32>
    %65 = arith.addf %64, %63 : vector<1x32xf32>
    %66 = arith.divf %64, %65 : vector<1x32xf32>
    %67 = vector.extract_strided_slice %40 {offsets = [0, 0], sizes = [1, 32], strides = [1, 1]} : vector<8x32xf32> to vector<1x32xf32>
    %68 = arith.addf %52, %48 : vector<1x32xf32>
    %69 = arith.mulf %59, %68 : vector<1x32xf32>
    %70 = arith.addf %67, %69 : vector<1x32xf32>
    %71 = math.tanh %70 : vector<1x32xf32>
    %cst_58 = arith.constant 1.000000e+00 : f32
    %72 = vector.broadcast %cst_58 : f32 to vector<1x32xf32>
    %73 = arith.subf %72, %66 : vector<1x32xf32>
    %74 = arith.mulf %73, %71 : vector<1x32xf32>
    %75 = arith.mulf %66, %49 : vector<1x32xf32>
    %76 = arith.addf %74, %75 : vector<1x32xf32>
    %c0_i32 = arith.constant 0 : i32
    %77 = vector.broadcast %c0_i32 : i32 to vector<1x1xi32>
    %78 = arith.cmpi sgt, %17, %77 : vector<1x1xi32>
    %79 = vector.shape_cast %78 : vector<1x1xi1> to vector<1x1xi1>
    %80 = vector.broadcast %79 : vector<1x1xi1> to vector<1x32xi1>
    %81 = arith.select %80, %76, %49 : vector<1x32xi1>, vector<1x32xf32>
    %c0_59 = arith.constant 0 : index
    %c0_60 = arith.constant 0 : index
    %82 = vector.load %arg17[%c0_59, %c0_60] : memref<8x32xf32, #tpu.memory_space<vmem>>, vector<1x32xf32>
    tpu.vector_store %arg17[%c0_59, %c0_60], %81 {strides = array<i32>} : memref<8x32xf32, #tpu.memory_space<vmem>>, vector<1x32xf32>,
    %cst_61 = arith.constant dense<0.000000e+00> : vector<1x32xf32>
    %83 = tpu.matmul %81, %42, %cst_61 {dimension_numbers = #tpu.dot_dimension_numbers<[1], [0], [0], [1], [0, 0, 1, 1], [], []>} : vector<1x32xf32>, vector<32x32xf32>, vector<1x32xf32> -> vector<1x32xf32>
    %cst_62 = arith.constant dense<0.000000e+00> : vector<1x32xf32>
    %84 = tpu.matmul %81, %44, %cst_62 {dimension_numbers = #tpu.dot_dimension_numbers<[1], [0], [0], [1], [0, 0, 1, 1], [], []>} : vector<1x32xf32>, vector<32x32xf32>, vector<1x32xf32> -> vector<1x32xf32>
    %cst_63 = arith.constant dense<0.000000e+00> : vector<1x32xf32>
    %85 = tpu.matmul %81, %46, %cst_63 {dimension_numbers = #tpu.dot_dimension_numbers<[1], [0], [0], [1], [0, 0, 1, 1], [], []>} : vector<1x32xf32>, vector<32x32xf32>, vector<1x32xf32> -> vector<1x32xf32>
    %86 = vector.extract_strided_slice %26 {offsets = [1, 0], sizes = [1, 32], strides = [1, 1]} : vector<8x32xf32> to vector<1x32xf32>
    %87 = arith.addf %86, %83 : vector<1x32xf32>
    %88 = arith.negf %87 : vector<1x32xf32>
    %89 = math.exp %88 : vector<1x32xf32>
    %cst_64 = arith.constant 1.000000e+00 : f32
    %90 = vector.broadcast %cst_64 : f32 to vector<1x32xf32>
    %91 = arith.addf %90, %89 : vector<1x32xf32>
    %92 = arith.divf %90, %91 : vector<1x32xf32>
    %93 = vector.extract_strided_slice %33 {offsets = [1, 0], sizes = [1, 32], strides = [1, 1]} : vector<8x32xf32> to vector<1x32xf32>
    %94 = arith.addf %93, %84 : vector<1x32xf32>
    %95 = arith.negf %94 : vector<1x32xf32>
    %96 = math.exp %95 : vector<1x32xf32>
    %cst_65 = arith.constant 1.000000e+00 : f32
    %97 = vector.broadcast %cst_65 : f32 to vector<1x32xf32>
    %98 = arith.addf %97, %96 : vector<1x32xf32>
    %99 = arith.divf %97, %98 : vector<1x32xf32>
    %100 = vector.extract_strided_slice %40 {offsets = [1, 0], sizes = [1, 32], strides = [1, 1]} : vector<8x32xf32> to vector<1x32xf32>
    %101 = arith.addf %85, %48 : vector<1x32xf32>
    %102 = arith.mulf %92, %101 : vector<1x32xf32>
    %103 = arith.addf %100, %102 : vector<1x32xf32>
    %104 = math.tanh %103 : vector<1x32xf32>
    %cst_66 = arith.constant 1.000000e+00 : f32
    %105 = vector.broadcast %cst_66 : f32 to vector<1x32xf32>
    %106 = arith.subf %105, %99 : vector<1x32xf32>
    %107 = arith.mulf %106, %104 : vector<1x32xf32>
    %108 = arith.mulf %99, %81 : vector<1x32xf32>
    %109 = arith.addf %107, %108 : vector<1x32xf32>
    %c1_i32 = arith.constant 1 : i32
    %110 = vector.broadcast %c1_i32 : i32 to vector<1x1xi32>
    %111 = arith.cmpi sgt, %17, %110 : vector<1x1xi32>
    %112 = vector.shape_cast %111 : vector<1x1xi1> to vector<1x1xi1>
    %113 = vector.broadcast %112 : vector<1x1xi1> to vector<1x32xi1>
    %114 = arith.select %113, %109, %81 : vector<1x32xi1>, vector<1x32xf32>
    %c1_67 = arith.constant 1 : index
    %c0_68 = arith.constant 0 : index
    %115 = vector.load %arg17[%c1_67, %c0_68] : memref<8x32xf32, #tpu.memory_space<vmem>>, vector<1x32xf32>
    tpu.vector_store %arg17[%c1_67, %c0_68], %114 {strides = array<i32>} : memref<8x32xf32, #tpu.memory_space<vmem>>, vector<1x32xf32>,
    %cst_69 = arith.constant dense<0.000000e+00> : vector<1x32xf32>
    %116 = tpu.matmul %114, %42, %cst_69 {dimension_numbers = #tpu.dot_dimension_numbers<[1], [0], [0], [1], [0, 0, 1, 1], [], []>} : vector<1x32xf32>, vector<32x32xf32>, vector<1x32xf32> -> vector<1x32xf32>
    %cst_70 = arith.constant dense<0.000000e+00> : vector<1x32xf32>
    %117 = tpu.matmul %114, %44, %cst_70 {dimension_numbers = #tpu.dot_dimension_numbers<[1], [0], [0], [1], [0, 0, 1, 1], [], []>} : vector<1x32xf32>, vector<32x32xf32>, vector<1x32xf32> -> vector<1x32xf32>
    %cst_71 = arith.constant dense<0.000000e+00> : vector<1x32xf32>
    %118 = tpu.matmul %114, %46, %cst_71 {dimension_numbers = #tpu.dot_dimension_numbers<[1], [0], [0], [1], [0, 0, 1, 1], [], []>} : vector<1x32xf32>, vector<32x32xf32>, vector<1x32xf32> -> vector<1x32xf32>
    %119 = vector.extract_strided_slice %26 {offsets = [2, 0], sizes = [1, 32], strides = [1, 1]} : vector<8x32xf32> to vector<1x32xf32>
    %120 = arith.addf %119, %116 : vector<1x32xf32>
    %121 = arith.negf %120 : vector<1x32xf32>
    %122 = math.exp %121 : vector<1x32xf32>
    %cst_72 = arith.constant 1.000000e+00 : f32
    %123 = vector.broadcast %cst_72 : f32 to vector<1x32xf32>
    %124 = arith.addf %123, %122 : vector<1x32xf32>
    %125 = arith.divf %123, %124 : vector<1x32xf32>
    %126 = vector.extract_strided_slice %33 {offsets = [2, 0], sizes = [1, 32], strides = [1, 1]} : vector<8x32xf32> to vector<1x32xf32>
    %127 = arith.addf %126, %117 : vector<1x32xf32>
    %128 = arith.negf %127 : vector<1x32xf32>
    %129 = math.exp %128 : vector<1x32xf32>
    %cst_73 = arith.constant 1.000000e+00 : f32
    %130 = vector.broadcast %cst_73 : f32 to vector<1x32xf32>
    %131 = arith.addf %130, %129 : vector<1x32xf32>
    %132 = arith.divf %130, %131 : vector<1x32xf32>
    %133 = vector.extract_strided_slice %40 {offsets = [2, 0], sizes = [1, 32], strides = [1, 1]} : vector<8x32xf32> to vector<1x32xf32>
    %134 = arith.addf %118, %48 : vector<1x32xf32>
    %135 = arith.mulf %125, %134 : vector<1x32xf32>
    %136 = arith.addf %133, %135 : vector<1x32xf32>
    %137 = math.tanh %136 : vector<1x32xf32>
    %cst_74 = arith.constant 1.000000e+00 : f32
    %138 = vector.broadcast %cst_74 : f32 to vector<1x32xf32>
    %139 = arith.subf %138, %132 : vector<1x32xf32>
    %140 = arith.mulf %139, %137 : vector<1x32xf32>
    %141 = arith.mulf %132, %114 : vector<1x32xf32>
    %142 = arith.addf %140, %141 : vector<1x32xf32>
    %c2_i32 = arith.constant 2 : i32
    %143 = vector.broadcast %c2_i32 : i32 to vector<1x1xi32>
    %144 = arith.cmpi sgt, %17, %143 : vector<1x1xi32>
    %145 = vector.shape_cast %144 : vector<1x1xi1> to vector<1x1xi1>
    %146 = vector.broadcast %145 : vector<1x1xi1> to vector<1x32xi1>
    %147 = arith.select %146, %142, %114 : vector<1x32xi1>, vector<1x32xf32>
    %c2_75 = arith.constant 2 : index
    %c0_76 = arith.constant 0 : index
    %148 = vector.load %arg17[%c2_75, %c0_76] : memref<8x32xf32, #tpu.memory_space<vmem>>, vector<1x32xf32>
    tpu.vector_store %arg17[%c2_75, %c0_76], %147 {strides = array<i32>} : memref<8x32xf32, #tpu.memory_space<vmem>>, vector<1x32xf32>,
    %cst_77 = arith.constant dense<0.000000e+00> : vector<1x32xf32>
    %149 = tpu.matmul %147, %42, %cst_77 {dimension_numbers = #tpu.dot_dimension_numbers<[1], [0], [0], [1], [0, 0, 1, 1], [], []>} : vector<1x32xf32>, vector<32x32xf32>, vector<1x32xf32> -> vector<1x32xf32>
    %cst_78 = arith.constant dense<0.000000e+00> : vector<1x32xf32>
    %150 = tpu.matmul %147, %44, %cst_78 {dimension_numbers = #tpu.dot_dimension_numbers<[1], [0], [0], [1], [0, 0, 1, 1], [], []>} : vector<1x32xf32>, vector<32x32xf32>, vector<1x32xf32> -> vector<1x32xf32>
    %cst_79 = arith.constant dense<0.000000e+00> : vector<1x32xf32>
    %151 = tpu.matmul %147, %46, %cst_79 {dimension_numbers = #tpu.dot_dimension_numbers<[1], [0], [0], [1], [0, 0, 1, 1], [], []>} : vector<1x32xf32>, vector<32x32xf32>, vector<1x32xf32> -> vector<1x32xf32>
    %152 = vector.extract_strided_slice %26 {offsets = [3, 0], sizes = [1, 32], strides = [1, 1]} : vector<8x32xf32> to vector<1x32xf32>
    %153 = arith.addf %152, %149 : vector<1x32xf32>
    %154 = arith.negf %153 : vector<1x32xf32>
    %155 = math.exp %154 : vector<1x32xf32>
    %cst_80 = arith.constant 1.000000e+00 : f32
    %156 = vector.broadcast %cst_80 : f32 to vector<1x32xf32>
    %157 = arith.addf %156, %155 : vector<1x32xf32>
    %158 = arith.divf %156, %157 : vector<1x32xf32>
    %159 = vector.extract_strided_slice %33 {offsets = [3, 0], sizes = [1, 32], strides = [1, 1]} : vector<8x32xf32> to vector<1x32xf32>
    %160 = arith.addf %159, %150 : vector<1x32xf32>
    %161 = arith.negf %160 : vector<1x32xf32>
    %162 = math.exp %161 : vector<1x32xf32>
    %cst_81 = arith.constant 1.000000e+00 : f32
    %163 = vector.broadcast %cst_81 : f32 to vector<1x32xf32>
    %164 = arith.addf %163, %162 : vector<1x32xf32>
    %165 = arith.divf %163, %164 : vector<1x32xf32>
    %166 = vector.extract_strided_slice %40 {offsets = [3, 0], sizes = [1, 32], strides = [1, 1]} : vector<8x32xf32> to vector<1x32xf32>
    %167 = arith.addf %151, %48 : vector<1x32xf32>
    %168 = arith.mulf %158, %167 : vector<1x32xf32>
    %169 = arith.addf %166, %168 : vector<1x32xf32>
    %170 = math.tanh %169 : vector<1x32xf32>
    %cst_82 = arith.constant 1.000000e+00 : f32
    %171 = vector.broadcast %cst_82 : f32 to vector<1x32xf32>
    %172 = arith.subf %171, %165 : vector<1x32xf32>
    %173 = arith.mulf %172, %170 : vector<1x32xf32>
    %174 = arith.mulf %165, %147 : vector<1x32xf32>
    %175 = arith.addf %173, %174 : vector<1x32xf32>
    %c3_i32 = arith.constant 3 : i32
    %176 = vector.broadcast %c3_i32 : i32 to vector<1x1xi32>
    %177 = arith.cmpi sgt, %17, %176 : vector<1x1xi32>
    %178 = vector.shape_cast %177 : vector<1x1xi1> to vector<1x1xi1>
    %179 = vector.broadcast %178 : vector<1x1xi1> to vector<1x32xi1>
    %180 = arith.select %179, %175, %147 : vector<1x32xi1>, vector<1x32xf32>
    %c3_83 = arith.constant 3 : index
    %c0_84 = arith.constant 0 : index
    %181 = vector.load %arg17[%c3_83, %c0_84] : memref<8x32xf32, #tpu.memory_space<vmem>>, vector<1x32xf32>
    tpu.vector_store %arg17[%c3_83, %c0_84], %180 {strides = array<i32>} : memref<8x32xf32, #tpu.memory_space<vmem>>, vector<1x32xf32>,
    %cst_85 = arith.constant dense<0.000000e+00> : vector<1x32xf32>
    %182 = tpu.matmul %180, %42, %cst_85 {dimension_numbers = #tpu.dot_dimension_numbers<[1], [0], [0], [1], [0, 0, 1, 1], [], []>} : vector<1x32xf32>, vector<32x32xf32>, vector<1x32xf32> -> vector<1x32xf32>
    %cst_86 = arith.constant dense<0.000000e+00> : vector<1x32xf32>
    %183 = tpu.matmul %180, %44, %cst_86 {dimension_numbers = #tpu.dot_dimension_numbers<[1], [0], [0], [1], [0, 0, 1, 1], [], []>} : vector<1x32xf32>, vector<32x32xf32>, vector<1x32xf32> -> vector<1x32xf32>
    %cst_87 = arith.constant dense<0.000000e+00> : vector<1x32xf32>
    %184 = tpu.matmul %180, %46, %cst_87 {dimension_numbers = #tpu.dot_dimension_numbers<[1], [0], [0], [1], [0, 0, 1, 1], [], []>} : vector<1x32xf32>, vector<32x32xf32>, vector<1x32xf32> -> vector<1x32xf32>
    %185 = vector.extract_strided_slice %26 {offsets = [4, 0], sizes = [1, 32], strides = [1, 1]} : vector<8x32xf32> to vector<1x32xf32>
    %186 = arith.addf %185, %182 : vector<1x32xf32>
    %187 = arith.negf %186 : vector<1x32xf32>
    %188 = math.exp %187 : vector<1x32xf32>
    %cst_88 = arith.constant 1.000000e+00 : f32
    %189 = vector.broadcast %cst_88 : f32 to vector<1x32xf32>
    %190 = arith.addf %189, %188 : vector<1x32xf32>
    %191 = arith.divf %189, %190 : vector<1x32xf32>
    %192 = vector.extract_strided_slice %33 {offsets = [4, 0], sizes = [1, 32], strides = [1, 1]} : vector<8x32xf32> to vector<1x32xf32>
    %193 = arith.addf %192, %183 : vector<1x32xf32>
    %194 = arith.negf %193 : vector<1x32xf32>
    %195 = math.exp %194 : vector<1x32xf32>
    %cst_89 = arith.constant 1.000000e+00 : f32
    %196 = vector.broadcast %cst_89 : f32 to vector<1x32xf32>
    %197 = arith.addf %196, %195 : vector<1x32xf32>
    %198 = arith.divf %196, %197 : vector<1x32xf32>
    %199 = vector.extract_strided_slice %40 {offsets = [4, 0], sizes = [1, 32], strides = [1, 1]} : vector<8x32xf32> to vector<1x32xf32>
    %200 = arith.addf %184, %48 : vector<1x32xf32>
    %201 = arith.mulf %191, %200 : vector<1x32xf32>
    %202 = arith.addf %199, %201 : vector<1x32xf32>
    %203 = math.tanh %202 : vector<1x32xf32>
    %cst_90 = arith.constant 1.000000e+00 : f32
    %204 = vector.broadcast %cst_90 : f32 to vector<1x32xf32>
    %205 = arith.subf %204, %198 : vector<1x32xf32>
    %206 = arith.mulf %205, %203 : vector<1x32xf32>
    %207 = arith.mulf %198, %180 : vector<1x32xf32>
    %208 = arith.addf %206, %207 : vector<1x32xf32>
    %c4_i32 = arith.constant 4 : i32
    %209 = vector.broadcast %c4_i32 : i32 to vector<1x1xi32>
    %210 = arith.cmpi sgt, %17, %209 : vector<1x1xi32>
    %211 = vector.shape_cast %210 : vector<1x1xi1> to vector<1x1xi1>
    %212 = vector.broadcast %211 : vector<1x1xi1> to vector<1x32xi1>
    %213 = arith.select %212, %208, %180 : vector<1x32xi1>, vector<1x32xf32>
    %c4 = arith.constant 4 : index
    %c0_91 = arith.constant 0 : index
    %214 = vector.load %arg17[%c4, %c0_91] : memref<8x32xf32, #tpu.memory_space<vmem>>, vector<1x32xf32>
    tpu.vector_store %arg17[%c4, %c0_91], %213 {strides = array<i32>} : memref<8x32xf32, #tpu.memory_space<vmem>>, vector<1x32xf32>,
    %cst_92 = arith.constant dense<0.000000e+00> : vector<1x32xf32>
    %215 = tpu.matmul %213, %42, %cst_92 {dimension_numbers = #tpu.dot_dimension_numbers<[1], [0], [0], [1], [0, 0, 1, 1], [], []>} : vector<1x32xf32>, vector<32x32xf32>, vector<1x32xf32> -> vector<1x32xf32>
    %cst_93 = arith.constant dense<0.000000e+00> : vector<1x32xf32>
    %216 = tpu.matmul %213, %44, %cst_93 {dimension_numbers = #tpu.dot_dimension_numbers<[1], [0], [0], [1], [0, 0, 1, 1], [], []>} : vector<1x32xf32>, vector<32x32xf32>, vector<1x32xf32> -> vector<1x32xf32>
    %cst_94 = arith.constant dense<0.000000e+00> : vector<1x32xf32>
    %217 = tpu.matmul %213, %46, %cst_94 {dimension_numbers = #tpu.dot_dimension_numbers<[1], [0], [0], [1], [0, 0, 1, 1], [], []>} : vector<1x32xf32>, vector<32x32xf32>, vector<1x32xf32> -> vector<1x32xf32>
    %218 = vector.extract_strided_slice %26 {offsets = [5, 0], sizes = [1, 32], strides = [1, 1]} : vector<8x32xf32> to vector<1x32xf32>
    %219 = arith.addf %218, %215 : vector<1x32xf32>
    %220 = arith.negf %219 : vector<1x32xf32>
    %221 = math.exp %220 : vector<1x32xf32>
    %cst_95 = arith.constant 1.000000e+00 : f32
    %222 = vector.broadcast %cst_95 : f32 to vector<1x32xf32>
    %223 = arith.addf %222, %221 : vector<1x32xf32>
    %224 = arith.divf %222, %223 : vector<1x32xf32>
    %225 = vector.extract_strided_slice %33 {offsets = [5, 0], sizes = [1, 32], strides = [1, 1]} : vector<8x32xf32> to vector<1x32xf32>
    %226 = arith.addf %225, %216 : vector<1x32xf32>
    %227 = arith.negf %226 : vector<1x32xf32>
    %228 = math.exp %227 : vector<1x32xf32>
    %cst_96 = arith.constant 1.000000e+00 : f32
    %229 = vector.broadcast %cst_96 : f32 to vector<1x32xf32>
    %230 = arith.addf %229, %228 : vector<1x32xf32>
    %231 = arith.divf %229, %230 : vector<1x32xf32>
    %232 = vector.extract_strided_slice %40 {offsets = [5, 0], sizes = [1, 32], strides = [1, 1]} : vector<8x32xf32> to vector<1x32xf32>
    %233 = arith.addf %217, %48 : vector<1x32xf32>
    %234 = arith.mulf %224, %233 : vector<1x32xf32>
    %235 = arith.addf %232, %234 : vector<1x32xf32>
    %236 = math.tanh %235 : vector<1x32xf32>
    %cst_97 = arith.constant 1.000000e+00 : f32
    %237 = vector.broadcast %cst_97 : f32 to vector<1x32xf32>
    %238 = arith.subf %237, %231 : vector<1x32xf32>
    %239 = arith.mulf %238, %236 : vector<1x32xf32>
    %240 = arith.mulf %231, %213 : vector<1x32xf32>
    %241 = arith.addf %239, %240 : vector<1x32xf32>
    %c5_i32 = arith.constant 5 : i32
    %242 = vector.broadcast %c5_i32 : i32 to vector<1x1xi32>
    %243 = arith.cmpi sgt, %17, %242 : vector<1x1xi32>
    %244 = vector.shape_cast %243 : vector<1x1xi1> to vector<1x1xi1>
    %245 = vector.broadcast %244 : vector<1x1xi1> to vector<1x32xi1>
    %246 = arith.select %245, %241, %213 : vector<1x32xi1>, vector<1x32xf32>
    %c5 = arith.constant 5 : index
    %c0_98 = arith.constant 0 : index
    %247 = vector.load %arg17[%c5, %c0_98] : memref<8x32xf32, #tpu.memory_space<vmem>>, vector<1x32xf32>
    tpu.vector_store %arg17[%c5, %c0_98], %246 {strides = array<i32>} : memref<8x32xf32, #tpu.memory_space<vmem>>, vector<1x32xf32>,
    %cst_99 = arith.constant dense<0.000000e+00> : vector<1x32xf32>
    %248 = tpu.matmul %246, %42, %cst_99 {dimension_numbers = #tpu.dot_dimension_numbers<[1], [0], [0], [1], [0, 0, 1, 1], [], []>} : vector<1x32xf32>, vector<32x32xf32>, vector<1x32xf32> -> vector<1x32xf32>
    %cst_100 = arith.constant dense<0.000000e+00> : vector<1x32xf32>
    %249 = tpu.matmul %246, %44, %cst_100 {dimension_numbers = #tpu.dot_dimension_numbers<[1], [0], [0], [1], [0, 0, 1, 1], [], []>} : vector<1x32xf32>, vector<32x32xf32>, vector<1x32xf32> -> vector<1x32xf32>
    %cst_101 = arith.constant dense<0.000000e+00> : vector<1x32xf32>
    %250 = tpu.matmul %246, %46, %cst_101 {dimension_numbers = #tpu.dot_dimension_numbers<[1], [0], [0], [1], [0, 0, 1, 1], [], []>} : vector<1x32xf32>, vector<32x32xf32>, vector<1x32xf32> -> vector<1x32xf32>
    %251 = vector.extract_strided_slice %26 {offsets = [6, 0], sizes = [1, 32], strides = [1, 1]} : vector<8x32xf32> to vector<1x32xf32>
    %252 = arith.addf %251, %248 : vector<1x32xf32>
    %253 = arith.negf %252 : vector<1x32xf32>
    %254 = math.exp %253 : vector<1x32xf32>
    %cst_102 = arith.constant 1.000000e+00 : f32
    %255 = vector.broadcast %cst_102 : f32 to vector<1x32xf32>
    %256 = arith.addf %255, %254 : vector<1x32xf32>
    %257 = arith.divf %255, %256 : vector<1x32xf32>
    %258 = vector.extract_strided_slice %33 {offsets = [6, 0], sizes = [1, 32], strides = [1, 1]} : vector<8x32xf32> to vector<1x32xf32>
    %259 = arith.addf %258, %249 : vector<1x32xf32>
    %260 = arith.negf %259 : vector<1x32xf32>
    %261 = math.exp %260 : vector<1x32xf32>
    %cst_103 = arith.constant 1.000000e+00 : f32
    %262 = vector.broadcast %cst_103 : f32 to vector<1x32xf32>
    %263 = arith.addf %262, %261 : vector<1x32xf32>
    %264 = arith.divf %262, %263 : vector<1x32xf32>
    %265 = vector.extract_strided_slice %40 {offsets = [6, 0], sizes = [1, 32], strides = [1, 1]} : vector<8x32xf32> to vector<1x32xf32>
    %266 = arith.addf %250, %48 : vector<1x32xf32>
    %267 = arith.mulf %257, %266 : vector<1x32xf32>
    %268 = arith.addf %265, %267 : vector<1x32xf32>
    %269 = math.tanh %268 : vector<1x32xf32>
    %cst_104 = arith.constant 1.000000e+00 : f32
    %270 = vector.broadcast %cst_104 : f32 to vector<1x32xf32>
    %271 = arith.subf %270, %264 : vector<1x32xf32>
    %272 = arith.mulf %271, %269 : vector<1x32xf32>
    %273 = arith.mulf %264, %246 : vector<1x32xf32>
    %274 = arith.addf %272, %273 : vector<1x32xf32>
    %c6_i32 = arith.constant 6 : i32
    %275 = vector.broadcast %c6_i32 : i32 to vector<1x1xi32>
    %276 = arith.cmpi sgt, %17, %275 : vector<1x1xi32>
    %277 = vector.shape_cast %276 : vector<1x1xi1> to vector<1x1xi1>
    %278 = vector.broadcast %277 : vector<1x1xi1> to vector<1x32xi1>
    %279 = arith.select %278, %274, %246 : vector<1x32xi1>, vector<1x32xf32>
    %c6 = arith.constant 6 : index
    %c0_105 = arith.constant 0 : index
    %280 = vector.load %arg17[%c6, %c0_105] : memref<8x32xf32, #tpu.memory_space<vmem>>, vector<1x32xf32>
    tpu.vector_store %arg17[%c6, %c0_105], %279 {strides = array<i32>} : memref<8x32xf32, #tpu.memory_space<vmem>>, vector<1x32xf32>,
    %cst_106 = arith.constant dense<0.000000e+00> : vector<1x32xf32>
    %281 = tpu.matmul %279, %42, %cst_106 {dimension_numbers = #tpu.dot_dimension_numbers<[1], [0], [0], [1], [0, 0, 1, 1], [], []>} : vector<1x32xf32>, vector<32x32xf32>, vector<1x32xf32> -> vector<1x32xf32>
    %cst_107 = arith.constant dense<0.000000e+00> : vector<1x32xf32>
    %282 = tpu.matmul %279, %44, %cst_107 {dimension_numbers = #tpu.dot_dimension_numbers<[1], [0], [0], [1], [0, 0, 1, 1], [], []>} : vector<1x32xf32>, vector<32x32xf32>, vector<1x32xf32> -> vector<1x32xf32>
    %cst_108 = arith.constant dense<0.000000e+00> : vector<1x32xf32>
    %283 = tpu.matmul %279, %46, %cst_108 {dimension_numbers = #tpu.dot_dimension_numbers<[1], [0], [0], [1], [0, 0, 1, 1], [], []>} : vector<1x32xf32>, vector<32x32xf32>, vector<1x32xf32> -> vector<1x32xf32>
    %284 = vector.extract_strided_slice %26 {offsets = [7, 0], sizes = [1, 32], strides = [1, 1]} : vector<8x32xf32> to vector<1x32xf32>
    %285 = arith.addf %284, %281 : vector<1x32xf32>
    %286 = arith.negf %285 : vector<1x32xf32>
    %287 = math.exp %286 : vector<1x32xf32>
    %cst_109 = arith.constant 1.000000e+00 : f32
    %288 = vector.broadcast %cst_109 : f32 to vector<1x32xf32>
    %289 = arith.addf %288, %287 : vector<1x32xf32>
    %290 = arith.divf %288, %289 : vector<1x32xf32>
    %291 = vector.extract_strided_slice %33 {offsets = [7, 0], sizes = [1, 32], strides = [1, 1]} : vector<8x32xf32> to vector<1x32xf32>
    %292 = arith.addf %291, %282 : vector<1x32xf32>
    %293 = arith.negf %292 : vector<1x32xf32>
    %294 = math.exp %293 : vector<1x32xf32>
    %cst_110 = arith.constant 1.000000e+00 : f32
    %295 = vector.broadcast %cst_110 : f32 to vector<1x32xf32>
    %296 = arith.addf %295, %294 : vector<1x32xf32>
    %297 = arith.divf %295, %296 : vector<1x32xf32>
    %298 = vector.extract_strided_slice %40 {offsets = [7, 0], sizes = [1, 32], strides = [1, 1]} : vector<8x32xf32> to vector<1x32xf32>
    %299 = arith.addf %283, %48 : vector<1x32xf32>
    %300 = arith.mulf %290, %299 : vector<1x32xf32>
    %301 = arith.addf %298, %300 : vector<1x32xf32>
    %302 = math.tanh %301 : vector<1x32xf32>
    %cst_111 = arith.constant 1.000000e+00 : f32
    %303 = vector.broadcast %cst_111 : f32 to vector<1x32xf32>
    %304 = arith.subf %303, %297 : vector<1x32xf32>
    %305 = arith.mulf %304, %302 : vector<1x32xf32>
    %306 = arith.mulf %297, %279 : vector<1x32xf32>
    %307 = arith.addf %305, %306 : vector<1x32xf32>
    %c7_i32 = arith.constant 7 : i32
    %308 = vector.broadcast %c7_i32 : i32 to vector<1x1xi32>
    %309 = arith.cmpi sgt, %17, %308 : vector<1x1xi32>
    %310 = vector.shape_cast %309 : vector<1x1xi1> to vector<1x1xi1>
    %311 = vector.broadcast %310 : vector<1x1xi1> to vector<1x32xi1>
    %312 = arith.select %311, %307, %279 : vector<1x32xi1>, vector<1x32xf32>
    %c7 = arith.constant 7 : index
    %c0_112 = arith.constant 0 : index
    %313 = vector.load %arg17[%c7, %c0_112] : memref<8x32xf32, #tpu.memory_space<vmem>>, vector<1x32xf32>
    tpu.vector_store %arg17[%c7, %c0_112], %312 {strides = array<i32>} : memref<8x32xf32, #tpu.memory_space<vmem>>, vector<1x32xf32>,
    %c0_113 = arith.constant 0 : index
    %c0_114 = arith.constant 0 : index
    %314 = vector.load %arg17[%c0_113, %c0_114] : memref<8x32xf32, #tpu.memory_space<vmem>>, vector<8x32xf32>
    %c0_115 = arith.constant 0 : index
    %c0_116 = arith.constant 0 : index
    %c0_117 = arith.constant 0 : index
    %315 = vector.load %arg5[%c0_115, %c0_116, %c0_117] : memref<3x32x32xf32, #tpu.memory_space<vmem>>, vector<1x32x32xf32>
    %316 = vector.shape_cast %315 : vector<1x32x32xf32> to vector<32x32xf32>
    %cst_118 = arith.constant dense<0.000000e+00> : vector<8x32xf32>
    %317 = tpu.matmul %314, %316, %cst_118 {dimension_numbers = #tpu.dot_dimension_numbers<[1], [0], [0], [1], [0, 0, 1, 1], [], []>} : vector<8x32xf32>, vector<32x32xf32>, vector<8x32xf32> -> vector<8x32xf32>
    %c0_119 = arith.constant 0 : index
    %c0_120 = arith.constant 0 : index
    %c0_121 = arith.constant 0 : index
    %318 = vector.load %arg7[%c0_119, %c0_120, %c0_121] : memref<4x1x32xf32, #tpu.memory_space<vmem>>, vector<1x1x32xf32>
    %319 = vector.shape_cast %318 : vector<1x1x32xf32> to vector<1x32xf32>
    %320 = vector.broadcast %319 : vector<1x32xf32> to vector<8x32xf32>
    %321 = arith.addf %317, %320 : vector<8x32xf32>
    %c1_122 = arith.constant 1 : index
    %c0_123 = arith.constant 0 : index
    %c0_124 = arith.constant 0 : index
    %322 = vector.load %arg5[%c1_122, %c0_123, %c0_124] : memref<3x32x32xf32, #tpu.memory_space<vmem>>, vector<1x32x32xf32>
    %323 = vector.shape_cast %322 : vector<1x32x32xf32> to vector<32x32xf32>
    %cst_125 = arith.constant dense<0.000000e+00> : vector<8x32xf32>
    %324 = tpu.matmul %314, %323, %cst_125 {dimension_numbers = #tpu.dot_dimension_numbers<[1], [0], [0], [1], [0, 0, 1, 1], [], []>} : vector<8x32xf32>, vector<32x32xf32>, vector<8x32xf32> -> vector<8x32xf32>
    %c1_126 = arith.constant 1 : index
    %c0_127 = arith.constant 0 : index
    %c0_128 = arith.constant 0 : index
    %325 = vector.load %arg7[%c1_126, %c0_127, %c0_128] : memref<4x1x32xf32, #tpu.memory_space<vmem>>, vector<1x1x32xf32>
    %326 = vector.shape_cast %325 : vector<1x1x32xf32> to vector<1x32xf32>
    %327 = vector.broadcast %326 : vector<1x32xf32> to vector<8x32xf32>
    %328 = arith.addf %324, %327 : vector<8x32xf32>
    %c2_129 = arith.constant 2 : index
    %c0_130 = arith.constant 0 : index
    %c0_131 = arith.constant 0 : index
    %329 = vector.load %arg5[%c2_129, %c0_130, %c0_131] : memref<3x32x32xf32, #tpu.memory_space<vmem>>, vector<1x32x32xf32>
    %330 = vector.shape_cast %329 : vector<1x32x32xf32> to vector<32x32xf32>
    %cst_132 = arith.constant dense<0.000000e+00> : vector<8x32xf32>
    %331 = tpu.matmul %314, %330, %cst_132 {dimension_numbers = #tpu.dot_dimension_numbers<[1], [0], [0], [1], [0, 0, 1, 1], [], []>} : vector<8x32xf32>, vector<32x32xf32>, vector<8x32xf32> -> vector<8x32xf32>
    %c2_133 = arith.constant 2 : index
    %c0_134 = arith.constant 0 : index
    %c0_135 = arith.constant 0 : index
    %332 = vector.load %arg7[%c2_133, %c0_134, %c0_135] : memref<4x1x32xf32, #tpu.memory_space<vmem>>, vector<1x1x32xf32>
    %333 = vector.shape_cast %332 : vector<1x1x32xf32> to vector<1x32xf32>
    %334 = vector.broadcast %333 : vector<1x32xf32> to vector<8x32xf32>
    %335 = arith.addf %331, %334 : vector<8x32xf32>
    %c0_136 = arith.constant 0 : index
    %c0_137 = arith.constant 0 : index
    %c0_138 = arith.constant 0 : index
    %336 = vector.load %arg6[%c0_136, %c0_137, %c0_138] : memref<3x32x32xf32, #tpu.memory_space<vmem>>, vector<1x32x32xf32>
    %337 = vector.shape_cast %336 : vector<1x32x32xf32> to vector<32x32xf32>
    %c1_139 = arith.constant 1 : index
    %c0_140 = arith.constant 0 : index
    %c0_141 = arith.constant 0 : index
    %338 = vector.load %arg6[%c1_139, %c0_140, %c0_141] : memref<3x32x32xf32, #tpu.memory_space<vmem>>, vector<1x32x32xf32>
    %339 = vector.shape_cast %338 : vector<1x32x32xf32> to vector<32x32xf32>
    %c2_142 = arith.constant 2 : index
    %c0_143 = arith.constant 0 : index
    %c0_144 = arith.constant 0 : index
    %340 = vector.load %arg6[%c2_142, %c0_143, %c0_144] : memref<3x32x32xf32, #tpu.memory_space<vmem>>, vector<1x32x32xf32>
    %341 = vector.shape_cast %340 : vector<1x32x32xf32> to vector<32x32xf32>
    %c3_145 = arith.constant 3 : index
    %c0_146 = arith.constant 0 : index
    %c0_147 = arith.constant 0 : index
    %342 = vector.load %arg7[%c3_145, %c0_146, %c0_147] : memref<4x1x32xf32, #tpu.memory_space<vmem>>, vector<1x1x32xf32>
    %343 = vector.shape_cast %342 : vector<1x1x32xf32> to vector<1x32xf32>
    %cst_148 = arith.constant 0.000000e+00 : f32
    %344 = vector.broadcast %cst_148 : f32 to vector<1x32xf32>
    %cst_149 = arith.constant dense<0.000000e+00> : vector<1x32xf32>
    %345 = tpu.matmul %344, %337, %cst_149 {dimension_numbers = #tpu.dot_dimension_numbers<[1], [0], [0], [1], [0, 0, 1, 1], [], []>} : vector<1x32xf32>, vector<32x32xf32>, vector<1x32xf32> -> vector<1x32xf32>
    %cst_150 = arith.constant dense<0.000000e+00> : vector<1x32xf32>
    %346 = tpu.matmul %344, %339, %cst_150 {dimension_numbers = #tpu.dot_dimension_numbers<[1], [0], [0], [1], [0, 0, 1, 1], [], []>} : vector<1x32xf32>, vector<32x32xf32>, vector<1x32xf32> -> vector<1x32xf32>
    %cst_151 = arith.constant dense<0.000000e+00> : vector<1x32xf32>
    %347 = tpu.matmul %344, %341, %cst_151 {dimension_numbers = #tpu.dot_dimension_numbers<[1], [0], [0], [1], [0, 0, 1, 1], [], []>} : vector<1x32xf32>, vector<32x32xf32>, vector<1x32xf32> -> vector<1x32xf32>
    %348 = vector.extract_strided_slice %321 {offsets = [0, 0], sizes = [1, 32], strides = [1, 1]} : vector<8x32xf32> to vector<1x32xf32>
    %349 = arith.addf %348, %345 : vector<1x32xf32>
    %350 = arith.negf %349 : vector<1x32xf32>
    %351 = math.exp %350 : vector<1x32xf32>
    %cst_152 = arith.constant 1.000000e+00 : f32
    %352 = vector.broadcast %cst_152 : f32 to vector<1x32xf32>
    %353 = arith.addf %352, %351 : vector<1x32xf32>
    %354 = arith.divf %352, %353 : vector<1x32xf32>
    %355 = vector.extract_strided_slice %328 {offsets = [0, 0], sizes = [1, 32], strides = [1, 1]} : vector<8x32xf32> to vector<1x32xf32>
    %356 = arith.addf %355, %346 : vector<1x32xf32>
    %357 = arith.negf %356 : vector<1x32xf32>
    %358 = math.exp %357 : vector<1x32xf32>
    %cst_153 = arith.constant 1.000000e+00 : f32
    %359 = vector.broadcast %cst_153 : f32 to vector<1x32xf32>
    %360 = arith.addf %359, %358 : vector<1x32xf32>
    %361 = arith.divf %359, %360 : vector<1x32xf32>
    %362 = vector.extract_strided_slice %335 {offsets = [0, 0], sizes = [1, 32], strides = [1, 1]} : vector<8x32xf32> to vector<1x32xf32>
    %363 = arith.addf %347, %343 : vector<1x32xf32>
    %364 = arith.mulf %354, %363 : vector<1x32xf32>
    %365 = arith.addf %362, %364 : vector<1x32xf32>
    %366 = math.tanh %365 : vector<1x32xf32>
    %cst_154 = arith.constant 1.000000e+00 : f32
    %367 = vector.broadcast %cst_154 : f32 to vector<1x32xf32>
    %368 = arith.subf %367, %361 : vector<1x32xf32>
    %369 = arith.mulf %368, %366 : vector<1x32xf32>
    %370 = arith.mulf %361, %344 : vector<1x32xf32>
    %371 = arith.addf %369, %370 : vector<1x32xf32>
    %c0_i32_155 = arith.constant 0 : i32
    %372 = vector.broadcast %c0_i32_155 : i32 to vector<1x1xi32>
    %373 = arith.cmpi sgt, %17, %372 : vector<1x1xi32>
    %374 = vector.shape_cast %373 : vector<1x1xi1> to vector<1x1xi1>
    %375 = vector.broadcast %374 : vector<1x1xi1> to vector<1x32xi1>
    %376 = arith.select %375, %371, %344 : vector<1x32xi1>, vector<1x32xf32>
    %cst_156 = arith.constant 0.000000e+00 : f32
    %377 = vector.shape_cast %373 : vector<1x1xi1> to vector<1x1xi1>
    %378 = vector.broadcast %377 : vector<1x1xi1> to vector<1x32xi1>
    %379 = vector.broadcast %cst_156 : f32 to vector<1x32xf32>
    %380 = arith.select %378, %371, %379 : vector<1x32xi1>, vector<1x32xf32>
    %c0_157 = arith.constant 0 : index
    %c0_158 = arith.constant 0 : index
    %381 = vector.load %arg17[%c0_157, %c0_158] : memref<8x32xf32, #tpu.memory_space<vmem>>, vector<1x32xf32>
    tpu.vector_store %arg17[%c0_157, %c0_158], %380 {strides = array<i32>} : memref<8x32xf32, #tpu.memory_space<vmem>>, vector<1x32xf32>,
    %cst_159 = arith.constant dense<0.000000e+00> : vector<1x32xf32>
    %382 = tpu.matmul %376, %337, %cst_159 {dimension_numbers = #tpu.dot_dimension_numbers<[1], [0], [0], [1], [0, 0, 1, 1], [], []>} : vector<1x32xf32>, vector<32x32xf32>, vector<1x32xf32> -> vector<1x32xf32>
    %cst_160 = arith.constant dense<0.000000e+00> : vector<1x32xf32>
    %383 = tpu.matmul %376, %339, %cst_160 {dimension_numbers = #tpu.dot_dimension_numbers<[1], [0], [0], [1], [0, 0, 1, 1], [], []>} : vector<1x32xf32>, vector<32x32xf32>, vector<1x32xf32> -> vector<1x32xf32>
    %cst_161 = arith.constant dense<0.000000e+00> : vector<1x32xf32>
    %384 = tpu.matmul %376, %341, %cst_161 {dimension_numbers = #tpu.dot_dimension_numbers<[1], [0], [0], [1], [0, 0, 1, 1], [], []>} : vector<1x32xf32>, vector<32x32xf32>, vector<1x32xf32> -> vector<1x32xf32>
    %385 = vector.extract_strided_slice %321 {offsets = [1, 0], sizes = [1, 32], strides = [1, 1]} : vector<8x32xf32> to vector<1x32xf32>
    %386 = arith.addf %385, %382 : vector<1x32xf32>
    %387 = arith.negf %386 : vector<1x32xf32>
    %388 = math.exp %387 : vector<1x32xf32>
    %cst_162 = arith.constant 1.000000e+00 : f32
    %389 = vector.broadcast %cst_162 : f32 to vector<1x32xf32>
    %390 = arith.addf %389, %388 : vector<1x32xf32>
    %391 = arith.divf %389, %390 : vector<1x32xf32>
    %392 = vector.extract_strided_slice %328 {offsets = [1, 0], sizes = [1, 32], strides = [1, 1]} : vector<8x32xf32> to vector<1x32xf32>
    %393 = arith.addf %392, %383 : vector<1x32xf32>
    %394 = arith.negf %393 : vector<1x32xf32>
    %395 = math.exp %394 : vector<1x32xf32>
    %cst_163 = arith.constant 1.000000e+00 : f32
    %396 = vector.broadcast %cst_163 : f32 to vector<1x32xf32>
    %397 = arith.addf %396, %395 : vector<1x32xf32>
    %398 = arith.divf %396, %397 : vector<1x32xf32>
    %399 = vector.extract_strided_slice %335 {offsets = [1, 0], sizes = [1, 32], strides = [1, 1]} : vector<8x32xf32> to vector<1x32xf32>
    %400 = arith.addf %384, %343 : vector<1x32xf32>
    %401 = arith.mulf %391, %400 : vector<1x32xf32>
    %402 = arith.addf %399, %401 : vector<1x32xf32>
    %403 = math.tanh %402 : vector<1x32xf32>
    %cst_164 = arith.constant 1.000000e+00 : f32
    %404 = vector.broadcast %cst_164 : f32 to vector<1x32xf32>
    %405 = arith.subf %404, %398 : vector<1x32xf32>
    %406 = arith.mulf %405, %403 : vector<1x32xf32>
    %407 = arith.mulf %398, %376 : vector<1x32xf32>
    %408 = arith.addf %406, %407 : vector<1x32xf32>
    %c1_i32_165 = arith.constant 1 : i32
    %409 = vector.broadcast %c1_i32_165 : i32 to vector<1x1xi32>
    %410 = arith.cmpi sgt, %17, %409 : vector<1x1xi32>
    %411 = vector.shape_cast %410 : vector<1x1xi1> to vector<1x1xi1>
    %412 = vector.broadcast %411 : vector<1x1xi1> to vector<1x32xi1>
    %413 = arith.select %412, %408, %376 : vector<1x32xi1>, vector<1x32xf32>
    %cst_166 = arith.constant 0.000000e+00 : f32
    %414 = vector.shape_cast %410 : vector<1x1xi1> to vector<1x1xi1>
    %415 = vector.broadcast %414 : vector<1x1xi1> to vector<1x32xi1>
    %416 = vector.broadcast %cst_166 : f32 to vector<1x32xf32>
    %417 = arith.select %415, %408, %416 : vector<1x32xi1>, vector<1x32xf32>
    %c1_167 = arith.constant 1 : index
    %c0_168 = arith.constant 0 : index
    %418 = vector.load %arg17[%c1_167, %c0_168] : memref<8x32xf32, #tpu.memory_space<vmem>>, vector<1x32xf32>
    tpu.vector_store %arg17[%c1_167, %c0_168], %417 {strides = array<i32>} : memref<8x32xf32, #tpu.memory_space<vmem>>, vector<1x32xf32>,
    %cst_169 = arith.constant dense<0.000000e+00> : vector<1x32xf32>
    %419 = tpu.matmul %413, %337, %cst_169 {dimension_numbers = #tpu.dot_dimension_numbers<[1], [0], [0], [1], [0, 0, 1, 1], [], []>} : vector<1x32xf32>, vector<32x32xf32>, vector<1x32xf32> -> vector<1x32xf32>
    %cst_170 = arith.constant dense<0.000000e+00> : vector<1x32xf32>
    %420 = tpu.matmul %413, %339, %cst_170 {dimension_numbers = #tpu.dot_dimension_numbers<[1], [0], [0], [1], [0, 0, 1, 1], [], []>} : vector<1x32xf32>, vector<32x32xf32>, vector<1x32xf32> -> vector<1x32xf32>
    %cst_171 = arith.constant dense<0.000000e+00> : vector<1x32xf32>
    %421 = tpu.matmul %413, %341, %cst_171 {dimension_numbers = #tpu.dot_dimension_numbers<[1], [0], [0], [1], [0, 0, 1, 1], [], []>} : vector<1x32xf32>, vector<32x32xf32>, vector<1x32xf32> -> vector<1x32xf32>
    %422 = vector.extract_strided_slice %321 {offsets = [2, 0], sizes = [1, 32], strides = [1, 1]} : vector<8x32xf32> to vector<1x32xf32>
    %423 = arith.addf %422, %419 : vector<1x32xf32>
    %424 = arith.negf %423 : vector<1x32xf32>
    %425 = math.exp %424 : vector<1x32xf32>
    %cst_172 = arith.constant 1.000000e+00 : f32
    %426 = vector.broadcast %cst_172 : f32 to vector<1x32xf32>
    %427 = arith.addf %426, %425 : vector<1x32xf32>
    %428 = arith.divf %426, %427 : vector<1x32xf32>
    %429 = vector.extract_strided_slice %328 {offsets = [2, 0], sizes = [1, 32], strides = [1, 1]} : vector<8x32xf32> to vector<1x32xf32>
    %430 = arith.addf %429, %420 : vector<1x32xf32>
    %431 = arith.negf %430 : vector<1x32xf32>
    %432 = math.exp %431 : vector<1x32xf32>
    %cst_173 = arith.constant 1.000000e+00 : f32
    %433 = vector.broadcast %cst_173 : f32 to vector<1x32xf32>
    %434 = arith.addf %433, %432 : vector<1x32xf32>
    %435 = arith.divf %433, %434 : vector<1x32xf32>
    %436 = vector.extract_strided_slice %335 {offsets = [2, 0], sizes = [1, 32], strides = [1, 1]} : vector<8x32xf32> to vector<1x32xf32>
    %437 = arith.addf %421, %343 : vector<1x32xf32>
    %438 = arith.mulf %428, %437 : vector<1x32xf32>
    %439 = arith.addf %436, %438 : vector<1x32xf32>
    %440 = math.tanh %439 : vector<1x32xf32>
    %cst_174 = arith.constant 1.000000e+00 : f32
    %441 = vector.broadcast %cst_174 : f32 to vector<1x32xf32>
    %442 = arith.subf %441, %435 : vector<1x32xf32>
    %443 = arith.mulf %442, %440 : vector<1x32xf32>
    %444 = arith.mulf %435, %413 : vector<1x32xf32>
    %445 = arith.addf %443, %444 : vector<1x32xf32>
    %c2_i32_175 = arith.constant 2 : i32
    %446 = vector.broadcast %c2_i32_175 : i32 to vector<1x1xi32>
    %447 = arith.cmpi sgt, %17, %446 : vector<1x1xi32>
    %448 = vector.shape_cast %447 : vector<1x1xi1> to vector<1x1xi1>
    %449 = vector.broadcast %448 : vector<1x1xi1> to vector<1x32xi1>
    %450 = arith.select %449, %445, %413 : vector<1x32xi1>, vector<1x32xf32>
    %cst_176 = arith.constant 0.000000e+00 : f32
    %451 = vector.shape_cast %447 : vector<1x1xi1> to vector<1x1xi1>
    %452 = vector.broadcast %451 : vector<1x1xi1> to vector<1x32xi1>
    %453 = vector.broadcast %cst_176 : f32 to vector<1x32xf32>
    %454 = arith.select %452, %445, %453 : vector<1x32xi1>, vector<1x32xf32>
    %c2_177 = arith.constant 2 : index
    %c0_178 = arith.constant 0 : index
    %455 = vector.load %arg17[%c2_177, %c0_178] : memref<8x32xf32, #tpu.memory_space<vmem>>, vector<1x32xf32>
    tpu.vector_store %arg17[%c2_177, %c0_178], %454 {strides = array<i32>} : memref<8x32xf32, #tpu.memory_space<vmem>>, vector<1x32xf32>,
    %cst_179 = arith.constant dense<0.000000e+00> : vector<1x32xf32>
    %456 = tpu.matmul %450, %337, %cst_179 {dimension_numbers = #tpu.dot_dimension_numbers<[1], [0], [0], [1], [0, 0, 1, 1], [], []>} : vector<1x32xf32>, vector<32x32xf32>, vector<1x32xf32> -> vector<1x32xf32>
    %cst_180 = arith.constant dense<0.000000e+00> : vector<1x32xf32>
    %457 = tpu.matmul %450, %339, %cst_180 {dimension_numbers = #tpu.dot_dimension_numbers<[1], [0], [0], [1], [0, 0, 1, 1], [], []>} : vector<1x32xf32>, vector<32x32xf32>, vector<1x32xf32> -> vector<1x32xf32>
    %cst_181 = arith.constant dense<0.000000e+00> : vector<1x32xf32>
    %458 = tpu.matmul %450, %341, %cst_181 {dimension_numbers = #tpu.dot_dimension_numbers<[1], [0], [0], [1], [0, 0, 1, 1], [], []>} : vector<1x32xf32>, vector<32x32xf32>, vector<1x32xf32> -> vector<1x32xf32>
    %459 = vector.extract_strided_slice %321 {offsets = [3, 0], sizes = [1, 32], strides = [1, 1]} : vector<8x32xf32> to vector<1x32xf32>
    %460 = arith.addf %459, %456 : vector<1x32xf32>
    %461 = arith.negf %460 : vector<1x32xf32>
    %462 = math.exp %461 : vector<1x32xf32>
    %cst_182 = arith.constant 1.000000e+00 : f32
    %463 = vector.broadcast %cst_182 : f32 to vector<1x32xf32>
    %464 = arith.addf %463, %462 : vector<1x32xf32>
    %465 = arith.divf %463, %464 : vector<1x32xf32>
    %466 = vector.extract_strided_slice %328 {offsets = [3, 0], sizes = [1, 32], strides = [1, 1]} : vector<8x32xf32> to vector<1x32xf32>
    %467 = arith.addf %466, %457 : vector<1x32xf32>
    %468 = arith.negf %467 : vector<1x32xf32>
    %469 = math.exp %468 : vector<1x32xf32>
    %cst_183 = arith.constant 1.000000e+00 : f32
    %470 = vector.broadcast %cst_183 : f32 to vector<1x32xf32>
    %471 = arith.addf %470, %469 : vector<1x32xf32>
    %472 = arith.divf %470, %471 : vector<1x32xf32>
    %473 = vector.extract_strided_slice %335 {offsets = [3, 0], sizes = [1, 32], strides = [1, 1]} : vector<8x32xf32> to vector<1x32xf32>
    %474 = arith.addf %458, %343 : vector<1x32xf32>
    %475 = arith.mulf %465, %474 : vector<1x32xf32>
    %476 = arith.addf %473, %475 : vector<1x32xf32>
    %477 = math.tanh %476 : vector<1x32xf32>
    %cst_184 = arith.constant 1.000000e+00 : f32
    %478 = vector.broadcast %cst_184 : f32 to vector<1x32xf32>
    %479 = arith.subf %478, %472 : vector<1x32xf32>
    %480 = arith.mulf %479, %477 : vector<1x32xf32>
    %481 = arith.mulf %472, %450 : vector<1x32xf32>
    %482 = arith.addf %480, %481 : vector<1x32xf32>
    %c3_i32_185 = arith.constant 3 : i32
    %483 = vector.broadcast %c3_i32_185 : i32 to vector<1x1xi32>
    %484 = arith.cmpi sgt, %17, %483 : vector<1x1xi32>
    %485 = vector.shape_cast %484 : vector<1x1xi1> to vector<1x1xi1>
    %486 = vector.broadcast %485 : vector<1x1xi1> to vector<1x32xi1>
    %487 = arith.select %486, %482, %450 : vector<1x32xi1>, vector<1x32xf32>
    %cst_186 = arith.constant 0.000000e+00 : f32
    %488 = vector.shape_cast %484 : vector<1x1xi1> to vector<1x1xi1>
    %489 = vector.broadcast %488 : vector<1x1xi1> to vector<1x32xi1>
    %490 = vector.broadcast %cst_186 : f32 to vector<1x32xf32>
    %491 = arith.select %489, %482, %490 : vector<1x32xi1>, vector<1x32xf32>
    %c3_187 = arith.constant 3 : index
    %c0_188 = arith.constant 0 : index
    %492 = vector.load %arg17[%c3_187, %c0_188] : memref<8x32xf32, #tpu.memory_space<vmem>>, vector<1x32xf32>
    tpu.vector_store %arg17[%c3_187, %c0_188], %491 {strides = array<i32>} : memref<8x32xf32, #tpu.memory_space<vmem>>, vector<1x32xf32>,
    %cst_189 = arith.constant dense<0.000000e+00> : vector<1x32xf32>
    %493 = tpu.matmul %487, %337, %cst_189 {dimension_numbers = #tpu.dot_dimension_numbers<[1], [0], [0], [1], [0, 0, 1, 1], [], []>} : vector<1x32xf32>, vector<32x32xf32>, vector<1x32xf32> -> vector<1x32xf32>
    %cst_190 = arith.constant dense<0.000000e+00> : vector<1x32xf32>
    %494 = tpu.matmul %487, %339, %cst_190 {dimension_numbers = #tpu.dot_dimension_numbers<[1], [0], [0], [1], [0, 0, 1, 1], [], []>} : vector<1x32xf32>, vector<32x32xf32>, vector<1x32xf32> -> vector<1x32xf32>
    %cst_191 = arith.constant dense<0.000000e+00> : vector<1x32xf32>
    %495 = tpu.matmul %487, %341, %cst_191 {dimension_numbers = #tpu.dot_dimension_numbers<[1], [0], [0], [1], [0, 0, 1, 1], [], []>} : vector<1x32xf32>, vector<32x32xf32>, vector<1x32xf32> -> vector<1x32xf32>
    %496 = vector.extract_strided_slice %321 {offsets = [4, 0], sizes = [1, 32], strides = [1, 1]} : vector<8x32xf32> to vector<1x32xf32>
    %497 = arith.addf %496, %493 : vector<1x32xf32>
    %498 = arith.negf %497 : vector<1x32xf32>
    %499 = math.exp %498 : vector<1x32xf32>
    %cst_192 = arith.constant 1.000000e+00 : f32
    %500 = vector.broadcast %cst_192 : f32 to vector<1x32xf32>
    %501 = arith.addf %500, %499 : vector<1x32xf32>
    %502 = arith.divf %500, %501 : vector<1x32xf32>
    %503 = vector.extract_strided_slice %328 {offsets = [4, 0], sizes = [1, 32], strides = [1, 1]} : vector<8x32xf32> to vector<1x32xf32>
    %504 = arith.addf %503, %494 : vector<1x32xf32>
    %505 = arith.negf %504 : vector<1x32xf32>
    %506 = math.exp %505 : vector<1x32xf32>
    %cst_193 = arith.constant 1.000000e+00 : f32
    %507 = vector.broadcast %cst_193 : f32 to vector<1x32xf32>
    %508 = arith.addf %507, %506 : vector<1x32xf32>
    %509 = arith.divf %507, %508 : vector<1x32xf32>
    %510 = vector.extract_strided_slice %335 {offsets = [4, 0], sizes = [1, 32], strides = [1, 1]} : vector<8x32xf32> to vector<1x32xf32>
    %511 = arith.addf %495, %343 : vector<1x32xf32>
    %512 = arith.mulf %502, %511 : vector<1x32xf32>
    %513 = arith.addf %510, %512 : vector<1x32xf32>
    %514 = math.tanh %513 : vector<1x32xf32>
    %cst_194 = arith.constant 1.000000e+00 : f32
    %515 = vector.broadcast %cst_194 : f32 to vector<1x32xf32>
    %516 = arith.subf %515, %509 : vector<1x32xf32>
    %517 = arith.mulf %516, %514 : vector<1x32xf32>
    %518 = arith.mulf %509, %487 : vector<1x32xf32>
    %519 = arith.addf %517, %518 : vector<1x32xf32>
    %c4_i32_195 = arith.constant 4 : i32
    %520 = vector.broadcast %c4_i32_195 : i32 to vector<1x1xi32>
    %521 = arith.cmpi sgt, %17, %520 : vector<1x1xi32>
    %522 = vector.shape_cast %521 : vector<1x1xi1> to vector<1x1xi1>
    %523 = vector.broadcast %522 : vector<1x1xi1> to vector<1x32xi1>
    %524 = arith.select %523, %519, %487 : vector<1x32xi1>, vector<1x32xf32>
    %cst_196 = arith.constant 0.000000e+00 : f32
    %525 = vector.shape_cast %521 : vector<1x1xi1> to vector<1x1xi1>
    %526 = vector.broadcast %525 : vector<1x1xi1> to vector<1x32xi1>
    %527 = vector.broadcast %cst_196 : f32 to vector<1x32xf32>
    %528 = arith.select %526, %519, %527 : vector<1x32xi1>, vector<1x32xf32>
    %c4_197 = arith.constant 4 : index
    %c0_198 = arith.constant 0 : index
    %529 = vector.load %arg17[%c4_197, %c0_198] : memref<8x32xf32, #tpu.memory_space<vmem>>, vector<1x32xf32>
    tpu.vector_store %arg17[%c4_197, %c0_198], %528 {strides = array<i32>} : memref<8x32xf32, #tpu.memory_space<vmem>>, vector<1x32xf32>,
    %cst_199 = arith.constant dense<0.000000e+00> : vector<1x32xf32>
    %530 = tpu.matmul %524, %337, %cst_199 {dimension_numbers = #tpu.dot_dimension_numbers<[1], [0], [0], [1], [0, 0, 1, 1], [], []>} : vector<1x32xf32>, vector<32x32xf32>, vector<1x32xf32> -> vector<1x32xf32>
    %cst_200 = arith.constant dense<0.000000e+00> : vector<1x32xf32>
    %531 = tpu.matmul %524, %339, %cst_200 {dimension_numbers = #tpu.dot_dimension_numbers<[1], [0], [0], [1], [0, 0, 1, 1], [], []>} : vector<1x32xf32>, vector<32x32xf32>, vector<1x32xf32> -> vector<1x32xf32>
    %cst_201 = arith.constant dense<0.000000e+00> : vector<1x32xf32>
    %532 = tpu.matmul %524, %341, %cst_201 {dimension_numbers = #tpu.dot_dimension_numbers<[1], [0], [0], [1], [0, 0, 1, 1], [], []>} : vector<1x32xf32>, vector<32x32xf32>, vector<1x32xf32> -> vector<1x32xf32>
    %533 = vector.extract_strided_slice %321 {offsets = [5, 0], sizes = [1, 32], strides = [1, 1]} : vector<8x32xf32> to vector<1x32xf32>
    %534 = arith.addf %533, %530 : vector<1x32xf32>
    %535 = arith.negf %534 : vector<1x32xf32>
    %536 = math.exp %535 : vector<1x32xf32>
    %cst_202 = arith.constant 1.000000e+00 : f32
    %537 = vector.broadcast %cst_202 : f32 to vector<1x32xf32>
    %538 = arith.addf %537, %536 : vector<1x32xf32>
    %539 = arith.divf %537, %538 : vector<1x32xf32>
    %540 = vector.extract_strided_slice %328 {offsets = [5, 0], sizes = [1, 32], strides = [1, 1]} : vector<8x32xf32> to vector<1x32xf32>
    %541 = arith.addf %540, %531 : vector<1x32xf32>
    %542 = arith.negf %541 : vector<1x32xf32>
    %543 = math.exp %542 : vector<1x32xf32>
    %cst_203 = arith.constant 1.000000e+00 : f32
    %544 = vector.broadcast %cst_203 : f32 to vector<1x32xf32>
    %545 = arith.addf %544, %543 : vector<1x32xf32>
    %546 = arith.divf %544, %545 : vector<1x32xf32>
    %547 = vector.extract_strided_slice %335 {offsets = [5, 0], sizes = [1, 32], strides = [1, 1]} : vector<8x32xf32> to vector<1x32xf32>
    %548 = arith.addf %532, %343 : vector<1x32xf32>
    %549 = arith.mulf %539, %548 : vector<1x32xf32>
    %550 = arith.addf %547, %549 : vector<1x32xf32>
    %551 = math.tanh %550 : vector<1x32xf32>
    %cst_204 = arith.constant 1.000000e+00 : f32
    %552 = vector.broadcast %cst_204 : f32 to vector<1x32xf32>
    %553 = arith.subf %552, %546 : vector<1x32xf32>
    %554 = arith.mulf %553, %551 : vector<1x32xf32>
    %555 = arith.mulf %546, %524 : vector<1x32xf32>
    %556 = arith.addf %554, %555 : vector<1x32xf32>
    %c5_i32_205 = arith.constant 5 : i32
    %557 = vector.broadcast %c5_i32_205 : i32 to vector<1x1xi32>
    %558 = arith.cmpi sgt, %17, %557 : vector<1x1xi32>
    %559 = vector.shape_cast %558 : vector<1x1xi1> to vector<1x1xi1>
    %560 = vector.broadcast %559 : vector<1x1xi1> to vector<1x32xi1>
    %561 = arith.select %560, %556, %524 : vector<1x32xi1>, vector<1x32xf32>
    %cst_206 = arith.constant 0.000000e+00 : f32
    %562 = vector.shape_cast %558 : vector<1x1xi1> to vector<1x1xi1>
    %563 = vector.broadcast %562 : vector<1x1xi1> to vector<1x32xi1>
    %564 = vector.broadcast %cst_206 : f32 to vector<1x32xf32>
    %565 = arith.select %563, %556, %564 : vector<1x32xi1>, vector<1x32xf32>
    %c5_207 = arith.constant 5 : index
    %c0_208 = arith.constant 0 : index
    %566 = vector.load %arg17[%c5_207, %c0_208] : memref<8x32xf32, #tpu.memory_space<vmem>>, vector<1x32xf32>
    tpu.vector_store %arg17[%c5_207, %c0_208], %565 {strides = array<i32>} : memref<8x32xf32, #tpu.memory_space<vmem>>, vector<1x32xf32>,
    %cst_209 = arith.constant dense<0.000000e+00> : vector<1x32xf32>
    %567 = tpu.matmul %561, %337, %cst_209 {dimension_numbers = #tpu.dot_dimension_numbers<[1], [0], [0], [1], [0, 0, 1, 1], [], []>} : vector<1x32xf32>, vector<32x32xf32>, vector<1x32xf32> -> vector<1x32xf32>
    %cst_210 = arith.constant dense<0.000000e+00> : vector<1x32xf32>
    %568 = tpu.matmul %561, %339, %cst_210 {dimension_numbers = #tpu.dot_dimension_numbers<[1], [0], [0], [1], [0, 0, 1, 1], [], []>} : vector<1x32xf32>, vector<32x32xf32>, vector<1x32xf32> -> vector<1x32xf32>
    %cst_211 = arith.constant dense<0.000000e+00> : vector<1x32xf32>
    %569 = tpu.matmul %561, %341, %cst_211 {dimension_numbers = #tpu.dot_dimension_numbers<[1], [0], [0], [1], [0, 0, 1, 1], [], []>} : vector<1x32xf32>, vector<32x32xf32>, vector<1x32xf32> -> vector<1x32xf32>
    %570 = vector.extract_strided_slice %321 {offsets = [6, 0], sizes = [1, 32], strides = [1, 1]} : vector<8x32xf32> to vector<1x32xf32>
    %571 = arith.addf %570, %567 : vector<1x32xf32>
    %572 = arith.negf %571 : vector<1x32xf32>
    %573 = math.exp %572 : vector<1x32xf32>
    %cst_212 = arith.constant 1.000000e+00 : f32
    %574 = vector.broadcast %cst_212 : f32 to vector<1x32xf32>
    %575 = arith.addf %574, %573 : vector<1x32xf32>
    %576 = arith.divf %574, %575 : vector<1x32xf32>
    %577 = vector.extract_strided_slice %328 {offsets = [6, 0], sizes = [1, 32], strides = [1, 1]} : vector<8x32xf32> to vector<1x32xf32>
    %578 = arith.addf %577, %568 : vector<1x32xf32>
    %579 = arith.negf %578 : vector<1x32xf32>
    %580 = math.exp %579 : vector<1x32xf32>
    %cst_213 = arith.constant 1.000000e+00 : f32
    %581 = vector.broadcast %cst_213 : f32 to vector<1x32xf32>
    %582 = arith.addf %581, %580 : vector<1x32xf32>
    %583 = arith.divf %581, %582 : vector<1x32xf32>
    %584 = vector.extract_strided_slice %335 {offsets = [6, 0], sizes = [1, 32], strides = [1, 1]} : vector<8x32xf32> to vector<1x32xf32>
    %585 = arith.addf %569, %343 : vector<1x32xf32>
    %586 = arith.mulf %576, %585 : vector<1x32xf32>
    %587 = arith.addf %584, %586 : vector<1x32xf32>
    %588 = math.tanh %587 : vector<1x32xf32>
    %cst_214 = arith.constant 1.000000e+00 : f32
    %589 = vector.broadcast %cst_214 : f32 to vector<1x32xf32>
    %590 = arith.subf %589, %583 : vector<1x32xf32>
    %591 = arith.mulf %590, %588 : vector<1x32xf32>
    %592 = arith.mulf %583, %561 : vector<1x32xf32>
    %593 = arith.addf %591, %592 : vector<1x32xf32>
    %c6_i32_215 = arith.constant 6 : i32
    %594 = vector.broadcast %c6_i32_215 : i32 to vector<1x1xi32>
    %595 = arith.cmpi sgt, %17, %594 : vector<1x1xi32>
    %596 = vector.shape_cast %595 : vector<1x1xi1> to vector<1x1xi1>
    %597 = vector.broadcast %596 : vector<1x1xi1> to vector<1x32xi1>
    %598 = arith.select %597, %593, %561 : vector<1x32xi1>, vector<1x32xf32>
    %cst_216 = arith.constant 0.000000e+00 : f32
    %599 = vector.shape_cast %595 : vector<1x1xi1> to vector<1x1xi1>
    %600 = vector.broadcast %599 : vector<1x1xi1> to vector<1x32xi1>
    %601 = vector.broadcast %cst_216 : f32 to vector<1x32xf32>
    %602 = arith.select %600, %593, %601 : vector<1x32xi1>, vector<1x32xf32>
    %c6_217 = arith.constant 6 : index
    %c0_218 = arith.constant 0 : index
    %603 = vector.load %arg17[%c6_217, %c0_218] : memref<8x32xf32, #tpu.memory_space<vmem>>, vector<1x32xf32>
    tpu.vector_store %arg17[%c6_217, %c0_218], %602 {strides = array<i32>} : memref<8x32xf32, #tpu.memory_space<vmem>>, vector<1x32xf32>,
    %cst_219 = arith.constant dense<0.000000e+00> : vector<1x32xf32>
    %604 = tpu.matmul %598, %337, %cst_219 {dimension_numbers = #tpu.dot_dimension_numbers<[1], [0], [0], [1], [0, 0, 1, 1], [], []>} : vector<1x32xf32>, vector<32x32xf32>, vector<1x32xf32> -> vector<1x32xf32>
    %cst_220 = arith.constant dense<0.000000e+00> : vector<1x32xf32>
    %605 = tpu.matmul %598, %339, %cst_220 {dimension_numbers = #tpu.dot_dimension_numbers<[1], [0], [0], [1], [0, 0, 1, 1], [], []>} : vector<1x32xf32>, vector<32x32xf32>, vector<1x32xf32> -> vector<1x32xf32>
    %cst_221 = arith.constant dense<0.000000e+00> : vector<1x32xf32>
    %606 = tpu.matmul %598, %341, %cst_221 {dimension_numbers = #tpu.dot_dimension_numbers<[1], [0], [0], [1], [0, 0, 1, 1], [], []>} : vector<1x32xf32>, vector<32x32xf32>, vector<1x32xf32> -> vector<1x32xf32>
    %607 = vector.extract_strided_slice %321 {offsets = [7, 0], sizes = [1, 32], strides = [1, 1]} : vector<8x32xf32> to vector<1x32xf32>
    %608 = arith.addf %607, %604 : vector<1x32xf32>
    %609 = arith.negf %608 : vector<1x32xf32>
    %610 = math.exp %609 : vector<1x32xf32>
    %cst_222 = arith.constant 1.000000e+00 : f32
    %611 = vector.broadcast %cst_222 : f32 to vector<1x32xf32>
    %612 = arith.addf %611, %610 : vector<1x32xf32>
    %613 = arith.divf %611, %612 : vector<1x32xf32>
    %614 = vector.extract_strided_slice %328 {offsets = [7, 0], sizes = [1, 32], strides = [1, 1]} : vector<8x32xf32> to vector<1x32xf32>
    %615 = arith.addf %614, %605 : vector<1x32xf32>
    %616 = arith.negf %615 : vector<1x32xf32>
    %617 = math.exp %616 : vector<1x32xf32>
    %cst_223 = arith.constant 1.000000e+00 : f32
    %618 = vector.broadcast %cst_223 : f32 to vector<1x32xf32>
    %619 = arith.addf %618, %617 : vector<1x32xf32>
    %620 = arith.divf %618, %619 : vector<1x32xf32>
    %621 = vector.extract_strided_slice %335 {offsets = [7, 0], sizes = [1, 32], strides = [1, 1]} : vector<8x32xf32> to vector<1x32xf32>
    %622 = arith.addf %606, %343 : vector<1x32xf32>
    %623 = arith.mulf %613, %622 : vector<1x32xf32>
    %624 = arith.addf %621, %623 : vector<1x32xf32>
    %625 = math.tanh %624 : vector<1x32xf32>
    %cst_224 = arith.constant 1.000000e+00 : f32
    %626 = vector.broadcast %cst_224 : f32 to vector<1x32xf32>
    %627 = arith.subf %626, %620 : vector<1x32xf32>
    %628 = arith.mulf %627, %625 : vector<1x32xf32>
    %629 = arith.mulf %620, %598 : vector<1x32xf32>
    %630 = arith.addf %628, %629 : vector<1x32xf32>
    %c7_i32_225 = arith.constant 7 : i32
    %631 = vector.broadcast %c7_i32_225 : i32 to vector<1x1xi32>
    %632 = arith.cmpi sgt, %17, %631 : vector<1x1xi32>
    %cst_226 = arith.constant 0.000000e+00 : f32
    %633 = vector.shape_cast %632 : vector<1x1xi1> to vector<1x1xi1>
    %634 = vector.broadcast %633 : vector<1x1xi1> to vector<1x32xi1>
    %635 = vector.broadcast %cst_226 : f32 to vector<1x32xf32>
    %636 = arith.select %634, %630, %635 : vector<1x32xi1>, vector<1x32xf32>
    %c7_227 = arith.constant 7 : index
    %c0_228 = arith.constant 0 : index
    %637 = vector.load %arg17[%c7_227, %c0_228] : memref<8x32xf32, #tpu.memory_space<vmem>>, vector<1x32xf32>
    tpu.vector_store %arg17[%c7_227, %c0_228], %636 {strides = array<i32>} : memref<8x32xf32, #tpu.memory_space<vmem>>, vector<1x32xf32>,
    %638 = vector.extract_strided_slice %16 {offsets = [0, 0], sizes = [1, 32], strides = [1, 1]} : vector<2x32xf32> to vector<1x32xf32>
    %c0_229 = arith.constant 0 : index
    %c0_230 = arith.constant 0 : index
    %639 = vector.load %arg17[%c0_229, %c0_230] : memref<8x32xf32, #tpu.memory_space<vmem>>, vector<8x32xf32>
    %cst_231 = arith.constant dense<0.000000e+00> : vector<8x32xf32>
    %640 = tpu.matmul %639, %1, %cst_231 {dimension_numbers = #tpu.dot_dimension_numbers<[1], [0], [0], [1], [0, 0, 1, 1], [], []>} : vector<8x32xf32>, vector<32x32xf32>, vector<8x32xf32> -> vector<8x32xf32>
    %641 = vector.broadcast %638 : vector<1x32xf32> to vector<8x32xf32>
    %642 = arith.addf %640, %641 : vector<8x32xf32>
    %c0_232 = arith.constant 0 : index
    %c0_233 = arith.constant 0 : index
    %c0_234 = arith.constant 0 : index
    %643 = vector.load %arg16[%c0_232, %c0_233, %c0_234] : memref<2x8x32xf32, #tpu.memory_space<vmem>>, vector<1x8x32xf32>
    %644 = vector.shape_cast %643 : vector<1x8x32xf32> to vector<8x32xf32>
    %645 = vector.shape_cast %642 : vector<8x32xf32> to vector<1x8x32xf32>
    tpu.vector_store %arg16[%c0_232, %c0_233, %c0_234], %645 {strides = array<i32>} : memref<2x8x32xf32, #tpu.memory_space<vmem>>, vector<1x8x32xf32>,
    %646 = vector.extract_strided_slice %0 {offsets = [1, 0], sizes = [1, 1], strides = [1, 1]} : vector<2x1xi32> to vector<1x1xi32>
    %c1_235 = arith.constant 1 : index
    %c0_236 = arith.constant 0 : index
    %c0_237 = arith.constant 0 : index
    %647 = vector.load %arg1[%c1_235, %c0_236, %c0_237] : memref<2x8x4xf32, #tpu.memory_space<vmem>>, vector<1x8x4xf32>
    %648 = vector.shape_cast %647 : vector<1x8x4xf32> to vector<8x4xf32>
    %c0_238 = arith.constant 0 : index
    %c0_239 = arith.constant 0 : index
    %c0_240 = arith.constant 0 : index
    %649 = vector.load %arg2[%c0_238, %c0_239, %c0_240] : memref<3x4x32xf32, #tpu.memory_space<vmem>>, vector<1x4x32xf32>
    %650 = vector.shape_cast %649 : vector<1x4x32xf32> to vector<4x32xf32>
    %cst_241 = arith.constant dense<0.000000e+00> : vector<8x32xf32>
    %651 = tpu.matmul %648, %650, %cst_241 {dimension_numbers = #tpu.dot_dimension_numbers<[1], [0], [0], [1], [0, 0, 1, 1], [], []>} : vector<8x4xf32>, vector<4x32xf32>, vector<8x32xf32> -> vector<8x32xf32>
    %c0_242 = arith.constant 0 : index
    %c0_243 = arith.constant 0 : index
    %c0_244 = arith.constant 0 : index
    %652 = vector.load %arg4[%c0_242, %c0_243, %c0_244] : memref<4x1x32xf32, #tpu.memory_space<vmem>>, vector<1x1x32xf32>
    %653 = vector.shape_cast %652 : vector<1x1x32xf32> to vector<1x32xf32>
    %654 = vector.broadcast %653 : vector<1x32xf32> to vector<8x32xf32>
    %655 = arith.addf %651, %654 : vector<8x32xf32>
    %c1_245 = arith.constant 1 : index
    %c0_246 = arith.constant 0 : index
    %c0_247 = arith.constant 0 : index
    %656 = vector.load %arg2[%c1_245, %c0_246, %c0_247] : memref<3x4x32xf32, #tpu.memory_space<vmem>>, vector<1x4x32xf32>
    %657 = vector.shape_cast %656 : vector<1x4x32xf32> to vector<4x32xf32>
    %cst_248 = arith.constant dense<0.000000e+00> : vector<8x32xf32>
    %658 = tpu.matmul %648, %657, %cst_248 {dimension_numbers = #tpu.dot_dimension_numbers<[1], [0], [0], [1], [0, 0, 1, 1], [], []>} : vector<8x4xf32>, vector<4x32xf32>, vector<8x32xf32> -> vector<8x32xf32>
    %c1_249 = arith.constant 1 : index
    %c0_250 = arith.constant 0 : index
    %c0_251 = arith.constant 0 : index
    %659 = vector.load %arg4[%c1_249, %c0_250, %c0_251] : memref<4x1x32xf32, #tpu.memory_space<vmem>>, vector<1x1x32xf32>
    %660 = vector.shape_cast %659 : vector<1x1x32xf32> to vector<1x32xf32>
    %661 = vector.broadcast %660 : vector<1x32xf32> to vector<8x32xf32>
    %662 = arith.addf %658, %661 : vector<8x32xf32>
    %c2_252 = arith.constant 2 : index
    %c0_253 = arith.constant 0 : index
    %c0_254 = arith.constant 0 : index
    %663 = vector.load %arg2[%c2_252, %c0_253, %c0_254] : memref<3x4x32xf32, #tpu.memory_space<vmem>>, vector<1x4x32xf32>
    %664 = vector.shape_cast %663 : vector<1x4x32xf32> to vector<4x32xf32>
    %cst_255 = arith.constant dense<0.000000e+00> : vector<8x32xf32>
    %665 = tpu.matmul %648, %664, %cst_255 {dimension_numbers = #tpu.dot_dimension_numbers<[1], [0], [0], [1], [0, 0, 1, 1], [], []>} : vector<8x4xf32>, vector<4x32xf32>, vector<8x32xf32> -> vector<8x32xf32>
    %c2_256 = arith.constant 2 : index
    %c0_257 = arith.constant 0 : index
    %c0_258 = arith.constant 0 : index
    %666 = vector.load %arg4[%c2_256, %c0_257, %c0_258] : memref<4x1x32xf32, #tpu.memory_space<vmem>>, vector<1x1x32xf32>
    %667 = vector.shape_cast %666 : vector<1x1x32xf32> to vector<1x32xf32>
    %668 = vector.broadcast %667 : vector<1x32xf32> to vector<8x32xf32>
    %669 = arith.addf %665, %668 : vector<8x32xf32>
    %c0_259 = arith.constant 0 : index
    %c0_260 = arith.constant 0 : index
    %c0_261 = arith.constant 0 : index
    %670 = vector.load %arg3[%c0_259, %c0_260, %c0_261] : memref<3x32x32xf32, #tpu.memory_space<vmem>>, vector<1x32x32xf32>
    %671 = vector.shape_cast %670 : vector<1x32x32xf32> to vector<32x32xf32>
    %c1_262 = arith.constant 1 : index
    %c0_263 = arith.constant 0 : index
    %c0_264 = arith.constant 0 : index
    %672 = vector.load %arg3[%c1_262, %c0_263, %c0_264] : memref<3x32x32xf32, #tpu.memory_space<vmem>>, vector<1x32x32xf32>
    %673 = vector.shape_cast %672 : vector<1x32x32xf32> to vector<32x32xf32>
    %c2_265 = arith.constant 2 : index
    %c0_266 = arith.constant 0 : index
    %c0_267 = arith.constant 0 : index
    %674 = vector.load %arg3[%c2_265, %c0_266, %c0_267] : memref<3x32x32xf32, #tpu.memory_space<vmem>>, vector<1x32x32xf32>
    %675 = vector.shape_cast %674 : vector<1x32x32xf32> to vector<32x32xf32>
    %c3_268 = arith.constant 3 : index
    %c0_269 = arith.constant 0 : index
    %c0_270 = arith.constant 0 : index
    %676 = vector.load %arg4[%c3_268, %c0_269, %c0_270] : memref<4x1x32xf32, #tpu.memory_space<vmem>>, vector<1x1x32xf32>
    %677 = vector.shape_cast %676 : vector<1x1x32xf32> to vector<1x32xf32>
    %cst_271 = arith.constant 0.000000e+00 : f32
    %678 = vector.broadcast %cst_271 : f32 to vector<1x32xf32>
    %cst_272 = arith.constant dense<0.000000e+00> : vector<1x32xf32>
    %679 = tpu.matmul %678, %671, %cst_272 {dimension_numbers = #tpu.dot_dimension_numbers<[1], [0], [0], [1], [0, 0, 1, 1], [], []>} : vector<1x32xf32>, vector<32x32xf32>, vector<1x32xf32> -> vector<1x32xf32>
    %cst_273 = arith.constant dense<0.000000e+00> : vector<1x32xf32>
    %680 = tpu.matmul %678, %673, %cst_273 {dimension_numbers = #tpu.dot_dimension_numbers<[1], [0], [0], [1], [0, 0, 1, 1], [], []>} : vector<1x32xf32>, vector<32x32xf32>, vector<1x32xf32> -> vector<1x32xf32>
    %cst_274 = arith.constant dense<0.000000e+00> : vector<1x32xf32>
    %681 = tpu.matmul %678, %675, %cst_274 {dimension_numbers = #tpu.dot_dimension_numbers<[1], [0], [0], [1], [0, 0, 1, 1], [], []>} : vector<1x32xf32>, vector<32x32xf32>, vector<1x32xf32> -> vector<1x32xf32>
    %682 = vector.extract_strided_slice %655 {offsets = [0, 0], sizes = [1, 32], strides = [1, 1]} : vector<8x32xf32> to vector<1x32xf32>
    %683 = arith.addf %682, %679 : vector<1x32xf32>
    %684 = arith.negf %683 : vector<1x32xf32>
    %685 = math.exp %684 : vector<1x32xf32>
    %cst_275 = arith.constant 1.000000e+00 : f32
    %686 = vector.broadcast %cst_275 : f32 to vector<1x32xf32>
    %687 = arith.addf %686, %685 : vector<1x32xf32>
    %688 = arith.divf %686, %687 : vector<1x32xf32>
    %689 = vector.extract_strided_slice %662 {offsets = [0, 0], sizes = [1, 32], strides = [1, 1]} : vector<8x32xf32> to vector<1x32xf32>
    %690 = arith.addf %689, %680 : vector<1x32xf32>
    %691 = arith.negf %690 : vector<1x32xf32>
    %692 = math.exp %691 : vector<1x32xf32>
    %cst_276 = arith.constant 1.000000e+00 : f32
    %693 = vector.broadcast %cst_276 : f32 to vector<1x32xf32>
    %694 = arith.addf %693, %692 : vector<1x32xf32>
    %695 = arith.divf %693, %694 : vector<1x32xf32>
    %696 = vector.extract_strided_slice %669 {offsets = [0, 0], sizes = [1, 32], strides = [1, 1]} : vector<8x32xf32> to vector<1x32xf32>
    %697 = arith.addf %681, %677 : vector<1x32xf32>
    %698 = arith.mulf %688, %697 : vector<1x32xf32>
    %699 = arith.addf %696, %698 : vector<1x32xf32>
    %700 = math.tanh %699 : vector<1x32xf32>
    %cst_277 = arith.constant 1.000000e+00 : f32
    %701 = vector.broadcast %cst_277 : f32 to vector<1x32xf32>
    %702 = arith.subf %701, %695 : vector<1x32xf32>
    %703 = arith.mulf %702, %700 : vector<1x32xf32>
    %704 = arith.mulf %695, %678 : vector<1x32xf32>
    %705 = arith.addf %703, %704 : vector<1x32xf32>
    %c0_i32_278 = arith.constant 0 : i32
    %706 = vector.broadcast %c0_i32_278 : i32 to vector<1x1xi32>
    %707 = arith.cmpi sgt, %646, %706 : vector<1x1xi32>
    %708 = vector.shape_cast %707 : vector<1x1xi1> to vector<1x1xi1>
    %709 = vector.broadcast %708 : vector<1x1xi1> to vector<1x32xi1>
    %710 = arith.select %709, %705, %678 : vector<1x32xi1>, vector<1x32xf32>
    %c0_279 = arith.constant 0 : index
    %c0_280 = arith.constant 0 : index
    %711 = vector.load %arg17[%c0_279, %c0_280] : memref<8x32xf32, #tpu.memory_space<vmem>>, vector<1x32xf32>
    tpu.vector_store %arg17[%c0_279, %c0_280], %710 {strides = array<i32>} : memref<8x32xf32, #tpu.memory_space<vmem>>, vector<1x32xf32>,
    %cst_281 = arith.constant dense<0.000000e+00> : vector<1x32xf32>
    %712 = tpu.matmul %710, %671, %cst_281 {dimension_numbers = #tpu.dot_dimension_numbers<[1], [0], [0], [1], [0, 0, 1, 1], [], []>} : vector<1x32xf32>, vector<32x32xf32>, vector<1x32xf32> -> vector<1x32xf32>
    %cst_282 = arith.constant dense<0.000000e+00> : vector<1x32xf32>
    %713 = tpu.matmul %710, %673, %cst_282 {dimension_numbers = #tpu.dot_dimension_numbers<[1], [0], [0], [1], [0, 0, 1, 1], [], []>} : vector<1x32xf32>, vector<32x32xf32>, vector<1x32xf32> -> vector<1x32xf32>
    %cst_283 = arith.constant dense<0.000000e+00> : vector<1x32xf32>
    %714 = tpu.matmul %710, %675, %cst_283 {dimension_numbers = #tpu.dot_dimension_numbers<[1], [0], [0], [1], [0, 0, 1, 1], [], []>} : vector<1x32xf32>, vector<32x32xf32>, vector<1x32xf32> -> vector<1x32xf32>
    %715 = vector.extract_strided_slice %655 {offsets = [1, 0], sizes = [1, 32], strides = [1, 1]} : vector<8x32xf32> to vector<1x32xf32>
    %716 = arith.addf %715, %712 : vector<1x32xf32>
    %717 = arith.negf %716 : vector<1x32xf32>
    %718 = math.exp %717 : vector<1x32xf32>
    %cst_284 = arith.constant 1.000000e+00 : f32
    %719 = vector.broadcast %cst_284 : f32 to vector<1x32xf32>
    %720 = arith.addf %719, %718 : vector<1x32xf32>
    %721 = arith.divf %719, %720 : vector<1x32xf32>
    %722 = vector.extract_strided_slice %662 {offsets = [1, 0], sizes = [1, 32], strides = [1, 1]} : vector<8x32xf32> to vector<1x32xf32>
    %723 = arith.addf %722, %713 : vector<1x32xf32>
    %724 = arith.negf %723 : vector<1x32xf32>
    %725 = math.exp %724 : vector<1x32xf32>
    %cst_285 = arith.constant 1.000000e+00 : f32
    %726 = vector.broadcast %cst_285 : f32 to vector<1x32xf32>
    %727 = arith.addf %726, %725 : vector<1x32xf32>
    %728 = arith.divf %726, %727 : vector<1x32xf32>
    %729 = vector.extract_strided_slice %669 {offsets = [1, 0], sizes = [1, 32], strides = [1, 1]} : vector<8x32xf32> to vector<1x32xf32>
    %730 = arith.addf %714, %677 : vector<1x32xf32>
    %731 = arith.mulf %721, %730 : vector<1x32xf32>
    %732 = arith.addf %729, %731 : vector<1x32xf32>
    %733 = math.tanh %732 : vector<1x32xf32>
    %cst_286 = arith.constant 1.000000e+00 : f32
    %734 = vector.broadcast %cst_286 : f32 to vector<1x32xf32>
    %735 = arith.subf %734, %728 : vector<1x32xf32>
    %736 = arith.mulf %735, %733 : vector<1x32xf32>
    %737 = arith.mulf %728, %710 : vector<1x32xf32>
    %738 = arith.addf %736, %737 : vector<1x32xf32>
    %c1_i32_287 = arith.constant 1 : i32
    %739 = vector.broadcast %c1_i32_287 : i32 to vector<1x1xi32>
    %740 = arith.cmpi sgt, %646, %739 : vector<1x1xi32>
    %741 = vector.shape_cast %740 : vector<1x1xi1> to vector<1x1xi1>
    %742 = vector.broadcast %741 : vector<1x1xi1> to vector<1x32xi1>
    %743 = arith.select %742, %738, %710 : vector<1x32xi1>, vector<1x32xf32>
    %c1_288 = arith.constant 1 : index
    %c0_289 = arith.constant 0 : index
    %744 = vector.load %arg17[%c1_288, %c0_289] : memref<8x32xf32, #tpu.memory_space<vmem>>, vector<1x32xf32>
    tpu.vector_store %arg17[%c1_288, %c0_289], %743 {strides = array<i32>} : memref<8x32xf32, #tpu.memory_space<vmem>>, vector<1x32xf32>,
    %cst_290 = arith.constant dense<0.000000e+00> : vector<1x32xf32>
    %745 = tpu.matmul %743, %671, %cst_290 {dimension_numbers = #tpu.dot_dimension_numbers<[1], [0], [0], [1], [0, 0, 1, 1], [], []>} : vector<1x32xf32>, vector<32x32xf32>, vector<1x32xf32> -> vector<1x32xf32>
    %cst_291 = arith.constant dense<0.000000e+00> : vector<1x32xf32>
    %746 = tpu.matmul %743, %673, %cst_291 {dimension_numbers = #tpu.dot_dimension_numbers<[1], [0], [0], [1], [0, 0, 1, 1], [], []>} : vector<1x32xf32>, vector<32x32xf32>, vector<1x32xf32> -> vector<1x32xf32>
    %cst_292 = arith.constant dense<0.000000e+00> : vector<1x32xf32>
    %747 = tpu.matmul %743, %675, %cst_292 {dimension_numbers = #tpu.dot_dimension_numbers<[1], [0], [0], [1], [0, 0, 1, 1], [], []>} : vector<1x32xf32>, vector<32x32xf32>, vector<1x32xf32> -> vector<1x32xf32>
    %748 = vector.extract_strided_slice %655 {offsets = [2, 0], sizes = [1, 32], strides = [1, 1]} : vector<8x32xf32> to vector<1x32xf32>
    %749 = arith.addf %748, %745 : vector<1x32xf32>
    %750 = arith.negf %749 : vector<1x32xf32>
    %751 = math.exp %750 : vector<1x32xf32>
    %cst_293 = arith.constant 1.000000e+00 : f32
    %752 = vector.broadcast %cst_293 : f32 to vector<1x32xf32>
    %753 = arith.addf %752, %751 : vector<1x32xf32>
    %754 = arith.divf %752, %753 : vector<1x32xf32>
    %755 = vector.extract_strided_slice %662 {offsets = [2, 0], sizes = [1, 32], strides = [1, 1]} : vector<8x32xf32> to vector<1x32xf32>
    %756 = arith.addf %755, %746 : vector<1x32xf32>
    %757 = arith.negf %756 : vector<1x32xf32>
    %758 = math.exp %757 : vector<1x32xf32>
    %cst_294 = arith.constant 1.000000e+00 : f32
    %759 = vector.broadcast %cst_294 : f32 to vector<1x32xf32>
    %760 = arith.addf %759, %758 : vector<1x32xf32>
    %761 = arith.divf %759, %760 : vector<1x32xf32>
    %762 = vector.extract_strided_slice %669 {offsets = [2, 0], sizes = [1, 32], strides = [1, 1]} : vector<8x32xf32> to vector<1x32xf32>
    %763 = arith.addf %747, %677 : vector<1x32xf32>
    %764 = arith.mulf %754, %763 : vector<1x32xf32>
    %765 = arith.addf %762, %764 : vector<1x32xf32>
    %766 = math.tanh %765 : vector<1x32xf32>
    %cst_295 = arith.constant 1.000000e+00 : f32
    %767 = vector.broadcast %cst_295 : f32 to vector<1x32xf32>
    %768 = arith.subf %767, %761 : vector<1x32xf32>
    %769 = arith.mulf %768, %766 : vector<1x32xf32>
    %770 = arith.mulf %761, %743 : vector<1x32xf32>
    %771 = arith.addf %769, %770 : vector<1x32xf32>
    %c2_i32_296 = arith.constant 2 : i32
    %772 = vector.broadcast %c2_i32_296 : i32 to vector<1x1xi32>
    %773 = arith.cmpi sgt, %646, %772 : vector<1x1xi32>
    %774 = vector.shape_cast %773 : vector<1x1xi1> to vector<1x1xi1>
    %775 = vector.broadcast %774 : vector<1x1xi1> to vector<1x32xi1>
    %776 = arith.select %775, %771, %743 : vector<1x32xi1>, vector<1x32xf32>
    %c2_297 = arith.constant 2 : index
    %c0_298 = arith.constant 0 : index
    %777 = vector.load %arg17[%c2_297, %c0_298] : memref<8x32xf32, #tpu.memory_space<vmem>>, vector<1x32xf32>
    tpu.vector_store %arg17[%c2_297, %c0_298], %776 {strides = array<i32>} : memref<8x32xf32, #tpu.memory_space<vmem>>, vector<1x32xf32>,
    %cst_299 = arith.constant dense<0.000000e+00> : vector<1x32xf32>
    %778 = tpu.matmul %776, %671, %cst_299 {dimension_numbers = #tpu.dot_dimension_numbers<[1], [0], [0], [1], [0, 0, 1, 1], [], []>} : vector<1x32xf32>, vector<32x32xf32>, vector<1x32xf32> -> vector<1x32xf32>
    %cst_300 = arith.constant dense<0.000000e+00> : vector<1x32xf32>
    %779 = tpu.matmul %776, %673, %cst_300 {dimension_numbers = #tpu.dot_dimension_numbers<[1], [0], [0], [1], [0, 0, 1, 1], [], []>} : vector<1x32xf32>, vector<32x32xf32>, vector<1x32xf32> -> vector<1x32xf32>
    %cst_301 = arith.constant dense<0.000000e+00> : vector<1x32xf32>
    %780 = tpu.matmul %776, %675, %cst_301 {dimension_numbers = #tpu.dot_dimension_numbers<[1], [0], [0], [1], [0, 0, 1, 1], [], []>} : vector<1x32xf32>, vector<32x32xf32>, vector<1x32xf32> -> vector<1x32xf32>
    %781 = vector.extract_strided_slice %655 {offsets = [3, 0], sizes = [1, 32], strides = [1, 1]} : vector<8x32xf32> to vector<1x32xf32>
    %782 = arith.addf %781, %778 : vector<1x32xf32>
    %783 = arith.negf %782 : vector<1x32xf32>
    %784 = math.exp %783 : vector<1x32xf32>
    %cst_302 = arith.constant 1.000000e+00 : f32
    %785 = vector.broadcast %cst_302 : f32 to vector<1x32xf32>
    %786 = arith.addf %785, %784 : vector<1x32xf32>
    %787 = arith.divf %785, %786 : vector<1x32xf32>
    %788 = vector.extract_strided_slice %662 {offsets = [3, 0], sizes = [1, 32], strides = [1, 1]} : vector<8x32xf32> to vector<1x32xf32>
    %789 = arith.addf %788, %779 : vector<1x32xf32>
    %790 = arith.negf %789 : vector<1x32xf32>
    %791 = math.exp %790 : vector<1x32xf32>
    %cst_303 = arith.constant 1.000000e+00 : f32
    %792 = vector.broadcast %cst_303 : f32 to vector<1x32xf32>
    %793 = arith.addf %792, %791 : vector<1x32xf32>
    %794 = arith.divf %792, %793 : vector<1x32xf32>
    %795 = vector.extract_strided_slice %669 {offsets = [3, 0], sizes = [1, 32], strides = [1, 1]} : vector<8x32xf32> to vector<1x32xf32>
    %796 = arith.addf %780, %677 : vector<1x32xf32>
    %797 = arith.mulf %787, %796 : vector<1x32xf32>
    %798 = arith.addf %795, %797 : vector<1x32xf32>
    %799 = math.tanh %798 : vector<1x32xf32>
    %cst_304 = arith.constant 1.000000e+00 : f32
    %800 = vector.broadcast %cst_304 : f32 to vector<1x32xf32>
    %801 = arith.subf %800, %794 : vector<1x32xf32>
    %802 = arith.mulf %801, %799 : vector<1x32xf32>
    %803 = arith.mulf %794, %776 : vector<1x32xf32>
    %804 = arith.addf %802, %803 : vector<1x32xf32>
    %c3_i32_305 = arith.constant 3 : i32
    %805 = vector.broadcast %c3_i32_305 : i32 to vector<1x1xi32>
    %806 = arith.cmpi sgt, %646, %805 : vector<1x1xi32>
    %807 = vector.shape_cast %806 : vector<1x1xi1> to vector<1x1xi1>
    %808 = vector.broadcast %807 : vector<1x1xi1> to vector<1x32xi1>
    %809 = arith.select %808, %804, %776 : vector<1x32xi1>, vector<1x32xf32>
    %c3_306 = arith.constant 3 : index
    %c0_307 = arith.constant 0 : index
    %810 = vector.load %arg17[%c3_306, %c0_307] : memref<8x32xf32, #tpu.memory_space<vmem>>, vector<1x32xf32>
    tpu.vector_store %arg17[%c3_306, %c0_307], %809 {strides = array<i32>} : memref<8x32xf32, #tpu.memory_space<vmem>>, vector<1x32xf32>,
    %cst_308 = arith.constant dense<0.000000e+00> : vector<1x32xf32>
    %811 = tpu.matmul %809, %671, %cst_308 {dimension_numbers = #tpu.dot_dimension_numbers<[1], [0], [0], [1], [0, 0, 1, 1], [], []>} : vector<1x32xf32>, vector<32x32xf32>, vector<1x32xf32> -> vector<1x32xf32>
    %cst_309 = arith.constant dense<0.000000e+00> : vector<1x32xf32>
    %812 = tpu.matmul %809, %673, %cst_309 {dimension_numbers = #tpu.dot_dimension_numbers<[1], [0], [0], [1], [0, 0, 1, 1], [], []>} : vector<1x32xf32>, vector<32x32xf32>, vector<1x32xf32> -> vector<1x32xf32>
    %cst_310 = arith.constant dense<0.000000e+00> : vector<1x32xf32>
    %813 = tpu.matmul %809, %675, %cst_310 {dimension_numbers = #tpu.dot_dimension_numbers<[1], [0], [0], [1], [0, 0, 1, 1], [], []>} : vector<1x32xf32>, vector<32x32xf32>, vector<1x32xf32> -> vector<1x32xf32>
    %814 = vector.extract_strided_slice %655 {offsets = [4, 0], sizes = [1, 32], strides = [1, 1]} : vector<8x32xf32> to vector<1x32xf32>
    %815 = arith.addf %814, %811 : vector<1x32xf32>
    %816 = arith.negf %815 : vector<1x32xf32>
    %817 = math.exp %816 : vector<1x32xf32>
    %cst_311 = arith.constant 1.000000e+00 : f32
    %818 = vector.broadcast %cst_311 : f32 to vector<1x32xf32>
    %819 = arith.addf %818, %817 : vector<1x32xf32>
    %820 = arith.divf %818, %819 : vector<1x32xf32>
    %821 = vector.extract_strided_slice %662 {offsets = [4, 0], sizes = [1, 32], strides = [1, 1]} : vector<8x32xf32> to vector<1x32xf32>
    %822 = arith.addf %821, %812 : vector<1x32xf32>
    %823 = arith.negf %822 : vector<1x32xf32>
    %824 = math.exp %823 : vector<1x32xf32>
    %cst_312 = arith.constant 1.000000e+00 : f32
    %825 = vector.broadcast %cst_312 : f32 to vector<1x32xf32>
    %826 = arith.addf %825, %824 : vector<1x32xf32>
    %827 = arith.divf %825, %826 : vector<1x32xf32>
    %828 = vector.extract_strided_slice %669 {offsets = [4, 0], sizes = [1, 32], strides = [1, 1]} : vector<8x32xf32> to vector<1x32xf32>
    %829 = arith.addf %813, %677 : vector<1x32xf32>
    %830 = arith.mulf %820, %829 : vector<1x32xf32>
    %831 = arith.addf %828, %830 : vector<1x32xf32>
    %832 = math.tanh %831 : vector<1x32xf32>
    %cst_313 = arith.constant 1.000000e+00 : f32
    %833 = vector.broadcast %cst_313 : f32 to vector<1x32xf32>
    %834 = arith.subf %833, %827 : vector<1x32xf32>
    %835 = arith.mulf %834, %832 : vector<1x32xf32>
    %836 = arith.mulf %827, %809 : vector<1x32xf32>
    %837 = arith.addf %835, %836 : vector<1x32xf32>
    %c4_i32_314 = arith.constant 4 : i32
    %838 = vector.broadcast %c4_i32_314 : i32 to vector<1x1xi32>
    %839 = arith.cmpi sgt, %646, %838 : vector<1x1xi32>
    %840 = vector.shape_cast %839 : vector<1x1xi1> to vector<1x1xi1>
    %841 = vector.broadcast %840 : vector<1x1xi1> to vector<1x32xi1>
    %842 = arith.select %841, %837, %809 : vector<1x32xi1>, vector<1x32xf32>
    %c4_315 = arith.constant 4 : index
    %c0_316 = arith.constant 0 : index
    %843 = vector.load %arg17[%c4_315, %c0_316] : memref<8x32xf32, #tpu.memory_space<vmem>>, vector<1x32xf32>
    tpu.vector_store %arg17[%c4_315, %c0_316], %842 {strides = array<i32>} : memref<8x32xf32, #tpu.memory_space<vmem>>, vector<1x32xf32>,
    %cst_317 = arith.constant dense<0.000000e+00> : vector<1x32xf32>
    %844 = tpu.matmul %842, %671, %cst_317 {dimension_numbers = #tpu.dot_dimension_numbers<[1], [0], [0], [1], [0, 0, 1, 1], [], []>} : vector<1x32xf32>, vector<32x32xf32>, vector<1x32xf32> -> vector<1x32xf32>
    %cst_318 = arith.constant dense<0.000000e+00> : vector<1x32xf32>
    %845 = tpu.matmul %842, %673, %cst_318 {dimension_numbers = #tpu.dot_dimension_numbers<[1], [0], [0], [1], [0, 0, 1, 1], [], []>} : vector<1x32xf32>, vector<32x32xf32>, vector<1x32xf32> -> vector<1x32xf32>
    %cst_319 = arith.constant dense<0.000000e+00> : vector<1x32xf32>
    %846 = tpu.matmul %842, %675, %cst_319 {dimension_numbers = #tpu.dot_dimension_numbers<[1], [0], [0], [1], [0, 0, 1, 1], [], []>} : vector<1x32xf32>, vector<32x32xf32>, vector<1x32xf32> -> vector<1x32xf32>
    %847 = vector.extract_strided_slice %655 {offsets = [5, 0], sizes = [1, 32], strides = [1, 1]} : vector<8x32xf32> to vector<1x32xf32>
    %848 = arith.addf %847, %844 : vector<1x32xf32>
    %849 = arith.negf %848 : vector<1x32xf32>
    %850 = math.exp %849 : vector<1x32xf32>
    %cst_320 = arith.constant 1.000000e+00 : f32
    %851 = vector.broadcast %cst_320 : f32 to vector<1x32xf32>
    %852 = arith.addf %851, %850 : vector<1x32xf32>
    %853 = arith.divf %851, %852 : vector<1x32xf32>
    %854 = vector.extract_strided_slice %662 {offsets = [5, 0], sizes = [1, 32], strides = [1, 1]} : vector<8x32xf32> to vector<1x32xf32>
    %855 = arith.addf %854, %845 : vector<1x32xf32>
    %856 = arith.negf %855 : vector<1x32xf32>
    %857 = math.exp %856 : vector<1x32xf32>
    %cst_321 = arith.constant 1.000000e+00 : f32
    %858 = vector.broadcast %cst_321 : f32 to vector<1x32xf32>
    %859 = arith.addf %858, %857 : vector<1x32xf32>
    %860 = arith.divf %858, %859 : vector<1x32xf32>
    %861 = vector.extract_strided_slice %669 {offsets = [5, 0], sizes = [1, 32], strides = [1, 1]} : vector<8x32xf32> to vector<1x32xf32>
    %862 = arith.addf %846, %677 : vector<1x32xf32>
    %863 = arith.mulf %853, %862 : vector<1x32xf32>
    %864 = arith.addf %861, %863 : vector<1x32xf32>
    %865 = math.tanh %864 : vector<1x32xf32>
    %cst_322 = arith.constant 1.000000e+00 : f32
    %866 = vector.broadcast %cst_322 : f32 to vector<1x32xf32>
    %867 = arith.subf %866, %860 : vector<1x32xf32>
    %868 = arith.mulf %867, %865 : vector<1x32xf32>
    %869 = arith.mulf %860, %842 : vector<1x32xf32>
    %870 = arith.addf %868, %869 : vector<1x32xf32>
    %c5_i32_323 = arith.constant 5 : i32
    %871 = vector.broadcast %c5_i32_323 : i32 to vector<1x1xi32>
    %872 = arith.cmpi sgt, %646, %871 : vector<1x1xi32>
    %873 = vector.shape_cast %872 : vector<1x1xi1> to vector<1x1xi1>
    %874 = vector.broadcast %873 : vector<1x1xi1> to vector<1x32xi1>
    %875 = arith.select %874, %870, %842 : vector<1x32xi1>, vector<1x32xf32>
    %c5_324 = arith.constant 5 : index
    %c0_325 = arith.constant 0 : index
    %876 = vector.load %arg17[%c5_324, %c0_325] : memref<8x32xf32, #tpu.memory_space<vmem>>, vector<1x32xf32>
    tpu.vector_store %arg17[%c5_324, %c0_325], %875 {strides = array<i32>} : memref<8x32xf32, #tpu.memory_space<vmem>>, vector<1x32xf32>,
    %cst_326 = arith.constant dense<0.000000e+00> : vector<1x32xf32>
    %877 = tpu.matmul %875, %671, %cst_326 {dimension_numbers = #tpu.dot_dimension_numbers<[1], [0], [0], [1], [0, 0, 1, 1], [], []>} : vector<1x32xf32>, vector<32x32xf32>, vector<1x32xf32> -> vector<1x32xf32>
    %cst_327 = arith.constant dense<0.000000e+00> : vector<1x32xf32>
    %878 = tpu.matmul %875, %673, %cst_327 {dimension_numbers = #tpu.dot_dimension_numbers<[1], [0], [0], [1], [0, 0, 1, 1], [], []>} : vector<1x32xf32>, vector<32x32xf32>, vector<1x32xf32> -> vector<1x32xf32>
    %cst_328 = arith.constant dense<0.000000e+00> : vector<1x32xf32>
    %879 = tpu.matmul %875, %675, %cst_328 {dimension_numbers = #tpu.dot_dimension_numbers<[1], [0], [0], [1], [0, 0, 1, 1], [], []>} : vector<1x32xf32>, vector<32x32xf32>, vector<1x32xf32> -> vector<1x32xf32>
    %880 = vector.extract_strided_slice %655 {offsets = [6, 0], sizes = [1, 32], strides = [1, 1]} : vector<8x32xf32> to vector<1x32xf32>
    %881 = arith.addf %880, %877 : vector<1x32xf32>
    %882 = arith.negf %881 : vector<1x32xf32>
    %883 = math.exp %882 : vector<1x32xf32>
    %cst_329 = arith.constant 1.000000e+00 : f32
    %884 = vector.broadcast %cst_329 : f32 to vector<1x32xf32>
    %885 = arith.addf %884, %883 : vector<1x32xf32>
    %886 = arith.divf %884, %885 : vector<1x32xf32>
    %887 = vector.extract_strided_slice %662 {offsets = [6, 0], sizes = [1, 32], strides = [1, 1]} : vector<8x32xf32> to vector<1x32xf32>
    %888 = arith.addf %887, %878 : vector<1x32xf32>
    %889 = arith.negf %888 : vector<1x32xf32>
    %890 = math.exp %889 : vector<1x32xf32>
    %cst_330 = arith.constant 1.000000e+00 : f32
    %891 = vector.broadcast %cst_330 : f32 to vector<1x32xf32>
    %892 = arith.addf %891, %890 : vector<1x32xf32>
    %893 = arith.divf %891, %892 : vector<1x32xf32>
    %894 = vector.extract_strided_slice %669 {offsets = [6, 0], sizes = [1, 32], strides = [1, 1]} : vector<8x32xf32> to vector<1x32xf32>
    %895 = arith.addf %879, %677 : vector<1x32xf32>
    %896 = arith.mulf %886, %895 : vector<1x32xf32>
    %897 = arith.addf %894, %896 : vector<1x32xf32>
    %898 = math.tanh %897 : vector<1x32xf32>
    %cst_331 = arith.constant 1.000000e+00 : f32
    %899 = vector.broadcast %cst_331 : f32 to vector<1x32xf32>
    %900 = arith.subf %899, %893 : vector<1x32xf32>
    %901 = arith.mulf %900, %898 : vector<1x32xf32>
    %902 = arith.mulf %893, %875 : vector<1x32xf32>
    %903 = arith.addf %901, %902 : vector<1x32xf32>
    %c6_i32_332 = arith.constant 6 : i32
    %904 = vector.broadcast %c6_i32_332 : i32 to vector<1x1xi32>
    %905 = arith.cmpi sgt, %646, %904 : vector<1x1xi32>
    %906 = vector.shape_cast %905 : vector<1x1xi1> to vector<1x1xi1>
    %907 = vector.broadcast %906 : vector<1x1xi1> to vector<1x32xi1>
    %908 = arith.select %907, %903, %875 : vector<1x32xi1>, vector<1x32xf32>
    %c6_333 = arith.constant 6 : index
    %c0_334 = arith.constant 0 : index
    %909 = vector.load %arg17[%c6_333, %c0_334] : memref<8x32xf32, #tpu.memory_space<vmem>>, vector<1x32xf32>
    tpu.vector_store %arg17[%c6_333, %c0_334], %908 {strides = array<i32>} : memref<8x32xf32, #tpu.memory_space<vmem>>, vector<1x32xf32>,
    %cst_335 = arith.constant dense<0.000000e+00> : vector<1x32xf32>
    %910 = tpu.matmul %908, %671, %cst_335 {dimension_numbers = #tpu.dot_dimension_numbers<[1], [0], [0], [1], [0, 0, 1, 1], [], []>} : vector<1x32xf32>, vector<32x32xf32>, vector<1x32xf32> -> vector<1x32xf32>
    %cst_336 = arith.constant dense<0.000000e+00> : vector<1x32xf32>
    %911 = tpu.matmul %908, %673, %cst_336 {dimension_numbers = #tpu.dot_dimension_numbers<[1], [0], [0], [1], [0, 0, 1, 1], [], []>} : vector<1x32xf32>, vector<32x32xf32>, vector<1x32xf32> -> vector<1x32xf32>
    %cst_337 = arith.constant dense<0.000000e+00> : vector<1x32xf32>
    %912 = tpu.matmul %908, %675, %cst_337 {dimension_numbers = #tpu.dot_dimension_numbers<[1], [0], [0], [1], [0, 0, 1, 1], [], []>} : vector<1x32xf32>, vector<32x32xf32>, vector<1x32xf32> -> vector<1x32xf32>
    %913 = vector.extract_strided_slice %655 {offsets = [7, 0], sizes = [1, 32], strides = [1, 1]} : vector<8x32xf32> to vector<1x32xf32>
    %914 = arith.addf %913, %910 : vector<1x32xf32>
    %915 = arith.negf %914 : vector<1x32xf32>
    %916 = math.exp %915 : vector<1x32xf32>
    %cst_338 = arith.constant 1.000000e+00 : f32
    %917 = vector.broadcast %cst_338 : f32 to vector<1x32xf32>
    %918 = arith.addf %917, %916 : vector<1x32xf32>
    %919 = arith.divf %917, %918 : vector<1x32xf32>
    %920 = vector.extract_strided_slice %662 {offsets = [7, 0], sizes = [1, 32], strides = [1, 1]} : vector<8x32xf32> to vector<1x32xf32>
    %921 = arith.addf %920, %911 : vector<1x32xf32>
    %922 = arith.negf %921 : vector<1x32xf32>
    %923 = math.exp %922 : vector<1x32xf32>
    %cst_339 = arith.constant 1.000000e+00 : f32
    %924 = vector.broadcast %cst_339 : f32 to vector<1x32xf32>
    %925 = arith.addf %924, %923 : vector<1x32xf32>
    %926 = arith.divf %924, %925 : vector<1x32xf32>
    %927 = vector.extract_strided_slice %669 {offsets = [7, 0], sizes = [1, 32], strides = [1, 1]} : vector<8x32xf32> to vector<1x32xf32>
    %928 = arith.addf %912, %677 : vector<1x32xf32>
    %929 = arith.mulf %919, %928 : vector<1x32xf32>
    %930 = arith.addf %927, %929 : vector<1x32xf32>
    %931 = math.tanh %930 : vector<1x32xf32>
    %cst_340 = arith.constant 1.000000e+00 : f32
    %932 = vector.broadcast %cst_340 : f32 to vector<1x32xf32>
    %933 = arith.subf %932, %926 : vector<1x32xf32>
    %934 = arith.mulf %933, %931 : vector<1x32xf32>
    %935 = arith.mulf %926, %908 : vector<1x32xf32>
    %936 = arith.addf %934, %935 : vector<1x32xf32>
    %c7_i32_341 = arith.constant 7 : i32
    %937 = vector.broadcast %c7_i32_341 : i32 to vector<1x1xi32>
    %938 = arith.cmpi sgt, %646, %937 : vector<1x1xi32>
    %939 = vector.shape_cast %938 : vector<1x1xi1> to vector<1x1xi1>
    %940 = vector.broadcast %939 : vector<1x1xi1> to vector<1x32xi1>
    %941 = arith.select %940, %936, %908 : vector<1x32xi1>, vector<1x32xf32>
    %c7_342 = arith.constant 7 : index
    %c0_343 = arith.constant 0 : index
    %942 = vector.load %arg17[%c7_342, %c0_343] : memref<8x32xf32, #tpu.memory_space<vmem>>, vector<1x32xf32>
    tpu.vector_store %arg17[%c7_342, %c0_343], %941 {strides = array<i32>} : memref<8x32xf32, #tpu.memory_space<vmem>>, vector<1x32xf32>,
    %c0_344 = arith.constant 0 : index
    %c0_345 = arith.constant 0 : index
    %943 = vector.load %arg17[%c0_344, %c0_345] : memref<8x32xf32, #tpu.memory_space<vmem>>, vector<8x32xf32>
    %c0_346 = arith.constant 0 : index
    %c0_347 = arith.constant 0 : index
    %c0_348 = arith.constant 0 : index
    %944 = vector.load %arg5[%c0_346, %c0_347, %c0_348] : memref<3x32x32xf32, #tpu.memory_space<vmem>>, vector<1x32x32xf32>
    %945 = vector.shape_cast %944 : vector<1x32x32xf32> to vector<32x32xf32>
    %cst_349 = arith.constant dense<0.000000e+00> : vector<8x32xf32>
    %946 = tpu.matmul %943, %945, %cst_349 {dimension_numbers = #tpu.dot_dimension_numbers<[1], [0], [0], [1], [0, 0, 1, 1], [], []>} : vector<8x32xf32>, vector<32x32xf32>, vector<8x32xf32> -> vector<8x32xf32>
    %c0_350 = arith.constant 0 : index
    %c0_351 = arith.constant 0 : index
    %c0_352 = arith.constant 0 : index
    %947 = vector.load %arg7[%c0_350, %c0_351, %c0_352] : memref<4x1x32xf32, #tpu.memory_space<vmem>>, vector<1x1x32xf32>
    %948 = vector.shape_cast %947 : vector<1x1x32xf32> to vector<1x32xf32>
    %949 = vector.broadcast %948 : vector<1x32xf32> to vector<8x32xf32>
    %950 = arith.addf %946, %949 : vector<8x32xf32>
    %c1_353 = arith.constant 1 : index
    %c0_354 = arith.constant 0 : index
    %c0_355 = arith.constant 0 : index
    %951 = vector.load %arg5[%c1_353, %c0_354, %c0_355] : memref<3x32x32xf32, #tpu.memory_space<vmem>>, vector<1x32x32xf32>
    %952 = vector.shape_cast %951 : vector<1x32x32xf32> to vector<32x32xf32>
    %cst_356 = arith.constant dense<0.000000e+00> : vector<8x32xf32>
    %953 = tpu.matmul %943, %952, %cst_356 {dimension_numbers = #tpu.dot_dimension_numbers<[1], [0], [0], [1], [0, 0, 1, 1], [], []>} : vector<8x32xf32>, vector<32x32xf32>, vector<8x32xf32> -> vector<8x32xf32>
    %c1_357 = arith.constant 1 : index
    %c0_358 = arith.constant 0 : index
    %c0_359 = arith.constant 0 : index
    %954 = vector.load %arg7[%c1_357, %c0_358, %c0_359] : memref<4x1x32xf32, #tpu.memory_space<vmem>>, vector<1x1x32xf32>
    %955 = vector.shape_cast %954 : vector<1x1x32xf32> to vector<1x32xf32>
    %956 = vector.broadcast %955 : vector<1x32xf32> to vector<8x32xf32>
    %957 = arith.addf %953, %956 : vector<8x32xf32>
    %c2_360 = arith.constant 2 : index
    %c0_361 = arith.constant 0 : index
    %c0_362 = arith.constant 0 : index
    %958 = vector.load %arg5[%c2_360, %c0_361, %c0_362] : memref<3x32x32xf32, #tpu.memory_space<vmem>>, vector<1x32x32xf32>
    %959 = vector.shape_cast %958 : vector<1x32x32xf32> to vector<32x32xf32>
    %cst_363 = arith.constant dense<0.000000e+00> : vector<8x32xf32>
    %960 = tpu.matmul %943, %959, %cst_363 {dimension_numbers = #tpu.dot_dimension_numbers<[1], [0], [0], [1], [0, 0, 1, 1], [], []>} : vector<8x32xf32>, vector<32x32xf32>, vector<8x32xf32> -> vector<8x32xf32>
    %c2_364 = arith.constant 2 : index
    %c0_365 = arith.constant 0 : index
    %c0_366 = arith.constant 0 : index
    %961 = vector.load %arg7[%c2_364, %c0_365, %c0_366] : memref<4x1x32xf32, #tpu.memory_space<vmem>>, vector<1x1x32xf32>
    %962 = vector.shape_cast %961 : vector<1x1x32xf32> to vector<1x32xf32>
    %963 = vector.broadcast %962 : vector<1x32xf32> to vector<8x32xf32>
    %964 = arith.addf %960, %963 : vector<8x32xf32>
    %c0_367 = arith.constant 0 : index
    %c0_368 = arith.constant 0 : index
    %c0_369 = arith.constant 0 : index
    %965 = vector.load %arg6[%c0_367, %c0_368, %c0_369] : memref<3x32x32xf32, #tpu.memory_space<vmem>>, vector<1x32x32xf32>
    %966 = vector.shape_cast %965 : vector<1x32x32xf32> to vector<32x32xf32>
    %c1_370 = arith.constant 1 : index
    %c0_371 = arith.constant 0 : index
    %c0_372 = arith.constant 0 : index
    %967 = vector.load %arg6[%c1_370, %c0_371, %c0_372] : memref<3x32x32xf32, #tpu.memory_space<vmem>>, vector<1x32x32xf32>
    %968 = vector.shape_cast %967 : vector<1x32x32xf32> to vector<32x32xf32>
    %c2_373 = arith.constant 2 : index
    %c0_374 = arith.constant 0 : index
    %c0_375 = arith.constant 0 : index
    %969 = vector.load %arg6[%c2_373, %c0_374, %c0_375] : memref<3x32x32xf32, #tpu.memory_space<vmem>>, vector<1x32x32xf32>
    %970 = vector.shape_cast %969 : vector<1x32x32xf32> to vector<32x32xf32>
    %c3_376 = arith.constant 3 : index
    %c0_377 = arith.constant 0 : index
    %c0_378 = arith.constant 0 : index
    %971 = vector.load %arg7[%c3_376, %c0_377, %c0_378] : memref<4x1x32xf32, #tpu.memory_space<vmem>>, vector<1x1x32xf32>
    %972 = vector.shape_cast %971 : vector<1x1x32xf32> to vector<1x32xf32>
    %cst_379 = arith.constant 0.000000e+00 : f32
    %973 = vector.broadcast %cst_379 : f32 to vector<1x32xf32>
    %cst_380 = arith.constant dense<0.000000e+00> : vector<1x32xf32>
    %974 = tpu.matmul %973, %966, %cst_380 {dimension_numbers = #tpu.dot_dimension_numbers<[1], [0], [0], [1], [0, 0, 1, 1], [], []>} : vector<1x32xf32>, vector<32x32xf32>, vector<1x32xf32> -> vector<1x32xf32>
    %cst_381 = arith.constant dense<0.000000e+00> : vector<1x32xf32>
    %975 = tpu.matmul %973, %968, %cst_381 {dimension_numbers = #tpu.dot_dimension_numbers<[1], [0], [0], [1], [0, 0, 1, 1], [], []>} : vector<1x32xf32>, vector<32x32xf32>, vector<1x32xf32> -> vector<1x32xf32>
    %cst_382 = arith.constant dense<0.000000e+00> : vector<1x32xf32>
    %976 = tpu.matmul %973, %970, %cst_382 {dimension_numbers = #tpu.dot_dimension_numbers<[1], [0], [0], [1], [0, 0, 1, 1], [], []>} : vector<1x32xf32>, vector<32x32xf32>, vector<1x32xf32> -> vector<1x32xf32>
    %977 = vector.extract_strided_slice %950 {offsets = [0, 0], sizes = [1, 32], strides = [1, 1]} : vector<8x32xf32> to vector<1x32xf32>
    %978 = arith.addf %977, %974 : vector<1x32xf32>
    %979 = arith.negf %978 : vector<1x32xf32>
    %980 = math.exp %979 : vector<1x32xf32>
    %cst_383 = arith.constant 1.000000e+00 : f32
    %981 = vector.broadcast %cst_383 : f32 to vector<1x32xf32>
    %982 = arith.addf %981, %980 : vector<1x32xf32>
    %983 = arith.divf %981, %982 : vector<1x32xf32>
    %984 = vector.extract_strided_slice %957 {offsets = [0, 0], sizes = [1, 32], strides = [1, 1]} : vector<8x32xf32> to vector<1x32xf32>
    %985 = arith.addf %984, %975 : vector<1x32xf32>
    %986 = arith.negf %985 : vector<1x32xf32>
    %987 = math.exp %986 : vector<1x32xf32>
    %cst_384 = arith.constant 1.000000e+00 : f32
    %988 = vector.broadcast %cst_384 : f32 to vector<1x32xf32>
    %989 = arith.addf %988, %987 : vector<1x32xf32>
    %990 = arith.divf %988, %989 : vector<1x32xf32>
    %991 = vector.extract_strided_slice %964 {offsets = [0, 0], sizes = [1, 32], strides = [1, 1]} : vector<8x32xf32> to vector<1x32xf32>
    %992 = arith.addf %976, %972 : vector<1x32xf32>
    %993 = arith.mulf %983, %992 : vector<1x32xf32>
    %994 = arith.addf %991, %993 : vector<1x32xf32>
    %995 = math.tanh %994 : vector<1x32xf32>
    %cst_385 = arith.constant 1.000000e+00 : f32
    %996 = vector.broadcast %cst_385 : f32 to vector<1x32xf32>
    %997 = arith.subf %996, %990 : vector<1x32xf32>
    %998 = arith.mulf %997, %995 : vector<1x32xf32>
    %999 = arith.mulf %990, %973 : vector<1x32xf32>
    %1000 = arith.addf %998, %999 : vector<1x32xf32>
    %c0_i32_386 = arith.constant 0 : i32
    %1001 = vector.broadcast %c0_i32_386 : i32 to vector<1x1xi32>
    %1002 = arith.cmpi sgt, %646, %1001 : vector<1x1xi32>
    %1003 = vector.shape_cast %1002 : vector<1x1xi1> to vector<1x1xi1>
    %1004 = vector.broadcast %1003 : vector<1x1xi1> to vector<1x32xi1>
    %1005 = arith.select %1004, %1000, %973 : vector<1x32xi1>, vector<1x32xf32>
    %cst_387 = arith.constant 0.000000e+00 : f32
    %1006 = vector.shape_cast %1002 : vector<1x1xi1> to vector<1x1xi1>
    %1007 = vector.broadcast %1006 : vector<1x1xi1> to vector<1x32xi1>
    %1008 = vector.broadcast %cst_387 : f32 to vector<1x32xf32>
    %1009 = arith.select %1007, %1000, %1008 : vector<1x32xi1>, vector<1x32xf32>
    %c0_388 = arith.constant 0 : index
    %c0_389 = arith.constant 0 : index
    %1010 = vector.load %arg17[%c0_388, %c0_389] : memref<8x32xf32, #tpu.memory_space<vmem>>, vector<1x32xf32>
    tpu.vector_store %arg17[%c0_388, %c0_389], %1009 {strides = array<i32>} : memref<8x32xf32, #tpu.memory_space<vmem>>, vector<1x32xf32>,
    %cst_390 = arith.constant dense<0.000000e+00> : vector<1x32xf32>
    %1011 = tpu.matmul %1005, %966, %cst_390 {dimension_numbers = #tpu.dot_dimension_numbers<[1], [0], [0], [1], [0, 0, 1, 1], [], []>} : vector<1x32xf32>, vector<32x32xf32>, vector<1x32xf32> -> vector<1x32xf32>
    %cst_391 = arith.constant dense<0.000000e+00> : vector<1x32xf32>
    %1012 = tpu.matmul %1005, %968, %cst_391 {dimension_numbers = #tpu.dot_dimension_numbers<[1], [0], [0], [1], [0, 0, 1, 1], [], []>} : vector<1x32xf32>, vector<32x32xf32>, vector<1x32xf32> -> vector<1x32xf32>
    %cst_392 = arith.constant dense<0.000000e+00> : vector<1x32xf32>
    %1013 = tpu.matmul %1005, %970, %cst_392 {dimension_numbers = #tpu.dot_dimension_numbers<[1], [0], [0], [1], [0, 0, 1, 1], [], []>} : vector<1x32xf32>, vector<32x32xf32>, vector<1x32xf32> -> vector<1x32xf32>
    %1014 = vector.extract_strided_slice %950 {offsets = [1, 0], sizes = [1, 32], strides = [1, 1]} : vector<8x32xf32> to vector<1x32xf32>
    %1015 = arith.addf %1014, %1011 : vector<1x32xf32>
    %1016 = arith.negf %1015 : vector<1x32xf32>
    %1017 = math.exp %1016 : vector<1x32xf32>
    %cst_393 = arith.constant 1.000000e+00 : f32
    %1018 = vector.broadcast %cst_393 : f32 to vector<1x32xf32>
    %1019 = arith.addf %1018, %1017 : vector<1x32xf32>
    %1020 = arith.divf %1018, %1019 : vector<1x32xf32>
    %1021 = vector.extract_strided_slice %957 {offsets = [1, 0], sizes = [1, 32], strides = [1, 1]} : vector<8x32xf32> to vector<1x32xf32>
    %1022 = arith.addf %1021, %1012 : vector<1x32xf32>
    %1023 = arith.negf %1022 : vector<1x32xf32>
    %1024 = math.exp %1023 : vector<1x32xf32>
    %cst_394 = arith.constant 1.000000e+00 : f32
    %1025 = vector.broadcast %cst_394 : f32 to vector<1x32xf32>
    %1026 = arith.addf %1025, %1024 : vector<1x32xf32>
    %1027 = arith.divf %1025, %1026 : vector<1x32xf32>
    %1028 = vector.extract_strided_slice %964 {offsets = [1, 0], sizes = [1, 32], strides = [1, 1]} : vector<8x32xf32> to vector<1x32xf32>
    %1029 = arith.addf %1013, %972 : vector<1x32xf32>
    %1030 = arith.mulf %1020, %1029 : vector<1x32xf32>
    %1031 = arith.addf %1028, %1030 : vector<1x32xf32>
    %1032 = math.tanh %1031 : vector<1x32xf32>
    %cst_395 = arith.constant 1.000000e+00 : f32
    %1033 = vector.broadcast %cst_395 : f32 to vector<1x32xf32>
    %1034 = arith.subf %1033, %1027 : vector<1x32xf32>
    %1035 = arith.mulf %1034, %1032 : vector<1x32xf32>
    %1036 = arith.mulf %1027, %1005 : vector<1x32xf32>
    %1037 = arith.addf %1035, %1036 : vector<1x32xf32>
    %c1_i32_396 = arith.constant 1 : i32
    %1038 = vector.broadcast %c1_i32_396 : i32 to vector<1x1xi32>
    %1039 = arith.cmpi sgt, %646, %1038 : vector<1x1xi32>
    %1040 = vector.shape_cast %1039 : vector<1x1xi1> to vector<1x1xi1>
    %1041 = vector.broadcast %1040 : vector<1x1xi1> to vector<1x32xi1>
    %1042 = arith.select %1041, %1037, %1005 : vector<1x32xi1>, vector<1x32xf32>
    %cst_397 = arith.constant 0.000000e+00 : f32
    %1043 = vector.shape_cast %1039 : vector<1x1xi1> to vector<1x1xi1>
    %1044 = vector.broadcast %1043 : vector<1x1xi1> to vector<1x32xi1>
    %1045 = vector.broadcast %cst_397 : f32 to vector<1x32xf32>
    %1046 = arith.select %1044, %1037, %1045 : vector<1x32xi1>, vector<1x32xf32>
    %c1_398 = arith.constant 1 : index
    %c0_399 = arith.constant 0 : index
    %1047 = vector.load %arg17[%c1_398, %c0_399] : memref<8x32xf32, #tpu.memory_space<vmem>>, vector<1x32xf32>
    tpu.vector_store %arg17[%c1_398, %c0_399], %1046 {strides = array<i32>} : memref<8x32xf32, #tpu.memory_space<vmem>>, vector<1x32xf32>,
    %cst_400 = arith.constant dense<0.000000e+00> : vector<1x32xf32>
    %1048 = tpu.matmul %1042, %966, %cst_400 {dimension_numbers = #tpu.dot_dimension_numbers<[1], [0], [0], [1], [0, 0, 1, 1], [], []>} : vector<1x32xf32>, vector<32x32xf32>, vector<1x32xf32> -> vector<1x32xf32>
    %cst_401 = arith.constant dense<0.000000e+00> : vector<1x32xf32>
    %1049 = tpu.matmul %1042, %968, %cst_401 {dimension_numbers = #tpu.dot_dimension_numbers<[1], [0], [0], [1], [0, 0, 1, 1], [], []>} : vector<1x32xf32>, vector<32x32xf32>, vector<1x32xf32> -> vector<1x32xf32>
    %cst_402 = arith.constant dense<0.000000e+00> : vector<1x32xf32>
    %1050 = tpu.matmul %1042, %970, %cst_402 {dimension_numbers = #tpu.dot_dimension_numbers<[1], [0], [0], [1], [0, 0, 1, 1], [], []>} : vector<1x32xf32>, vector<32x32xf32>, vector<1x32xf32> -> vector<1x32xf32>
    %1051 = vector.extract_strided_slice %950 {offsets = [2, 0], sizes = [1, 32], strides = [1, 1]} : vector<8x32xf32> to vector<1x32xf32>
    %1052 = arith.addf %1051, %1048 : vector<1x32xf32>
    %1053 = arith.negf %1052 : vector<1x32xf32>
    %1054 = math.exp %1053 : vector<1x32xf32>
    %cst_403 = arith.constant 1.000000e+00 : f32
    %1055 = vector.broadcast %cst_403 : f32 to vector<1x32xf32>
    %1056 = arith.addf %1055, %1054 : vector<1x32xf32>
    %1057 = arith.divf %1055, %1056 : vector<1x32xf32>
    %1058 = vector.extract_strided_slice %957 {offsets = [2, 0], sizes = [1, 32], strides = [1, 1]} : vector<8x32xf32> to vector<1x32xf32>
    %1059 = arith.addf %1058, %1049 : vector<1x32xf32>
    %1060 = arith.negf %1059 : vector<1x32xf32>
    %1061 = math.exp %1060 : vector<1x32xf32>
    %cst_404 = arith.constant 1.000000e+00 : f32
    %1062 = vector.broadcast %cst_404 : f32 to vector<1x32xf32>
    %1063 = arith.addf %1062, %1061 : vector<1x32xf32>
    %1064 = arith.divf %1062, %1063 : vector<1x32xf32>
    %1065 = vector.extract_strided_slice %964 {offsets = [2, 0], sizes = [1, 32], strides = [1, 1]} : vector<8x32xf32> to vector<1x32xf32>
    %1066 = arith.addf %1050, %972 : vector<1x32xf32>
    %1067 = arith.mulf %1057, %1066 : vector<1x32xf32>
    %1068 = arith.addf %1065, %1067 : vector<1x32xf32>
    %1069 = math.tanh %1068 : vector<1x32xf32>
    %cst_405 = arith.constant 1.000000e+00 : f32
    %1070 = vector.broadcast %cst_405 : f32 to vector<1x32xf32>
    %1071 = arith.subf %1070, %1064 : vector<1x32xf32>
    %1072 = arith.mulf %1071, %1069 : vector<1x32xf32>
    %1073 = arith.mulf %1064, %1042 : vector<1x32xf32>
    %1074 = arith.addf %1072, %1073 : vector<1x32xf32>
    %c2_i32_406 = arith.constant 2 : i32
    %1075 = vector.broadcast %c2_i32_406 : i32 to vector<1x1xi32>
    %1076 = arith.cmpi sgt, %646, %1075 : vector<1x1xi32>
    %1077 = vector.shape_cast %1076 : vector<1x1xi1> to vector<1x1xi1>
    %1078 = vector.broadcast %1077 : vector<1x1xi1> to vector<1x32xi1>
    %1079 = arith.select %1078, %1074, %1042 : vector<1x32xi1>, vector<1x32xf32>
    %cst_407 = arith.constant 0.000000e+00 : f32
    %1080 = vector.shape_cast %1076 : vector<1x1xi1> to vector<1x1xi1>
    %1081 = vector.broadcast %1080 : vector<1x1xi1> to vector<1x32xi1>
    %1082 = vector.broadcast %cst_407 : f32 to vector<1x32xf32>
    %1083 = arith.select %1081, %1074, %1082 : vector<1x32xi1>, vector<1x32xf32>
    %c2_408 = arith.constant 2 : index
    %c0_409 = arith.constant 0 : index
    %1084 = vector.load %arg17[%c2_408, %c0_409] : memref<8x32xf32, #tpu.memory_space<vmem>>, vector<1x32xf32>
    tpu.vector_store %arg17[%c2_408, %c0_409], %1083 {strides = array<i32>} : memref<8x32xf32, #tpu.memory_space<vmem>>, vector<1x32xf32>,
    %cst_410 = arith.constant dense<0.000000e+00> : vector<1x32xf32>
    %1085 = tpu.matmul %1079, %966, %cst_410 {dimension_numbers = #tpu.dot_dimension_numbers<[1], [0], [0], [1], [0, 0, 1, 1], [], []>} : vector<1x32xf32>, vector<32x32xf32>, vector<1x32xf32> -> vector<1x32xf32>
    %cst_411 = arith.constant dense<0.000000e+00> : vector<1x32xf32>
    %1086 = tpu.matmul %1079, %968, %cst_411 {dimension_numbers = #tpu.dot_dimension_numbers<[1], [0], [0], [1], [0, 0, 1, 1], [], []>} : vector<1x32xf32>, vector<32x32xf32>, vector<1x32xf32> -> vector<1x32xf32>
    %cst_412 = arith.constant dense<0.000000e+00> : vector<1x32xf32>
    %1087 = tpu.matmul %1079, %970, %cst_412 {dimension_numbers = #tpu.dot_dimension_numbers<[1], [0], [0], [1], [0, 0, 1, 1], [], []>} : vector<1x32xf32>, vector<32x32xf32>, vector<1x32xf32> -> vector<1x32xf32>
    %1088 = vector.extract_strided_slice %950 {offsets = [3, 0], sizes = [1, 32], strides = [1, 1]} : vector<8x32xf32> to vector<1x32xf32>
    %1089 = arith.addf %1088, %1085 : vector<1x32xf32>
    %1090 = arith.negf %1089 : vector<1x32xf32>
    %1091 = math.exp %1090 : vector<1x32xf32>
    %cst_413 = arith.constant 1.000000e+00 : f32
    %1092 = vector.broadcast %cst_413 : f32 to vector<1x32xf32>
    %1093 = arith.addf %1092, %1091 : vector<1x32xf32>
    %1094 = arith.divf %1092, %1093 : vector<1x32xf32>
    %1095 = vector.extract_strided_slice %957 {offsets = [3, 0], sizes = [1, 32], strides = [1, 1]} : vector<8x32xf32> to vector<1x32xf32>
    %1096 = arith.addf %1095, %1086 : vector<1x32xf32>
    %1097 = arith.negf %1096 : vector<1x32xf32>
    %1098 = math.exp %1097 : vector<1x32xf32>
    %cst_414 = arith.constant 1.000000e+00 : f32
    %1099 = vector.broadcast %cst_414 : f32 to vector<1x32xf32>
    %1100 = arith.addf %1099, %1098 : vector<1x32xf32>
    %1101 = arith.divf %1099, %1100 : vector<1x32xf32>
    %1102 = vector.extract_strided_slice %964 {offsets = [3, 0], sizes = [1, 32], strides = [1, 1]} : vector<8x32xf32> to vector<1x32xf32>
    %1103 = arith.addf %1087, %972 : vector<1x32xf32>
    %1104 = arith.mulf %1094, %1103 : vector<1x32xf32>
    %1105 = arith.addf %1102, %1104 : vector<1x32xf32>
    %1106 = math.tanh %1105 : vector<1x32xf32>
    %cst_415 = arith.constant 1.000000e+00 : f32
    %1107 = vector.broadcast %cst_415 : f32 to vector<1x32xf32>
    %1108 = arith.subf %1107, %1101 : vector<1x32xf32>
    %1109 = arith.mulf %1108, %1106 : vector<1x32xf32>
    %1110 = arith.mulf %1101, %1079 : vector<1x32xf32>
    %1111 = arith.addf %1109, %1110 : vector<1x32xf32>
    %c3_i32_416 = arith.constant 3 : i32
    %1112 = vector.broadcast %c3_i32_416 : i32 to vector<1x1xi32>
    %1113 = arith.cmpi sgt, %646, %1112 : vector<1x1xi32>
    %1114 = vector.shape_cast %1113 : vector<1x1xi1> to vector<1x1xi1>
    %1115 = vector.broadcast %1114 : vector<1x1xi1> to vector<1x32xi1>
    %1116 = arith.select %1115, %1111, %1079 : vector<1x32xi1>, vector<1x32xf32>
    %cst_417 = arith.constant 0.000000e+00 : f32
    %1117 = vector.shape_cast %1113 : vector<1x1xi1> to vector<1x1xi1>
    %1118 = vector.broadcast %1117 : vector<1x1xi1> to vector<1x32xi1>
    %1119 = vector.broadcast %cst_417 : f32 to vector<1x32xf32>
    %1120 = arith.select %1118, %1111, %1119 : vector<1x32xi1>, vector<1x32xf32>
    %c3_418 = arith.constant 3 : index
    %c0_419 = arith.constant 0 : index
    %1121 = vector.load %arg17[%c3_418, %c0_419] : memref<8x32xf32, #tpu.memory_space<vmem>>, vector<1x32xf32>
    tpu.vector_store %arg17[%c3_418, %c0_419], %1120 {strides = array<i32>} : memref<8x32xf32, #tpu.memory_space<vmem>>, vector<1x32xf32>,
    %cst_420 = arith.constant dense<0.000000e+00> : vector<1x32xf32>
    %1122 = tpu.matmul %1116, %966, %cst_420 {dimension_numbers = #tpu.dot_dimension_numbers<[1], [0], [0], [1], [0, 0, 1, 1], [], []>} : vector<1x32xf32>, vector<32x32xf32>, vector<1x32xf32> -> vector<1x32xf32>
    %cst_421 = arith.constant dense<0.000000e+00> : vector<1x32xf32>
    %1123 = tpu.matmul %1116, %968, %cst_421 {dimension_numbers = #tpu.dot_dimension_numbers<[1], [0], [0], [1], [0, 0, 1, 1], [], []>} : vector<1x32xf32>, vector<32x32xf32>, vector<1x32xf32> -> vector<1x32xf32>
    %cst_422 = arith.constant dense<0.000000e+00> : vector<1x32xf32>
    %1124 = tpu.matmul %1116, %970, %cst_422 {dimension_numbers = #tpu.dot_dimension_numbers<[1], [0], [0], [1], [0, 0, 1, 1], [], []>} : vector<1x32xf32>, vector<32x32xf32>, vector<1x32xf32> -> vector<1x32xf32>
    %1125 = vector.extract_strided_slice %950 {offsets = [4, 0], sizes = [1, 32], strides = [1, 1]} : vector<8x32xf32> to vector<1x32xf32>
    %1126 = arith.addf %1125, %1122 : vector<1x32xf32>
    %1127 = arith.negf %1126 : vector<1x32xf32>
    %1128 = math.exp %1127 : vector<1x32xf32>
    %cst_423 = arith.constant 1.000000e+00 : f32
    %1129 = vector.broadcast %cst_423 : f32 to vector<1x32xf32>
    %1130 = arith.addf %1129, %1128 : vector<1x32xf32>
    %1131 = arith.divf %1129, %1130 : vector<1x32xf32>
    %1132 = vector.extract_strided_slice %957 {offsets = [4, 0], sizes = [1, 32], strides = [1, 1]} : vector<8x32xf32> to vector<1x32xf32>
    %1133 = arith.addf %1132, %1123 : vector<1x32xf32>
    %1134 = arith.negf %1133 : vector<1x32xf32>
    %1135 = math.exp %1134 : vector<1x32xf32>
    %cst_424 = arith.constant 1.000000e+00 : f32
    %1136 = vector.broadcast %cst_424 : f32 to vector<1x32xf32>
    %1137 = arith.addf %1136, %1135 : vector<1x32xf32>
    %1138 = arith.divf %1136, %1137 : vector<1x32xf32>
    %1139 = vector.extract_strided_slice %964 {offsets = [4, 0], sizes = [1, 32], strides = [1, 1]} : vector<8x32xf32> to vector<1x32xf32>
    %1140 = arith.addf %1124, %972 : vector<1x32xf32>
    %1141 = arith.mulf %1131, %1140 : vector<1x32xf32>
    %1142 = arith.addf %1139, %1141 : vector<1x32xf32>
    %1143 = math.tanh %1142 : vector<1x32xf32>
    %cst_425 = arith.constant 1.000000e+00 : f32
    %1144 = vector.broadcast %cst_425 : f32 to vector<1x32xf32>
    %1145 = arith.subf %1144, %1138 : vector<1x32xf32>
    %1146 = arith.mulf %1145, %1143 : vector<1x32xf32>
    %1147 = arith.mulf %1138, %1116 : vector<1x32xf32>
    %1148 = arith.addf %1146, %1147 : vector<1x32xf32>
    %c4_i32_426 = arith.constant 4 : i32
    %1149 = vector.broadcast %c4_i32_426 : i32 to vector<1x1xi32>
    %1150 = arith.cmpi sgt, %646, %1149 : vector<1x1xi32>
    %1151 = vector.shape_cast %1150 : vector<1x1xi1> to vector<1x1xi1>
    %1152 = vector.broadcast %1151 : vector<1x1xi1> to vector<1x32xi1>
    %1153 = arith.select %1152, %1148, %1116 : vector<1x32xi1>, vector<1x32xf32>
    %cst_427 = arith.constant 0.000000e+00 : f32
    %1154 = vector.shape_cast %1150 : vector<1x1xi1> to vector<1x1xi1>
    %1155 = vector.broadcast %1154 : vector<1x1xi1> to vector<1x32xi1>
    %1156 = vector.broadcast %cst_427 : f32 to vector<1x32xf32>
    %1157 = arith.select %1155, %1148, %1156 : vector<1x32xi1>, vector<1x32xf32>
    %c4_428 = arith.constant 4 : index
    %c0_429 = arith.constant 0 : index
    %1158 = vector.load %arg17[%c4_428, %c0_429] : memref<8x32xf32, #tpu.memory_space<vmem>>, vector<1x32xf32>
    tpu.vector_store %arg17[%c4_428, %c0_429], %1157 {strides = array<i32>} : memref<8x32xf32, #tpu.memory_space<vmem>>, vector<1x32xf32>,
    %cst_430 = arith.constant dense<0.000000e+00> : vector<1x32xf32>
    %1159 = tpu.matmul %1153, %966, %cst_430 {dimension_numbers = #tpu.dot_dimension_numbers<[1], [0], [0], [1], [0, 0, 1, 1], [], []>} : vector<1x32xf32>, vector<32x32xf32>, vector<1x32xf32> -> vector<1x32xf32>
    %cst_431 = arith.constant dense<0.000000e+00> : vector<1x32xf32>
    %1160 = tpu.matmul %1153, %968, %cst_431 {dimension_numbers = #tpu.dot_dimension_numbers<[1], [0], [0], [1], [0, 0, 1, 1], [], []>} : vector<1x32xf32>, vector<32x32xf32>, vector<1x32xf32> -> vector<1x32xf32>
    %cst_432 = arith.constant dense<0.000000e+00> : vector<1x32xf32>
    %1161 = tpu.matmul %1153, %970, %cst_432 {dimension_numbers = #tpu.dot_dimension_numbers<[1], [0], [0], [1], [0, 0, 1, 1], [], []>} : vector<1x32xf32>, vector<32x32xf32>, vector<1x32xf32> -> vector<1x32xf32>
    %1162 = vector.extract_strided_slice %950 {offsets = [5, 0], sizes = [1, 32], strides = [1, 1]} : vector<8x32xf32> to vector<1x32xf32>
    %1163 = arith.addf %1162, %1159 : vector<1x32xf32>
    %1164 = arith.negf %1163 : vector<1x32xf32>
    %1165 = math.exp %1164 : vector<1x32xf32>
    %cst_433 = arith.constant 1.000000e+00 : f32
    %1166 = vector.broadcast %cst_433 : f32 to vector<1x32xf32>
    %1167 = arith.addf %1166, %1165 : vector<1x32xf32>
    %1168 = arith.divf %1166, %1167 : vector<1x32xf32>
    %1169 = vector.extract_strided_slice %957 {offsets = [5, 0], sizes = [1, 32], strides = [1, 1]} : vector<8x32xf32> to vector<1x32xf32>
    %1170 = arith.addf %1169, %1160 : vector<1x32xf32>
    %1171 = arith.negf %1170 : vector<1x32xf32>
    %1172 = math.exp %1171 : vector<1x32xf32>
    %cst_434 = arith.constant 1.000000e+00 : f32
    %1173 = vector.broadcast %cst_434 : f32 to vector<1x32xf32>
    %1174 = arith.addf %1173, %1172 : vector<1x32xf32>
    %1175 = arith.divf %1173, %1174 : vector<1x32xf32>
    %1176 = vector.extract_strided_slice %964 {offsets = [5, 0], sizes = [1, 32], strides = [1, 1]} : vector<8x32xf32> to vector<1x32xf32>
    %1177 = arith.addf %1161, %972 : vector<1x32xf32>
    %1178 = arith.mulf %1168, %1177 : vector<1x32xf32>
    %1179 = arith.addf %1176, %1178 : vector<1x32xf32>
    %1180 = math.tanh %1179 : vector<1x32xf32>
    %cst_435 = arith.constant 1.000000e+00 : f32
    %1181 = vector.broadcast %cst_435 : f32 to vector<1x32xf32>
    %1182 = arith.subf %1181, %1175 : vector<1x32xf32>
    %1183 = arith.mulf %1182, %1180 : vector<1x32xf32>
    %1184 = arith.mulf %1175, %1153 : vector<1x32xf32>
    %1185 = arith.addf %1183, %1184 : vector<1x32xf32>
    %c5_i32_436 = arith.constant 5 : i32
    %1186 = vector.broadcast %c5_i32_436 : i32 to vector<1x1xi32>
    %1187 = arith.cmpi sgt, %646, %1186 : vector<1x1xi32>
    %1188 = vector.shape_cast %1187 : vector<1x1xi1> to vector<1x1xi1>
    %1189 = vector.broadcast %1188 : vector<1x1xi1> to vector<1x32xi1>
    %1190 = arith.select %1189, %1185, %1153 : vector<1x32xi1>, vector<1x32xf32>
    %cst_437 = arith.constant 0.000000e+00 : f32
    %1191 = vector.shape_cast %1187 : vector<1x1xi1> to vector<1x1xi1>
    %1192 = vector.broadcast %1191 : vector<1x1xi1> to vector<1x32xi1>
    %1193 = vector.broadcast %cst_437 : f32 to vector<1x32xf32>
    %1194 = arith.select %1192, %1185, %1193 : vector<1x32xi1>, vector<1x32xf32>
    %c5_438 = arith.constant 5 : index
    %c0_439 = arith.constant 0 : index
    %1195 = vector.load %arg17[%c5_438, %c0_439] : memref<8x32xf32, #tpu.memory_space<vmem>>, vector<1x32xf32>
    tpu.vector_store %arg17[%c5_438, %c0_439], %1194 {strides = array<i32>} : memref<8x32xf32, #tpu.memory_space<vmem>>, vector<1x32xf32>,
    %cst_440 = arith.constant dense<0.000000e+00> : vector<1x32xf32>
    %1196 = tpu.matmul %1190, %966, %cst_440 {dimension_numbers = #tpu.dot_dimension_numbers<[1], [0], [0], [1], [0, 0, 1, 1], [], []>} : vector<1x32xf32>, vector<32x32xf32>, vector<1x32xf32> -> vector<1x32xf32>
    %cst_441 = arith.constant dense<0.000000e+00> : vector<1x32xf32>
    %1197 = tpu.matmul %1190, %968, %cst_441 {dimension_numbers = #tpu.dot_dimension_numbers<[1], [0], [0], [1], [0, 0, 1, 1], [], []>} : vector<1x32xf32>, vector<32x32xf32>, vector<1x32xf32> -> vector<1x32xf32>
    %cst_442 = arith.constant dense<0.000000e+00> : vector<1x32xf32>
    %1198 = tpu.matmul %1190, %970, %cst_442 {dimension_numbers = #tpu.dot_dimension_numbers<[1], [0], [0], [1], [0, 0, 1, 1], [], []>} : vector<1x32xf32>, vector<32x32xf32>, vector<1x32xf32> -> vector<1x32xf32>
    %1199 = vector.extract_strided_slice %950 {offsets = [6, 0], sizes = [1, 32], strides = [1, 1]} : vector<8x32xf32> to vector<1x32xf32>
    %1200 = arith.addf %1199, %1196 : vector<1x32xf32>
    %1201 = arith.negf %1200 : vector<1x32xf32>
    %1202 = math.exp %1201 : vector<1x32xf32>
    %cst_443 = arith.constant 1.000000e+00 : f32
    %1203 = vector.broadcast %cst_443 : f32 to vector<1x32xf32>
    %1204 = arith.addf %1203, %1202 : vector<1x32xf32>
    %1205 = arith.divf %1203, %1204 : vector<1x32xf32>
    %1206 = vector.extract_strided_slice %957 {offsets = [6, 0], sizes = [1, 32], strides = [1, 1]} : vector<8x32xf32> to vector<1x32xf32>
    %1207 = arith.addf %1206, %1197 : vector<1x32xf32>
    %1208 = arith.negf %1207 : vector<1x32xf32>
    %1209 = math.exp %1208 : vector<1x32xf32>
    %cst_444 = arith.constant 1.000000e+00 : f32
    %1210 = vector.broadcast %cst_444 : f32 to vector<1x32xf32>
    %1211 = arith.addf %1210, %1209 : vector<1x32xf32>
    %1212 = arith.divf %1210, %1211 : vector<1x32xf32>
    %1213 = vector.extract_strided_slice %964 {offsets = [6, 0], sizes = [1, 32], strides = [1, 1]} : vector<8x32xf32> to vector<1x32xf32>
    %1214 = arith.addf %1198, %972 : vector<1x32xf32>
    %1215 = arith.mulf %1205, %1214 : vector<1x32xf32>
    %1216 = arith.addf %1213, %1215 : vector<1x32xf32>
    %1217 = math.tanh %1216 : vector<1x32xf32>
    %cst_445 = arith.constant 1.000000e+00 : f32
    %1218 = vector.broadcast %cst_445 : f32 to vector<1x32xf32>
    %1219 = arith.subf %1218, %1212 : vector<1x32xf32>
    %1220 = arith.mulf %1219, %1217 : vector<1x32xf32>
    %1221 = arith.mulf %1212, %1190 : vector<1x32xf32>
    %1222 = arith.addf %1220, %1221 : vector<1x32xf32>
    %c6_i32_446 = arith.constant 6 : i32
    %1223 = vector.broadcast %c6_i32_446 : i32 to vector<1x1xi32>
    %1224 = arith.cmpi sgt, %646, %1223 : vector<1x1xi32>
    %1225 = vector.shape_cast %1224 : vector<1x1xi1> to vector<1x1xi1>
    %1226 = vector.broadcast %1225 : vector<1x1xi1> to vector<1x32xi1>
    %1227 = arith.select %1226, %1222, %1190 : vector<1x32xi1>, vector<1x32xf32>
    %cst_447 = arith.constant 0.000000e+00 : f32
    %1228 = vector.shape_cast %1224 : vector<1x1xi1> to vector<1x1xi1>
    %1229 = vector.broadcast %1228 : vector<1x1xi1> to vector<1x32xi1>
    %1230 = vector.broadcast %cst_447 : f32 to vector<1x32xf32>
    %1231 = arith.select %1229, %1222, %1230 : vector<1x32xi1>, vector<1x32xf32>
    %c6_448 = arith.constant 6 : index
    %c0_449 = arith.constant 0 : index
    %1232 = vector.load %arg17[%c6_448, %c0_449] : memref<8x32xf32, #tpu.memory_space<vmem>>, vector<1x32xf32>
    tpu.vector_store %arg17[%c6_448, %c0_449], %1231 {strides = array<i32>} : memref<8x32xf32, #tpu.memory_space<vmem>>, vector<1x32xf32>,
    %cst_450 = arith.constant dense<0.000000e+00> : vector<1x32xf32>
    %1233 = tpu.matmul %1227, %966, %cst_450 {dimension_numbers = #tpu.dot_dimension_numbers<[1], [0], [0], [1], [0, 0, 1, 1], [], []>} : vector<1x32xf32>, vector<32x32xf32>, vector<1x32xf32> -> vector<1x32xf32>
    %cst_451 = arith.constant dense<0.000000e+00> : vector<1x32xf32>
    %1234 = tpu.matmul %1227, %968, %cst_451 {dimension_numbers = #tpu.dot_dimension_numbers<[1], [0], [0], [1], [0, 0, 1, 1], [], []>} : vector<1x32xf32>, vector<32x32xf32>, vector<1x32xf32> -> vector<1x32xf32>
    %cst_452 = arith.constant dense<0.000000e+00> : vector<1x32xf32>
    %1235 = tpu.matmul %1227, %970, %cst_452 {dimension_numbers = #tpu.dot_dimension_numbers<[1], [0], [0], [1], [0, 0, 1, 1], [], []>} : vector<1x32xf32>, vector<32x32xf32>, vector<1x32xf32> -> vector<1x32xf32>
    %1236 = vector.extract_strided_slice %950 {offsets = [7, 0], sizes = [1, 32], strides = [1, 1]} : vector<8x32xf32> to vector<1x32xf32>
    %1237 = arith.addf %1236, %1233 : vector<1x32xf32>
    %1238 = arith.negf %1237 : vector<1x32xf32>
    %1239 = math.exp %1238 : vector<1x32xf32>
    %cst_453 = arith.constant 1.000000e+00 : f32
    %1240 = vector.broadcast %cst_453 : f32 to vector<1x32xf32>
    %1241 = arith.addf %1240, %1239 : vector<1x32xf32>
    %1242 = arith.divf %1240, %1241 : vector<1x32xf32>
    %1243 = vector.extract_strided_slice %957 {offsets = [7, 0], sizes = [1, 32], strides = [1, 1]} : vector<8x32xf32> to vector<1x32xf32>
    %1244 = arith.addf %1243, %1234 : vector<1x32xf32>
    %1245 = arith.negf %1244 : vector<1x32xf32>
    %1246 = math.exp %1245 : vector<1x32xf32>
    %cst_454 = arith.constant 1.000000e+00 : f32
    %1247 = vector.broadcast %cst_454 : f32 to vector<1x32xf32>
    %1248 = arith.addf %1247, %1246 : vector<1x32xf32>
    %1249 = arith.divf %1247, %1248 : vector<1x32xf32>
    %1250 = vector.extract_strided_slice %964 {offsets = [7, 0], sizes = [1, 32], strides = [1, 1]} : vector<8x32xf32> to vector<1x32xf32>
    %1251 = arith.addf %1235, %972 : vector<1x32xf32>
    %1252 = arith.mulf %1242, %1251 : vector<1x32xf32>
    %1253 = arith.addf %1250, %1252 : vector<1x32xf32>
    %1254 = math.tanh %1253 : vector<1x32xf32>
    %cst_455 = arith.constant 1.000000e+00 : f32
    %1255 = vector.broadcast %cst_455 : f32 to vector<1x32xf32>
    %1256 = arith.subf %1255, %1249 : vector<1x32xf32>
    %1257 = arith.mulf %1256, %1254 : vector<1x32xf32>
    %1258 = arith.mulf %1249, %1227 : vector<1x32xf32>
    %1259 = arith.addf %1257, %1258 : vector<1x32xf32>
    %c7_i32_456 = arith.constant 7 : i32
    %1260 = vector.broadcast %c7_i32_456 : i32 to vector<1x1xi32>
    %1261 = arith.cmpi sgt, %646, %1260 : vector<1x1xi32>
    %cst_457 = arith.constant 0.000000e+00 : f32
    %1262 = vector.shape_cast %1261 : vector<1x1xi1> to vector<1x1xi1>
    %1263 = vector.broadcast %1262 : vector<1x1xi1> to vector<1x32xi1>
    %1264 = vector.broadcast %cst_457 : f32 to vector<1x32xf32>
    %1265 = arith.select %1263, %1259, %1264 : vector<1x32xi1>, vector<1x32xf32>
    %c7_458 = arith.constant 7 : index
    %c0_459 = arith.constant 0 : index
    %1266 = vector.load %arg17[%c7_458, %c0_459] : memref<8x32xf32, #tpu.memory_space<vmem>>, vector<1x32xf32>
    tpu.vector_store %arg17[%c7_458, %c0_459], %1265 {strides = array<i32>} : memref<8x32xf32, #tpu.memory_space<vmem>>, vector<1x32xf32>,
    %1267 = vector.extract_strided_slice %16 {offsets = [1, 0], sizes = [1, 32], strides = [1, 1]} : vector<2x32xf32> to vector<1x32xf32>
    %c0_460 = arith.constant 0 : index
    %c0_461 = arith.constant 0 : index
    %1268 = vector.load %arg17[%c0_460, %c0_461] : memref<8x32xf32, #tpu.memory_space<vmem>>, vector<8x32xf32>
    %cst_462 = arith.constant dense<0.000000e+00> : vector<8x32xf32>
    %1269 = tpu.matmul %1268, %1, %cst_462 {dimension_numbers = #tpu.dot_dimension_numbers<[1], [0], [0], [1], [0, 0, 1, 1], [], []>} : vector<8x32xf32>, vector<32x32xf32>, vector<8x32xf32> -> vector<8x32xf32>
    %1270 = vector.broadcast %1267 : vector<1x32xf32> to vector<8x32xf32>
    %1271 = arith.addf %1269, %1270 : vector<8x32xf32>
    %c1_463 = arith.constant 1 : index
    %c0_464 = arith.constant 0 : index
    %c0_465 = arith.constant 0 : index
    %1272 = vector.load %arg16[%c1_463, %c0_464, %c0_465] : memref<2x8x32xf32, #tpu.memory_space<vmem>>, vector<1x8x32xf32>
    %1273 = vector.shape_cast %1272 : vector<1x8x32xf32> to vector<8x32xf32>
    %1274 = vector.shape_cast %1271 : vector<8x32xf32> to vector<1x8x32xf32>
    tpu.vector_store %arg16[%c1_463, %c0_464, %c0_465], %1274 {strides = array<i32>} : memref<2x8x32xf32, #tpu.memory_space<vmem>>, vector<1x8x32xf32>,
    return
  }
}

</mosaic_0001>

<bundles_post_ra>
// kernel: generator_rnn_forward.1
= control target key start
LH: loop header
LB: loop body
LE: loop exit
PB: predicated region body
PF: predicated region fallthrough
CT: control target
= control target key end

     0   :  { %s14175_s0 = inlined_call_operand.vmem [shape: s32[2,1], index: 0, kind: input, shape index: {}]   ;;  %s14176_s1 = inlined_call_operand.vmem [shape: f32[2,8,4], index: 1, kind: input, shape index: {}]   ;;  %s14177_s2 = inlined_call_operand.hbm [shape: f32[3,4,32], index: 2, kind: input, shape index: {}]   ;;  %s14178_s3 = inlined_call_operand.hbm [shape: f32[3,32,32], index: 3, kind: input, shape index: {}]   ;;  %s14179_s4 = inlined_call_operand.hbm [shape: f32[4,1,32], index: 4, kind: input, shape index: {}]   ;;  %s14180_s5 = inlined_call_operand.hbm [shape: f32[3,32,32], index: 5, kind: input, shape index: {}]   ;;  %s14181_s6 = inlined_call_operand.hbm [shape: f32[3,32,32], index: 6, kind: input, shape index: {}]   ;;  %s14182_s7 = inlined_call_operand.vmem [shape: f32[4,1,32], index: 7, kind: input, shape index: {}]   ;;  %s14183_s8 = inlined_call_operand.vmem [shape: f32[2,3], index: 8, kind: input, shape index: {}]   ;;  %s14184_s9 = inlined_call_operand.vmem [shape: f32[2,5], index: 9, kind: input, shape index: {}]   ;;  %s14185_s10 = inlined_call_operand.hbm [shape: f32[3,32], index: 10, kind: input, shape index: {}]   ;;  %s14186_s11 = inlined_call_operand.hbm [shape: f32[5,32], index: 11, kind: input, shape index: {}]   ;;  %s14187_s12 = inlined_call_operand.hbm [shape: f32[1,32], index: 12, kind: input, shape index: {}]   ;;  %s14188_s13 = inlined_call_operand.vmem [shape: f32[32,32], index: 13, kind: input, shape index: {}]   ;;  %s14189_s14 = inlined_call_operand.hbm [shape: f32[32,32], index: 14, kind: input, shape index: {}]   ;;  %s14190_s15 = inlined_call_operand.hbm [shape: f32[1,32], index: 15, kind: input, shape index: {}]   ;;  %s14191_s16 = inlined_call_operand.hbm [shape: f32[2,8,32], index: 16, kind: output, shape index: {}]  }
   0x1   :  { %14192 = sst [smem:[#allocation28_spill]] %s14175_s0 }
   0x2   :  { %21 = vsyncpa [#allocation4], 0 }
   0x3   :  { %22 = vsyncpa [#allocation7], 0 }
   0x4   :  { %23 = vsyncpa [#allocation10], 0 }
   0x5   :  { %24 = vsyncpa [#allocation13], 0 }
   0x6   :  { %25 = vsyncpa [#allocation16], 0 }
   0x7   :  { %26 = vsyncpa [#allocation19], 0 }
   0x8   :  { %27 = vsyncpa [#allocation5], 0  ;;  %s12202_s21 = smov [#allocation6]  }
   0x9   :  { %s49_s22 = sshll.u32 %s12202_s21, 4  ;;  %s50_s22 = int_to_ptr.vmem [resolvable:$true] %s49_s22 }
   0xa   :  { %s11976_s23 = scalar_lea.vmem %s50_s22, 1536  ;;  %p11981_p1 = scmp.lt.s32.totalorder %s50_s22, %s50_s22 }
   0xb   :  { %p11977_p0 = scmp.ne.s32.totalorder %s50_s22, %s11976_s23  ;;  %p11982_p2 = scmp.lt.s32.totalorder %s11976_s23, %s11976_s23 }
   0xd   :  { %p11983_p3 = por %p11982_p2, %p11981_p1 }
   0xf   :  { %p11984_p4 = pnand %p11983_p3, %p11977_p0 }
  0x11   :  { %11987 = shalt.err (!%p11984_p4)
}
  0x12   :  { %s12203_s24 = smov 128   ;;  %s12204_s25 = smov 8  }
  0x13   :  { %55 = dma.hbm_to_vmem [thread:$0]  %s14178_s3, 1536, %s50_s22, [#allocation7], %s12203_s24, %s12203_s24, %s12204_s25  }
  0x14   :  { %s12205_s28 = smov [#allocation9]   ;;  %s12206_s30 = smov [#allocation12]  }
  0x15   :  { %s73_s29 = sshll.u32 %s12205_s28, 4  ;;  %s104_s0 = sshll.u32 %s12206_s30, 4  ;;  %s74_s29 = int_to_ptr.vmem [resolvable:$true] %s73_s29  ;;  %s105_s0 = int_to_ptr.vmem [resolvable:$true] %s104_s0 }
  0x16   :  { %s11996_s17 = scalar_lea.vmem %s74_s29, 1536  ;;  %p12001_p6 = scmp.lt.s32.totalorder %s74_s29, %s74_s29 }
  0x17   :  { %p11997_p5 = scmp.ne.s32.totalorder %s74_s29, %s11996_s17  ;;  %p12002_p7 = scmp.lt.s32.totalorder %s11996_s17, %s11996_s17 }
  0x19   :  { %p12003_p8 = por %p12002_p7, %p12001_p6 }
  0x1b   :  { %p12004_p9 = pnand %p12003_p8, %p11997_p5 }
  0x1d   :  { %12007 = shalt.err (!%p12004_p9)
}
  0x1e   :  { %79 = dma.hbm_to_vmem [thread:$0]  %s14180_s5, 1536, %s74_s29, [#allocation10], %s12203_s24, %s12203_s24, %s12204_s25  }
  0x1f   :  { %s12016_s3 = scalar_lea.vmem %s105_s0, 64  ;;  %p12021_p11 = scmp.lt.s32.totalorder %s105_s0, %s105_s0 }
  0x20   :  { %p12017_p10 = scmp.ne.s32.totalorder %s105_s0, %s12016_s3  ;;  %p12022_p12 = scmp.lt.s32.totalorder %s12016_s3, %s12016_s3 }
  0x22   :  { %p12023_p13 = por %p12022_p12, %p12021_p11 }
  0x24   :  { %p12024_p0 = pnand %p12023_p13, %p12017_p10 }
  0x26   :  { %12027 = shalt.err (!%p12024_p0)
}
  0x27   :  { %107 = dma.hbm_to_vmem [thread:$0]  %s14185_s10, 64, %s105_s0, [#allocation13]  }
  0x28   :  { %s12207_s22 = smov [#allocation15]   ;;  %s12208_s26 = smov [#allocation3]  }
  0x29   :  { %s124_s23 = sshll.u32 %s12207_s22, 4  ;;  %s37_s27 = sshll.u32 %s12208_s26, 4  ;;  %s125_s23 = int_to_ptr.vmem [resolvable:$true] %s124_s23  ;;  %s38_s27 = int_to_ptr.vmem [resolvable:$true] %s37_s27 }
  0x2a   :  { %s12036_s28 = scalar_lea.vmem %s125_s23, 16  ;;  %s12040_s5 = scalar_lea.vmem %s125_s23, 32 }
  0x2b   :  { %p12037_p1 = scmp.ne.s32.totalorder %s125_s23, %s12036_s28  ;;  %p12041_p2 = scmp.lt.s32.totalorder %s125_s23, %s125_s23 }
  0x2c   :  { %p12042_p3 = scmp.lt.s32.totalorder %s12040_s5, %s12036_s28 }
  0x2e   :  { %p12043_p4 = por %p12042_p3, %p12041_p2 }
  0x30   :  { %p12044_p5 = pnand %p12043_p4, %p12037_p1 }
  0x32   :  { %12047 = shalt.err (!%p12044_p5)
}
  0x33   :  { %127 = dma.hbm_to_vmem [thread:$0]  %s14187_s12, 16, %s125_s23, [#allocation16]  }
  0x34   :  { %s12056_s17 = scalar_lea.vmem %s38_s27, 192  ;;  %p12061_p7 = scmp.lt.s32.totalorder %s38_s27, %s38_s27 }
  0x35   :  { %p12057_p6 = scmp.ne.s32.totalorder %s38_s27, %s12056_s17  ;;  %p12062_p8 = scmp.lt.s32.totalorder %s12056_s17, %s12056_s17 }
  0x37   :  { %p12063_p9 = por %p12062_p8, %p12061_p7 }
  0x39   :  { %p12064_p10 = pnand %p12063_p9, %p12057_p6 }
  0x3b   :  { %12067 = shalt.err (!%p12064_p10)
}
  0x3c   :  { %s12209_s10 = smov 64   ;;  %s12210_s0 = smov 4  }
  0x3d   :  { %43 = dma.hbm_to_vmem [thread:$0]  %s14177_s2, 192, %s38_s27, [#allocation4], %s12209_s10, %s12209_s10, %s12210_s0  }
  0x3e   :  { %s12211_s3 = smov [#allocation8]  }
  0x3f   :  { %s61_s20 = sshll.u32 %s12211_s3, 4  ;;  %s62_s20 = int_to_ptr.vmem [resolvable:$true] %s61_s20 }
  0x40   :  { %s12076_s21 = scalar_lea.vmem %s62_s20, 64  ;;  %p12081_p12 = scmp.lt.s32.totalorder %s62_s20, %s62_s20 }
  0x41   :  { %p12077_p11 = scmp.ne.s32.totalorder %s62_s20, %s12076_s21  ;;  %p12082_p13 = scmp.lt.s32.totalorder %s12076_s21, %s12076_s21 }
  0x43   :  { %p12083_p0 = por %p12082_p13, %p12081_p12 }
  0x45   :  { %p12084_p1 = pnand %p12083_p0, %p12077_p11 }
  0x47   :  { %12087 = shalt.err (!%p12084_p1)
}
  0x48   :  { %s12212_s12 = smov 16   ;;  %s12213_s22 = smov 1  }
  0x49   :  { %67 = dma.hbm_to_vmem [thread:$0]  %s14179_s4, 64, %s62_s20, [#allocation7], %s12212_s12, %s12212_s12, %s12213_s22  }
  0x4a   :  { %s12214_s28 = smov [#allocation11]   ;;  %s12215_s29 = smov [#allocation14]  }
  0x4b   :  { %s85_s5 = sshll.u32 %s12214_s28, 4  ;;  %s114_s2 = sshll.u32 %s12215_s29, 4  ;;  %s86_s5 = int_to_ptr.vmem [resolvable:$true] %s85_s5  ;;  %s115_s2 = int_to_ptr.vmem [resolvable:$true] %s114_s2 }
  0x4c   :  { %s12096_s27 = scalar_lea.vmem %s86_s5, 1536  ;;  %p12101_p3 = scmp.lt.s32.totalorder %s86_s5, %s86_s5 }
  0x4d   :  { %p12097_p2 = scmp.ne.s32.totalorder %s86_s5, %s12096_s27  ;;  %p12102_p4 = scmp.lt.s32.totalorder %s12096_s27, %s12096_s27 }
  0x4f   :  { %p12103_p5 = por %p12102_p4, %p12101_p3 }
  0x51   :  { %p12104_p6 = pnand %p12103_p5, %p12097_p2 }
  0x53   :  { %12107 = shalt.err (!%p12104_p6)
}
  0x54   :  { %91 = dma.hbm_to_vmem [thread:$0]  %s14181_s6, 1536, %s86_s5, [#allocation10], %s12203_s24, %s12203_s24, %s12204_s25  }
  0x55   :  { %s12116_s4 = scalar_lea.vmem %s115_s2, 128  ;;  %p12121_p8 = scmp.lt.s32.totalorder %s115_s2, %s115_s2 }
  0x56   :  { %p12117_p7 = scmp.ne.s32.totalorder %s115_s2, %s12116_s4  ;;  %p12122_p9 = scmp.lt.s32.totalorder %s12116_s4, %s12116_s4 }
  0x58   :  { %p12123_p10 = por %p12122_p9, %p12121_p8 }
  0x5a   :  { %p12124_p11 = pnand %p12123_p10, %p12117_p7 }
  0x5c   :  { %12127 = shalt.err (!%p12124_p11)
}
  0x5d   :  { %117 = dma.hbm_to_vmem [thread:$0]  %s14186_s11, 128, %s115_s2, [#allocation13]  }
  0x5e   :  { %s12216_s18 = smov [#allocation17]   ;;  %s12217_s3 = smov [#allocation18]  }
  0x5f   :  { %s135_s19 = sshll.u32 %s12216_s18, 4  ;;  %s148_s20 = sshll.u32 %s12217_s3, 4  ;;  %s136_s19 = int_to_ptr.vmem [resolvable:$true] %s135_s19  ;;  %s149_s20 = int_to_ptr.vmem [resolvable:$true] %s148_s20 }
  0x60   :  { %s12136_s21 = scalar_lea.vmem %s136_s19, 512  ;;  %p12141_p13 = scmp.lt.s32.totalorder %s136_s19, %s136_s19 }
  0x61   :  { %p12137_p12 = scmp.ne.s32.totalorder %s136_s19, %s12136_s21  ;;  %p12142_p0 = scmp.lt.s32.totalorder %s12136_s21, %s12136_s21 }
  0x63   :  { %p12143_p1 = por %p12142_p0, %p12141_p13 }
  0x65   :  { %p12144_p2 = pnand %p12143_p1, %p12137_p12 }
  0x67   :  { %12147 = shalt.err (!%p12144_p2)
}
  0x68   :  { %141 = dma.hbm_to_vmem [thread:$0]  %s14189_s14, 512, %s136_s19, [#allocation16], %s12203_s24, %s12203_s24, %s12204_s25  }
  0x69   :  { %s12156_s11 = scalar_lea.vmem %s149_s20, 16  ;;  %s12160_s22 = scalar_lea.vmem %s149_s20, 32 }
  0x6a   :  { %p12157_p3 = scmp.ne.s32.totalorder %s149_s20, %s12156_s11  ;;  %p12161_p4 = scmp.lt.s32.totalorder %s149_s20, %s149_s20 }
  0x6b   :  { %p12162_p5 = scmp.lt.s32.totalorder %s12160_s22, %s12156_s11 }
  0x6d   :  { %p12163_p6 = por %p12162_p5, %p12161_p4 }
  0x6f   :  { %p12164_p7 = pnand %p12163_p6, %p12157_p3 }
  0x71   :  { %12167 = shalt.err (!%p12164_p7)
}
  0x72   :  { %151 = dma.hbm_to_vmem [thread:$0]  %s14190_s15, 16, %s149_s20, [#allocation19]  }
  0x73   :  { %12188 = dma.done.wait [#allocation4], 192  }
  0x74   :  { %12189 = vsyncadd [#allocation4], 4294967104 }
  0x75   :  { %12190 = dma.done.wait [#allocation7], 1600  }
  0x76   :  { %12191 = vsyncadd [#allocation7], 4294965696 }
  0x77   :  { %12192 = dma.done.wait [#allocation10], 3072  }
  0x78   :  { %12193 = vsyncadd [#allocation10], 4294964224 }
  0x79   :  { %12194 = dma.done.wait [#allocation13], 192  }
  0x7a   :  { %12195 = vsyncadd [#allocation13], 4294967104 }
  0x7b   :  { %12196 = dma.done.wait [#allocation16], 528  }
  0x7c   :  { %12197 = vsyncadd [#allocation16], 4294966768 }
  0x7d   :  { %12198 = dma.done.wait [#allocation19], 16  }
  0x7e   :  { %12199 = vsyncadd [#allocation19], 4294967280  ;;  %v12218_v0 = vmov 0.0   ;;  %vm12219_vm0 = vmmov 0   ;;  %vm196_vm1 = vcmask 1044480   ;;  %vm274_vm2 = vcmask 1042432  }
  0x7f   :  { %10420 = vmatprep.subr.mxu0 %v12218_v0  ;;  %10425 = vmatprep.subr.mxu1 %v12218_v0  ;;  %vm192_vm3 = vcmask 39936   ;;  %vm270_vm4 = vcmask 23552   ;;  %v191_v1 = vld [vmem:[#allocation14] sm:$0x1f]  ;;  %v189_v2 = vld [vmem:[#allocation12] sm:$0x7]  ;;  %v5001_v56 = vlaneseq }
  0x80   :  { %10422 = vmatprep.mubr.msk.f32.mxu0 %vm12219_vm0, %v12218_v0  ;;  %10427 = vmatprep.mubr.msk.f32.mxu1 %vm12219_vm0, %v12218_v0  ;;  %v190_v3 = vld [vmem:[%s14184_s9] sm:$0x3]  ;;  %v441_v5 = vld [vmem:[#allocation3] sm:$0xf]  ;;  %vm453_vm5 = vcmask 1043456   ;;  %vm449_vm6 = vcmask 31744  }
  0x81   :  { %10421 = vmatpush3.msk.msra.mxu0 %vm196_vm1, %v191_v1  ;;  %10426 = vmatpush3.msk.msra.mxu1 %vm274_vm2, %v189_v2  ;;  %v188_v4 = vld [vmem:[%s14183_s8] sm:$0x3]  ;;  %v359_v7 = vld [vmem:[%s14188_s13 + $0x18] sm:$0xff]  ;;  %v528_v8 = vld [vmem:[#allocation3 + $0x4] sm:$0xf]  ;;  %s14193_s19 = sld [smem:[#allocation28_spill]] }
  0x82   :  { %10423 = vmatmul.mubr.msk.f32.vlgmr.msra.gmra.mxu0 %vm192_vm3, %v190_v3  ;;  %10428 = vmatmul.mubr.msk.f32.vlgmr.msra.gmra.mxu1 %vm270_vm4, %v188_v4  ;;  %v12367_v6 = vld [vmem:[%s14176_s1] sm:$0xff]  ;;  %v358_v9 = vld [vmem:[%s14188_s13 + $0x10] sm:$0xff]  ;;  %v357_v15 = vld [vmem:[%s14188_s13 + $0x8] sm:$0xff]  ;;  %v12220_v25 = vmov 0   ;;  %vm366_vm11 = vcmask 261120   ;;  %v12503_v57 = vshrl.u32 %v5001_v56, 7 }
  0x83   :  { %10441 = vmatprep.subr.mxu1 %v12218_v0  ;;  %10443 = vmatprep.mubr.msk.f32.mxu1 %vm12219_vm0, %v12218_v0  ;;  %v12385_v10 = vld [vmem:[#allocation6 + $0x18] sm:$0xff]  ;;  %v12392_v11 = vld [vmem:[#allocation6 + $0x10] sm:$0xff]  ;;  %v12398_v12 = vld [vmem:[#allocation6 + $0x8] sm:$0xff]  ;;  %vm950_vm13 = vcmask 253952  }
  0x84   :  { %10442 = vmatpush3.msk.msra.mxu1 %vm453_vm5, %v441_v5  ;;  %10430 = vmatprep.subr.mxu0 %v12218_v0  ;;  %v12402_v13 = vld [vmem:[#allocation6] sm:$0xff]  ;;  %v12411_v14 = vld [vmem:[#allocation6 + $0x58] sm:$0xff]  ;;  %v12418_v16 = vld [vmem:[#allocation6 + $0x50] sm:$0xff]  ;;  %v9586_v59 = vsub.s32 1, %v12503_v57 }
  0x85   :  { %10446 = vmatprep.subr.mxu1 %v12218_v0  ;;  %10431 = vmatpush3.msra.mxu0 %v359_v7  ;;  %v356_v17 = vld [vmem:[%s14188_s13] sm:$0xff]  ;;  %v12431_v19 = vld [vmem:[#allocation6 + $0x40] sm:$0xff]  ;;  %v12436_v20 = vld [vmem:[#allocation6 + $0x38] sm:$0xff] }
  0x86   :  { %10444 = vmatmul.mubr.msk.f32.vlgmr.msra.gmra.mxu1 %vm449_vm6, %v12367_v6  ;;  %10432 = vmatprep.subr.mxu0 %v12218_v0  ;;  %v12426_v18 = vld [vmem:[#allocation6 + $0x48] sm:$0xff]  ;;  %v12442_v21 = vld [vmem:[#allocation6 + $0x30] sm:$0xff]  ;;  %v12449_v23 = vld [vmem:[#allocation6 + $0x20] sm:$0xff] }
  0x87   :  { %10447 = vmatpush3.msk.msra.mxu1 %vm453_vm5, %v528_v8  ;;  %10448 = vmatprep.mubr.msk.f32.mxu1 %vm12219_vm0, %v12218_v0  ;;  %v12445_v22 = vld [vmem:[#allocation6 + $0x28] sm:$0xff]  ;;  %v9689_v32 = vld [vmem:[#allocation15] ss:$0 sm:$0xff]  ;;  %v611_v37 = vld [vmem:[#allocation3 + $0x8] sm:$0xf] }
  0x88   :  { %10456 = vmatprep.subr.mxu1 %v12218_v0  ;;  %10433 = vmatpush3.msra.mxu0 %v358_v9  ;;  %v12456_v24 = vld [vmem:[%s14193_s19] sm:$0x3]  ;;  %v9692_v44 = vld [vmem:[#allocation8] ss:$0 sm:$0xff]  ;;  %v12500_v51 = vld [vmem:[#allocation8 + $0x3] sm:$0x1] }
  0x89   :  { %10434 = vmatprep.subr.mxu0 %v12218_v0  ;;  %10438 = vmatprep.mubr.msk.f32.mxu0 %vm12219_vm0, %v12218_v0  ;;  %vm943_vm7 = vcmp.gt.s32.totalorder %v12456_v24, 0  ;;  %vm1197_vm8 = vcmp.gt.s32.totalorder %v12456_v24, 1  ;;  %vm1965_vm9 = vcmp.gt.s32.totalorder %v12456_v24, 4  ;;  %vm2477_vm10 = vcmp.gt.s32.totalorder %v12456_v24, 6  ;;  %v9690_v58 = vld [vmem:[#allocation18] ss:$0 sm:$0xff] }
  0x8a   :  { %10449 = vmatmul.mubr.msk.f32.vlgmr.msra.gmra.mxu1 %vm449_vm6, %v12367_v6  ;;  %10435 = vmatpush3.msra.mxu0 %v357_v15  ;;  %v944_v26 = vsel %vm943_vm7, 1, %v12220_v25  ;;  %v1198_v27 = vsel %vm1197_vm8, 1, %v12220_v25  ;;  %v1966_v28 = vsel %vm1965_vm9, 1, %v12220_v25  ;;  %v2478_v29 = vsel %vm2477_vm10, 1, %v12220_v25  ;;  %v9695_v3 = vld [vmem:[#allocation8 + $0x1] ss:$0 sm:$0xff] }
  0x8b   :  { %10457 = vmatpush3.msra.mxu1 %v12385_v10  ;;  %10464 = vmatprep.mubr.msk.f32.mxu1 %vm12219_vm0, %v12218_v0  ;;  %v9698_v9 = vld [vmem:[#allocation8 + $0x2] ss:$0 sm:$0xff]  ;;  %vm1453_vm14 = vcmp.gt.s32.totalorder %v12456_v24, 2  ;;  %vm1709_vm15 = vcmp.gt.s32.totalorder %v12456_v24, 3  ;;  %vm2221_vm1 = vcmp.gt.s32.totalorder %v12456_v24, 5  ;;  %vm2733_vm2 = vcmp.gt.s32.totalorder %v12456_v24, 7 }
  0x8c   :  { %10458 = vmatprep.subr.mxu1 %v12218_v0  ;;  %10436 = vmatprep.subr.mxu0 %v12218_v0 }
  0x8d   :  { %10459 = vmatpush3.msra.mxu1 %v12392_v11  ;;  %10437 = vmatpush3.msra.mxu0 %v356_v17 }
  0x8e   :  { %10460 = vmatprep.subr.mxu1 %v12218_v0  ;;  %10451 = vmatprep.subr.mxu0 %v12218_v0 }
  0x8f   :  { %10461 = vmatpush3.msra.mxu1 %v12398_v12  ;;  %11635 = vset.pattern.permute.xlu0 %v12220_v25 }
  0x90   :  { %10462 = vmatprep.subr.mxu1 %v12218_v0  ;;  %11636 = vset.pattern.permute.xlu1 %v12220_v25 }
  0x91   :  { %10463 = vmatpush3.msra.mxu1 %v12402_v13  ;;  %946 = vperm.xlu0 %11635, %v944_v26  }
  0x92   :  { %10465 = vmatmul.mubr.f32.vlgmr.msra.gmra.mxu1 %v12218_v0  ;;  %10478 = vmatprep.subr.mxu1 %v12218_v0 }
  0x93   :  { %10486 = vmatprep.mubr.msk.f32.mxu1 %vm12219_vm0, %v12218_v0  ;;  %10479 = vmatpush3.msra.mxu1 %v12411_v14 }
  0x94   :  { %10480 = vmatprep.subr.mxu1 %v12218_v0 }
  0x95   :  { %10481 = vmatpush3.msra.mxu1 %v12418_v16  ;;  %1200 = vperm.xlu0 %11635, %v1198_v27  }
  0x96   :  { %10482 = vmatprep.subr.mxu1 %v12218_v0 }
  0x97   :  { %10483 = vmatpush3.msra.mxu1 %v12426_v18 }
  0x98   :  { %10484 = vmatprep.subr.mxu1 %v12218_v0 }
  0x99   :  { %10485 = vmatpush3.msra.mxu1 %v12431_v19  ;;  %1968 = vperm.xlu0 %11635, %v1966_v28  }
  0x9a   :  { %10487 = vmatmul.mubr.f32.vlgmr.msra.gmra.mxu1 %v12218_v0  ;;  %10500 = vmatprep.subr.mxu1 %v12218_v0 }
  0x9b   :  { %10508 = vmatprep.mubr.msk.f32.mxu1 %vm12219_vm0, %v12218_v0  ;;  %10501 = vmatpush3.msra.mxu1 %v12436_v20 }
  0x9c   :  { %10502 = vmatprep.subr.mxu1 %v12218_v0 }
  0x9d   :  { %10503 = vmatpush3.msra.mxu1 %v12442_v21  ;;  %2480 = vperm.xlu0 %11635, %v2478_v29  }
  0x9e   :  { %10504 = vmatprep.subr.mxu1 %v12218_v0 }
  0x9f   :  { %10505 = vmatpush3.msra.mxu1 %v12445_v22 }
  0xa0   :  { %10506 = vmatprep.subr.mxu1 %v12218_v0 }
  0xa1   :  { %10507 = vmatpush3.msra.mxu1 %v12449_v23 }
  0xa2   :  { %10522 = vmatprep.subr.mxu1 %v12218_v0 }
 0x142   :  { %v266_v30 = vpop.f32.mrf.mxu0  ;;  %v344_v31 = vpop.f32.mrf.mxu1 }
 0x143   :  { %v345_v33 = vadd.f32 %v344_v31, %v266_v30 }
 0x144   :  { %v10424_v34 = vpop.f32.mrf.mxu0  ;;  %v10429_v35 = vpop.f32.mrf.mxu1 }
 0x145   :  { %v355_v36 = vadd.f32 %v9689_v32, %v345_v33  ;;  %v12517_v33 = vpop.permute.xlu0 %946 }
 0x146   :  { %v523_v38 = vpop.f32.mrf.mxu1  ;;  %vm948_vm12 = vcmp.eq.s32.totalorder %v12517_v33, 1 }
 0x147   :  { %10439 = vmatmul.mubr.msk.f32.vlgmr.msra.gmra.mxu0 %vm366_vm11, %v355_v36  ;;  %v12497_v45 = vadd.f32 %v9692_v44, %v523_v38  ;;  %v1454_v36 = vsel %vm1453_vm14, 1, %v12220_v25  ;;  %v2222_v38 = vsel %vm2221_vm1, 1, %v12220_v25 }
 0x148   :  { %10452 = vmatpush3.msk.msra.mxu0 %vm453_vm5, %v611_v37  ;;  %10453 = vmatprep.mubr.msk.f32.mxu0 %vm12219_vm0, %v12218_v0  ;;  %v10445_v39 = vpop.f32.mrf.mxu1  ;;  %v1710_v37 = vsel %vm1709_vm15, 1, %v12220_v25 }
 0x149   :  { %10467 = vmatprep.subr.mxu0 %v12218_v0  ;;  %1456 = vperm.xlu1 %11636, %v1454_v36   ;;  %v2734_v39 = vsel %vm2733_vm2, 1, %v12220_v25 }
 0x14a   :  { %v606_v40 = vpop.f32.mrf.mxu1 }
 0x14b   :  { %10454 = vmatmul.mubr.msk.f32.vlgmr.msra.gmra.mxu0 %vm449_vm6, %v12367_v6  ;;  %v12511_v4 = vadd.f32 %v9695_v3, %v606_v40 }
 0x14c   :  { %10468 = vmatpush3.msra.mxu0 %v12436_v20  ;;  %10475 = vmatprep.mubr.msk.f32.mxu0 %vm12219_vm0, %v12218_v0  ;;  %v10450_v41 = vpop.f32.mrf.mxu1 }
 0x14d   :  { %10469 = vmatprep.subr.mxu0 %v12218_v0  ;;  %1712 = vperm.xlu1 %11636, %v1710_v37  }
 0x14e   :  { %10470 = vmatpush3.msra.mxu0 %v12442_v21 }
 0x14f   :  { %10471 = vmatprep.subr.mxu0 %v12218_v0 }
 0x150   :  { %10472 = vmatpush3.msra.mxu0 %v12445_v22 }
 0x151   :  { %10473 = vmatprep.subr.mxu0 %v12218_v0  ;;  %2224 = vperm.xlu1 %11636, %v2222_v38  }
 0x152   :  { %10474 = vmatpush3.msra.mxu0 %v12449_v23  ;;  %v778_v42 = vpop.f32.mrf.mxu1 }
 0x153   :  { %10476 = vmatmul.mubr.f32.vlgmr.msra.gmra.mxu0 %v12218_v0  ;;  %10489 = vmatprep.subr.mxu0 %v12218_v0  ;;  %v852_v46 = vadd.f32 %v778_v42, %v12497_v45 }
 0x154   :  { %v10466_v43 = vpop.f32.mrf.mxu1  ;;  %10490 = vmatpush3.msra.mxu0 %v12385_v10  ;;  %10497 = vmatprep.mubr.msk.f32.mxu0 %vm12219_vm0, %v12218_v0 }
 0x155   :  { %10491 = vmatprep.subr.mxu0 %v12218_v0  ;;  %v9701_v47 = vmul.f32 -1.442695, %v852_v46  ;;  %2736 = vperm.xlu1 %11636, %v2734_v39  }
 0x156   :  { %10492 = vmatpush3.msra.mxu0 %v12392_v11 }
 0x157   :  { %10493 = vmatprep.subr.mxu0 %v12218_v0  ;;  %11637 = vpow2.f32 %v9701_v47 }
 0x158   :  { %10494 = vmatpush3.msra.mxu0 %v12398_v12 }
 0x159   :  { %10495 = vmatprep.subr.mxu0 %v12218_v0 }
 0x15a   :  { %10496 = vmatpush3.msra.mxu0 %v12402_v13  ;;  %v932_v52 = vpop.f32.mrf.mxu1 }
 0x15b   :  { %10511 = vmatprep.subr.mxu0 %v12218_v0  ;;  %v933_v53 = vadd.f32 %v932_v52, %v12500_v51 }
 0x15c   :  { %v10488_v54 = vpop.f32.mrf.mxu1 }
 0x164   :  { %v11638_v48 = vpop.eup %11637 }
 0x165   :  { %v856_v49 = vadd.f32 1.0, %v11638_v48 }
 0x167   :  { %11639 = vrcp.f32 %v856_v49 }
 0x174   :  { %v11640_v50 = vpop.eup %11639 }
 0x175   :  { %v936_v55 = vmul.f32 %v11640_v50, %v933_v53 }
 0x207   :  { %v436_v60 = vpop.f32.mrf.mxu0 }
 0x208   :  { %v12506_v61 = vadd.f32 %v9690_v58, %v436_v60 }
 0x209   :  { %v10440_v62 = vpop.f32.mrf.mxu0 }
 0x20a   :  { %v12509_v63 = vrot.slane %v12506_v61, %v9586_v59 }
 0x20b   :  { %v689_v1 = vpop.f32.mrf.mxu0 }
 0x20c   :  { %v12514_v15 = vadd.f32 %v9698_v9, %v689_v1  ;;  %v12575_v9 = vpop.permute.xlu0 %1200 }
 0x20d   :  { %v10455_v2 = vpop.f32.mrf.mxu0  ;;  %vm1202_vm3 = vcmp.eq.s32.totalorder %v12575_v9, 1 }
 0x20e   :  { %v937_v27 = vadd.f32 %v936_v55, %v12514_v15 }
 0x213   :  { %v848_v5 = vpop.f32.mrf.mxu0 }
 0x214   :  { %v859_v6 = vadd.f32 %v848_v5, %v12511_v4 }
 0x215   :  { %v10477_v7 = vpop.f32.mrf.mxu0 }
 0x216   :  { %v9702_v8 = vmul.f32 -1.442695, %v859_v6 }
 0x218   :  { %11641 = vpow2.f32 %v9702_v8 }
 0x225   :  { %v11642_v17 = vpop.eup %11641 }
 0x226   :  { %v863_v26 = vadd.f32 1.0, %v11642_v17 }
 0x228   :  { %11643 = vrcp.f32 %v863_v26 }
 0x229   :  { %11645 = vtanh.f32 %v937_v27 }
 0x235   :  { %v11644_v28 = vpop.eup %11643 }
 0x236   :  { %v939_v29 = vsub.f32 1.0, %v11644_v28  ;;  %v11646_v30 = vpop.eup %11645  ;;  %v941_v32 = vmul.f32 0.0, %v11644_v28 }
 0x238   :  { %v940_v31 = vmul.f32 %v11646_v30, %v939_v29 }
 0x23a   :  { %v942_v34 = vadd.f32 %v941_v32, %v940_v31 }
 0x23c   :  { %v12522_v35 = vsel %vm948_vm12, %v942_v34, 0.0 }
 0x23d   :  { %951 = vst.msk [vmem:[#allocation2] sm:$0x1] %vm950_vm13, %v12522_v35  ;;  %10498 = vmatmul.mubr.msk.f32.vlgmr.msra.gmra.mxu0 %vm366_vm11, %v12522_v35  ;;  %10509 = vmatmul.mubr.msk.f32.vlgmr.msra.gmra.mxu1 %vm366_vm11, %v12522_v35  ;;  %v1193_v2 = vrot.slane %v12522_v35, 7 }
 0x23e   :  { %10512 = vmatpush3.msra.mxu0 %v12411_v14  ;;  %10519 = vmatprep.mubr.msk.f32.mxu0 %vm12219_vm0, %v12218_v0 }
 0x23f   :  { %10513 = vmatprep.subr.mxu0 %v12218_v0  ;;  %10523 = vmatpush3.msra.mxu1 %v12385_v10 }
 0x240   :  { %10514 = vmatpush3.msra.mxu0 %v12418_v16  ;;  %10524 = vmatprep.subr.mxu1 %v12218_v0 }
 0x241   :  { %10515 = vmatprep.subr.mxu0 %v12218_v0  ;;  %10525 = vmatpush3.msra.mxu1 %v12392_v11 }
 0x242   :  { %10516 = vmatpush3.msra.mxu0 %v12426_v18  ;;  %10526 = vmatprep.subr.mxu1 %v12218_v0 }
 0x243   :  { %10517 = vmatprep.subr.mxu0 %v12218_v0  ;;  %10527 = vmatpush3.msra.mxu1 %v12398_v12 }
 0x244   :  { %10518 = vmatpush3.msra.mxu0 %v12431_v19  ;;  %10528 = vmatprep.subr.mxu1 %v12218_v0 }
 0x245   :  { %10520 = vmatmul.mubr.msk.f32.vlgmr.msra.gmra.mxu0 %vm366_vm11, %v12522_v35  ;;  %10533 = vmatprep.subr.mxu0 %v12218_v0 }
 0x246   :  { %10534 = vmatpush3.msra.mxu0 %v12436_v20  ;;  %10529 = vmatpush3.msra.mxu1 %v12402_v13 }
 0x247   :  { %10535 = vmatprep.subr.mxu0 %v12218_v0  ;;  %10530 = vmatprep.mubr.msk.f32.mxu1 %vm12219_vm0, %v12218_v0 }
 0x248   :  { %10536 = vmatpush3.msra.mxu0 %v12442_v21  ;;  %10541 = vmatprep.mubr.msk.f32.mxu0 %vm12219_vm0, %v12218_v0 }
 0x249   :  { %10537 = vmatprep.subr.mxu0 %v12218_v0  ;;  %10544 = vmatprep.subr.mxu1 %v12218_v0 }
 0x24a   :  { %10538 = vmatpush3.msra.mxu0 %v12445_v22 }
 0x24b   :  { %10539 = vmatprep.subr.mxu0 %v12218_v0 }
 0x24c   :  { %10540 = vmatpush3.msra.mxu0 %v12449_v23 }
 0x24d   :  { %10555 = vmatprep.subr.mxu0 %v12218_v0 }
 0x2fd   :  { %v1021_v40 = vpop.f32.mrf.mxu0  ;;  %v1091_v41 = vpop.f32.mrf.mxu1 }
 0x2fe   :  { %v1096_v42 = vrot.slane %v1021_v40, 7  ;;  %v1106_v48 = vrot.slane %v1091_v41, 7 }
 0x2ff   :  { %v10499_v43 = vpop.f32.mrf.mxu0  ;;  %v10510_v44 = vpop.f32.mrf.mxu1 }
 0x300   :  { %v1098_v46 = vadd.f32 %v1096_v42, %v12497_v45  ;;  %v1108_v50 = vadd.f32 %v1106_v48, %v12511_v4 }
 0x302   :  { %v9705_v47 = vmul.f32 -1.442695, %v1098_v46  ;;  %v9706_v53 = vmul.f32 -1.442695, %v1108_v50 }
 0x304   :  { %11647 = vpow2.f32 %v9705_v47 }
 0x305   :  { %v1181_v49 = vpop.f32.mrf.mxu0  ;;  %11649 = vpow2.f32 %v9706_v53 }
 0x306   :  { %v1182_v55 = vadd.f32 %v1181_v49, %v12500_v51 }
 0x307   :  { %v10521_v52 = vpop.f32.mrf.mxu0 }
 0x308   :  { %v1186_v58 = vrot.slane %v1182_v55, 7  ;;  %v12626_v55 = vpop.permute.xlu1 %1456 }
 0x309   :  { %vm1458_vm4 = vcmp.eq.s32.totalorder %v12626_v55, 1 }
 0x311   :  { %v11648_v24 = vpop.eup %11647 }
 0x312   :  { %v1102_v54 = vadd.f32 1.0, %v11648_v24  ;;  %v11650_v25 = vpop.eup %11649 }
 0x313   :  { %v1112_v56 = vadd.f32 1.0, %v11650_v25 }
 0x314   :  { %11651 = vrcp.f32 %v1102_v54 }
 0x315   :  { %11653 = vrcp.f32 %v1112_v56 }
 0x321   :  { %v11652_v59 = vpop.eup %11651 }
 0x322   :  { %v1188_v60 = vmul.f32 %v11652_v59, %v1186_v58  ;;  %v11654_v1 = vpop.eup %11653 }
 0x323   :  { %v1191_v3 = vsub.f32 1.0, %v11654_v1  ;;  %v1195_v7 = vmul.f32 %v11654_v1, %v1193_v2 }
 0x324   :  { %v1189_v62 = vadd.f32 %v1188_v60, %v12514_v15 }
 0x326   :  { %11655 = vtanh.f32 %v1189_v62 }
 0x333   :  { %v11656_v5 = vpop.eup %11655 }
 0x334   :  { %v1192_v6 = vmul.f32 %v11656_v5, %v1191_v3 }
 0x336   :  { %v1196_v8 = vadd.f32 %v1195_v7, %v1192_v6 }
 0x338   :  { %v1204_v17 = vrot.slane %v1196_v8, 1 }
 0x33a   :  { %v12581_v26 = vsel %vm1202_vm3, %v1204_v17, %v12522_v35 }
 0x33b   :  { %1207 = vst.msk [vmem:[#allocation2 + $0x1] sm:$0x1] %vm950_vm13, %v12581_v26  ;;  %10531 = vmatmul.mubr.msk.f32.vlgmr.msra.gmra.mxu1 %vm366_vm11, %v12581_v26  ;;  %10542 = vmatmul.mubr.msk.f32.vlgmr.msra.gmra.mxu0 %vm366_vm11, %v12581_v26  ;;  %v1449_v53 = vrot.slane %v12581_v26, 6 }
 0x33c   :  { %10545 = vmatpush3.msra.mxu1 %v12411_v14  ;;  %10552 = vmatprep.mubr.msk.f32.mxu1 %vm12219_vm0, %v12218_v0 }
 0x33d   :  { %10546 = vmatprep.subr.mxu1 %v12218_v0  ;;  %10556 = vmatpush3.msra.mxu0 %v12385_v10 }
 0x33e   :  { %10547 = vmatpush3.msra.mxu1 %v12418_v16  ;;  %10557 = vmatprep.subr.mxu0 %v12218_v0 }
 0x33f   :  { %10548 = vmatprep.subr.mxu1 %v12218_v0  ;;  %10558 = vmatpush3.msra.mxu0 %v12392_v11 }
 0x340   :  { %10549 = vmatpush3.msra.mxu1 %v12426_v18  ;;  %10559 = vmatprep.subr.mxu0 %v12218_v0 }
 0x341   :  { %10550 = vmatprep.subr.mxu1 %v12218_v0  ;;  %10560 = vmatpush3.msra.mxu0 %v12398_v12 }
 0x342   :  { %10551 = vmatpush3.msra.mxu1 %v12431_v19  ;;  %10561 = vmatprep.subr.mxu0 %v12218_v0 }
 0x343   :  { %10553 = vmatmul.mubr.msk.f32.vlgmr.msra.gmra.mxu1 %vm366_vm11, %v12581_v26  ;;  %10566 = vmatprep.subr.mxu1 %v12218_v0 }
 0x344   :  { %10567 = vmatpush3.msra.mxu1 %v12436_v20  ;;  %10562 = vmatpush3.msra.mxu0 %v12402_v13 }
 0x345   :  { %10568 = vmatprep.subr.mxu1 %v12218_v0  ;;  %10563 = vmatprep.mubr.msk.f32.mxu0 %vm12219_vm0, %v12218_v0 }
 0x346   :  { %10569 = vmatpush3.msra.mxu1 %v12442_v21  ;;  %10574 = vmatprep.mubr.msk.f32.mxu1 %vm12219_vm0, %v12218_v0 }
 0x347   :  { %10570 = vmatprep.subr.mxu1 %v12218_v0  ;;  %10577 = vmatprep.subr.mxu0 %v12218_v0 }
 0x348   :  { %10571 = vmatpush3.msra.mxu1 %v12445_v22 }
 0x349   :  { %10572 = vmatprep.subr.mxu1 %v12218_v0 }
 0x34a   :  { %10573 = vmatpush3.msra.mxu1 %v12449_v23 }
 0x34b   :  { %10588 = vmatprep.subr.mxu1 %v12218_v0 }
 0x3fb   :  { %v1277_v27 = vpop.f32.mrf.mxu1  ;;  %v1347_v28 = vpop.f32.mrf.mxu0 }
 0x3fc   :  { %v1352_v29 = vrot.slane %v1277_v27, 6  ;;  %v1362_v35 = vrot.slane %v1347_v28, 6 }
 0x3fd   :  { %v10532_v30 = vpop.f32.mrf.mxu1  ;;  %v10543_v31 = vpop.f32.mrf.mxu0 }
 0x3fe   :  { %v1354_v32 = vadd.f32 %v1352_v29, %v12497_v45  ;;  %v1364_v37 = vadd.f32 %v1362_v35, %v12511_v4 }
 0x400   :  { %v9710_v34 = vmul.f32 -1.442695, %v1354_v32  ;;  %v9711_v39 = vmul.f32 -1.442695, %v1364_v37 }
 0x402   :  { %11657 = vpow2.f32 %v9710_v34 }
 0x403   :  { %v1437_v36 = vpop.f32.mrf.mxu1  ;;  %11659 = vpow2.f32 %v9711_v39 }
 0x404   :  { %v1438_v43 = vadd.f32 %v1437_v36, %v12500_v51 }
 0x405   :  { %v10554_v38 = vpop.f32.mrf.mxu1 }
 0x406   :  { %v1442_v46 = vrot.slane %v1438_v43, 6 }
 0x40f   :  { %v11658_v40 = vpop.eup %11657 }
 0x410   :  { %v1358_v41 = vadd.f32 1.0, %v11658_v40  ;;  %v11660_v42 = vpop.eup %11659 }
 0x411   :  { %v1368_v44 = vadd.f32 1.0, %v11660_v42 }
 0x412   :  { %11661 = vrcp.f32 %v1358_v41 }
 0x413   :  { %11663 = vrcp.f32 %v1368_v44 }
 0x41f   :  { %v11662_v47 = vpop.eup %11661 }
 0x420   :  { %v1444_v48 = vmul.f32 %v11662_v47, %v1442_v46  ;;  %v11664_v50 = vpop.eup %11663  ;;  %v12677_v46 = vpop.permute.xlu1 %1712 }
 0x421   :  { %v1447_v52 = vsub.f32 1.0, %v11664_v50  ;;  %v1451_v25 = vmul.f32 %v11664_v50, %v1449_v53  ;;  %vm1714_vm7 = vcmp.eq.s32.totalorder %v12677_v46, 1 }
 0x422   :  { %v1445_v49 = vadd.f32 %v1444_v48, %v12514_v15 }
 0x424   :  { %11665 = vtanh.f32 %v1445_v49 }
 0x431   :  { %v11666_v24 = vpop.eup %11665 }
 0x432   :  { %v1448_v54 = vmul.f32 %v11666_v24, %v1447_v52 }
 0x434   :  { %v1452_v56 = vadd.f32 %v1451_v25, %v1448_v54 }
 0x436   :  { %v1460_v58 = vrot.slane %v1452_v56, 2 }
 0x438   :  { %v12632_v59 = vsel %vm1458_vm4, %v1460_v58, %v12581_v26 }
 0x439   :  { %1463 = vst.msk [vmem:[#allocation2 + $0x2] sm:$0x1] %vm950_vm13, %v12632_v59  ;;  %10564 = vmatmul.mubr.msk.f32.vlgmr.msra.gmra.mxu0 %vm366_vm11, %v12632_v59  ;;  %10575 = vmatmul.mubr.msk.f32.vlgmr.msra.gmra.mxu1 %vm366_vm11, %v12632_v59  ;;  %v1705_v40 = vrot.slane %v12632_v59, 5 }
 0x43a   :  { %10578 = vmatpush3.msra.mxu0 %v12411_v14  ;;  %10585 = vmatprep.mubr.msk.f32.mxu0 %vm12219_vm0, %v12218_v0 }
 0x43b   :  { %10579 = vmatprep.subr.mxu0 %v12218_v0  ;;  %10589 = vmatpush3.msra.mxu1 %v12385_v10 }
 0x43c   :  { %10580 = vmatpush3.msra.mxu0 %v12418_v16  ;;  %10590 = vmatprep.subr.mxu1 %v12218_v0 }
 0x43d   :  { %10581 = vmatprep.subr.mxu0 %v12218_v0  ;;  %10591 = vmatpush3.msra.mxu1 %v12392_v11 }
 0x43e   :  { %10582 = vmatpush3.msra.mxu0 %v12426_v18  ;;  %10592 = vmatprep.subr.mxu1 %v12218_v0 }
 0x43f   :  { %10583 = vmatprep.subr.mxu0 %v12218_v0  ;;  %10593 = vmatpush3.msra.mxu1 %v12398_v12 }
 0x440   :  { %10584 = vmatpush3.msra.mxu0 %v12431_v19  ;;  %10594 = vmatprep.subr.mxu1 %v12218_v0 }
 0x441   :  { %10586 = vmatmul.mubr.msk.f32.vlgmr.msra.gmra.mxu0 %vm366_vm11, %v12632_v59  ;;  %10599 = vmatprep.subr.mxu0 %v12218_v0 }
 0x442   :  { %10600 = vmatpush3.msra.mxu0 %v12436_v20  ;;  %10595 = vmatpush3.msra.mxu1 %v12402_v13 }
 0x443   :  { %10601 = vmatprep.subr.mxu0 %v12218_v0  ;;  %10596 = vmatprep.mubr.msk.f32.mxu1 %vm12219_vm0, %v12218_v0 }
 0x444   :  { %10602 = vmatpush3.msra.mxu0 %v12442_v21  ;;  %10607 = vmatprep.mubr.msk.f32.mxu0 %vm12219_vm0, %v12218_v0 }
 0x445   :  { %10603 = vmatprep.subr.mxu0 %v12218_v0  ;;  %10610 = vmatprep.subr.mxu1 %v12218_v0 }
 0x446   :  { %10604 = vmatpush3.msra.mxu0 %v12445_v22 }
 0x447   :  { %10605 = vmatprep.subr.mxu0 %v12218_v0 }
 0x448   :  { %10606 = vmatpush3.msra.mxu0 %v12449_v23 }
 0x449   :  { %10621 = vmatprep.subr.mxu0 %v12218_v0 }
 0x4f9   :  { %v1533_v60 = vpop.f32.mrf.mxu0  ;;  %v1603_v62 = vpop.f32.mrf.mxu1 }
 0x4fa   :  { %v1608_v1 = vrot.slane %v1533_v60, 5  ;;  %v1618_v7 = vrot.slane %v1603_v62, 5 }
 0x4fb   :  { %v10565_v2 = vpop.f32.mrf.mxu0  ;;  %v10576_v3 = vpop.f32.mrf.mxu1 }
 0x4fc   :  { %v1610_v5 = vadd.f32 %v1608_v1, %v12497_v45  ;;  %v1620_v17 = vadd.f32 %v1618_v7, %v12511_v4 }
 0x4fe   :  { %v9715_v6 = vmul.f32 -1.442695, %v1610_v5  ;;  %v9716_v27 = vmul.f32 -1.442695, %v1620_v17 }
 0x500   :  { %11667 = vpow2.f32 %v9715_v6 }
 0x501   :  { %v1693_v8 = vpop.f32.mrf.mxu0  ;;  %11669 = vpow2.f32 %v9716_v27 }
 0x502   :  { %v1694_v31 = vadd.f32 %v1693_v8, %v12500_v51 }
 0x503   :  { %v10587_v26 = vpop.f32.mrf.mxu0 }
 0x504   :  { %v1698_v34 = vrot.slane %v1694_v31, 5 }
 0x50d   :  { %v11668_v28 = vpop.eup %11667 }
 0x50e   :  { %v1614_v29 = vadd.f32 1.0, %v11668_v28  ;;  %v11670_v30 = vpop.eup %11669 }
 0x50f   :  { %v1624_v32 = vadd.f32 1.0, %v11670_v30 }
 0x510   :  { %11671 = vrcp.f32 %v1614_v29 }
 0x511   :  { %11673 = vrcp.f32 %v1624_v32 }
 0x51d   :  { %v11672_v35 = vpop.eup %11671 }
 0x51e   :  { %v1700_v36 = vmul.f32 %v11672_v35, %v1698_v34  ;;  %v11674_v38 = vpop.eup %11673  ;;  %v12728_v35 = vpop.permute.xlu0 %1968 }
 0x51f   :  { %v1703_v39 = vsub.f32 1.0, %v11674_v38  ;;  %v1707_v43 = vmul.f32 %v11674_v38, %v1705_v40  ;;  %vm1970_vm8 = vcmp.eq.s32.totalorder %v12728_v35, 1 }
 0x520   :  { %v1701_v37 = vadd.f32 %v1700_v36, %v12514_v15 }
 0x522   :  { %11675 = vtanh.f32 %v1701_v37 }
 0x52f   :  { %v11676_v41 = vpop.eup %11675 }
 0x530   :  { %v1704_v42 = vmul.f32 %v11676_v41, %v1703_v39 }
 0x532   :  { %v1708_v44 = vadd.f32 %v1707_v43, %v1704_v42 }
 0x534   :  { %v1716_v47 = vrot.slane %v1708_v44, 3 }
 0x536   :  { %v12683_v48 = vsel %vm1714_vm7, %v1716_v47, %v12632_v59 }
 0x537   :  { %1719 = vst.msk [vmem:[#allocation2 + $0x3] sm:$0x1] %vm950_vm13, %v12683_v48  ;;  %10597 = vmatmul.mubr.msk.f32.vlgmr.msra.gmra.mxu1 %vm366_vm11, %v12683_v48  ;;  %10608 = vmatmul.mubr.msk.f32.vlgmr.msra.gmra.mxu0 %vm366_vm11, %v12683_v48  ;;  %v1961_v29 = vrot.slane %v12683_v48, 4 }
 0x538   :  { %10611 = vmatpush3.msra.mxu1 %v12411_v14  ;;  %10618 = vmatprep.mubr.msk.f32.mxu1 %vm12219_vm0, %v12218_v0 }
 0x539   :  { %10612 = vmatprep.subr.mxu1 %v12218_v0  ;;  %10622 = vmatpush3.msra.mxu0 %v12385_v10 }
 0x53a   :  { %10613 = vmatpush3.msra.mxu1 %v12418_v16  ;;  %10623 = vmatprep.subr.mxu0 %v12218_v0 }
 0x53b   :  { %10614 = vmatprep.subr.mxu1 %v12218_v0  ;;  %10624 = vmatpush3.msra.mxu0 %v12392_v11 }
 0x53c   :  { %10615 = vmatpush3.msra.mxu1 %v12426_v18  ;;  %10625 = vmatprep.subr.mxu0 %v12218_v0 }
 0x53d   :  { %10616 = vmatprep.subr.mxu1 %v12218_v0  ;;  %10626 = vmatpush3.msra.mxu0 %v12398_v12 }
 0x53e   :  { %10617 = vmatpush3.msra.mxu1 %v12431_v19  ;;  %10627 = vmatprep.subr.mxu0 %v12218_v0 }
 0x53f   :  { %10619 = vmatmul.mubr.msk.f32.vlgmr.msra.gmra.mxu1 %vm366_vm11, %v12683_v48  ;;  %10632 = vmatprep.subr.mxu1 %v12218_v0 }
 0x540   :  { %10633 = vmatpush3.msra.mxu1 %v12436_v20  ;;  %10628 = vmatpush3.msra.mxu0 %v12402_v13 }
 0x541   :  { %10634 = vmatprep.subr.mxu1 %v12218_v0  ;;  %10629 = vmatprep.mubr.msk.f32.mxu0 %vm12219_vm0, %v12218_v0 }
 0x542   :  { %10635 = vmatpush3.msra.mxu1 %v12442_v21  ;;  %10640 = vmatprep.mubr.msk.f32.mxu1 %vm12219_vm0, %v12218_v0 }
 0x543   :  { %10636 = vmatprep.subr.mxu1 %v12218_v0  ;;  %10643 = vmatprep.subr.mxu0 %v12218_v0 }
 0x544   :  { %10637 = vmatpush3.msra.mxu1 %v12445_v22 }
 0x545   :  { %10638 = vmatprep.subr.mxu1 %v12218_v0 }
 0x546   :  { %10639 = vmatpush3.msra.mxu1 %v12449_v23 }
 0x547   :  { %10654 = vmatprep.subr.mxu1 %v12218_v0 }
 0x5f7   :  { %v1789_v49 = vpop.f32.mrf.mxu1  ;;  %v1859_v50 = vpop.f32.mrf.mxu0 }
 0x5f8   :  { %v1864_v52 = vrot.slane %v1789_v49, 4  ;;  %v1874_v56 = vrot.slane %v1859_v50, 4 }
 0x5f9   :  { %v10598_v53 = vpop.f32.mrf.mxu1  ;;  %v10609_v24 = vpop.f32.mrf.mxu0 }
 0x5fa   :  { %v1866_v54 = vadd.f32 %v1864_v52, %v12497_v45  ;;  %v1876_v59 = vadd.f32 %v1874_v56, %v12511_v4 }
 0x5fc   :  { %v9720_v25 = vmul.f32 -1.442695, %v1866_v54  ;;  %v9721_v62 = vmul.f32 -1.442695, %v1876_v59 }
 0x5fe   :  { %11677 = vpow2.f32 %v9720_v25 }
 0x5ff   :  { %v1949_v58 = vpop.f32.mrf.mxu1  ;;  %11679 = vpow2.f32 %v9721_v62 }
 0x600   :  { %v1950_v5 = vadd.f32 %v1949_v58, %v12500_v51 }
 0x601   :  { %v10620_v60 = vpop.f32.mrf.mxu1 }
 0x602   :  { %v1954_v7 = vrot.slane %v1950_v5, 4 }
 0x60b   :  { %v11678_v1 = vpop.eup %11677 }
 0x60c   :  { %v1870_v2 = vadd.f32 1.0, %v11678_v1  ;;  %v11680_v3 = vpop.eup %11679 }
 0x60d   :  { %v1880_v6 = vadd.f32 1.0, %v11680_v3 }
 0x60e   :  { %11681 = vrcp.f32 %v1870_v2 }
 0x60f   :  { %11683 = vrcp.f32 %v1880_v6 }
 0x61b   :  { %v11682_v8 = vpop.eup %11681 }
 0x61c   :  { %v1956_v17 = vmul.f32 %v11682_v8, %v1954_v7  ;;  %v11684_v27 = vpop.eup %11683  ;;  %v12779_v7 = vpop.permute.xlu1 %2224 }
 0x61d   :  { %v1959_v28 = vsub.f32 1.0, %v11684_v27  ;;  %v1963_v32 = vmul.f32 %v11684_v27, %v1961_v29  ;;  %vm2226_vm9 = vcmp.eq.s32.totalorder %v12779_v7, 1 }
 0x61e   :  { %v1957_v26 = vadd.f32 %v1956_v17, %v12514_v15 }
 0x620   :  { %11685 = vtanh.f32 %v1957_v26  ;;  %v11957_v26 = vld [vmem:[#allocation6 + $0x18] sm:$0xff] }
 0x62d   :  { %v11686_v30 = vpop.eup %11685 }
 0x62e   :  { %v1960_v31 = vmul.f32 %v11686_v30, %v1959_v28 }
 0x630   :  { %v1964_v34 = vadd.f32 %v1963_v32, %v1960_v31 }
 0x632   :  { %v1972_v36 = vrot.slane %v1964_v34, 4 }
 0x634   :  { %v12734_v37 = vsel %vm1970_vm8, %v1972_v36, %v12683_v48 }
 0x635   :  { %1975 = vst.msk [vmem:[#allocation2 + $0x4] sm:$0x1] %vm950_vm13, %v12734_v37  ;;  %10630 = vmatmul.mubr.msk.f32.vlgmr.msra.gmra.mxu0 %vm366_vm11, %v12734_v37  ;;  %10641 = vmatmul.mubr.msk.f32.vlgmr.msra.gmra.mxu1 %vm366_vm11, %v12734_v37  ;;  %v2217_v1 = vrot.slane %v12734_v37, 3 }
 0x636   :  { %10644 = vmatpush3.msra.mxu0 %v12411_v14  ;;  %10651 = vmatprep.mubr.msk.f32.mxu0 %vm12219_vm0, %v12218_v0 }
 0x637   :  { %10645 = vmatprep.subr.mxu0 %v12218_v0  ;;  %10655 = vmatpush3.msra.mxu1 %v12385_v10 }
 0x638   :  { %10646 = vmatpush3.msra.mxu0 %v12418_v16  ;;  %10656 = vmatprep.subr.mxu1 %v12218_v0 }
 0x639   :  { %10647 = vmatprep.subr.mxu0 %v12218_v0  ;;  %10657 = vmatpush3.msra.mxu1 %v12392_v11 }
 0x63a   :  { %10648 = vmatpush3.msra.mxu0 %v12426_v18  ;;  %10658 = vmatprep.subr.mxu1 %v12218_v0 }
 0x63b   :  { %10649 = vmatprep.subr.mxu0 %v12218_v0  ;;  %10659 = vmatpush3.msra.mxu1 %v12398_v12 }
 0x63c   :  { %10650 = vmatpush3.msra.mxu0 %v12431_v19  ;;  %10660 = vmatprep.subr.mxu1 %v12218_v0 }
 0x63d   :  { %10652 = vmatmul.mubr.msk.f32.vlgmr.msra.gmra.mxu0 %vm366_vm11, %v12734_v37  ;;  %10665 = vmatprep.subr.mxu0 %v12218_v0 }
 0x63e   :  { %10666 = vmatpush3.msra.mxu0 %v12436_v20  ;;  %10661 = vmatpush3.msra.mxu1 %v12402_v13 }
 0x63f   :  { %10667 = vmatprep.subr.mxu0 %v12218_v0  ;;  %10662 = vmatprep.mubr.msk.f32.mxu1 %vm12219_vm0, %v12218_v0 }
 0x640   :  { %10668 = vmatpush3.msra.mxu0 %v12442_v21  ;;  %10673 = vmatprep.mubr.msk.f32.mxu0 %vm12219_vm0, %v12218_v0 }
 0x641   :  { %10669 = vmatprep.subr.mxu0 %v12218_v0  ;;  %10676 = vmatprep.subr.mxu1 %v12218_v0 }
 0x642   :  { %10670 = vmatpush3.msra.mxu0 %v12445_v22 }
 0x643   :  { %10671 = vmatprep.subr.mxu0 %v12218_v0 }
 0x644   :  { %10672 = vmatpush3.msra.mxu0 %v12449_v23 }
 0x645   :  { %10687 = vmatprep.subr.mxu0 %v12218_v0 }
 0x6f5   :  { %v2045_v10 = vpop.f32.mrf.mxu0  ;;  %v2115_v13 = vpop.f32.mrf.mxu1 }
 0x6f6   :  { %v2120_v38 = vrot.slane %v2045_v10, 3  ;;  %v2130_v43 = vrot.slane %v2115_v13, 3 }
 0x6f7   :  { %v10631_v39 = vpop.f32.mrf.mxu0  ;;  %v10642_v40 = vpop.f32.mrf.mxu1 }
 0x6f8   :  { %v2122_v41 = vadd.f32 %v2120_v38, %v12497_v45  ;;  %v2132_v47 = vadd.f32 %v2130_v43, %v12511_v4 }
 0x6fa   :  { %v9725_v42 = vmul.f32 -1.442695, %v2122_v41  ;;  %v9726_v49 = vmul.f32 -1.442695, %v2132_v47  ;;  %v12828_v47 = vpop.permute.xlu0 %2480 }
 0x6fb   :  { %vm2482_vm10 = vcmp.eq.s32.totalorder %v12828_v47, 1  ;;  %v11965_v47 = vld [vmem:[#allocation17 + $0x10] sm:$0xff] }
 0x6fc   :  { %11687 = vpow2.f32 %v9725_v42 }
 0x6fd   :  { %v2205_v44 = vpop.f32.mrf.mxu0  ;;  %11689 = vpow2.f32 %v9726_v49 }
 0x6fe   :  { %v2206_v24 = vadd.f32 %v2205_v44, %v12500_v51 }
 0x6ff   :  { %v10653_v48 = vpop.f32.mrf.mxu0 }
 0x700   :  { %v2210_v25 = vrot.slane %v2206_v24, 3  ;;  %v11962_v24 = vld [vmem:[#allocation6 + $0x40] sm:$0xff] }
 0x709   :  { %v11688_v50 = vpop.eup %11687 }
 0x70a   :  { %v2126_v52 = vadd.f32 1.0, %v11688_v50  ;;  %v11690_v53 = vpop.eup %11689  ;;  %v11959_v50 = vld [vmem:[#allocation6 + $0x58] sm:$0xff] }
 0x70b   :  { %v2136_v54 = vadd.f32 1.0, %v11690_v53  ;;  %v11961_v53 = vld [vmem:[#allocation6 + $0x48] sm:$0xff] }
 0x70c   :  { %11691 = vrcp.f32 %v2126_v52  ;;  %v11960_v52 = vld [vmem:[#allocation6 + $0x50] sm:$0xff] }
 0x70d   :  { %11693 = vrcp.f32 %v2136_v54  ;;  %v2748_v54 = vld [vmem:[#allocation9 + $0x18] sm:$0xff] }
 0x719   :  { %v11692_v56 = vpop.eup %11691 }
 0x71a   :  { %v2212_v58 = vmul.f32 %v11692_v56, %v2210_v25  ;;  %v11694_v60 = vpop.eup %11693  ;;  %v2833_v25 = vld [vmem:[#allocation9 + $0x38] sm:$0xff]  ;;  %v2747_v56 = vld [vmem:[#allocation9 + $0x10] sm:$0xff] }
 0x71b   :  { %v2215_v62 = vsub.f32 1.0, %v11694_v60  ;;  %v2219_v5 = vmul.f32 %v11694_v60, %v2217_v1  ;;  %v2831_v60 = vld [vmem:[#allocation9 + $0x28] sm:$0xff]  ;;  %v2830_v1 = vld [vmem:[#allocation9 + $0x20] sm:$0xff] }
 0x71c   :  { %v2213_v59 = vadd.f32 %v2212_v58, %v12514_v15  ;;  %v2832_v58 = vld [vmem:[#allocation9 + $0x30] sm:$0xff] }
 0x71e   :  { %11695 = vtanh.f32 %v2213_v59  ;;  %v2746_v59 = vld [vmem:[#allocation9 + $0x8] sm:$0xff] }
 0x72b   :  { %v11696_v2 = vpop.eup %11695 }
 0x72c   :  { %v2216_v3 = vmul.f32 %v11696_v2, %v2215_v62  ;;  %v2745_v62 = vld [vmem:[#allocation9] sm:$0xff] }
 0x72e   :  { %v2220_v6 = vadd.f32 %v2219_v5, %v2216_v3 }
 0x730   :  { %v2228_v8 = vrot.slane %v2220_v6, 5 }
 0x732   :  { %v12785_v17 = vsel %vm2226_vm9, %v2228_v8, %v12734_v37 }
 0x733   :  { %2231 = vst.msk [vmem:[#allocation2 + $0x5] sm:$0x1] %vm950_vm13, %v12785_v17  ;;  %10663 = vmatmul.mubr.msk.f32.vlgmr.msra.gmra.mxu1 %vm366_vm11, %v12785_v17  ;;  %10674 = vmatmul.mubr.msk.f32.vlgmr.msra.gmra.mxu0 %vm366_vm11, %v12785_v17  ;;  %v2473_v41 = vrot.slane %v12785_v17, 2 }
 0x734   :  { %10677 = vmatpush3.msra.mxu1 %v12411_v14  ;;  %10684 = vmatprep.mubr.msk.f32.mxu1 %vm12219_vm0, %v12218_v0 }
 0x735   :  { %10678 = vmatprep.subr.mxu1 %v12218_v0  ;;  %10688 = vmatpush3.msra.mxu0 %v11957_v26 }
 0x736   :  { %10679 = vmatpush3.msra.mxu1 %v12418_v16  ;;  %10689 = vmatprep.subr.mxu0 %v12218_v0 }
 0x737   :  { %10680 = vmatprep.subr.mxu1 %v12218_v0  ;;  %10690 = vmatpush3.msra.mxu0 %v12392_v11  ;;  %v11958_v11 = vld [vmem:[#allocation6] sm:$0xff] }
 0x738   :  { %10681 = vmatpush3.msra.mxu1 %v12426_v18  ;;  %10691 = vmatprep.subr.mxu0 %v12218_v0 }
 0x739   :  { %10682 = vmatprep.subr.mxu1 %v12218_v0  ;;  %10692 = vmatpush3.msra.mxu0 %v12398_v12 }
 0x73a   :  { %10683 = vmatpush3.msra.mxu1 %v12431_v19  ;;  %10693 = vmatprep.subr.mxu0 %v12218_v0 }
 0x73b   :  { %10685 = vmatmul.mubr.msk.f32.vlgmr.msra.gmra.mxu1 %vm366_vm11, %v12785_v17  ;;  %10698 = vmatprep.subr.mxu1 %v12218_v0 }
 0x73c   :  { %10699 = vmatpush3.msra.mxu1 %v12436_v20  ;;  %10694 = vmatpush3.msra.mxu0 %v11958_v11 }
 0x73d   :  { %10700 = vmatprep.subr.mxu1 %v12218_v0  ;;  %10695 = vmatprep.mubr.msk.f32.mxu0 %vm12219_vm0, %v12218_v0 }
 0x73e   :  { %10701 = vmatpush3.msra.mxu1 %v12442_v21  ;;  %10706 = vmatprep.mubr.msk.f32.mxu1 %vm12219_vm0, %v12218_v0 }
 0x73f   :  { %10702 = vmatprep.subr.mxu1 %v12218_v0  ;;  %10709 = vmatprep.subr.mxu0 %v12218_v0 }
 0x740   :  { %10703 = vmatpush3.msra.mxu1 %v12445_v22 }
 0x741   :  { %10704 = vmatprep.subr.mxu1 %v12218_v0 }
 0x742   :  { %10705 = vmatpush3.msra.mxu1 %v12449_v23 }
 0x743   :  { %10720 = vmatprep.subr.mxu1 %v12218_v0 }
 0x7f3   :  { %v2301_v12 = vpop.f32.mrf.mxu1  ;;  %v2371_v14 = vpop.f32.mrf.mxu0 }
 0x7f4   :  { %v2376_v16 = vrot.slane %v2301_v12, 2  ;;  %v2386_v27 = vrot.slane %v2371_v14, 2 }
 0x7f5   :  { %v10664_v18 = vpop.f32.mrf.mxu1  ;;  %v10675_v19 = vpop.f32.mrf.mxu0 }
 0x7f6   :  { %v2378_v20 = vadd.f32 %v2376_v16, %v12497_v45  ;;  %v2388_v29 = vadd.f32 %v2386_v27, %v12511_v4  ;;  %v11963_v27 = vld [vmem:[#allocation8 + $0x3] sm:$0x1] }
 0x7f8   :  { %v9730_v21 = vmul.f32 -1.442695, %v2378_v20  ;;  %v9731_v30 = vmul.f32 -1.442695, %v2388_v29 }
 0x7fa   :  { %11697 = vpow2.f32 %v9730_v21 }
 0x7fb   :  { %v2461_v28 = vpop.f32.mrf.mxu1  ;;  %11699 = vpow2.f32 %v9731_v30 }
 0x7fc   :  { %v2462_v34 = vadd.f32 %v2461_v28, %v12500_v51 }
 0x7fd   :  { %v10686_v22 = vpop.f32.mrf.mxu1 }
 0x7fe   :  { %v2466_v37 = vrot.slane %v2462_v34, 2 }
 0x807   :  { %v11698_v31 = vpop.eup %11697 }
 0x808   :  { %v2382_v23 = vadd.f32 1.0, %v11698_v31  ;;  %v11700_v32 = vpop.eup %11699 }
 0x809   :  { %v2392_v36 = vadd.f32 1.0, %v11700_v32 }
 0x80a   :  { %11701 = vrcp.f32 %v2382_v23 }
 0x80b   :  { %11703 = vrcp.f32 %v2392_v36 }
 0x817   :  { %v11702_v10 = vpop.eup %11701 }
 0x818   :  { %v2468_v13 = vmul.f32 %v11702_v10, %v2466_v37  ;;  %v11704_v39 = vpop.eup %11703  ;;  %v12866_v10 = vpop.permute.xlu1 %2736 }
 0x819   :  { %v2471_v40 = vsub.f32 1.0, %v11704_v39  ;;  %v2475_v44 = vmul.f32 %v11704_v39, %v2473_v41  ;;  %vm2738_vm14 = vcmp.eq.s32.totalorder %v12866_v10, 1 }
 0x81a   :  { %v2469_v38 = vadd.f32 %v2468_v13, %v12514_v15 }
 0x81c   :  { %11705 = vtanh.f32 %v2469_v38 }
 0x829   :  { %v11706_v42 = vpop.eup %11705 }
 0x82a   :  { %v2472_v43 = vmul.f32 %v11706_v42, %v2471_v40  ;;  %v12873_v40 = vld [vmem:[#allocation11 + $0x18] sm:$0xff]  ;;  %v2915_v42 = vld [vmem:[#allocation9 + $0x50] sm:$0xff] }
 0x82c   :  { %v2476_v48 = vadd.f32 %v2475_v44, %v2472_v43  ;;  %v12877_v43 = vld [vmem:[#allocation11 + $0x10] sm:$0xff]  ;;  %v2914_v44 = vld [vmem:[#allocation9 + $0x48] sm:$0xff] }
 0x82e   :  { %v2484_v49 = vrot.slane %v2476_v48, 6  ;;  %v12882_v48 = vld [vmem:[#allocation11 + $0x8] sm:$0xff] }
 0x830   :  { %v12834_v51 = vsel %vm2482_vm10, %v2484_v49, %v12785_v17  ;;  %v2913_v49 = vld [vmem:[#allocation9 + $0x40] sm:$0xff] }
 0x831   :  { %2487 = vst.msk [vmem:[#allocation2 + $0x6] sm:$0x1] %vm950_vm13, %v12834_v51  ;;  %10696 = vmatmul.mubr.msk.f32.vlgmr.msra.gmra.mxu0 %vm366_vm11, %v12834_v51  ;;  %10707 = vmatmul.mubr.msk.f32.vlgmr.msra.gmra.mxu1 %vm366_vm11, %v12834_v51 }
 0x832   :  { %10710 = vmatpush3.msra.mxu0 %v11959_v50  ;;  %10717 = vmatprep.mubr.msk.f32.mxu0 %vm12219_vm0, %v12218_v0  ;;  %v12897_v50 = vld [vmem:[#allocation11 + $0x38] sm:$0xff] }
 0x833   :  { %10711 = vmatprep.subr.mxu0 %v12218_v0  ;;  %10728 = vmatprep.mubr.msk.f32.mxu1 %vm12219_vm0, %v12218_v0 }
 0x834   :  { %10712 = vmatpush3.msra.mxu0 %v11960_v52  ;;  %10721 = vmatpush3.msra.mxu1 %v2748_v54  ;;  %v12901_v52 = vld [vmem:[#allocation11 + $0x58] sm:$0xff]  ;;  %v12913_v54 = vld [vmem:[#allocation11 + $0x28] sm:$0xff] }
 0x835   :  { %10713 = vmatprep.subr.mxu0 %v12218_v0  ;;  %10722 = vmatprep.subr.mxu1 %v12218_v0 }
 0x836   :  { %10714 = vmatpush3.msra.mxu0 %v11961_v53  ;;  %10723 = vmatpush3.msra.mxu1 %v2747_v56  ;;  %v12904_v53 = vld [vmem:[#allocation11 + $0x30] sm:$0xff]  ;;  %v12921_v56 = vld [vmem:[#allocation11 + $0x20] sm:$0xff] }
 0x837   :  { %10715 = vmatprep.subr.mxu0 %v12218_v0  ;;  %10724 = vmatprep.subr.mxu1 %v12218_v0 }
 0x838   :  { %10716 = vmatpush3.msra.mxu0 %v11962_v24  ;;  %10725 = vmatpush3.msra.mxu1 %v2746_v59  ;;  %v12910_v24 = vld [vmem:[#allocation11 + $0x50] sm:$0xff] }
 0x839   :  { %10718 = vmatmul.mubr.msk.f32.vlgmr.msra.gmra.mxu0 %vm366_vm11, %v12834_v51  ;;  %10731 = vmatprep.subr.mxu0 %v12218_v0 }
 0x83a   :  { %10739 = vmatprep.mubr.msk.f32.mxu0 %vm12219_vm0, %v12218_v0  ;;  %10732 = vmatpush3.msra.mxu0 %v2833_v25  ;;  %v12918_v25 = vld [vmem:[#allocation11 + $0x48] sm:$0xff] }
 0x83b   :  { %10733 = vmatprep.subr.mxu0 %v12218_v0  ;;  %10726 = vmatprep.subr.mxu1 %v12218_v0 }
 0x83c   :  { %10734 = vmatpush3.msra.mxu0 %v2832_v58  ;;  %10727 = vmatpush3.msra.mxu1 %v2745_v62  ;;  %v12926_v58 = vld [vmem:[#allocation11 + $0x40] sm:$0xff] }
 0x83d   :  { %10735 = vmatprep.subr.mxu0 %v12218_v0  ;;  %10742 = vmatprep.subr.mxu1 %v12218_v0 }
 0x83e   :  { %10736 = vmatpush3.msra.mxu0 %v2831_v60 }
 0x83f   :  { %10737 = vmatprep.subr.mxu0 %v12218_v0 }
 0x840   :  { %10738 = vmatpush3.msra.mxu0 %v2830_v1 }
 0x841   :  { %10753 = vmatprep.subr.mxu0 %v12218_v0 }
 0x8f1   :  { %v2557_v2 = vpop.f32.mrf.mxu0  ;;  %v2627_v3 = vpop.f32.mrf.mxu1 }
 0x8f2   :  { %v2632_v5 = vrot.slane %v2557_v2, 1  ;;  %v2642_v11 = vrot.slane %v2627_v3, 1  ;;  %v9738_v2 = vld [vmem:[%s14182_s7] ss:$0 sm:$0xff] }
 0x8f3   :  { %v10697_v6 = vpop.f32.mrf.mxu0  ;;  %v10708_v8 = vpop.f32.mrf.mxu1 }
 0x8f4   :  { %v2634_v17 = vadd.f32 %v2632_v5, %v12497_v45  ;;  %v2644_v14 = vadd.f32 %v2642_v11, %v12511_v4  ;;  %v2729_v4 = vrot.slane %v12834_v51, 1 }
 0x8f6   :  { %v9735_v26 = vmul.f32 -1.442695, %v2634_v17  ;;  %v9736_v18 = vmul.f32 -1.442695, %v2644_v14 }
 0x8f8   :  { %11707 = vpow2.f32 %v9735_v26 }
 0x8f9   :  { %v2717_v12 = vpop.f32.mrf.mxu0  ;;  %11709 = vpow2.f32 %v9736_v18 }
 0x8fa   :  { %v2718_v28 = vadd.f32 %v11963_v27, %v2717_v12  ;;  %v9741_v12 = vld [vmem:[%s14182_s7 + $0x1] ss:$0 sm:$0xff] }
 0x8fb   :  { %v10719_v16 = vpop.f32.mrf.mxu0 }
 0x8fc   :  { %v2722_v22 = vrot.slane %v2718_v28, 1 }
 0x905   :  { %v11708_v19 = vpop.eup %11707 }
 0x906   :  { %v2638_v20 = vadd.f32 1.0, %v11708_v19  ;;  %v11710_v21 = vpop.eup %11709 }
 0x907   :  { %v2648_v29 = vadd.f32 1.0, %v11710_v21 }
 0x908   :  { %11711 = vrcp.f32 %v2638_v20 }
 0x909   :  { %11713 = vrcp.f32 %v2648_v29 }
 0x915   :  { %v11712_v30 = vpop.eup %11711 }
 0x916   :  { %v2724_v45 = vmul.f32 %v11712_v30, %v2722_v22  ;;  %v11714_v23 = vpop.eup %11713  ;;  %v12974_v30 = vld [vmem:[%s14182_s7 + $0x3] sm:$0x1] }
 0x917   :  { %v2727_v32 = vsub.f32 1.0, %v11714_v23  ;;  %v2731_v36 = vmul.f32 %v11714_v23, %v2729_v4  ;;  %v9744_v23 = vld [vmem:[%s14182_s7 + $0x2] ss:$0 sm:$0xff] }
 0x918   :  { %v2725_v31 = vadd.f32 %v2724_v45, %v12514_v15  ;;  %v2916_v15 = vld [vmem:[#allocation9 + $0x58] sm:$0xff] }
 0x91a   :  { %11715 = vtanh.f32 %v2725_v31 }
 0x927   :  { %v11716_v34 = vpop.eup %11715 }
 0x928   :  { %v2728_v37 = vmul.f32 %v11716_v34, %v2727_v32 }
 0x92a   :  { %v2732_v13 = vadd.f32 %v2731_v36, %v2728_v37 }
 0x92c   :  { %v2740_v38 = vrot.slane %v2732_v13, 7 }
 0x92e   :  { %v2742_v39 = vsel %vm2738_vm14, %v2740_v38, %v12834_v51  ;;  %v12888_v51 = vld [vmem:[#allocation11] sm:$0xff] }
 0x92f   :  { %2743 = vst.msk [vmem:[#allocation2 + $0x7] sm:$0x1] %vm950_vm13, %v2742_v39 }
 0x936   :  { %v2744_v41 = vld [vmem:[#allocation2] sm:$0xff] }
 0x937   :  { %10729 = vmatmul.mubr.msk.f32.vlgmr.msra.gmra.mxu1 %vm366_vm11, %v2744_v41  ;;  %10740 = vmatmul.mubr.msk.f32.vlgmr.msra.gmra.mxu0 %vm366_vm11, %v2744_v41 }
 0x938   :  { %10743 = vmatpush3.msra.mxu1 %v2916_v15  ;;  %10754 = vmatpush3.msra.mxu0 %v12873_v40 }
 0x939   :  { %10744 = vmatprep.subr.mxu1 %v12218_v0  ;;  %10755 = vmatprep.subr.mxu0 %v12218_v0 }
 0x93a   :  { %10745 = vmatpush3.msra.mxu1 %v2915_v42  ;;  %10756 = vmatpush3.msra.mxu0 %v12877_v43 }
 0x93b   :  { %10746 = vmatprep.subr.mxu1 %v12218_v0  ;;  %10757 = vmatprep.subr.mxu0 %v12218_v0 }
 0x93c   :  { %10747 = vmatpush3.msra.mxu1 %v2914_v44  ;;  %10758 = vmatpush3.msra.mxu0 %v12882_v48 }
 0x93d   :  { %10748 = vmatprep.subr.mxu1 %v12218_v0  ;;  %10759 = vmatprep.subr.mxu0 %v12218_v0 }
 0x93e   :  { %10749 = vmatpush3.msra.mxu1 %v2913_v49  ;;  %10750 = vmatprep.mubr.msk.f32.mxu1 %vm12219_vm0, %v12218_v0 }
 0x93f   :  { %10760 = vmatpush3.msra.mxu0 %v12888_v51  ;;  %10761 = vmatprep.mubr.msk.f32.mxu0 %vm12219_vm0, %v12218_v0 }
 0x940   :  { %10751 = vmatmul.mubr.msk.f32.vlgmr.msra.gmra.mxu1 %vm366_vm11, %v2744_v41  ;;  %10762 = vmatmul.mubr.f32.vlgmr.msra.gmra.mxu0 %v12218_v0 }
 0x941   :  { %10764 = vmatprep.subr.mxu1 %v12218_v0  ;;  %10772 = vmatprep.mubr.msk.f32.mxu1 %vm12219_vm0, %v12218_v0 }
 0x942   :  { %10765 = vmatpush3.msra.mxu1 %v12897_v50  ;;  %10775 = vmatprep.subr.mxu0 %v12218_v0 }
 0x943   :  { %10766 = vmatprep.subr.mxu1 %v12218_v0  ;;  %10776 = vmatpush3.msra.mxu0 %v12901_v52 }
 0x944   :  { %10767 = vmatpush3.msra.mxu1 %v12904_v53  ;;  %10777 = vmatprep.subr.mxu0 %v12218_v0 }
 0x945   :  { %10768 = vmatprep.subr.mxu1 %v12218_v0  ;;  %10778 = vmatpush3.msra.mxu0 %v12910_v24 }
 0x946   :  { %10769 = vmatpush3.msra.mxu1 %v12913_v54  ;;  %10779 = vmatprep.subr.mxu0 %v12218_v0 }
 0x947   :  { %10770 = vmatprep.subr.mxu1 %v12218_v0  ;;  %10780 = vmatpush3.msra.mxu0 %v12918_v25 }
 0x948   :  { %10771 = vmatpush3.msra.mxu1 %v12921_v56  ;;  %10781 = vmatprep.subr.mxu0 %v12218_v0 }
 0x949   :  { %10773 = vmatmul.mubr.f32.vlgmr.msra.gmra.mxu1 %v12218_v0  ;;  %10782 = vmatpush3.msra.mxu0 %v12926_v58 }
 0x94a   :  { %10783 = vmatprep.mubr.msk.f32.mxu0 %vm12219_vm0, %v12218_v0  ;;  %10786 = vmatprep.subr.mxu1 %v12218_v0 }
 0x94b   :  { %10784 = vmatmul.mubr.f32.vlgmr.msra.gmra.mxu0 %v12218_v0  ;;  %10787 = vmatpush3.msra.mxu1 %v12873_v40 }
 0x94c   :  { %10797 = vmatprep.subr.mxu0 %v12218_v0  ;;  %10788 = vmatprep.subr.mxu1 %v12218_v0 }
 0x94d   :  { %10798 = vmatpush3.msra.mxu0 %v12897_v50  ;;  %10789 = vmatpush3.msra.mxu1 %v12877_v43 }
 0x94e   :  { %10799 = vmatprep.subr.mxu0 %v12218_v0  ;;  %10790 = vmatprep.subr.mxu1 %v12218_v0 }
 0x94f   :  { %10800 = vmatpush3.msra.mxu0 %v12904_v53  ;;  %10791 = vmatpush3.msra.mxu1 %v12882_v48 }
 0x950   :  { %10801 = vmatprep.subr.mxu0 %v12218_v0  ;;  %10792 = vmatprep.subr.mxu1 %v12218_v0 }
 0x951   :  { %10802 = vmatpush3.msra.mxu0 %v12913_v54  ;;  %10793 = vmatpush3.msra.mxu1 %v12888_v51 }
 0x952   :  { %10803 = vmatprep.subr.mxu0 %v12218_v0  ;;  %10794 = vmatprep.mubr.msk.f32.mxu1 %vm12219_vm0, %v12218_v0 }
 0x953   :  { %10804 = vmatpush3.msra.mxu0 %v12921_v56  ;;  %10805 = vmatprep.mubr.msk.f32.mxu0 %vm12219_vm0, %v12218_v0 }
 0x954   :  { %10808 = vmatprep.subr.mxu1 %v12218_v0  ;;  %10819 = vmatprep.subr.mxu0 %v12218_v0 }
 0x9f7   :  { %v2825_v59 = vpop.f32.mrf.mxu1  ;;  %v2908_v60 = vpop.f32.mrf.mxu0 }
 0x9f8   :  { %v12962_v3 = vadd.f32 %v9738_v2, %v2825_v59  ;;  %v12968_v14 = vadd.f32 %v9741_v12, %v2908_v60 }
 0x9f9   :  { %v10730_v62 = vpop.f32.mrf.mxu1  ;;  %v10741_v1 = vpop.f32.mrf.mxu0 }
 0xa00   :  { %v2991_v5 = vpop.f32.mrf.mxu1  ;;  %v3077_v6 = vpop.f32.mrf.mxu0 }
 0xa01   :  { %v3151_v8 = vadd.f32 %v3077_v6, %v12962_v3  ;;  %v12980_v32 = vadd.f32 %v9744_v23, %v2991_v5 }
 0xa02   :  { %v10752_v17 = vpop.f32.mrf.mxu1  ;;  %v10763_v26 = vpop.f32.mrf.mxu0 }
 0xa03   :  { %v9747_v11 = vmul.f32 -1.442695, %v3151_v8 }
 0xa05   :  { %11717 = vpow2.f32 %v9747_v11 }
 0xa09   :  { %v3147_v16 = vpop.f32.mrf.mxu1 }
 0xa0a   :  { %v3158_v18 = vadd.f32 %v3147_v16, %v12968_v14 }
 0xa0b   :  { %v10774_v19 = vpop.f32.mrf.mxu1  ;;  %v3231_v20 = vpop.f32.mrf.mxu0 }
 0xa0c   :  { %v9748_v21 = vmul.f32 -1.442695, %v3158_v18  ;;  %v3232_v31 = vadd.f32 %v12974_v30, %v3231_v20 }
 0xa0d   :  { %v10785_v27 = vpop.f32.mrf.mxu0 }
 0xa0e   :  { %11719 = vpow2.f32 %v9748_v21 }
 0xa12   :  { %v11718_v28 = vpop.eup %11717 }
 0xa13   :  { %v3155_v29 = vadd.f32 1.0, %v11718_v28 }
 0xa15   :  { %11721 = vrcp.f32 %v3155_v29 }
 0xa1b   :  { %v11720_v22 = vpop.eup %11719 }
 0xa1c   :  { %v3162_v45 = vadd.f32 1.0, %v11720_v22 }
 0xa1e   :  { %11723 = vrcp.f32 %v3162_v45 }
 0xa22   :  { %v11722_v4 = vpop.eup %11721 }
 0xa23   :  { %v3235_v34 = vmul.f32 %v11722_v4, %v3232_v31 }
 0xa25   :  { %v3236_v36 = vadd.f32 %v3235_v34, %v12980_v32 }
 0xa27   :  { %11725 = vtanh.f32 %v3236_v36 }
 0xa2b   :  { %v11724_v37 = vpop.eup %11723 }
 0xa2c   :  { %v3238_v13 = vsub.f32 1.0, %v11724_v37  ;;  %v3240_v15 = vmul.f32 0.0, %v11724_v37 }
 0xa34   :  { %v11726_v38 = vpop.eup %11725 }
 0xa35   :  { %v3239_v39 = vmul.f32 %v11726_v38, %v3238_v13 }
 0xa37   :  { %v3241_v41 = vadd.f32 %v3240_v15, %v3239_v39 }
 0xa39   :  { %v12985_v42 = vsel %vm948_vm12, %v3241_v41, 0.0 }
 0xa3a   :  { %3243 = vst.msk [vmem:[#allocation2] sm:$0x1] %vm950_vm13, %v12985_v42  ;;  %10795 = vmatmul.mubr.msk.f32.vlgmr.msra.gmra.mxu1 %vm366_vm11, %v12985_v42  ;;  %10806 = vmatmul.mubr.msk.f32.vlgmr.msra.gmra.mxu0 %vm366_vm11, %v12985_v42  ;;  %v3485_v45 = vrot.slane %v12985_v42, 7 }
 0xa3b   :  { %10809 = vmatpush3.msra.mxu1 %v12901_v52  ;;  %10816 = vmatprep.mubr.msk.f32.mxu1 %vm12219_vm0, %v12218_v0 }
 0xa3c   :  { %10810 = vmatprep.subr.mxu1 %v12218_v0  ;;  %10820 = vmatpush3.msra.mxu0 %v12873_v40 }
 0xa3d   :  { %10811 = vmatpush3.msra.mxu1 %v12910_v24  ;;  %10821 = vmatprep.subr.mxu0 %v12218_v0 }
 0xa3e   :  { %10812 = vmatprep.subr.mxu1 %v12218_v0  ;;  %10822 = vmatpush3.msra.mxu0 %v12877_v43 }
 0xa3f   :  { %10813 = vmatpush3.msra.mxu1 %v12918_v25  ;;  %10823 = vmatprep.subr.mxu0 %v12218_v0 }
 0xa40   :  { %10814 = vmatprep.subr.mxu1 %v12218_v0  ;;  %10824 = vmatpush3.msra.mxu0 %v12882_v48 }
 0xa41   :  { %10815 = vmatpush3.msra.mxu1 %v12926_v58  ;;  %10825 = vmatprep.subr.mxu0 %v12218_v0 }
 0xa42   :  { %10817 = vmatmul.mubr.msk.f32.vlgmr.msra.gmra.mxu1 %vm366_vm11, %v12985_v42  ;;  %10830 = vmatprep.subr.mxu1 %v12218_v0 }
 0xa43   :  { %10831 = vmatpush3.msra.mxu1 %v12897_v50  ;;  %10826 = vmatpush3.msra.mxu0 %v12888_v51 }
 0xa44   :  { %10832 = vmatprep.subr.mxu1 %v12218_v0  ;;  %10827 = vmatprep.mubr.msk.f32.mxu0 %vm12219_vm0, %v12218_v0 }
 0xa45   :  { %10833 = vmatpush3.msra.mxu1 %v12904_v53  ;;  %10838 = vmatprep.mubr.msk.f32.mxu1 %vm12219_vm0, %v12218_v0 }
 0xa46   :  { %10834 = vmatprep.subr.mxu1 %v12218_v0  ;;  %10841 = vmatprep.subr.mxu0 %v12218_v0 }
 0xa47   :  { %10835 = vmatpush3.msra.mxu1 %v12913_v54 }
 0xa48   :  { %10836 = vmatprep.subr.mxu1 %v12218_v0 }
 0xa49   :  { %10837 = vmatpush3.msra.mxu1 %v12921_v56 }
 0xa4a   :  { %10852 = vmatprep.subr.mxu1 %v12218_v0 }
 0xafa   :  { %v3313_v44 = vpop.f32.mrf.mxu1  ;;  %v3383_v49 = vpop.f32.mrf.mxu0 }
 0xafb   :  { %v3388_v59 = vrot.slane %v3313_v44, 7  ;;  %v3398_v5 = vrot.slane %v3383_v49, 7 }
 0xafc   :  { %v10796_v60 = vpop.f32.mrf.mxu1  ;;  %v10807_v62 = vpop.f32.mrf.mxu0 }
 0xafd   :  { %v3390_v1 = vadd.f32 %v3388_v59, %v12962_v3  ;;  %v3400_v8 = vadd.f32 %v3398_v5, %v12968_v14 }
 0xaff   :  { %v9751_v2 = vmul.f32 -1.442695, %v3390_v1  ;;  %v9752_v26 = vmul.f32 -1.442695, %v3400_v8 }
 0xb01   :  { %11727 = vpow2.f32 %v9751_v2 }
 0xb02   :  { %v3473_v6 = vpop.f32.mrf.mxu1  ;;  %11729 = vpow2.f32 %v9752_v26 }
 0xb03   :  { %v3474_v18 = vadd.f32 %v12974_v30, %v3473_v6 }
 0xb04   :  { %v10818_v17 = vpop.f32.mrf.mxu1 }
 0xb05   :  { %v3478_v20 = vrot.slane %v3474_v18, 7 }
 0xb0e   :  { %v11728_v11 = vpop.eup %11727 }
 0xb0f   :  { %v3394_v12 = vadd.f32 1.0, %v11728_v11  ;;  %v11730_v16 = vpop.eup %11729 }
 0xb10   :  { %v3404_v19 = vadd.f32 1.0, %v11730_v16 }
 0xb11   :  { %11731 = vrcp.f32 %v3394_v12 }
 0xb12   :  { %11733 = vrcp.f32 %v3404_v19 }
 0xb1e   :  { %v11732_v21 = vpop.eup %11731 }
 0xb1f   :  { %v3480_v27 = vmul.f32 %v11732_v21, %v3478_v20  ;;  %v11734_v29 = vpop.eup %11733 }
 0xb20   :  { %v3483_v22 = vsub.f32 1.0, %v11734_v29  ;;  %v3487_v4 = vmul.f32 %v11734_v29, %v3485_v45 }
 0xb21   :  { %v3481_v28 = vadd.f32 %v3480_v27, %v12980_v32 }
 0xb23   :  { %11735 = vtanh.f32 %v3481_v28 }
 0xb30   :  { %v11736_v31 = vpop.eup %11735 }
 0xb31   :  { %v3484_v23 = vmul.f32 %v11736_v31, %v3483_v22 }
 0xb33   :  { %v3488_v34 = vadd.f32 %v3487_v4, %v3484_v23 }
 0xb35   :  { %v3490_v36 = vrot.slane %v3488_v34, 1 }
 0xb37   :  { %v13033_v37 = vsel %vm1202_vm3, %v3490_v36, %v12985_v42  ;;  %v3493_v13 = vsel %vm1202_vm3, %v3490_v36, 0.0 }
 0xb38   :  { %3494 = vst.msk [vmem:[#allocation2 + $0x1] sm:$0x1] %vm950_vm13, %v3493_v13  ;;  %10828 = vmatmul.mubr.msk.f32.vlgmr.msra.gmra.mxu0 %vm366_vm11, %v13033_v37  ;;  %10839 = vmatmul.mubr.msk.f32.vlgmr.msra.gmra.mxu1 %vm366_vm11, %v13033_v37  ;;  %v3736_v20 = vrot.slane %v13033_v37, 6 }
 0xb39   :  { %10842 = vmatpush3.msra.mxu0 %v12901_v52  ;;  %10849 = vmatprep.mubr.msk.f32.mxu0 %vm12219_vm0, %v12218_v0 }
 0xb3a   :  { %10843 = vmatprep.subr.mxu0 %v12218_v0  ;;  %10853 = vmatpush3.msra.mxu1 %v12873_v40 }
 0xb3b   :  { %10844 = vmatpush3.msra.mxu0 %v12910_v24  ;;  %10854 = vmatprep.subr.mxu1 %v12218_v0 }
 0xb3c   :  { %10845 = vmatprep.subr.mxu0 %v12218_v0  ;;  %10855 = vmatpush3.msra.mxu1 %v12877_v43 }
 0xb3d   :  { %10846 = vmatpush3.msra.mxu0 %v12918_v25  ;;  %10856 = vmatprep.subr.mxu1 %v12218_v0 }
 0xb3e   :  { %10847 = vmatprep.subr.mxu0 %v12218_v0  ;;  %10857 = vmatpush3.msra.mxu1 %v12882_v48 }
 0xb3f   :  { %10848 = vmatpush3.msra.mxu0 %v12926_v58  ;;  %10858 = vmatprep.subr.mxu1 %v12218_v0 }
 0xb40   :  { %10850 = vmatmul.mubr.msk.f32.vlgmr.msra.gmra.mxu0 %vm366_vm11, %v13033_v37  ;;  %10863 = vmatprep.subr.mxu0 %v12218_v0 }
 0xb41   :  { %10864 = vmatpush3.msra.mxu0 %v12897_v50  ;;  %10859 = vmatpush3.msra.mxu1 %v12888_v51 }
 0xb42   :  { %10865 = vmatprep.subr.mxu0 %v12218_v0  ;;  %10860 = vmatprep.mubr.msk.f32.mxu1 %vm12219_vm0, %v12218_v0 }
 0xb43   :  { %10866 = vmatpush3.msra.mxu0 %v12904_v53  ;;  %10871 = vmatprep.mubr.msk.f32.mxu0 %vm12219_vm0, %v12218_v0 }
 0xb44   :  { %10867 = vmatprep.subr.mxu0 %v12218_v0  ;;  %10874 = vmatprep.subr.mxu1 %v12218_v0 }
 0xb45   :  { %10868 = vmatpush3.msra.mxu0 %v12913_v54 }
 0xb46   :  { %10869 = vmatprep.subr.mxu0 %v12218_v0 }
 0xb47   :  { %10870 = vmatpush3.msra.mxu0 %v12921_v56 }
 0xb48   :  { %10885 = vmatprep.subr.mxu0 %v12218_v0 }
 0xbf8   :  { %v3564_v38 = vpop.f32.mrf.mxu0  ;;  %v3634_v39 = vpop.f32.mrf.mxu1 }
 0xbf9   :  { %v3639_v15 = vrot.slane %v3564_v38, 6  ;;  %v3649_v59 = vrot.slane %v3634_v39, 6 }
 0xbfa   :  { %v10829_v41 = vpop.f32.mrf.mxu0  ;;  %v10840_v42 = vpop.f32.mrf.mxu1 }
 0xbfb   :  { %v3641_v44 = vadd.f32 %v3639_v15, %v12962_v3  ;;  %v3651_v62 = vadd.f32 %v3649_v59, %v12968_v14 }
 0xbfd   :  { %v9756_v49 = vmul.f32 -1.442695, %v3641_v44  ;;  %v9757_v2 = vmul.f32 -1.442695, %v3651_v62 }
 0xbff   :  { %11737 = vpow2.f32 %v9756_v49 }
 0xc00   :  { %v3724_v60 = vpop.f32.mrf.mxu0  ;;  %11739 = vpow2.f32 %v9757_v2 }
 0xc01   :  { %v3725_v17 = vadd.f32 %v12974_v30, %v3724_v60 }
 0xc02   :  { %v10851_v1 = vpop.f32.mrf.mxu0 }
 0xc03   :  { %v3729_v11 = vrot.slane %v3725_v17, 6 }
 0xc0c   :  { %v11738_v5 = vpop.eup %11737 }
 0xc0d   :  { %v3645_v6 = vadd.f32 1.0, %v11738_v5  ;;  %v11740_v8 = vpop.eup %11739 }
 0xc0e   :  { %v3655_v26 = vadd.f32 1.0, %v11740_v8 }
 0xc0f   :  { %11741 = vrcp.f32 %v3645_v6 }
 0xc10   :  { %11743 = vrcp.f32 %v3655_v26 }
 0xc1c   :  { %v11742_v12 = vpop.eup %11741 }
 0xc1d   :  { %v3731_v16 = vmul.f32 %v11742_v12, %v3729_v11  ;;  %v11744_v19 = vpop.eup %11743 }
 0xc1e   :  { %v3734_v21 = vsub.f32 1.0, %v11744_v19  ;;  %v3738_v29 = vmul.f32 %v11744_v19, %v3736_v20 }
 0xc1f   :  { %v3732_v18 = vadd.f32 %v3731_v16, %v12980_v32 }
 0xc21   :  { %11745 = vtanh.f32 %v3732_v18 }
 0xc2e   :  { %v11746_v27 = vpop.eup %11745 }
 0xc2f   :  { %v3735_v28 = vmul.f32 %v11746_v27, %v3734_v21 }
 0xc31   :  { %v3739_v22 = vadd.f32 %v3738_v29, %v3735_v28 }
 0xc33   :  { %v3741_v45 = vrot.slane %v3739_v22, 2 }
 0xc35   :  { %v13082_v31 = vsel %vm1458_vm4, %v3741_v45, %v13033_v37  ;;  %v3744_v23 = vsel %vm1458_vm4, %v3741_v45, 0.0 }
 0xc36   :  { %3745 = vst.msk [vmem:[#allocation2 + $0x2] sm:$0x1] %vm950_vm13, %v3744_v23  ;;  %10861 = vmatmul.mubr.msk.f32.vlgmr.msra.gmra.mxu1 %vm366_vm11, %v13082_v31  ;;  %10872 = vmatmul.mubr.msk.f32.vlgmr.msra.gmra.mxu0 %vm366_vm11, %v13082_v31  ;;  %v3987_v11 = vrot.slane %v13082_v31, 5 }
 0xc37   :  { %10875 = vmatpush3.msra.mxu1 %v12901_v52  ;;  %10882 = vmatprep.mubr.msk.f32.mxu1 %vm12219_vm0, %v12218_v0 }
 0xc38   :  { %10876 = vmatprep.subr.mxu1 %v12218_v0  ;;  %10886 = vmatpush3.msra.mxu0 %v12873_v40 }
 0xc39   :  { %10877 = vmatpush3.msra.mxu1 %v12910_v24  ;;  %10887 = vmatprep.subr.mxu0 %v12218_v0 }
 0xc3a   :  { %10878 = vmatprep.subr.mxu1 %v12218_v0  ;;  %10888 = vmatpush3.msra.mxu0 %v12877_v43 }
 0xc3b   :  { %10879 = vmatpush3.msra.mxu1 %v12918_v25  ;;  %10889 = vmatprep.subr.mxu0 %v12218_v0 }
 0xc3c   :  { %10880 = vmatprep.subr.mxu1 %v12218_v0  ;;  %10890 = vmatpush3.msra.mxu0 %v12882_v48 }
 0xc3d   :  { %10881 = vmatpush3.msra.mxu1 %v12926_v58  ;;  %10891 = vmatprep.subr.mxu0 %v12218_v0 }
 0xc3e   :  { %10883 = vmatmul.mubr.msk.f32.vlgmr.msra.gmra.mxu1 %vm366_vm11, %v13082_v31  ;;  %10896 = vmatprep.subr.mxu1 %v12218_v0 }
 0xc3f   :  { %10897 = vmatpush3.msra.mxu1 %v12897_v50  ;;  %10892 = vmatpush3.msra.mxu0 %v12888_v51 }
 0xc40   :  { %10898 = vmatprep.subr.mxu1 %v12218_v0  ;;  %10893 = vmatprep.mubr.msk.f32.mxu0 %vm12219_vm0, %v12218_v0 }
 0xc41   :  { %10899 = vmatpush3.msra.mxu1 %v12904_v53  ;;  %10904 = vmatprep.mubr.msk.f32.mxu1 %vm12219_vm0, %v12218_v0 }
 0xc42   :  { %10900 = vmatprep.subr.mxu1 %v12218_v0  ;;  %10907 = vmatprep.subr.mxu0 %v12218_v0 }
 0xc43   :  { %10901 = vmatpush3.msra.mxu1 %v12913_v54 }
 0xc44   :  { %10902 = vmatprep.subr.mxu1 %v12218_v0 }
 0xc45   :  { %10903 = vmatpush3.msra.mxu1 %v12921_v56 }
 0xc46   :  { %10918 = vmatprep.subr.mxu1 %v12218_v0 }
 0xcf6   :  { %v3815_v4 = vpop.f32.mrf.mxu1  ;;  %v3885_v34 = vpop.f32.mrf.mxu0 }
 0xcf7   :  { %v3890_v36 = vrot.slane %v3815_v4, 5  ;;  %v3900_v15 = vrot.slane %v3885_v34, 5 }
 0xcf8   :  { %v10862_v37 = vpop.f32.mrf.mxu1  ;;  %v10873_v13 = vpop.f32.mrf.mxu0 }
 0xcf9   :  { %v3892_v38 = vadd.f32 %v3890_v36, %v12962_v3  ;;  %v3902_v42 = vadd.f32 %v3900_v15, %v12968_v14 }
 0xcfb   :  { %v9761_v39 = vmul.f32 -1.442695, %v3892_v38  ;;  %v9762_v49 = vmul.f32 -1.442695, %v3902_v42 }
 0xcfd   :  { %11747 = vpow2.f32 %v9761_v39 }
 0xcfe   :  { %v3975_v41 = vpop.f32.mrf.mxu1  ;;  %11749 = vpow2.f32 %v9762_v49 }
 0xcff   :  { %v3976_v1 = vadd.f32 %v12974_v30, %v3975_v41 }
 0xd00   :  { %v10884_v44 = vpop.f32.mrf.mxu1 }
 0xd01   :  { %v3980_v5 = vrot.slane %v3976_v1, 5 }
 0xd0a   :  { %v11748_v59 = vpop.eup %11747 }
 0xd0b   :  { %v3896_v60 = vadd.f32 1.0, %v11748_v59  ;;  %v11750_v62 = vpop.eup %11749 }
 0xd0c   :  { %v3906_v2 = vadd.f32 1.0, %v11750_v62 }
 0xd0d   :  { %11751 = vrcp.f32 %v3896_v60 }
 0xd0e   :  { %11753 = vrcp.f32 %v3906_v2 }
 0xd1a   :  { %v11752_v6 = vpop.eup %11751 }
 0xd1b   :  { %v3982_v8 = vmul.f32 %v11752_v6, %v3980_v5  ;;  %v11754_v26 = vpop.eup %11753 }
 0xd1c   :  { %v3985_v12 = vsub.f32 1.0, %v11754_v26  ;;  %v3989_v19 = vmul.f32 %v11754_v26, %v3987_v11 }
 0xd1d   :  { %v3983_v17 = vadd.f32 %v3982_v8, %v12980_v32 }
 0xd1f   :  { %11755 = vtanh.f32 %v3983_v17 }
 0xd2c   :  { %v11756_v16 = vpop.eup %11755 }
 0xd2d   :  { %v3986_v18 = vmul.f32 %v11756_v16, %v3985_v12 }
 0xd2f   :  { %v3990_v20 = vadd.f32 %v3989_v19, %v3986_v18 }
 0xd31   :  { %v3992_v21 = vrot.slane %v3990_v20, 3 }
 0xd33   :  { %v13131_v27 = vsel %vm1714_vm7, %v3992_v21, %v13082_v31  ;;  %v3995_v28 = vsel %vm1714_vm7, %v3992_v21, 0.0 }
 0xd34   :  { %3996 = vst.msk [vmem:[#allocation2 + $0x3] sm:$0x1] %vm950_vm13, %v3995_v28  ;;  %10894 = vmatmul.mubr.msk.f32.vlgmr.msra.gmra.mxu0 %vm366_vm11, %v13131_v27  ;;  %10905 = vmatmul.mubr.msk.f32.vlgmr.msra.gmra.mxu1 %vm366_vm11, %v13131_v27  ;;  %v4238_v5 = vrot.slane %v13131_v27, 4 }
 0xd35   :  { %10908 = vmatpush3.msra.mxu0 %v12901_v52  ;;  %10915 = vmatprep.mubr.msk.f32.mxu0 %vm12219_vm0, %v12218_v0 }
 0xd36   :  { %10909 = vmatprep.subr.mxu0 %v12218_v0  ;;  %10919 = vmatpush3.msra.mxu1 %v12873_v40 }
 0xd37   :  { %10910 = vmatpush3.msra.mxu0 %v12910_v24  ;;  %10920 = vmatprep.subr.mxu1 %v12218_v0 }
 0xd38   :  { %10911 = vmatprep.subr.mxu0 %v12218_v0  ;;  %10921 = vmatpush3.msra.mxu1 %v12877_v43 }
 0xd39   :  { %10912 = vmatpush3.msra.mxu0 %v12918_v25  ;;  %10922 = vmatprep.subr.mxu1 %v12218_v0 }
 0xd3a   :  { %10913 = vmatprep.subr.mxu0 %v12218_v0  ;;  %10923 = vmatpush3.msra.mxu1 %v12882_v48 }
 0xd3b   :  { %10914 = vmatpush3.msra.mxu0 %v12926_v58  ;;  %10924 = vmatprep.subr.mxu1 %v12218_v0 }
 0xd3c   :  { %10916 = vmatmul.mubr.msk.f32.vlgmr.msra.gmra.mxu0 %vm366_vm11, %v13131_v27  ;;  %10929 = vmatprep.subr.mxu0 %v12218_v0 }
 0xd3d   :  { %10930 = vmatpush3.msra.mxu0 %v12897_v50  ;;  %10925 = vmatpush3.msra.mxu1 %v12888_v51 }
 0xd3e   :  { %10931 = vmatprep.subr.mxu0 %v12218_v0  ;;  %10926 = vmatprep.mubr.msk.f32.mxu1 %vm12219_vm0, %v12218_v0 }
 0xd3f   :  { %10932 = vmatpush3.msra.mxu0 %v12904_v53  ;;  %10937 = vmatprep.mubr.msk.f32.mxu0 %vm12219_vm0, %v12218_v0 }
 0xd40   :  { %10933 = vmatprep.subr.mxu0 %v12218_v0  ;;  %10940 = vmatprep.subr.mxu1 %v12218_v0 }
 0xd41   :  { %10934 = vmatpush3.msra.mxu0 %v12913_v54 }
 0xd42   :  { %10935 = vmatprep.subr.mxu0 %v12218_v0 }
 0xd43   :  { %10936 = vmatpush3.msra.mxu0 %v12921_v56 }
 0xd44   :  { %10951 = vmatprep.subr.mxu0 %v12218_v0 }
 0xdf4   :  { %v4066_v29 = vpop.f32.mrf.mxu0  ;;  %v4136_v22 = vpop.f32.mrf.mxu1 }
 0xdf5   :  { %v4141_v45 = vrot.slane %v4066_v29, 4  ;;  %v4151_v36 = vrot.slane %v4136_v22, 4 }
 0xdf6   :  { %v10895_v31 = vpop.f32.mrf.mxu0  ;;  %v10906_v23 = vpop.f32.mrf.mxu1 }
 0xdf7   :  { %v4143_v4 = vadd.f32 %v4141_v45, %v12962_v3  ;;  %v4153_v13 = vadd.f32 %v4151_v36, %v12968_v14 }
 0xdf9   :  { %v9766_v34 = vmul.f32 -1.442695, %v4143_v4  ;;  %v9767_v39 = vmul.f32 -1.442695, %v4153_v13 }
 0xdfb   :  { %11757 = vpow2.f32 %v9766_v34 }
 0xdfc   :  { %v4226_v37 = vpop.f32.mrf.mxu0  ;;  %11759 = vpow2.f32 %v9767_v39 }
 0xdfd   :  { %v4227_v44 = vadd.f32 %v12974_v30, %v4226_v37 }
 0xdfe   :  { %v10917_v38 = vpop.f32.mrf.mxu0 }
 0xdff   :  { %v4231_v59 = vrot.slane %v4227_v44, 4 }
 0xe08   :  { %v11758_v15 = vpop.eup %11757 }
 0xe09   :  { %v4147_v41 = vadd.f32 1.0, %v11758_v15  ;;  %v11760_v42 = vpop.eup %11759 }
 0xe0a   :  { %v4157_v49 = vadd.f32 1.0, %v11760_v42 }
 0xe0b   :  { %11761 = vrcp.f32 %v4147_v41 }
 0xe0c   :  { %11763 = vrcp.f32 %v4157_v49 }
 0xe18   :  { %v11762_v60 = vpop.eup %11761 }
 0xe19   :  { %v4233_v62 = vmul.f32 %v11762_v60, %v4231_v59  ;;  %v11764_v2 = vpop.eup %11763 }
 0xe1a   :  { %v4236_v6 = vsub.f32 1.0, %v11764_v2  ;;  %v4240_v26 = vmul.f32 %v11764_v2, %v4238_v5 }
 0xe1b   :  { %v4234_v1 = vadd.f32 %v4233_v62, %v12980_v32 }
 0xe1d   :  { %11765 = vtanh.f32 %v4234_v1 }
 0xe2a   :  { %v11766_v8 = vpop.eup %11765 }
 0xe2b   :  { %v4237_v17 = vmul.f32 %v11766_v8, %v4236_v6 }
 0xe2d   :  { %v4241_v11 = vadd.f32 %v4240_v26, %v4237_v17 }
 0xe2f   :  { %v4243_v12 = vrot.slane %v4241_v11, 4 }
 0xe31   :  { %v13180_v16 = vsel %vm1970_vm8, %v4243_v12, %v13131_v27  ;;  %v4246_v18 = vsel %vm1970_vm8, %v4243_v12, 0.0 }
 0xe32   :  { %4247 = vst.msk [vmem:[#allocation2 + $0x4] sm:$0x1] %vm950_vm13, %v4246_v18  ;;  %10927 = vmatmul.mubr.msk.f32.vlgmr.msra.gmra.mxu1 %vm366_vm11, %v13180_v16  ;;  %10938 = vmatmul.mubr.msk.f32.vlgmr.msra.gmra.mxu0 %vm366_vm11, %v13180_v16  ;;  %v4489_v59 = vrot.slane %v13180_v16, 3 }
 0xe33   :  { %10941 = vmatpush3.msra.mxu1 %v12901_v52  ;;  %10948 = vmatprep.mubr.msk.f32.mxu1 %vm12219_vm0, %v12218_v0 }
 0xe34   :  { %10942 = vmatprep.subr.mxu1 %v12218_v0  ;;  %10952 = vmatpush3.msra.mxu0 %v12873_v40 }
 0xe35   :  { %10943 = vmatpush3.msra.mxu1 %v12910_v24  ;;  %10953 = vmatprep.subr.mxu0 %v12218_v0 }
 0xe36   :  { %10944 = vmatprep.subr.mxu1 %v12218_v0  ;;  %10954 = vmatpush3.msra.mxu0 %v12877_v43 }
 0xe37   :  { %10945 = vmatpush3.msra.mxu1 %v12918_v25  ;;  %10955 = vmatprep.subr.mxu0 %v12218_v0 }
 0xe38   :  { %10946 = vmatprep.subr.mxu1 %v12218_v0  ;;  %10956 = vmatpush3.msra.mxu0 %v12882_v48 }
 0xe39   :  { %10947 = vmatpush3.msra.mxu1 %v12926_v58  ;;  %10957 = vmatprep.subr.mxu0 %v12218_v0 }
 0xe3a   :  { %10949 = vmatmul.mubr.msk.f32.vlgmr.msra.gmra.mxu1 %vm366_vm11, %v13180_v16  ;;  %10962 = vmatprep.subr.mxu1 %v12218_v0 }
 0xe3b   :  { %10963 = vmatpush3.msra.mxu1 %v12897_v50  ;;  %10958 = vmatpush3.msra.mxu0 %v12888_v51 }
 0xe3c   :  { %10964 = vmatprep.subr.mxu1 %v12218_v0  ;;  %10959 = vmatprep.mubr.msk.f32.mxu0 %vm12219_vm0, %v12218_v0 }
 0xe3d   :  { %10965 = vmatpush3.msra.mxu1 %v12904_v53  ;;  %10970 = vmatprep.mubr.msk.f32.mxu1 %vm12219_vm0, %v12218_v0 }
 0xe3e   :  { %10966 = vmatprep.subr.mxu1 %v12218_v0  ;;  %10973 = vmatprep.subr.mxu0 %v12218_v0 }
 0xe3f   :  { %10967 = vmatpush3.msra.mxu1 %v12913_v54 }
 0xe40   :  { %10968 = vmatprep.subr.mxu1 %v12218_v0 }
 0xe41   :  { %10969 = vmatpush3.msra.mxu1 %v12921_v56 }
 0xe42   :  { %10984 = vmatprep.subr.mxu1 %v12218_v0 }
 0xef2   :  { %v4317_v19 = vpop.f32.mrf.mxu1  ;;  %v4387_v20 = vpop.f32.mrf.mxu0 }
 0xef3   :  { %v4392_v21 = vrot.slane %v4317_v19, 3  ;;  %v4402_v45 = vrot.slane %v4387_v20, 3 }
 0xef4   :  { %v10928_v27 = vpop.f32.mrf.mxu1  ;;  %v10939_v28 = vpop.f32.mrf.mxu0 }
 0xef5   :  { %v4394_v29 = vadd.f32 %v4392_v21, %v12962_v3  ;;  %v4404_v23 = vadd.f32 %v4402_v45, %v12968_v14 }
 0xef7   :  { %v9771_v22 = vmul.f32 -1.442695, %v4394_v29  ;;  %v9772_v34 = vmul.f32 -1.442695, %v4404_v23 }
 0xef9   :  { %11767 = vpow2.f32 %v9771_v22 }
 0xefa   :  { %v4477_v31 = vpop.f32.mrf.mxu1  ;;  %11769 = vpow2.f32 %v9772_v34 }
 0xefb   :  { %v4478_v38 = vadd.f32 %v12974_v30, %v4477_v31 }
 0xefc   :  { %v10950_v4 = vpop.f32.mrf.mxu1 }
 0xefd   :  { %v4482_v15 = vrot.slane %v4478_v38, 3 }
 0xf06   :  { %v11768_v36 = vpop.eup %11767 }
 0xf07   :  { %v4398_v37 = vadd.f32 1.0, %v11768_v36  ;;  %v11770_v13 = vpop.eup %11769 }
 0xf08   :  { %v4408_v39 = vadd.f32 1.0, %v11770_v13 }
 0xf09   :  { %11771 = vrcp.f32 %v4398_v37 }
 0xf0a   :  { %11773 = vrcp.f32 %v4408_v39 }
 0xf16   :  { %v11772_v41 = vpop.eup %11771 }
 0xf17   :  { %v4484_v42 = vmul.f32 %v11772_v41, %v4482_v15  ;;  %v11774_v49 = vpop.eup %11773  ;;  %v5081_v41 = vld [vmem:[#allocation3] sm:$0xf] }
 0xf18   :  { %v4487_v60 = vsub.f32 1.0, %v11774_v49  ;;  %v4491_v2 = vmul.f32 %v11774_v49, %v4489_v59  ;;  %v13318_v49 = vld [vmem:[#allocation6 + $0x38] sm:$0xff]  ;;  %v13324_v59 = vld [vmem:[#allocation6 + $0x30] sm:$0xff] }
 0xf19   :  { %v4485_v44 = vadd.f32 %v4484_v42, %v12980_v32  ;;  %v5246_v42 = vld [vmem:[#allocation3 + $0x8] sm:$0xf] }
 0xf1b   :  { %11775 = vtanh.f32 %v4485_v44  ;;  %v183_v44 = vld [vmem:[#allocation17] sm:$0xff] }
 0xf28   :  { %v11776_v62 = vpop.eup %11775 }
 0xf29   :  { %v4488_v1 = vmul.f32 %v11776_v62, %v4487_v60  ;;  %v13330_v60 = vld [vmem:[#allocation6 + $0x28] sm:$0xff]  ;;  %v13334_v62 = vld [vmem:[#allocation6 + $0x20] sm:$0xff] }
 0xf2b   :  { %v4492_v5 = vadd.f32 %v4491_v2, %v4488_v1  ;;  %v13339_v1 = vld [vmem:[#allocation6 + $0x18] sm:$0xff]  ;;  %v13346_v2 = vld [vmem:[#allocation6 + $0x10] sm:$0xff] }
 0xf2d   :  { %v4494_v6 = vrot.slane %v4492_v5, 5  ;;  %v13350_v5 = vld [vmem:[#allocation6 + $0x8] sm:$0xff] }
 0xf2f   :  { %v13229_v8 = vsel %vm2226_vm9, %v4494_v6, %v13180_v16  ;;  %v4497_v17 = vsel %vm2226_vm9, %v4494_v6, 0.0  ;;  %v13354_v6 = vld [vmem:[#allocation6] sm:$0xff] }
 0xf30   :  { %4498 = vst.msk [vmem:[#allocation2 + $0x5] sm:$0x1] %vm950_vm13, %v4497_v17  ;;  %10960 = vmatmul.mubr.msk.f32.vlgmr.msra.gmra.mxu0 %vm366_vm11, %v13229_v8  ;;  %10971 = vmatmul.mubr.msk.f32.vlgmr.msra.gmra.mxu1 %vm366_vm11, %v13229_v8  ;;  %v4740_v23 = vrot.slane %v13229_v8, 2 }
 0xf31   :  { %10974 = vmatpush3.msra.mxu0 %v12901_v52  ;;  %10981 = vmatprep.mubr.msk.f32.mxu0 %vm12219_vm0, %v12218_v0 }
 0xf32   :  { %10975 = vmatprep.subr.mxu0 %v12218_v0  ;;  %10985 = vmatpush3.msra.mxu1 %v12873_v40 }
 0xf33   :  { %10976 = vmatpush3.msra.mxu0 %v12910_v24  ;;  %10986 = vmatprep.subr.mxu1 %v12218_v0 }
 0xf34   :  { %10977 = vmatprep.subr.mxu0 %v12218_v0  ;;  %10987 = vmatpush3.msra.mxu1 %v12877_v43 }
 0xf35   :  { %10978 = vmatpush3.msra.mxu0 %v12918_v25  ;;  %10988 = vmatprep.subr.mxu1 %v12218_v0 }
 0xf36   :  { %10979 = vmatprep.subr.mxu0 %v12218_v0  ;;  %10989 = vmatpush3.msra.mxu1 %v12882_v48 }
 0xf37   :  { %10980 = vmatpush3.msra.mxu0 %v12926_v58  ;;  %10990 = vmatprep.subr.mxu1 %v12218_v0 }
 0xf38   :  { %10982 = vmatmul.mubr.msk.f32.vlgmr.msra.gmra.mxu0 %vm366_vm11, %v13229_v8  ;;  %10995 = vmatprep.subr.mxu0 %v12218_v0 }
 0xf39   :  { %10996 = vmatpush3.msra.mxu0 %v12897_v50  ;;  %10991 = vmatpush3.msra.mxu1 %v12888_v51 }
 0xf3a   :  { %10997 = vmatprep.subr.mxu0 %v12218_v0  ;;  %10992 = vmatprep.mubr.msk.f32.mxu1 %vm12219_vm0, %v12218_v0 }
 0xf3b   :  { %10998 = vmatpush3.msra.mxu0 %v12904_v53  ;;  %11003 = vmatprep.mubr.msk.f32.mxu0 %vm12219_vm0, %v12218_v0 }
 0xf3c   :  { %10999 = vmatprep.subr.mxu0 %v12218_v0  ;;  %11006 = vmatprep.subr.mxu1 %v12218_v0 }
 0xf3d   :  { %11000 = vmatpush3.msra.mxu0 %v12913_v54 }
 0xf3e   :  { %11001 = vmatprep.subr.mxu0 %v12218_v0 }
 0xf3f   :  { %11002 = vmatpush3.msra.mxu0 %v12921_v56 }
 0xf40   :  { %11017 = vmatprep.subr.mxu0 %v12218_v0 }
 0xff0   :  { %v4568_v40 = vpop.f32.mrf.mxu0  ;;  %v4638_v43 = vpop.f32.mrf.mxu1 }
 0xff1   :  { %v4643_v48 = vrot.slane %v4568_v40, 2  ;;  %v4653_v11 = vrot.slane %v4638_v43, 2 }
 0xff2   :  { %v10961_v51 = vpop.f32.mrf.mxu0  ;;  %v10972_v50 = vpop.f32.mrf.mxu1 }
 0xff3   :  { %v4645_v53 = vadd.f32 %v4643_v48, %v12962_v3  ;;  %v4655_v16 = vadd.f32 %v4653_v11, %v12968_v14 }
 0xff5   :  { %v9776_v26 = vmul.f32 -1.442695, %v4645_v53  ;;  %v9777_v18 = vmul.f32 -1.442695, %v4655_v16 }
 0xff7   :  { %11777 = vpow2.f32 %v9776_v26 }
 0xff8   :  { %v4728_v12 = vpop.f32.mrf.mxu0  ;;  %11779 = vpow2.f32 %v9777_v18 }
 0xff9   :  { %v4729_v21 = vadd.f32 %v12974_v30, %v4728_v12 }
 0xffa   :  { %v10983_v54 = vpop.f32.mrf.mxu0 }
 0xffb   :  { %v4733_v28 = vrot.slane %v4729_v21, 2 }
0x1004   :  { %v11778_v19 = vpop.eup %11777 }
0x1005   :  { %v4649_v56 = vadd.f32 1.0, %v11778_v19  ;;  %v11780_v20 = vpop.eup %11779 }
0x1006   :  { %v4659_v27 = vadd.f32 1.0, %v11780_v20 }
0x1007   :  { %11781 = vrcp.f32 %v4649_v56 }
0x1008   :  { %11783 = vrcp.f32 %v4659_v27 }
0x1014   :  { %v11782_v29 = vpop.eup %11781 }
0x1015   :  { %v4735_v22 = vmul.f32 %v11782_v29, %v4733_v28  ;;  %v11784_v31 = vpop.eup %11783 }
0x1016   :  { %v4738_v4 = vsub.f32 1.0, %v11784_v31  ;;  %v4742_v37 = vmul.f32 %v11784_v31, %v4740_v23 }
0x1017   :  { %v4736_v45 = vadd.f32 %v4735_v22, %v12980_v32 }
0x1019   :  { %11785 = vtanh.f32 %v4736_v45 }
0x1026   :  { %v11786_v34 = vpop.eup %11785 }
0x1027   :  { %v4739_v36 = vmul.f32 %v11786_v34, %v4738_v4 }
0x1029   :  { %v4743_v13 = vadd.f32 %v4742_v37, %v4739_v36  ;;  %v5165_v36 = vld [vmem:[#allocation3 + $0x4] sm:$0xf] }
0x102b   :  { %v4745_v38 = vrot.slane %v4743_v13, 6  ;;  %v13387_v13 = vld [vmem:[#allocation6 + $0x50] sm:$0xff] }
0x102d   :  { %v13278_v39 = vsel %vm2482_vm10, %v4745_v38, %v13229_v8  ;;  %v4748_v15 = vsel %vm2482_vm10, %v4745_v38, 0.0  ;;  %v13393_v38 = vld [vmem:[#allocation6 + $0x48] sm:$0xff] }
0x102e   :  { %4749 = vst.msk [vmem:[#allocation2 + $0x6] sm:$0x1] %vm950_vm13, %v4748_v15  ;;  %10993 = vmatmul.mubr.msk.f32.vlgmr.msra.gmra.mxu1 %vm366_vm11, %v13278_v39  ;;  %11004 = vmatmul.mubr.msk.f32.vlgmr.msra.gmra.mxu0 %vm366_vm11, %v13278_v39 }
0x102f   :  { %11007 = vmatpush3.msra.mxu1 %v12901_v52  ;;  %11014 = vmatprep.mubr.msk.f32.mxu1 %vm12219_vm0, %v12218_v0  ;;  %v186_v52 = vld [vmem:[#allocation17 + $0x18] sm:$0xff] }
0x1030   :  { %11008 = vmatprep.subr.mxu1 %v12218_v0  ;;  %11025 = vmatprep.mubr.msk.f32.mxu0 %vm12219_vm0, %v12218_v0 }
0x1031   :  { %11009 = vmatpush3.msra.mxu1 %v12910_v24  ;;  %11018 = vmatpush3.msra.mxu0 %v186_v52  ;;  %v185_v24 = vld [vmem:[#allocation17 + $0x10] sm:$0xff] }
0x1032   :  { %11010 = vmatprep.subr.mxu1 %v12218_v0  ;;  %11019 = vmatprep.subr.mxu0 %v12218_v0 }
0x1033   :  { %11011 = vmatpush3.msra.mxu1 %v12918_v25  ;;  %v13308_v25 = vld [vmem:[%s14176_s1 + $0x8] sm:$0xff]  ;;  %11020 = vmatpush3.msra.mxu0 %v185_v24 }
0x1034   :  { %11012 = vmatprep.subr.mxu1 %v12218_v0  ;;  %11021 = vmatprep.subr.mxu0 %v12218_v0 }
0x1035   :  { %11013 = vmatpush3.msra.mxu1 %v12926_v58  ;;  %v184_v58 = vld [vmem:[#allocation17 + $0x8] sm:$0xff] }
0x1036   :  { %11015 = vmatmul.mubr.msk.f32.vlgmr.msra.gmra.mxu1 %vm366_vm11, %v13278_v39  ;;  %11028 = vmatprep.subr.mxu1 %v12218_v0 }
0x1037   :  { %11030 = vmatprep.mubr.msk.f32.mxu1 %vm12219_vm0, %v12218_v0  ;;  %11029 = vmatpush3.msk.msra.mxu1 %vm453_vm5, %v5081_v41 }
0x1038   :  { %11038 = vmatprep.subr.mxu1 %v12218_v0  ;;  %11022 = vmatpush3.msra.mxu0 %v184_v58 }
0x1039   :  { %11023 = vmatprep.subr.mxu0 %v12218_v0 }
0x103a   :  { %11031 = vmatmul.mubr.msk.f32.vlgmr.msra.gmra.mxu1 %vm449_vm6, %v13308_v25  ;;  %11024 = vmatpush3.msra.mxu0 %v183_v44 }
0x103b   :  { %11039 = vmatpush3.msk.msra.mxu1 %vm453_vm5, %v5246_v42  ;;  %11040 = vmatprep.mubr.msk.f32.mxu1 %vm12219_vm0, %v12218_v0  ;;  %v5003_v42 = vsub.s32 0, %v12503_v57 }
0x103c   :  { %11054 = vmatprep.subr.mxu1 %v12218_v0  ;;  %11033 = vmatprep.subr.mxu0 %v12218_v0 }
0x103d   :  { %v5004_v44 = vrot.slane %v12506_v61, %v5003_v42 }
0x103e   :  { %11041 = vmatmul.mubr.msk.f32.vlgmr.msra.gmra.mxu1 %vm449_vm6, %v13308_v25 }
0x103f   :  { %11055 = vmatpush3.msra.mxu1 %v13318_v49  ;;  %11062 = vmatprep.mubr.msk.f32.mxu1 %vm12219_vm0, %v12218_v0 }
0x1040   :  { %11056 = vmatprep.subr.mxu1 %v12218_v0 }
0x1041   :  { %11057 = vmatpush3.msra.mxu1 %v13324_v59 }
0x1042   :  { %11058 = vmatprep.subr.mxu1 %v12218_v0 }
0x1043   :  { %11059 = vmatpush3.msra.mxu1 %v13330_v60 }
0x1044   :  { %11060 = vmatprep.subr.mxu1 %v12218_v0 }
0x1045   :  { %11061 = vmatpush3.msra.mxu1 %v13334_v62 }
0x1046   :  { %11063 = vmatmul.mubr.f32.vlgmr.msra.gmra.mxu1 %v12218_v0  ;;  %11076 = vmatprep.subr.mxu1 %v12218_v0 }
0x1047   :  { %11077 = vmatpush3.msra.mxu1 %v13339_v1  ;;  %11084 = vmatprep.mubr.msk.f32.mxu1 %vm12219_vm0, %v12218_v0 }
0x1048   :  { %11078 = vmatprep.subr.mxu1 %v12218_v0 }
0x1049   :  { %11079 = vmatpush3.msra.mxu1 %v13346_v2 }
0x104a   :  { %11080 = vmatprep.subr.mxu1 %v12218_v0 }
0x104b   :  { %11081 = vmatpush3.msra.mxu1 %v13350_v5 }
0x104c   :  { %11082 = vmatprep.subr.mxu1 %v12218_v0 }
0x104d   :  { %11083 = vmatpush3.msra.mxu1 %v13354_v6 }
0x104e   :  { %11098 = vmatprep.subr.mxu1 %v12218_v0 }
0x10ee   :  { %v4819_v8 = vpop.f32.mrf.mxu1  ;;  %v4889_v17 = vpop.f32.mrf.mxu0 }
0x10ef   :  { %v4894_v40 = vrot.slane %v4819_v8, 1  ;;  %v4904_v53 = vrot.slane %v4889_v17, 1 }
0x10f0   :  { %v10994_v43 = vpop.f32.mrf.mxu1  ;;  %v11005_v48 = vpop.f32.mrf.mxu0 }
0x10f1   :  { %v4896_v51 = vadd.f32 %v4894_v40, %v12962_v3  ;;  %v4906_v11 = vadd.f32 %v4904_v53, %v12968_v14  ;;  %v4991_v14 = vrot.slane %v13278_v39, 1  ;;  %v13397_v39 = vld [vmem:[#allocation6 + $0x40] sm:$0xff] }
0x10f2   :  { %v9786_v48 = vld [vmem:[#allocation8] ss:$0 sm:$0xff]  ;;  %v9789_v53 = vld [vmem:[#allocation8 + $0x1] ss:$0 sm:$0xff] }
0x10f3   :  { %v9781_v50 = vmul.f32 -1.442695, %v4896_v51  ;;  %v9782_v16 = vmul.f32 -1.442695, %v4906_v11 }
0x10f5   :  { %11787 = vpow2.f32 %v9781_v50 }
0x10f6   :  { %v4979_v26 = vpop.f32.mrf.mxu1  ;;  %11789 = vpow2.f32 %v9782_v16 }
0x10f7   :  { %v4980_v56 = vadd.f32 %v12974_v30, %v4979_v26 }
0x10f8   :  { %v11016_v12 = vpop.f32.mrf.mxu1 }
0x10f9   :  { %v4984_v21 = vrot.slane %v4980_v56, 1 }
0x10fa   :  { %v5161_v15 = vpop.f32.mrf.mxu1 }
0x10fb   :  { %v13417_v50 = vadd.f32 %v9786_v48, %v5161_v15 }
0x10fc   :  { %v11032_v52 = vpop.f32.mrf.mxu1 }
0x10fe   :  { %v5323_v41 = vpop.f32.mrf.mxu1 }
0x1100   :  { %v11042_v24 = vpop.f32.mrf.mxu1 }
0x1102   :  { %v11788_v54 = vpop.eup %11787 }
0x1103   :  { %v4900_v18 = vadd.f32 1.0, %v11788_v54  ;;  %v11790_v19 = vpop.eup %11789 }
0x1104   :  { %v4910_v20 = vadd.f32 1.0, %v11790_v19 }
0x1105   :  { %11791 = vrcp.f32 %v4900_v18 }
0x1106   :  { %11793 = vrcp.f32 %v4910_v20 }
0x1112   :  { %v11792_v27 = vpop.eup %11791 }
0x1113   :  { %v4986_v3 = vmul.f32 %v11792_v27, %v4984_v21  ;;  %v11794_v29 = vpop.eup %11793  ;;  %v13423_v27 = vld [vmem:[#allocation8 + $0x3] sm:$0x1] }
0x1114   :  { %v4989_v22 = vsub.f32 1.0, %v11794_v29  ;;  %v4993_v31 = vmul.f32 %v11794_v29, %v4991_v14  ;;  %v9792_v29 = vld [vmem:[#allocation8 + $0x2] ss:$0 sm:$0xff] }
0x1115   :  { %v4987_v28 = vadd.f32 %v4986_v3, %v12980_v32  ;;  %v13382_v32 = vld [vmem:[#allocation6 + $0x58] sm:$0xff] }
0x1117   :  { %11795 = vtanh.f32 %v4987_v28 }
0x1124   :  { %v11796_v45 = vpop.eup %11795 }
0x1125   :  { %v4990_v23 = vmul.f32 %v11796_v45, %v4989_v22  ;;  %v13426_v22 = vadd.f32 %v9792_v29, %v5323_v41 }
0x1127   :  { %v4994_v4 = vadd.f32 %v4993_v31, %v4990_v23 }
0x1129   :  { %v4996_v34 = vrot.slane %v4994_v4, 7 }
0x112b   :  { %v4998_v30 = vsel %vm2738_vm14, %v4996_v34, 0.0 }
0x112c   :  { %4999 = vst.msk [vmem:[#allocation2 + $0x7] sm:$0x1] %vm950_vm13, %v4998_v30 }
0x1133   :  { %v5000_v37 = vld [vmem:[#allocation2] sm:$0xff] }
0x1134   :  { %11026 = vmatmul.mubr.msk.f32.vlgmr.msra.gmra.mxu0 %vm366_vm11, %v5000_v37 }
0x1135   :  { %11034 = vmatpush3.msk.msra.mxu0 %vm453_vm5, %v5165_v36  ;;  %11035 = vmatprep.mubr.msk.f32.mxu0 %vm12219_vm0, %v12218_v0  ;;  %vm5575_vm5 = vcmask 254977  }
0x1136   :  { %11043 = vmatprep.subr.mxu0 %v12218_v0 }
0x1138   :  { %11036 = vmatmul.mubr.msk.f32.vlgmr.msra.gmra.mxu0 %vm449_vm6, %v13308_v25  ;;  %v5476_v25 = vpop.f32.mrf.mxu1 }
0x1139   :  { %11044 = vmatpush3.msra.mxu0 %v13339_v1  ;;  %11051 = vmatprep.mubr.msk.f32.mxu0 %vm12219_vm0, %v12218_v0 }
0x113a   :  { %11045 = vmatprep.subr.mxu0 %v12218_v0  ;;  %v11064_v58 = vpop.f32.mrf.mxu1 }
0x113b   :  { %11046 = vmatpush3.msra.mxu0 %v13346_v2 }
0x113c   :  { %11047 = vmatprep.subr.mxu0 %v12218_v0 }
0x113d   :  { %11048 = vmatpush3.msra.mxu0 %v13350_v5 }
0x113e   :  { %11049 = vmatprep.subr.mxu0 %v12218_v0 }
0x113f   :  { %11050 = vmatpush3.msra.mxu0 %v13354_v6 }
0x1140   :  { %11052 = vmatmul.mubr.f32.vlgmr.msra.gmra.mxu0 %v12218_v0  ;;  %11065 = vmatprep.subr.mxu0 %v12218_v0 }
0x1141   :  { %11066 = vmatpush3.msra.mxu0 %v13382_v32  ;;  %11073 = vmatprep.mubr.msk.f32.mxu0 %vm12219_vm0, %v12218_v0 }
0x1142   :  { %11067 = vmatprep.subr.mxu0 %v12218_v0 }
0x1143   :  { %11068 = vmatpush3.msra.mxu0 %v13387_v13 }
0x1144   :  { %11069 = vmatprep.subr.mxu0 %v12218_v0 }
0x1145   :  { %11070 = vmatpush3.msra.mxu0 %v13393_v38 }
0x1146   :  { %11071 = vmatprep.subr.mxu0 %v12218_v0 }
0x1147   :  { %11072 = vmatpush3.msra.mxu0 %v13397_v39 }
0x1148   :  { %11074 = vmatmul.mubr.f32.vlgmr.msra.gmra.mxu0 %v12218_v0  ;;  %11087 = vmatprep.subr.mxu0 %v12218_v0 }
0x1149   :  { %11088 = vmatpush3.msra.mxu0 %v13318_v49  ;;  %11095 = vmatprep.mubr.msk.f32.mxu0 %vm12219_vm0, %v12218_v0 }
0x114a   :  { %11089 = vmatprep.subr.mxu0 %v12218_v0 }
0x114b   :  { %11090 = vmatpush3.msra.mxu0 %v13324_v59 }
0x114c   :  { %11091 = vmatprep.subr.mxu0 %v12218_v0 }
0x114d   :  { %11092 = vmatpush3.msra.mxu0 %v13330_v60 }
0x114e   :  { %11093 = vmatprep.subr.mxu0 %v12218_v0 }
0x114f   :  { %11094 = vmatpush3.msra.mxu0 %v13334_v62 }
0x1150   :  { %11109 = vmatprep.subr.mxu0 %v12218_v0 }
0x11f4   :  { %v5074_v8 = vpop.f32.mrf.mxu0 }
0x11f5   :  { %v5075_v17 = vadd.f32 %v5074_v8, %v5004_v44 }
0x11f6   :  { %v11027_v40 = vpop.f32.mrf.mxu0 }
0x11f7   :  { %5078 = vst.msk [vmem:[#allocation20] sm:$0xff] %vm366_vm11, %v5075_v17 }
0x11f8   :  { %v5242_v43 = vpop.f32.mrf.mxu0 }
0x11f9   :  { %v13420_v16 = vadd.f32 %v9789_v53, %v5242_v43 }
0x11fa   :  { %v11037_v51 = vpop.f32.mrf.mxu0 }
0x11fb   :  { %v5487_v61 = vadd.f32 %v5476_v25, %v13420_v16 }
0x11fd   :  { %v9796_v19 = vmul.f32 -1.442695, %v5487_v61 }
0x1200   :  { %v5406_v26 = vpop.f32.mrf.mxu0 }
0x1201   :  { %v5480_v11 = vadd.f32 %v5406_v26, %v13417_v50 }
0x1202   :  { %v11053_v12 = vpop.f32.mrf.mxu0 }
0x1203   :  { %v9795_v57 = vmul.f32 -1.442695, %v5480_v11 }
0x1205   :  { %11797 = vpow2.f32 %v9795_v57 }
0x1206   :  { %11799 = vpow2.f32 %v9796_v19 }
0x1208   :  { %v5560_v54 = vpop.f32.mrf.mxu0 }
0x1209   :  { %v5561_v28 = vadd.f32 %v5560_v54, %v13423_v27 }
0x120a   :  { %v11075_v18 = vpop.f32.mrf.mxu0 }
0x1212   :  { %v11798_v56 = vpop.eup %11797 }
0x1213   :  { %v5484_v20 = vadd.f32 1.0, %v11798_v56  ;;  %v11800_v21 = vpop.eup %11799 }
0x1214   :  { %v5491_v3 = vadd.f32 1.0, %v11800_v21 }
0x1215   :  { %11801 = vrcp.f32 %v5484_v20 }
0x1216   :  { %11803 = vrcp.f32 %v5491_v3 }
0x1222   :  { %v11802_v14 = vpop.eup %11801 }
0x1223   :  { %v5564_v45 = vmul.f32 %v11802_v14, %v5561_v28  ;;  %v11804_v23 = vpop.eup %11803 }
0x1224   :  { %v5567_v4 = vsub.f32 1.0, %v11804_v23  ;;  %v5569_v30 = vmul.f32 0.0, %v11804_v23 }
0x1225   :  { %v5565_v31 = vadd.f32 %v5564_v45, %v13426_v22 }
0x1227   :  { %11805 = vtanh.f32 %v5565_v31 }
0x1234   :  { %v11806_v34 = vpop.eup %11805 }
0x1235   :  { %v5568_v36 = vmul.f32 %v11806_v34, %v5567_v4 }
0x1237   :  { %v5570_v37 = vadd.f32 %v5569_v30, %v5568_v36 }
0x1239   :  { %v5572_v15 = vrot.slane %v5570_v37, 7 }
0x123b   :  { %v13431_v52 = vsel %vm948_vm12, %v5572_v15, 0.0 }
0x123c   :  { %5576 = vst.msk [vmem:[#allocation2 - $0x1] sm:$0x2] %vm5575_vm5, %v13431_v52  ;;  %v5578_v41 = vrot.slane %v13431_v52, 1 }
0x123e   :  { %11085 = vmatmul.mubr.msk.f32.vlgmr.msra.gmra.mxu1 %vm366_vm11, %v5578_v41  ;;  %11096 = vmatmul.mubr.msk.f32.vlgmr.msra.gmra.mxu0 %vm366_vm11, %v5578_v41 }
0x123f   :  { %11099 = vmatpush3.msra.mxu1 %v13382_v32  ;;  %11106 = vmatprep.mubr.msk.f32.mxu1 %vm12219_vm0, %v12218_v0 }
0x1240   :  { %11100 = vmatprep.subr.mxu1 %v12218_v0  ;;  %11110 = vmatpush3.msra.mxu0 %v13339_v1 }
0x1241   :  { %11101 = vmatpush3.msra.mxu1 %v13387_v13  ;;  %11111 = vmatprep.subr.mxu0 %v12218_v0 }
0x1242   :  { %11102 = vmatprep.subr.mxu1 %v12218_v0  ;;  %11112 = vmatpush3.msra.mxu0 %v13346_v2 }
0x1243   :  { %11103 = vmatpush3.msra.mxu1 %v13393_v38  ;;  %11113 = vmatprep.subr.mxu0 %v12218_v0 }
0x1244   :  { %11104 = vmatprep.subr.mxu1 %v12218_v0  ;;  %11114 = vmatpush3.msra.mxu0 %v13350_v5 }
0x1245   :  { %11105 = vmatpush3.msra.mxu1 %v13397_v39  ;;  %11115 = vmatprep.subr.mxu0 %v12218_v0 }
0x1246   :  { %11107 = vmatmul.mubr.msk.f32.vlgmr.msra.gmra.mxu1 %vm366_vm11, %v5578_v41  ;;  %11120 = vmatprep.subr.mxu1 %v12218_v0 }
0x1247   :  { %11121 = vmatpush3.msra.mxu1 %v13318_v49  ;;  %11116 = vmatpush3.msra.mxu0 %v13354_v6 }
0x1248   :  { %11122 = vmatprep.subr.mxu1 %v12218_v0  ;;  %11117 = vmatprep.mubr.msk.f32.mxu0 %vm12219_vm0, %v12218_v0 }
0x1249   :  { %11123 = vmatpush3.msra.mxu1 %v13324_v59  ;;  %11128 = vmatprep.mubr.msk.f32.mxu1 %vm12219_vm0, %v12218_v0 }
0x124a   :  { %11124 = vmatprep.subr.mxu1 %v12218_v0  ;;  %11131 = vmatprep.subr.mxu0 %v12218_v0 }
0x124b   :  { %11125 = vmatpush3.msra.mxu1 %v13330_v60 }
0x124c   :  { %11126 = vmatprep.subr.mxu1 %v12218_v0 }
0x124d   :  { %11127 = vmatpush3.msra.mxu1 %v13334_v62 }
0x124e   :  { %11142 = vmatprep.subr.mxu1 %v12218_v0 }
0x12fe   :  { %v5647_v24 = vpop.f32.mrf.mxu1  ;;  %v5717_v25 = vpop.f32.mrf.mxu0 }
0x12ff   :  { %v5722_v58 = vrot.slane %v5647_v24, 7  ;;  %v5732_v40 = vrot.slane %v5717_v25, 7 }
0x1300   :  { %v11086_v42 = vpop.f32.mrf.mxu1  ;;  %v11097_v44 = vpop.f32.mrf.mxu0 }
0x1301   :  { %v5724_v8 = vadd.f32 %v5722_v58, %v13417_v50  ;;  %v5734_v48 = vadd.f32 %v5732_v40, %v13420_v16 }
0x1303   :  { %v9799_v17 = vmul.f32 -1.442695, %v5724_v8  ;;  %v9800_v53 = vmul.f32 -1.442695, %v5734_v48 }
0x1305   :  { %11807 = vpow2.f32 %v9799_v17 }
0x1306   :  { %v5807_v43 = vpop.f32.mrf.mxu1  ;;  %11809 = vpow2.f32 %v9800_v53 }
0x1307   :  { %v5808_v57 = vadd.f32 %v5807_v43, %v13423_v27 }
0x1308   :  { %v11108_v51 = vpop.f32.mrf.mxu1 }
0x1309   :  { %v5812_v54 = vrot.slane %v5808_v57, 7 }
0x1312   :  { %v11808_v26 = vpop.eup %11807 }
0x1313   :  { %v5728_v11 = vadd.f32 1.0, %v11808_v26  ;;  %v11810_v12 = vpop.eup %11809 }
0x1314   :  { %v5738_v61 = vadd.f32 1.0, %v11810_v12 }
0x1315   :  { %11811 = vrcp.f32 %v5728_v11 }
0x1316   :  { %11813 = vrcp.f32 %v5738_v61 }
0x1322   :  { %v11812_v18 = vpop.eup %11811 }
0x1323   :  { %v5814_v19 = vmul.f32 %v11812_v18, %v5812_v54  ;;  %v11814_v20 = vpop.eup %11813 }
0x1324   :  { %v5817_v21 = vsub.f32 1.0, %v11814_v20  ;;  %v5819_v28 = vmul.f32 %v11814_v20, %v13431_v52 }
0x1325   :  { %v5815_v56 = vadd.f32 %v5814_v19, %v13426_v22 }
0x1327   :  { %11815 = vtanh.f32 %v5815_v56 }
0x1334   :  { %v11816_v3 = vpop.eup %11815 }
0x1335   :  { %v5818_v29 = vmul.f32 %v11816_v3, %v5817_v21 }
0x1337   :  { %v5820_v14 = vadd.f32 %v5819_v28, %v5818_v29 }
0x1339   :  { %v13477_v45 = vsel %vm1202_vm3, %v5820_v14, %v13431_v52 }
0x133a   :  { %5822 = vst.msk [vmem:[#allocation2] sm:$0x2] %vm5575_vm5, %v13477_v45  ;;  %v5824_v31 = vrot.slane %v13477_v45, 1  ;;  %v6065_v11 = vrot.slane %v13477_v45, 7 }
0x133c   :  { %11118 = vmatmul.mubr.msk.f32.vlgmr.msra.gmra.mxu0 %vm366_vm11, %v5824_v31  ;;  %11129 = vmatmul.mubr.msk.f32.vlgmr.msra.gmra.mxu1 %vm366_vm11, %v5824_v31 }
0x133d   :  { %11132 = vmatpush3.msra.mxu0 %v13382_v32  ;;  %11139 = vmatprep.mubr.msk.f32.mxu0 %vm12219_vm0, %v12218_v0 }
0x133e   :  { %11133 = vmatprep.subr.mxu0 %v12218_v0  ;;  %11143 = vmatpush3.msra.mxu1 %v13339_v1 }
0x133f   :  { %11134 = vmatpush3.msra.mxu0 %v13387_v13  ;;  %11144 = vmatprep.subr.mxu1 %v12218_v0 }
0x1340   :  { %11135 = vmatprep.subr.mxu0 %v12218_v0  ;;  %11145 = vmatpush3.msra.mxu1 %v13346_v2 }
0x1341   :  { %11136 = vmatpush3.msra.mxu0 %v13393_v38  ;;  %11146 = vmatprep.subr.mxu1 %v12218_v0 }
0x1342   :  { %11137 = vmatprep.subr.mxu0 %v12218_v0  ;;  %11147 = vmatpush3.msra.mxu1 %v13350_v5 }
0x1343   :  { %11138 = vmatpush3.msra.mxu0 %v13397_v39  ;;  %11148 = vmatprep.subr.mxu1 %v12218_v0 }
0x1344   :  { %11140 = vmatmul.mubr.msk.f32.vlgmr.msra.gmra.mxu0 %vm366_vm11, %v5824_v31  ;;  %11153 = vmatprep.subr.mxu0 %v12218_v0 }
0x1345   :  { %11154 = vmatpush3.msra.mxu0 %v13318_v49  ;;  %11149 = vmatpush3.msra.mxu1 %v13354_v6 }
0x1346   :  { %11155 = vmatprep.subr.mxu0 %v12218_v0  ;;  %11150 = vmatprep.mubr.msk.f32.mxu1 %vm12219_vm0, %v12218_v0 }
0x1347   :  { %11156 = vmatpush3.msra.mxu0 %v13324_v59  ;;  %11161 = vmatprep.mubr.msk.f32.mxu0 %vm12219_vm0, %v12218_v0 }
0x1348   :  { %11157 = vmatprep.subr.mxu0 %v12218_v0  ;;  %11164 = vmatprep.subr.mxu1 %v12218_v0 }
0x1349   :  { %11158 = vmatpush3.msra.mxu0 %v13330_v60 }
0x134a   :  { %11159 = vmatprep.subr.mxu0 %v12218_v0 }
0x134b   :  { %11160 = vmatpush3.msra.mxu0 %v13334_v62 }
0x134c   :  { %11175 = vmatprep.subr.mxu0 %v12218_v0 }
0x13fc   :  { %v5893_v23 = vpop.f32.mrf.mxu0  ;;  %v5963_v4 = vpop.f32.mrf.mxu1 }
0x13fd   :  { %v5968_v34 = vrot.slane %v5893_v23, 6  ;;  %v5978_v52 = vrot.slane %v5963_v4, 6 }
0x13fe   :  { %v11119_v30 = vpop.f32.mrf.mxu0  ;;  %v11130_v36 = vpop.f32.mrf.mxu1 }
0x13ff   :  { %v5970_v37 = vadd.f32 %v5968_v34, %v13417_v50  ;;  %v5980_v24 = vadd.f32 %v5978_v52, %v13420_v16 }
0x1401   :  { %v9804_v15 = vmul.f32 -1.442695, %v5970_v37  ;;  %v9805_v58 = vmul.f32 -1.442695, %v5980_v24 }
0x1403   :  { %11817 = vpow2.f32 %v9804_v15 }
0x1404   :  { %v6053_v41 = vpop.f32.mrf.mxu0  ;;  %11819 = vpow2.f32 %v9805_v58 }
0x1405   :  { %v6054_v17 = vadd.f32 %v6053_v41, %v13423_v27 }
0x1406   :  { %v11141_v25 = vpop.f32.mrf.mxu0 }
0x1407   :  { %v6058_v43 = vrot.slane %v6054_v17, 6 }
0x1410   :  { %v11818_v42 = vpop.eup %11817 }
0x1411   :  { %v5974_v44 = vadd.f32 1.0, %v11818_v42  ;;  %v11820_v8 = vpop.eup %11819 }
0x1412   :  { %v5984_v40 = vadd.f32 1.0, %v11820_v8 }
0x1413   :  { %11821 = vrcp.f32 %v5974_v44 }
0x1414   :  { %11823 = vrcp.f32 %v5984_v40 }
0x1420   :  { %v11822_v48 = vpop.eup %11821 }
0x1421   :  { %v6060_v51 = vmul.f32 %v11822_v48, %v6058_v43  ;;  %v11824_v26 = vpop.eup %11823 }
0x1422   :  { %v6063_v12 = vsub.f32 1.0, %v11824_v26  ;;  %v6067_v61 = vmul.f32 %v11824_v26, %v6065_v11 }
0x1423   :  { %v6061_v53 = vadd.f32 %v6060_v51, %v13426_v22 }
0x1425   :  { %11825 = vtanh.f32 %v6061_v53 }
0x1432   :  { %v11826_v57 = vpop.eup %11825 }
0x1433   :  { %v6064_v54 = vmul.f32 %v11826_v57, %v6063_v12 }
0x1435   :  { %v6068_v18 = vadd.f32 %v6067_v61, %v6064_v54 }
0x1437   :  { %v6070_v19 = vrot.slane %v6068_v18, 1 }
0x1439   :  { %v13523_v56 = vsel %vm1458_vm4, %v6070_v19, %v13477_v45 }
0x143a   :  { %6073 = vst.msk [vmem:[#allocation2 + $0x1] sm:$0x2] %vm5575_vm5, %v13523_v56  ;;  %v6075_v20 = vrot.slane %v13523_v56, 1  ;;  %v6316_v17 = vrot.slane %v13523_v56, 6 }
0x143c   :  { %11151 = vmatmul.mubr.msk.f32.vlgmr.msra.gmra.mxu1 %vm366_vm11, %v6075_v20  ;;  %11162 = vmatmul.mubr.msk.f32.vlgmr.msra.gmra.mxu0 %vm366_vm11, %v6075_v20 }
0x143d   :  { %11165 = vmatpush3.msra.mxu1 %v13382_v32  ;;  %11172 = vmatprep.mubr.msk.f32.mxu1 %vm12219_vm0, %v12218_v0 }
0x143e   :  { %11166 = vmatprep.subr.mxu1 %v12218_v0  ;;  %11176 = vmatpush3.msra.mxu0 %v13339_v1 }
0x143f   :  { %11167 = vmatpush3.msra.mxu1 %v13387_v13  ;;  %11177 = vmatprep.subr.mxu0 %v12218_v0 }
0x1440   :  { %11168 = vmatprep.subr.mxu1 %v12218_v0  ;;  %11178 = vmatpush3.msra.mxu0 %v13346_v2 }
0x1441   :  { %11169 = vmatpush3.msra.mxu1 %v13393_v38  ;;  %11179 = vmatprep.subr.mxu0 %v12218_v0 }
0x1442   :  { %11170 = vmatprep.subr.mxu1 %v12218_v0  ;;  %11180 = vmatpush3.msra.mxu0 %v13350_v5 }
0x1443   :  { %11171 = vmatpush3.msra.mxu1 %v13397_v39  ;;  %11181 = vmatprep.subr.mxu0 %v12218_v0 }
0x1444   :  { %11173 = vmatmul.mubr.msk.f32.vlgmr.msra.gmra.mxu1 %vm366_vm11, %v6075_v20  ;;  %11186 = vmatprep.subr.mxu1 %v12218_v0 }
0x1445   :  { %11187 = vmatpush3.msra.mxu1 %v13318_v49  ;;  %11182 = vmatpush3.msra.mxu0 %v13354_v6 }
0x1446   :  { %11188 = vmatprep.subr.mxu1 %v12218_v0  ;;  %11183 = vmatprep.mubr.msk.f32.mxu0 %vm12219_vm0, %v12218_v0 }
0x1447   :  { %11189 = vmatpush3.msra.mxu1 %v13324_v59  ;;  %11194 = vmatprep.mubr.msk.f32.mxu1 %vm12219_vm0, %v12218_v0 }
0x1448   :  { %11190 = vmatprep.subr.mxu1 %v12218_v0  ;;  %11197 = vmatprep.subr.mxu0 %v12218_v0 }
0x1449   :  { %11191 = vmatpush3.msra.mxu1 %v13330_v60 }
0x144a   :  { %11192 = vmatprep.subr.mxu1 %v12218_v0 }
0x144b   :  { %11193 = vmatpush3.msra.mxu1 %v13334_v62 }
0x144c   :  { %11208 = vmatprep.subr.mxu1 %v12218_v0 }
0x14fc   :  { %v6144_v21 = vpop.f32.mrf.mxu1  ;;  %v6214_v3 = vpop.f32.mrf.mxu0 }
0x14fd   :  { %v6219_v28 = vrot.slane %v6144_v21, 5  ;;  %v6229_v23 = vrot.slane %v6214_v3, 5 }
0x14fe   :  { %v11152_v29 = vpop.f32.mrf.mxu1  ;;  %v11163_v14 = vpop.f32.mrf.mxu0 }
0x14ff   :  { %v6221_v45 = vadd.f32 %v6219_v28, %v13417_v50  ;;  %v6231_v34 = vadd.f32 %v6229_v23, %v13420_v16 }
0x1501   :  { %v9809_v31 = vmul.f32 -1.442695, %v6221_v45  ;;  %v9810_v36 = vmul.f32 -1.442695, %v6231_v34 }
0x1503   :  { %11827 = vpow2.f32 %v9809_v31 }
0x1504   :  { %v6304_v4 = vpop.f32.mrf.mxu1  ;;  %11829 = vpow2.f32 %v9810_v36 }
0x1505   :  { %v6305_v41 = vadd.f32 %v6304_v4, %v13423_v27 }
0x1506   :  { %v11174_v30 = vpop.f32.mrf.mxu1 }
0x1507   :  { %v6309_v25 = vrot.slane %v6305_v41, 5 }
0x1510   :  { %v11828_v37 = vpop.eup %11827 }
0x1511   :  { %v6225_v15 = vadd.f32 1.0, %v11828_v37  ;;  %v11830_v52 = vpop.eup %11829 }
0x1512   :  { %v6235_v24 = vadd.f32 1.0, %v11830_v52 }
0x1513   :  { %11831 = vrcp.f32 %v6225_v15 }
0x1514   :  { %11833 = vrcp.f32 %v6235_v24 }
0x1520   :  { %v11832_v58 = vpop.eup %11831 }
0x1521   :  { %v6311_v42 = vmul.f32 %v11832_v58, %v6309_v25  ;;  %v11834_v8 = vpop.eup %11833 }
0x1522   :  { %v6314_v40 = vsub.f32 1.0, %v11834_v8  ;;  %v6318_v48 = vmul.f32 %v11834_v8, %v6316_v17 }
0x1523   :  { %v6312_v44 = vadd.f32 %v6311_v42, %v13426_v22 }
0x1525   :  { %11835 = vtanh.f32 %v6312_v44 }
0x1532   :  { %v11836_v43 = vpop.eup %11835 }
0x1533   :  { %v6315_v51 = vmul.f32 %v11836_v43, %v6314_v40 }
0x1535   :  { %v6319_v53 = vadd.f32 %v6318_v48, %v6315_v51 }
0x1537   :  { %v6321_v26 = vrot.slane %v6319_v53, 2 }
0x1539   :  { %v13569_v11 = vsel %vm1714_vm7, %v6321_v26, %v13523_v56 }
0x153a   :  { %6324 = vst.msk [vmem:[#allocation2 + $0x2] sm:$0x2] %vm5575_vm5, %v13569_v11  ;;  %v6326_v12 = vrot.slane %v13569_v11, 1  ;;  %v6567_v41 = vrot.slane %v13569_v11, 5 }
0x153c   :  { %11184 = vmatmul.mubr.msk.f32.vlgmr.msra.gmra.mxu0 %vm366_vm11, %v6326_v12  ;;  %11195 = vmatmul.mubr.msk.f32.vlgmr.msra.gmra.mxu1 %vm366_vm11, %v6326_v12 }
0x153d   :  { %11198 = vmatpush3.msra.mxu0 %v13382_v32  ;;  %11205 = vmatprep.mubr.msk.f32.mxu0 %vm12219_vm0, %v12218_v0 }
0x153e   :  { %11199 = vmatprep.subr.mxu0 %v12218_v0  ;;  %11209 = vmatpush3.msra.mxu1 %v13339_v1 }
0x153f   :  { %11200 = vmatpush3.msra.mxu0 %v13387_v13  ;;  %11210 = vmatprep.subr.mxu1 %v12218_v0 }
0x1540   :  { %11201 = vmatprep.subr.mxu0 %v12218_v0  ;;  %11211 = vmatpush3.msra.mxu1 %v13346_v2 }
0x1541   :  { %11202 = vmatpush3.msra.mxu0 %v13393_v38  ;;  %11212 = vmatprep.subr.mxu1 %v12218_v0 }
0x1542   :  { %11203 = vmatprep.subr.mxu0 %v12218_v0  ;;  %11213 = vmatpush3.msra.mxu1 %v13350_v5 }
0x1543   :  { %11204 = vmatpush3.msra.mxu0 %v13397_v39  ;;  %11214 = vmatprep.subr.mxu1 %v12218_v0 }
0x1544   :  { %11206 = vmatmul.mubr.msk.f32.vlgmr.msra.gmra.mxu0 %vm366_vm11, %v6326_v12  ;;  %11219 = vmatprep.subr.mxu0 %v12218_v0 }
0x1545   :  { %11220 = vmatpush3.msra.mxu0 %v13318_v49  ;;  %11215 = vmatpush3.msra.mxu1 %v13354_v6 }
0x1546   :  { %11221 = vmatprep.subr.mxu0 %v12218_v0  ;;  %11216 = vmatprep.mubr.msk.f32.mxu1 %vm12219_vm0, %v12218_v0 }
0x1547   :  { %11222 = vmatpush3.msra.mxu0 %v13324_v59  ;;  %11227 = vmatprep.mubr.msk.f32.mxu0 %vm12219_vm0, %v12218_v0 }
0x1548   :  { %11223 = vmatprep.subr.mxu0 %v12218_v0  ;;  %11230 = vmatprep.subr.mxu1 %v12218_v0 }
0x1549   :  { %11224 = vmatpush3.msra.mxu0 %v13330_v60 }
0x154a   :  { %11225 = vmatprep.subr.mxu0 %v12218_v0 }
0x154b   :  { %11226 = vmatpush3.msra.mxu0 %v13334_v62 }
0x154c   :  { %11241 = vmatprep.subr.mxu0 %v12218_v0 }
0x15fc   :  { %v6395_v57 = vpop.f32.mrf.mxu0  ;;  %v6465_v61 = vpop.f32.mrf.mxu1 }
0x15fd   :  { %v6470_v54 = vrot.slane %v6395_v57, 4  ;;  %v6480_v21 = vrot.slane %v6465_v61, 4 }
0x15fe   :  { %v11185_v18 = vpop.f32.mrf.mxu0  ;;  %v11196_v19 = vpop.f32.mrf.mxu1 }
0x15ff   :  { %v6472_v56 = vadd.f32 %v6470_v54, %v13417_v50  ;;  %v6482_v28 = vadd.f32 %v6480_v21, %v13420_v16 }
0x1601   :  { %v9814_v20 = vmul.f32 -1.442695, %v6472_v56  ;;  %v9815_v14 = vmul.f32 -1.442695, %v6482_v28 }
0x1603   :  { %11837 = vpow2.f32 %v9814_v20 }
0x1604   :  { %v6555_v3 = vpop.f32.mrf.mxu0  ;;  %11839 = vpow2.f32 %v9815_v14 }
0x1605   :  { %v6556_v4 = vadd.f32 %v6555_v3, %v13423_v27 }
0x1606   :  { %v11207_v29 = vpop.f32.mrf.mxu0 }
0x1607   :  { %v6560_v30 = vrot.slane %v6556_v4, 4 }
0x1610   :  { %v11838_v45 = vpop.eup %11837 }
0x1611   :  { %v6476_v31 = vadd.f32 1.0, %v11838_v45  ;;  %v11840_v23 = vpop.eup %11839 }
0x1612   :  { %v6486_v34 = vadd.f32 1.0, %v11840_v23 }
0x1613   :  { %11841 = vrcp.f32 %v6476_v31 }
0x1614   :  { %11843 = vrcp.f32 %v6486_v34 }
0x1620   :  { %v11842_v36 = vpop.eup %11841 }
0x1621   :  { %v6562_v37 = vmul.f32 %v11842_v36, %v6560_v30  ;;  %v11844_v52 = vpop.eup %11843 }
0x1622   :  { %v6565_v24 = vsub.f32 1.0, %v11844_v52  ;;  %v6569_v58 = vmul.f32 %v11844_v52, %v6567_v41 }
0x1623   :  { %v6563_v15 = vadd.f32 %v6562_v37, %v13426_v22 }
0x1625   :  { %11845 = vtanh.f32 %v6563_v15 }
0x1632   :  { %v11846_v25 = vpop.eup %11845 }
0x1633   :  { %v6566_v42 = vmul.f32 %v11846_v25, %v6565_v24 }
0x1635   :  { %v6570_v44 = vadd.f32 %v6569_v58, %v6566_v42 }
0x1637   :  { %v6572_v8 = vrot.slane %v6570_v44, 3 }
0x1639   :  { %v13615_v17 = vsel %vm1970_vm8, %v6572_v8, %v13569_v11 }
0x163a   :  { %6575 = vst.msk [vmem:[#allocation2 + $0x3] sm:$0x2] %vm5575_vm5, %v13615_v17  ;;  %v6577_v40 = vrot.slane %v13615_v17, 1  ;;  %v6818_v4 = vrot.slane %v13615_v17, 4 }
0x163c   :  { %11217 = vmatmul.mubr.msk.f32.vlgmr.msra.gmra.mxu1 %vm366_vm11, %v6577_v40  ;;  %11228 = vmatmul.mubr.msk.f32.vlgmr.msra.gmra.mxu0 %vm366_vm11, %v6577_v40 }
0x163d   :  { %11231 = vmatpush3.msra.mxu1 %v13382_v32  ;;  %11238 = vmatprep.mubr.msk.f32.mxu1 %vm12219_vm0, %v12218_v0 }
0x163e   :  { %11232 = vmatprep.subr.mxu1 %v12218_v0  ;;  %11242 = vmatpush3.msra.mxu0 %v13339_v1 }
0x163f   :  { %11233 = vmatpush3.msra.mxu1 %v13387_v13  ;;  %11243 = vmatprep.subr.mxu0 %v12218_v0 }
0x1640   :  { %11234 = vmatprep.subr.mxu1 %v12218_v0  ;;  %11244 = vmatpush3.msra.mxu0 %v13346_v2 }
0x1641   :  { %11235 = vmatpush3.msra.mxu1 %v13393_v38  ;;  %11245 = vmatprep.subr.mxu0 %v12218_v0 }
0x1642   :  { %11236 = vmatprep.subr.mxu1 %v12218_v0  ;;  %11246 = vmatpush3.msra.mxu0 %v13350_v5 }
0x1643   :  { %11237 = vmatpush3.msra.mxu1 %v13397_v39  ;;  %11247 = vmatprep.subr.mxu0 %v12218_v0 }
0x1644   :  { %11239 = vmatmul.mubr.msk.f32.vlgmr.msra.gmra.mxu1 %vm366_vm11, %v6577_v40  ;;  %11252 = vmatprep.subr.mxu1 %v12218_v0 }
0x1645   :  { %11253 = vmatpush3.msra.mxu1 %v13318_v49  ;;  %11248 = vmatpush3.msra.mxu0 %v13354_v6 }
0x1646   :  { %11254 = vmatprep.subr.mxu1 %v12218_v0  ;;  %11249 = vmatprep.mubr.msk.f32.mxu0 %vm12219_vm0, %v12218_v0 }
0x1647   :  { %11255 = vmatpush3.msra.mxu1 %v13324_v59  ;;  %11260 = vmatprep.mubr.msk.f32.mxu1 %vm12219_vm0, %v12218_v0 }
0x1648   :  { %11256 = vmatprep.subr.mxu1 %v12218_v0  ;;  %11263 = vmatprep.subr.mxu0 %v12218_v0 }
0x1649   :  { %11257 = vmatpush3.msra.mxu1 %v13330_v60 }
0x164a   :  { %11258 = vmatprep.subr.mxu1 %v12218_v0 }
0x164b   :  { %11259 = vmatpush3.msra.mxu1 %v13334_v62 }
0x164c   :  { %11274 = vmatprep.subr.mxu1 %v12218_v0 }
0x16fc   :  { %v6646_v43 = vpop.f32.mrf.mxu1  ;;  %v6716_v48 = vpop.f32.mrf.mxu0 }
0x16fd   :  { %v6721_v51 = vrot.slane %v6646_v43, 3  ;;  %v6731_v57 = vrot.slane %v6716_v48, 3 }
0x16fe   :  { %v11218_v53 = vpop.f32.mrf.mxu1  ;;  %v11229_v26 = vpop.f32.mrf.mxu0 }
0x16ff   :  { %v6723_v11 = vadd.f32 %v6721_v51, %v13417_v50  ;;  %v6733_v54 = vadd.f32 %v6731_v57, %v13420_v16 }
0x1701   :  { %v9819_v12 = vmul.f32 -1.442695, %v6723_v11  ;;  %v9820_v19 = vmul.f32 -1.442695, %v6733_v54 }
0x1703   :  { %11847 = vpow2.f32 %v9819_v12 }
0x1704   :  { %v6806_v61 = vpop.f32.mrf.mxu1  ;;  %11849 = vpow2.f32 %v9820_v19 }
0x1705   :  { %v6807_v3 = vadd.f32 %v6806_v61, %v13423_v27 }
0x1706   :  { %v11240_v18 = vpop.f32.mrf.mxu1 }
0x1707   :  { %v6811_v29 = vrot.slane %v6807_v3, 3 }
0x1710   :  { %v11848_v56 = vpop.eup %11847 }
0x1711   :  { %v6727_v20 = vadd.f32 1.0, %v11848_v56  ;;  %v11850_v21 = vpop.eup %11849 }
0x1712   :  { %v6737_v28 = vadd.f32 1.0, %v11850_v21 }
0x1713   :  { %11851 = vrcp.f32 %v6727_v20 }
0x1714   :  { %11853 = vrcp.f32 %v6737_v28  ;;  %v7417_v28 = vld [vmem:[#allocation9 + $0x38] sm:$0xff] }
0x1720   :  { %v11852_v14 = vpop.eup %11851 }
0x1721   :  { %v6813_v45 = vmul.f32 %v11852_v14, %v6811_v29  ;;  %v11854_v23 = vpop.eup %11853  ;;  %v7332_v29 = vld [vmem:[#allocation9 + $0x10] sm:$0xff]  ;;  %v7415_v14 = vld [vmem:[#allocation9 + $0x28] sm:$0xff] }
0x1722   :  { %v6816_v34 = vsub.f32 1.0, %v11854_v23  ;;  %v6820_v36 = vmul.f32 %v11854_v23, %v6818_v4 }
0x1723   :  { %v6814_v31 = vadd.f32 %v6813_v45, %v13426_v22  ;;  %v7414_v45 = vld [vmem:[#allocation9 + $0x20] sm:$0xff] }
0x1725   :  { %11855 = vtanh.f32 %v6814_v31 }
0x1732   :  { %v11856_v30 = vpop.eup %11855 }
0x1733   :  { %v6817_v37 = vmul.f32 %v11856_v30, %v6816_v34 }
0x1735   :  { %v6821_v15 = vadd.f32 %v6820_v36, %v6817_v37 }
0x1737   :  { %v6823_v52 = vrot.slane %v6821_v15, 4 }
0x1739   :  { %v13661_v41 = vsel %vm2226_vm9, %v6823_v52, %v13615_v17 }
0x173a   :  { %6826 = vst.msk [vmem:[#allocation2 + $0x4] sm:$0x2] %vm5575_vm5, %v13661_v41  ;;  %v6828_v24 = vrot.slane %v13661_v41, 1  ;;  %v7069_v57 = vrot.slane %v13661_v41, 3 }
0x173c   :  { %11250 = vmatmul.mubr.msk.f32.vlgmr.msra.gmra.mxu0 %vm366_vm11, %v6828_v24  ;;  %11261 = vmatmul.mubr.msk.f32.vlgmr.msra.gmra.mxu1 %vm366_vm11, %v6828_v24 }
0x173d   :  { %11264 = vmatpush3.msra.mxu0 %v13382_v32  ;;  %11271 = vmatprep.mubr.msk.f32.mxu0 %vm12219_vm0, %v12218_v0 }
0x173e   :  { %11265 = vmatprep.subr.mxu0 %v12218_v0  ;;  %11275 = vmatpush3.msra.mxu1 %v13339_v1 }
0x173f   :  { %11266 = vmatpush3.msra.mxu0 %v13387_v13  ;;  %11276 = vmatprep.subr.mxu1 %v12218_v0 }
0x1740   :  { %11267 = vmatprep.subr.mxu0 %v12218_v0  ;;  %11277 = vmatpush3.msra.mxu1 %v13346_v2 }
0x1741   :  { %11268 = vmatpush3.msra.mxu0 %v13393_v38  ;;  %11278 = vmatprep.subr.mxu1 %v12218_v0 }
0x1742   :  { %11269 = vmatprep.subr.mxu0 %v12218_v0  ;;  %11279 = vmatpush3.msra.mxu1 %v13350_v5 }
0x1743   :  { %11270 = vmatpush3.msra.mxu0 %v13397_v39  ;;  %11280 = vmatprep.subr.mxu1 %v12218_v0 }
0x1744   :  { %11272 = vmatmul.mubr.msk.f32.vlgmr.msra.gmra.mxu0 %vm366_vm11, %v6828_v24  ;;  %11285 = vmatprep.subr.mxu0 %v12218_v0 }
0x1745   :  { %11286 = vmatpush3.msra.mxu0 %v13318_v49  ;;  %11281 = vmatpush3.msra.mxu1 %v13354_v6 }
0x1746   :  { %11287 = vmatprep.subr.mxu0 %v12218_v0  ;;  %11282 = vmatprep.mubr.msk.f32.mxu1 %vm12219_vm0, %v12218_v0 }
0x1747   :  { %11288 = vmatpush3.msra.mxu0 %v13324_v59  ;;  %11293 = vmatprep.mubr.msk.f32.mxu0 %vm12219_vm0, %v12218_v0 }
0x1748   :  { %11289 = vmatprep.subr.mxu0 %v12218_v0  ;;  %11296 = vmatprep.subr.mxu1 %v12218_v0 }
0x1749   :  { %11290 = vmatpush3.msra.mxu0 %v13330_v60 }
0x174a   :  { %11291 = vmatprep.subr.mxu0 %v12218_v0 }
0x174b   :  { %11292 = vmatpush3.msra.mxu0 %v13334_v62 }
0x174c   :  { %11307 = vmatprep.subr.mxu0 %v12218_v0 }
0x17fc   :  { %v6897_v49 = vpop.f32.mrf.mxu0  ;;  %v6967_v1 = vpop.f32.mrf.mxu1 }
0x17fd   :  { %v6972_v2 = vrot.slane %v6897_v49, 2  ;;  %v6982_v58 = vrot.slane %v6967_v1, 2 }
0x17fe   :  { %v11251_v5 = vpop.f32.mrf.mxu0  ;;  %v11262_v59 = vpop.f32.mrf.mxu1 }
0x17ff   :  { %v6974_v6 = vadd.f32 %v6972_v2, %v13417_v50  ;;  %v6984_v44 = vadd.f32 %v6982_v58, %v13420_v16 }
0x1801   :  { %v9824_v25 = vmul.f32 -1.442695, %v6974_v6  ;;  %v9825_v8 = vmul.f32 -1.442695, %v6984_v44 }
0x1803   :  { %11857 = vpow2.f32 %v9824_v25 }
0x1804   :  { %v7057_v42 = vpop.f32.mrf.mxu0  ;;  %11859 = vpow2.f32 %v9825_v8 }
0x1805   :  { %v7058_v43 = vadd.f32 %v7057_v42, %v13423_v27 }
0x1806   :  { %v11273_v60 = vpop.f32.mrf.mxu0 }
0x1807   :  { %v7062_v51 = vrot.slane %v7058_v43, 2 }
0x1810   :  { %v11858_v17 = vpop.eup %11857 }
0x1811   :  { %v6978_v62 = vadd.f32 1.0, %v11858_v17  ;;  %v11860_v40 = vpop.eup %11859 }
0x1812   :  { %v6988_v48 = vadd.f32 1.0, %v11860_v40 }
0x1813   :  { %11861 = vrcp.f32 %v6978_v62 }
0x1814   :  { %11863 = vrcp.f32 %v6988_v48  ;;  %v7498_v48 = vld [vmem:[#allocation9 + $0x58] sm:$0xff] }
0x1820   :  { %v11862_v53 = vpop.eup %11861 }
0x1821   :  { %v7064_v26 = vmul.f32 %v11862_v53, %v7062_v51  ;;  %v11864_v12 = vpop.eup %11863  ;;  %v13746_v51 = vld [vmem:[#allocation11 + $0x18] sm:$0xff]  ;;  %v7497_v53 = vld [vmem:[#allocation9 + $0x50] sm:$0xff] }
0x1822   :  { %v7067_v61 = vsub.f32 1.0, %v11864_v12  ;;  %v7071_v18 = vmul.f32 %v11864_v12, %v7069_v57  ;;  %v13755_v12 = vld [vmem:[#allocation11 + $0x8] sm:$0xff]  ;;  %v7495_v57 = vld [vmem:[#allocation9 + $0x40] sm:$0xff] }
0x1823   :  { %v7065_v11 = vadd.f32 %v7064_v26, %v13426_v22  ;;  %v13750_v26 = vld [vmem:[#allocation11 + $0x10] sm:$0xff] }
0x1825   :  { %11865 = vtanh.f32 %v7065_v11  ;;  %v7496_v11 = vld [vmem:[#allocation9 + $0x48] sm:$0xff] }
0x1832   :  { %v11866_v54 = vpop.eup %11865 }
0x1833   :  { %v7068_v19 = vmul.f32 %v11866_v54, %v7067_v61  ;;  %v13761_v61 = vld [vmem:[#allocation11] sm:$0xff]  ;;  %v13770_v54 = vld [vmem:[#allocation11 + $0x38] sm:$0xff] }
0x1835   :  { %v7072_v56 = vadd.f32 %v7071_v18, %v7068_v19  ;;  %v13774_v18 = vld [vmem:[#allocation11 + $0x58] sm:$0xff]  ;;  %v13777_v19 = vld [vmem:[#allocation11 + $0x30] sm:$0xff] }
0x1837   :  { %v7074_v20 = vrot.slane %v7072_v56, 5  ;;  %v13783_v56 = vld [vmem:[#allocation11 + $0x50] sm:$0xff] }
0x1839   :  { %v13707_v21 = vsel %vm2482_vm10, %v7074_v20, %v13661_v41  ;;  %v13786_v20 = vld [vmem:[#allocation11 + $0x28] sm:$0xff] }
0x183a   :  { %7077 = vst.msk [vmem:[#allocation2 + $0x5] sm:$0x2] %vm5575_vm5, %v13707_v21  ;;  %v7079_v3 = vrot.slane %v13707_v21, 1 }
0x183c   :  { %11283 = vmatmul.mubr.msk.f32.vlgmr.msra.gmra.mxu1 %vm366_vm11, %v7079_v3  ;;  %11294 = vmatmul.mubr.msk.f32.vlgmr.msra.gmra.mxu0 %vm366_vm11, %v7079_v3 }
0x183d   :  { %11297 = vmatpush3.msra.mxu1 %v13382_v32  ;;  %11304 = vmatprep.mubr.msk.f32.mxu1 %vm12219_vm0, %v12218_v0  ;;  %v7333_v32 = vld [vmem:[#allocation9 + $0x18] sm:$0xff] }
0x183e   :  { %11298 = vmatprep.subr.mxu1 %v12218_v0  ;;  %11315 = vmatprep.mubr.msk.f32.mxu0 %vm12219_vm0, %v12218_v0 }
0x183f   :  { %11299 = vmatpush3.msra.mxu1 %v13387_v13  ;;  %11308 = vmatpush3.msra.mxu0 %v7333_v32  ;;  %v7416_v13 = vld [vmem:[#allocation9 + $0x30] sm:$0xff]  ;;  %v13799_v32 = vld [vmem:[#allocation11 + $0x40] sm:$0xff] }
0x1840   :  { %11300 = vmatprep.subr.mxu1 %v12218_v0  ;;  %11309 = vmatprep.subr.mxu0 %v12218_v0 }
0x1841   :  { %11301 = vmatpush3.msra.mxu1 %v13393_v38  ;;  %v7331_v38 = vld [vmem:[#allocation9 + $0x8] sm:$0xff]  ;;  %11310 = vmatpush3.msra.mxu0 %v7332_v29 }
0x1842   :  { %11302 = vmatprep.subr.mxu1 %v12218_v0  ;;  %11311 = vmatprep.subr.mxu0 %v12218_v0 }
0x1843   :  { %11303 = vmatpush3.msra.mxu1 %v13397_v39  ;;  %v7330_v39 = vld [vmem:[#allocation9] sm:$0xff]  ;;  %11312 = vmatpush3.msra.mxu0 %v7331_v38 }
0x1844   :  { %11305 = vmatmul.mubr.msk.f32.vlgmr.msra.gmra.mxu1 %vm366_vm11, %v7079_v3  ;;  %11318 = vmatprep.subr.mxu1 %v12218_v0  ;;  %v13794_v3 = vld [vmem:[#allocation11 + $0x20] sm:$0xff] }
0x1845   :  { %11326 = vmatprep.mubr.msk.f32.mxu1 %vm12219_vm0, %v12218_v0  ;;  %11319 = vmatpush3.msra.mxu1 %v7417_v28 }
0x1846   :  { %11320 = vmatprep.subr.mxu1 %v12218_v0  ;;  %11313 = vmatprep.subr.mxu0 %v12218_v0 }
0x1847   :  { %11321 = vmatpush3.msra.mxu1 %v7416_v13  ;;  %11314 = vmatpush3.msra.mxu0 %v7330_v39 }
0x1848   :  { %11322 = vmatprep.subr.mxu1 %v12218_v0  ;;  %11329 = vmatprep.subr.mxu0 %v12218_v0 }
0x1849   :  { %11323 = vmatpush3.msra.mxu1 %v7415_v14  ;;  %v9832_v14 = vld [vmem:[%s14182_s7] ss:$0 sm:$0xff] }
0x184a   :  { %11324 = vmatprep.subr.mxu1 %v12218_v0 }
0x184b   :  { %11325 = vmatpush3.msra.mxu1 %v7414_v45 }
0x184c   :  { %11340 = vmatprep.subr.mxu1 %v12218_v0 }
0x18fc   :  { %v7148_v31 = vpop.f32.mrf.mxu1  ;;  %v7218_v23 = vpop.f32.mrf.mxu0 }
0x18fd   :  { %v7223_v4 = vrot.slane %v7148_v31, 1  ;;  %v7233_v15 = vrot.slane %v7218_v23, 1 }
0x18fe   :  { %v11284_v34 = vpop.f32.mrf.mxu1  ;;  %v11295_v30 = vpop.f32.mrf.mxu0 }
0x18ff   :  { %v7225_v36 = vadd.f32 %v7223_v4, %v13417_v50  ;;  %v7235_v41 = vadd.f32 %v7233_v15, %v13420_v16  ;;  %v7320_v16 = vrot.slane %v13707_v21, 2 }
0x1901   :  { %v9829_v37 = vmul.f32 -1.442695, %v7225_v36  ;;  %v9830_v49 = vmul.f32 -1.442695, %v7235_v41  ;;  %v9835_v36 = vld [vmem:[%s14182_s7 + $0x1] ss:$0 sm:$0xff] }
0x1903   :  { %11867 = vpow2.f32 %v9829_v37 }
0x1904   :  { %v7308_v52 = vpop.f32.mrf.mxu1  ;;  %11869 = vpow2.f32 %v9830_v49 }
0x1905   :  { %v7309_v59 = vadd.f32 %v7308_v52, %v13423_v27 }
0x1906   :  { %v11306_v24 = vpop.f32.mrf.mxu1 }
0x1907   :  { %v7313_v25 = vrot.slane %v7309_v59, 1 }
0x1910   :  { %v11868_v1 = vpop.eup %11867 }
0x1911   :  { %v7229_v2 = vadd.f32 1.0, %v11868_v1  ;;  %v11870_v5 = vpop.eup %11869 }
0x1912   :  { %v7239_v6 = vadd.f32 1.0, %v11870_v5 }
0x1913   :  { %11871 = vrcp.f32 %v7229_v2 }
0x1914   :  { %11873 = vrcp.f32 %v7239_v6  ;;  %v13847_v6 = vld [vmem:[%s14182_s7 + $0x3] sm:$0x1] }
0x1920   :  { %v11872_v58 = vpop.eup %11871 }
0x1921   :  { %v7315_v50 = vmul.f32 %v11872_v58, %v7313_v25  ;;  %v11874_v44 = vpop.eup %11873 }
0x1922   :  { %v7318_v60 = vsub.f32 1.0, %v11874_v44  ;;  %v7322_v17 = vmul.f32 %v11874_v44, %v7320_v16 }
0x1923   :  { %v7316_v42 = vadd.f32 %v7315_v50, %v13426_v22  ;;  %v9838_v50 = vld [vmem:[%s14182_s7 + $0x2] ss:$0 sm:$0xff]  ;;  %s12221_s7 = smov [#allocation20]  }
0x1924   :  { %s9668_s8 = sshll.u32 %s12221_s7, 4  ;;  %s9669_s8 = int_to_ptr.vmem [resolvable:$true] %s9668_s8 }
0x1925   :  { %11875 = vtanh.f32 %v7316_v42  ;;  %s12168_s30 = scalar_lea.vmem %s9669_s8, 256  ;;  %p12173_p9 = scmp.lt.s32.totalorder %s9669_s8, %s9669_s8 }
0x1926   :  { %p12169_p8 = scmp.ne.s32.totalorder %s9669_s8, %s12168_s30  ;;  %p12174_p10 = scmp.lt.s32.totalorder %s12168_s30, %s12168_s30 }
0x1928   :  { %p12175_p11 = por %p12174_p10, %p12173_p9 }
0x192a   :  { %p12176_p12 = pnand %p12175_p11, %p12169_p8 }
0x1932   :  { %v11876_v8 = vpop.eup %11875 }
0x1933   :  { %v7319_v62 = vmul.f32 %v11876_v8, %v7318_v60 }
0x1935   :  { %v7323_v40 = vadd.f32 %v7322_v17, %v7319_v62 }
0x1937   :  { %v7325_v43 = vrot.slane %v7323_v40, 6 }
0x1939   :  { %v7327_v27 = vsel %vm2738_vm14, %v7325_v43, %v13707_v21  ;;  %v13791_v21 = vld [vmem:[#allocation11 + $0x48] sm:$0xff] }
0x193a   :  { %7328 = vst.msk [vmem:[#allocation2 + $0x6] sm:$0x2] %vm5575_vm5, %v7327_v27 }
0x1941   :  { %v7329_v22 = vld [vmem:[#allocation2] sm:$0xff] }
0x1942   :  { %11316 = vmatmul.mubr.msk.f32.vlgmr.msra.gmra.mxu0 %vm366_vm11, %v7329_v22  ;;  %11327 = vmatmul.mubr.msk.f32.vlgmr.msra.gmra.mxu1 %vm366_vm11, %v7329_v22 }
0x1943   :  { %11330 = vmatpush3.msra.mxu0 %v7498_v48  ;;  %11341 = vmatpush3.msra.mxu1 %v13746_v51 }
0x1944   :  { %11331 = vmatprep.subr.mxu0 %v12218_v0  ;;  %11342 = vmatprep.subr.mxu1 %v12218_v0 }
0x1945   :  { %11332 = vmatpush3.msra.mxu0 %v7497_v53  ;;  %11343 = vmatpush3.msra.mxu1 %v13750_v26 }
0x1946   :  { %11333 = vmatprep.subr.mxu0 %v12218_v0  ;;  %11344 = vmatprep.subr.mxu1 %v12218_v0 }
0x1947   :  { %11334 = vmatpush3.msra.mxu0 %v7496_v11  ;;  %11345 = vmatpush3.msra.mxu1 %v13755_v12 }
0x1948   :  { %11335 = vmatprep.subr.mxu0 %v12218_v0  ;;  %11346 = vmatprep.subr.mxu1 %v12218_v0 }
0x1949   :  { %11336 = vmatpush3.msra.mxu0 %v7495_v57  ;;  %11337 = vmatprep.mubr.msk.f32.mxu0 %vm12219_vm0, %v12218_v0 }
0x194a   :  { %11347 = vmatpush3.msra.mxu1 %v13761_v61  ;;  %11348 = vmatprep.mubr.msk.f32.mxu1 %vm12219_vm0, %v12218_v0 }
0x194b   :  { %11338 = vmatmul.mubr.msk.f32.vlgmr.msra.gmra.mxu0 %vm366_vm11, %v7329_v22  ;;  %11349 = vmatmul.mubr.f32.vlgmr.msra.gmra.mxu1 %v12218_v0 }
0x194c   :  { %11351 = vmatprep.subr.mxu0 %v12218_v0  ;;  %11359 = vmatprep.mubr.msk.f32.mxu0 %vm12219_vm0, %v12218_v0 }
0x194d   :  { %11352 = vmatpush3.msra.mxu0 %v13770_v54  ;;  %11362 = vmatprep.subr.mxu1 %v12218_v0 }
0x194e   :  { %11353 = vmatprep.subr.mxu0 %v12218_v0  ;;  %11363 = vmatpush3.msra.mxu1 %v13774_v18 }
0x194f   :  { %11354 = vmatpush3.msra.mxu0 %v13777_v19  ;;  %11364 = vmatprep.subr.mxu1 %v12218_v0 }
0x1950   :  { %11355 = vmatprep.subr.mxu0 %v12218_v0  ;;  %11365 = vmatpush3.msra.mxu1 %v13783_v56 }
0x1951   :  { %11356 = vmatpush3.msra.mxu0 %v13786_v20  ;;  %11366 = vmatprep.subr.mxu1 %v12218_v0 }
0x1952   :  { %11357 = vmatprep.subr.mxu0 %v12218_v0  ;;  %11367 = vmatpush3.msra.mxu1 %v13791_v21 }
0x1953   :  { %11358 = vmatpush3.msra.mxu0 %v13794_v3  ;;  %11368 = vmatprep.subr.mxu1 %v12218_v0 }
0x1954   :  { %11360 = vmatmul.mubr.f32.vlgmr.msra.gmra.mxu0 %v12218_v0  ;;  %11369 = vmatpush3.msra.mxu1 %v13799_v32 }
0x1955   :  { %11370 = vmatprep.mubr.msk.f32.mxu1 %vm12219_vm0, %v12218_v0  ;;  %11373 = vmatprep.subr.mxu0 %v12218_v0 }
0x1956   :  { %11371 = vmatmul.mubr.f32.vlgmr.msra.gmra.mxu1 %v12218_v0  ;;  %11374 = vmatpush3.msra.mxu0 %v13746_v51 }
0x1957   :  { %11384 = vmatprep.subr.mxu1 %v12218_v0  ;;  %11375 = vmatprep.subr.mxu0 %v12218_v0 }
0x1958   :  { %11385 = vmatpush3.msra.mxu1 %v13770_v54  ;;  %11376 = vmatpush3.msra.mxu0 %v13750_v26 }
0x1959   :  { %11386 = vmatprep.subr.mxu1 %v12218_v0  ;;  %11377 = vmatprep.subr.mxu0 %v12218_v0 }
0x195a   :  { %11387 = vmatpush3.msra.mxu1 %v13777_v19  ;;  %11378 = vmatpush3.msra.mxu0 %v13755_v12 }
0x195b   :  { %11388 = vmatprep.subr.mxu1 %v12218_v0  ;;  %11379 = vmatprep.subr.mxu0 %v12218_v0 }
0x195c   :  { %11389 = vmatpush3.msra.mxu1 %v13786_v20  ;;  %11380 = vmatpush3.msra.mxu0 %v13761_v61 }
0x195d   :  { %11390 = vmatprep.subr.mxu1 %v12218_v0  ;;  %11381 = vmatprep.mubr.msk.f32.mxu0 %vm12219_vm0, %v12218_v0 }
0x195e   :  { %11391 = vmatpush3.msra.mxu1 %v13794_v3  ;;  %11392 = vmatprep.mubr.msk.f32.mxu1 %vm12219_vm0, %v12218_v0 }
0x195f   :  { %11395 = vmatprep.subr.mxu0 %v12218_v0  ;;  %11406 = vmatprep.subr.mxu1 %v12218_v0 }
0x1a02   :  { %v7410_v28 = vpop.f32.mrf.mxu0  ;;  %v7491_v29 = vpop.f32.mrf.mxu1 }
0x1a03   :  { %v13835_v39 = vadd.f32 %v9832_v14, %v7410_v28  ;;  %v13841_v37 = vadd.f32 %v9835_v36, %v7491_v29 }
0x1a04   :  { %v11317_v13 = vpop.f32.mrf.mxu0  ;;  %v11328_v38 = vpop.f32.mrf.mxu1 }
0x1a0b   :  { %v7572_v45 = vpop.f32.mrf.mxu0  ;;  %v7655_v31 = vpop.f32.mrf.mxu1 }
0x1a0c   :  { %v7729_v23 = vadd.f32 %v7655_v31, %v13835_v39  ;;  %v13853_v44 = vadd.f32 %v9838_v50, %v7572_v45 }
0x1a0d   :  { %v11339_v4 = vpop.f32.mrf.mxu0  ;;  %v11350_v34 = vpop.f32.mrf.mxu1 }
0x1a0e   :  { %v9841_v30 = vmul.f32 -1.442695, %v7729_v23 }
0x1a10   :  { %11877 = vpow2.f32 %v9841_v30 }
0x1a14   :  { %v7725_v15 = vpop.f32.mrf.mxu0 }
0x1a15   :  { %v7736_v52 = vadd.f32 %v7725_v15, %v13841_v37 }
0x1a16   :  { %v11361_v41 = vpop.f32.mrf.mxu0  ;;  %v7809_v24 = vpop.f32.mrf.mxu1 }
0x1a17   :  { %v9842_v49 = vmul.f32 -1.442695, %v7736_v52  ;;  %v7810_v58 = vadd.f32 %v13847_v6, %v7809_v24 }
0x1a18   :  { %v11372_v1 = vpop.f32.mrf.mxu1 }
0x1a19   :  { %11879 = vpow2.f32 %v9842_v49 }
0x1a1d   :  { %v11878_v2 = vpop.eup %11877 }
0x1a1e   :  { %v7733_v5 = vadd.f32 1.0, %v11878_v2 }
0x1a20   :  { %11881 = vrcp.f32 %v7733_v5 }
0x1a26   :  { %v11880_v59 = vpop.eup %11879 }
0x1a27   :  { %v7740_v25 = vadd.f32 1.0, %v11880_v59 }
0x1a29   :  { %11883 = vrcp.f32 %v7740_v25 }
0x1a2d   :  { %v11882_v42 = vpop.eup %11881 }
0x1a2e   :  { %v7813_v16 = vmul.f32 %v11882_v42, %v7810_v58 }
0x1a30   :  { %v7814_v60 = vadd.f32 %v7813_v16, %v13853_v44 }
0x1a32   :  { %11885 = vtanh.f32 %v7814_v60 }
0x1a36   :  { %v11884_v8 = vpop.eup %11883 }
0x1a37   :  { %v7816_v17 = vsub.f32 1.0, %v11884_v8  ;;  %v7818_v40 = vmul.f32 0.0, %v11884_v8 }
0x1a3f   :  { %v11886_v62 = vpop.eup %11885 }
0x1a40   :  { %v7817_v43 = vmul.f32 %v11886_v62, %v7816_v17 }
0x1a42   :  { %v7819_v27 = vadd.f32 %v7818_v40, %v7817_v43 }
0x1a44   :  { %v7821_v48 = vrot.slane %v7819_v27, 7 }
0x1a46   :  { %v13858_v22 = vsel %vm948_vm12, %v7821_v48, 0.0 }
0x1a47   :  { %7824 = vst.msk [vmem:[#allocation2 - $0x1] sm:$0x2] %vm5575_vm5, %v13858_v22  ;;  %v7826_v53 = vrot.slane %v13858_v22, 1 }
0x1a49   :  { %11382 = vmatmul.mubr.msk.f32.vlgmr.msra.gmra.mxu0 %vm366_vm11, %v7826_v53  ;;  %11393 = vmatmul.mubr.msk.f32.vlgmr.msra.gmra.mxu1 %vm366_vm11, %v7826_v53 }
0x1a4a   :  { %11396 = vmatpush3.msra.mxu0 %v13774_v18  ;;  %11403 = vmatprep.mubr.msk.f32.mxu0 %vm12219_vm0, %v12218_v0 }
0x1a4b   :  { %11397 = vmatprep.subr.mxu0 %v12218_v0  ;;  %11407 = vmatpush3.msra.mxu1 %v13746_v51 }
0x1a4c   :  { %11398 = vmatpush3.msra.mxu0 %v13783_v56  ;;  %11408 = vmatprep.subr.mxu1 %v12218_v0 }
0x1a4d   :  { %11399 = vmatprep.subr.mxu0 %v12218_v0  ;;  %11409 = vmatpush3.msra.mxu1 %v13750_v26 }
0x1a4e   :  { %11400 = vmatpush3.msra.mxu0 %v13791_v21  ;;  %11410 = vmatprep.subr.mxu1 %v12218_v0 }
0x1a4f   :  { %11401 = vmatprep.subr.mxu0 %v12218_v0  ;;  %11411 = vmatpush3.msra.mxu1 %v13755_v12 }
0x1a50   :  { %11402 = vmatpush3.msra.mxu0 %v13799_v32  ;;  %11412 = vmatprep.subr.mxu1 %v12218_v0 }
0x1a51   :  { %11404 = vmatmul.mubr.msk.f32.vlgmr.msra.gmra.mxu0 %vm366_vm11, %v7826_v53  ;;  %11417 = vmatprep.subr.mxu0 %v12218_v0 }
0x1a52   :  { %11418 = vmatpush3.msra.mxu0 %v13770_v54  ;;  %11413 = vmatpush3.msra.mxu1 %v13761_v61 }
0x1a53   :  { %11419 = vmatprep.subr.mxu0 %v12218_v0  ;;  %11414 = vmatprep.mubr.msk.f32.mxu1 %vm12219_vm0, %v12218_v0 }
0x1a54   :  { %11420 = vmatpush3.msra.mxu0 %v13777_v19  ;;  %11425 = vmatprep.mubr.msk.f32.mxu0 %vm12219_vm0, %v12218_v0 }
0x1a55   :  { %11421 = vmatprep.subr.mxu0 %v12218_v0  ;;  %11428 = vmatprep.subr.mxu1 %v12218_v0 }
0x1a56   :  { %11422 = vmatpush3.msra.mxu0 %v13786_v20 }
0x1a57   :  { %11423 = vmatprep.subr.mxu0 %v12218_v0 }
0x1a58   :  { %11424 = vmatpush3.msra.mxu0 %v13794_v3 }
0x1a59   :  { %11439 = vmatprep.subr.mxu0 %v12218_v0 }
0x1b09   :  { %v7895_v33 = vpop.f32.mrf.mxu0  ;;  %v7965_v11 = vpop.f32.mrf.mxu1 }
0x1b0a   :  { %v7970_v57 = vrot.slane %v7895_v33, 7  ;;  %v7980_v14 = vrot.slane %v7965_v11, 7 }
0x1b0b   :  { %v11383_v28 = vpop.f32.mrf.mxu0  ;;  %v11394_v29 = vpop.f32.mrf.mxu1 }
0x1b0c   :  { %v7972_v13 = vadd.f32 %v7970_v57, %v13835_v39  ;;  %v7982_v31 = vadd.f32 %v7980_v14, %v13841_v37 }
0x1b0e   :  { %v9845_v38 = vmul.f32 -1.442695, %v7972_v13  ;;  %v9846_v4 = vmul.f32 -1.442695, %v7982_v31 }
0x1b10   :  { %11887 = vpow2.f32 %v9845_v38 }
0x1b11   :  { %v8055_v45 = vpop.f32.mrf.mxu0  ;;  %11889 = vpow2.f32 %v9846_v4 }
0x1b12   :  { %v8056_v15 = vadd.f32 %v13847_v6, %v8055_v45 }
0x1b13   :  { %v11405_v23 = vpop.f32.mrf.mxu0 }
0x1b14   :  { %v8060_v41 = vrot.slane %v8056_v15, 7 }
0x1b1d   :  { %v11888_v34 = vpop.eup %11887 }
0x1b1e   :  { %v7976_v30 = vadd.f32 1.0, %v11888_v34  ;;  %v11890_v36 = vpop.eup %11889 }
0x1b1f   :  { %v7986_v52 = vadd.f32 1.0, %v11890_v36 }
0x1b20   :  { %11891 = vrcp.f32 %v7976_v30 }
0x1b21   :  { %11893 = vrcp.f32 %v7986_v52 }
0x1b2d   :  { %v11892_v24 = vpop.eup %11891 }
0x1b2e   :  { %v8062_v49 = vmul.f32 %v11892_v24, %v8060_v41  ;;  %v11894_v2 = vpop.eup %11893 }
0x1b2f   :  { %v8065_v5 = vsub.f32 1.0, %v11894_v2  ;;  %v8067_v58 = vmul.f32 %v11894_v2, %v13858_v22 }
0x1b30   :  { %v8063_v1 = vadd.f32 %v8062_v49, %v13853_v44 }
0x1b32   :  { %11895 = vtanh.f32 %v8063_v1 }
0x1b3f   :  { %v11896_v59 = vpop.eup %11895 }
0x1b40   :  { %v8066_v25 = vmul.f32 %v11896_v59, %v8065_v5 }
0x1b42   :  { %v8068_v50 = vadd.f32 %v8067_v58, %v8066_v25 }
0x1b44   :  { %v13904_v42 = vsel %vm1202_vm3, %v8068_v50, %v13858_v22  ;;  %v8070_v16 = vsel %vm1202_vm3, %v8068_v50, 0.0 }
0x1b45   :  { %8071 = vst.msk [vmem:[#allocation2] sm:$0x2] %vm5575_vm5, %v8070_v16  ;;  %v8073_v60 = vrot.slane %v13904_v42, 1  ;;  %v8314_v34 = vrot.slane %v13904_v42, 7 }
0x1b47   :  { %11415 = vmatmul.mubr.msk.f32.vlgmr.msra.gmra.mxu1 %vm366_vm11, %v8073_v60  ;;  %11426 = vmatmul.mubr.msk.f32.vlgmr.msra.gmra.mxu0 %vm366_vm11, %v8073_v60 }
0x1b48   :  { %11429 = vmatpush3.msra.mxu1 %v13774_v18  ;;  %11436 = vmatprep.mubr.msk.f32.mxu1 %vm12219_vm0, %v12218_v0 }
0x1b49   :  { %11430 = vmatprep.subr.mxu1 %v12218_v0  ;;  %11440 = vmatpush3.msra.mxu0 %v13746_v51 }
0x1b4a   :  { %11431 = vmatpush3.msra.mxu1 %v13783_v56  ;;  %11441 = vmatprep.subr.mxu0 %v12218_v0 }
0x1b4b   :  { %11432 = vmatprep.subr.mxu1 %v12218_v0  ;;  %11442 = vmatpush3.msra.mxu0 %v13750_v26 }
0x1b4c   :  { %11433 = vmatpush3.msra.mxu1 %v13791_v21  ;;  %11443 = vmatprep.subr.mxu0 %v12218_v0 }
0x1b4d   :  { %11434 = vmatprep.subr.mxu1 %v12218_v0  ;;  %11444 = vmatpush3.msra.mxu0 %v13755_v12 }
0x1b4e   :  { %11435 = vmatpush3.msra.mxu1 %v13799_v32  ;;  %11445 = vmatprep.subr.mxu0 %v12218_v0 }
0x1b4f   :  { %11437 = vmatmul.mubr.msk.f32.vlgmr.msra.gmra.mxu1 %vm366_vm11, %v8073_v60  ;;  %11450 = vmatprep.subr.mxu1 %v12218_v0 }
0x1b50   :  { %11451 = vmatpush3.msra.mxu1 %v13770_v54  ;;  %11446 = vmatpush3.msra.mxu0 %v13761_v61 }
0x1b51   :  { %11452 = vmatprep.subr.mxu1 %v12218_v0  ;;  %11447 = vmatprep.mubr.msk.f32.mxu0 %vm12219_vm0, %v12218_v0 }
0x1b52   :  { %11453 = vmatpush3.msra.mxu1 %v13777_v19  ;;  %11458 = vmatprep.mubr.msk.f32.mxu1 %vm12219_vm0, %v12218_v0 }
0x1b53   :  { %11454 = vmatprep.subr.mxu1 %v12218_v0  ;;  %11461 = vmatprep.subr.mxu0 %v12218_v0 }
0x1b54   :  { %11455 = vmatpush3.msra.mxu1 %v13786_v20 }
0x1b55   :  { %11456 = vmatprep.subr.mxu1 %v12218_v0 }
0x1b56   :  { %11457 = vmatpush3.msra.mxu1 %v13794_v3 }
0x1b57   :  { %11472 = vmatprep.subr.mxu1 %v12218_v0 }
0x1c07   :  { %v8142_v9 = vpop.f32.mrf.mxu1  ;;  %v8212_v8 = vpop.f32.mrf.mxu0 }
0x1c08   :  { %v8217_v17 = vrot.slane %v8142_v9, 6  ;;  %v8227_v48 = vrot.slane %v8212_v8, 6 }
0x1c09   :  { %v11416_v62 = vpop.f32.mrf.mxu1  ;;  %v11427_v40 = vpop.f32.mrf.mxu0 }
0x1c0a   :  { %v8219_v43 = vadd.f32 %v8217_v17, %v13835_v39  ;;  %v8229_v53 = vadd.f32 %v8227_v48, %v13841_v37 }
0x1c0c   :  { %v9850_v27 = vmul.f32 -1.442695, %v8219_v43  ;;  %v9851_v11 = vmul.f32 -1.442695, %v8229_v53 }
0x1c0e   :  { %11897 = vpow2.f32 %v9850_v27 }
0x1c0f   :  { %v8302_v22 = vpop.f32.mrf.mxu1  ;;  %11899 = vpow2.f32 %v9851_v11 }
0x1c10   :  { %v8303_v13 = vadd.f32 %v13847_v6, %v8302_v22 }
0x1c11   :  { %v11438_v33 = vpop.f32.mrf.mxu1 }
0x1c12   :  { %v8307_v14 = vrot.slane %v8303_v13, 6 }
0x1c1b   :  { %v11898_v57 = vpop.eup %11897 }
0x1c1c   :  { %v8223_v28 = vadd.f32 1.0, %v11898_v57  ;;  %v11900_v29 = vpop.eup %11899 }
0x1c1d   :  { %v8233_v38 = vadd.f32 1.0, %v11900_v29 }
0x1c1e   :  { %11901 = vrcp.f32 %v8223_v28 }
0x1c1f   :  { %11903 = vrcp.f32 %v8233_v38 }
0x1c2b   :  { %v11902_v45 = vpop.eup %11901 }
0x1c2c   :  { %v8309_v31 = vmul.f32 %v11902_v45, %v8307_v14  ;;  %v11904_v4 = vpop.eup %11903 }
0x1c2d   :  { %v8312_v30 = vsub.f32 1.0, %v11904_v4  ;;  %v8316_v52 = vmul.f32 %v11904_v4, %v8314_v34 }
0x1c2e   :  { %v8310_v23 = vadd.f32 %v8309_v31, %v13853_v44 }
0x1c30   :  { %11905 = vtanh.f32 %v8310_v23 }
0x1c3d   :  { %v11906_v36 = vpop.eup %11905 }
0x1c3e   :  { %v8313_v15 = vmul.f32 %v11906_v36, %v8312_v30 }
0x1c40   :  { %v8317_v41 = vadd.f32 %v8316_v52, %v8313_v15 }
0x1c42   :  { %v8319_v24 = vrot.slane %v8317_v41, 1 }
0x1c44   :  { %v13951_v49 = vsel %vm1458_vm4, %v8319_v24, %v13904_v42  ;;  %v8322_v1 = vsel %vm1458_vm4, %v8319_v24, 0.0 }
0x1c45   :  { %8323 = vst.msk [vmem:[#allocation2 + $0x1] sm:$0x2] %vm5575_vm5, %v8322_v1  ;;  %v8325_v2 = vrot.slane %v13951_v49, 1  ;;  %v8566_v28 = vrot.slane %v13951_v49, 6 }
0x1c47   :  { %11448 = vmatmul.mubr.msk.f32.vlgmr.msra.gmra.mxu0 %vm366_vm11, %v8325_v2  ;;  %11459 = vmatmul.mubr.msk.f32.vlgmr.msra.gmra.mxu1 %vm366_vm11, %v8325_v2 }
0x1c48   :  { %11462 = vmatpush3.msra.mxu0 %v13774_v18  ;;  %11469 = vmatprep.mubr.msk.f32.mxu0 %vm12219_vm0, %v12218_v0 }
0x1c49   :  { %11463 = vmatprep.subr.mxu0 %v12218_v0  ;;  %11473 = vmatpush3.msra.mxu1 %v13746_v51 }
0x1c4a   :  { %11464 = vmatpush3.msra.mxu0 %v13783_v56  ;;  %11474 = vmatprep.subr.mxu1 %v12218_v0 }
0x1c4b   :  { %11465 = vmatprep.subr.mxu0 %v12218_v0  ;;  %11475 = vmatpush3.msra.mxu1 %v13750_v26 }
0x1c4c   :  { %11466 = vmatpush3.msra.mxu0 %v13791_v21  ;;  %11476 = vmatprep.subr.mxu1 %v12218_v0 }
0x1c4d   :  { %11467 = vmatprep.subr.mxu0 %v12218_v0  ;;  %11477 = vmatpush3.msra.mxu1 %v13755_v12 }
0x1c4e   :  { %11468 = vmatpush3.msra.mxu0 %v13799_v32  ;;  %11478 = vmatprep.subr.mxu1 %v12218_v0 }
0x1c4f   :  { %11470 = vmatmul.mubr.msk.f32.vlgmr.msra.gmra.mxu0 %vm366_vm11, %v8325_v2  ;;  %11483 = vmatprep.subr.mxu0 %v12218_v0 }
0x1c50   :  { %11484 = vmatpush3.msra.mxu0 %v13770_v54  ;;  %11479 = vmatpush3.msra.mxu1 %v13761_v61 }
0x1c51   :  { %11485 = vmatprep.subr.mxu0 %v12218_v0  ;;  %11480 = vmatprep.mubr.msk.f32.mxu1 %vm12219_vm0, %v12218_v0 }
0x1c52   :  { %11486 = vmatpush3.msra.mxu0 %v13777_v19  ;;  %11491 = vmatprep.mubr.msk.f32.mxu0 %vm12219_vm0, %v12218_v0 }
0x1c53   :  { %11487 = vmatprep.subr.mxu0 %v12218_v0  ;;  %11494 = vmatprep.subr.mxu1 %v12218_v0 }
0x1c54   :  { %11488 = vmatpush3.msra.mxu0 %v13786_v20 }
0x1c55   :  { %11489 = vmatprep.subr.mxu0 %v12218_v0 }
0x1c56   :  { %11490 = vmatpush3.msra.mxu0 %v13794_v3 }
0x1c57   :  { %11505 = vmatprep.subr.mxu0 %v12218_v0 }
0x1d07   :  { %v8394_v55 = vpop.f32.mrf.mxu0  ;;  %v8464_v5 = vpop.f32.mrf.mxu1 }
0x1d08   :  { %v8469_v59 = vrot.slane %v8394_v55, 5  ;;  %v8479_v16 = vrot.slane %v8464_v5, 5 }
0x1d09   :  { %v11449_v25 = vpop.f32.mrf.mxu0  ;;  %v11460_v58 = vpop.f32.mrf.mxu1 }
0x1d0a   :  { %v8471_v50 = vadd.f32 %v8469_v59, %v13835_v39  ;;  %v8481_v9 = vadd.f32 %v8479_v16, %v13841_v37 }
0x1d0c   :  { %v9855_v42 = vmul.f32 -1.442695, %v8471_v50  ;;  %v9856_v17 = vmul.f32 -1.442695, %v8481_v9 }
0x1d0e   :  { %11907 = vpow2.f32 %v9855_v42 }
0x1d0f   :  { %v8554_v60 = vpop.f32.mrf.mxu0  ;;  %11909 = vpow2.f32 %v9856_v17 }
0x1d10   :  { %v8555_v27 = vadd.f32 %v13847_v6, %v8554_v60 }
0x1d11   :  { %v11471_v8 = vpop.f32.mrf.mxu0 }
0x1d12   :  { %v8559_v22 = vrot.slane %v8555_v27, 5 }
0x1d1b   :  { %v11908_v62 = vpop.eup %11907 }
0x1d1c   :  { %v8475_v40 = vadd.f32 1.0, %v11908_v62  ;;  %v11910_v43 = vpop.eup %11909 }
0x1d1d   :  { %v8485_v48 = vadd.f32 1.0, %v11910_v43 }
0x1d1e   :  { %11911 = vrcp.f32 %v8475_v40 }
0x1d1f   :  { %11913 = vrcp.f32 %v8485_v48 }
0x1d2b   :  { %v11912_v53 = vpop.eup %11911 }
0x1d2c   :  { %v8561_v33 = vmul.f32 %v11912_v53, %v8559_v22  ;;  %v11914_v57 = vpop.eup %11913 }
0x1d2d   :  { %v8564_v29 = vsub.f32 1.0, %v11914_v57  ;;  %v8568_v14 = vmul.f32 %v11914_v57, %v8566_v28 }
0x1d2e   :  { %v8562_v11 = vadd.f32 %v8561_v33, %v13853_v44 }
0x1d30   :  { %11915 = vtanh.f32 %v8562_v11 }
0x1d3d   :  { %v11916_v13 = vpop.eup %11915 }
0x1d3e   :  { %v8565_v38 = vmul.f32 %v11916_v13, %v8564_v29 }
0x1d40   :  { %v8569_v45 = vadd.f32 %v8568_v14, %v8565_v38 }
0x1d42   :  { %v8571_v31 = vrot.slane %v8569_v45, 2 }
0x1d44   :  { %v13998_v23 = vsel %vm1714_vm7, %v8571_v31, %v13951_v49  ;;  %v8574_v4 = vsel %vm1714_vm7, %v8571_v31, 0.0 }
0x1d45   :  { %8575 = vst.msk [vmem:[#allocation2 + $0x2] sm:$0x2] %vm5575_vm5, %v8574_v4  ;;  %v8577_v34 = vrot.slane %v13998_v23, 1  ;;  %v8818_v62 = vrot.slane %v13998_v23, 5 }
0x1d47   :  { %11481 = vmatmul.mubr.msk.f32.vlgmr.msra.gmra.mxu1 %vm366_vm11, %v8577_v34  ;;  %11492 = vmatmul.mubr.msk.f32.vlgmr.msra.gmra.mxu0 %vm366_vm11, %v8577_v34 }
0x1d48   :  { %11495 = vmatpush3.msra.mxu1 %v13774_v18  ;;  %11502 = vmatprep.mubr.msk.f32.mxu1 %vm12219_vm0, %v12218_v0 }
0x1d49   :  { %11496 = vmatprep.subr.mxu1 %v12218_v0  ;;  %11506 = vmatpush3.msra.mxu0 %v13746_v51 }
0x1d4a   :  { %11497 = vmatpush3.msra.mxu1 %v13783_v56  ;;  %11507 = vmatprep.subr.mxu0 %v12218_v0 }
0x1d4b   :  { %11498 = vmatprep.subr.mxu1 %v12218_v0  ;;  %11508 = vmatpush3.msra.mxu0 %v13750_v26 }
0x1d4c   :  { %11499 = vmatpush3.msra.mxu1 %v13791_v21  ;;  %11509 = vmatprep.subr.mxu0 %v12218_v0 }
0x1d4d   :  { %11500 = vmatprep.subr.mxu1 %v12218_v0  ;;  %11510 = vmatpush3.msra.mxu0 %v13755_v12 }
0x1d4e   :  { %11501 = vmatpush3.msra.mxu1 %v13799_v32  ;;  %11511 = vmatprep.subr.mxu0 %v12218_v0 }
0x1d4f   :  { %11503 = vmatmul.mubr.msk.f32.vlgmr.msra.gmra.mxu1 %vm366_vm11, %v8577_v34  ;;  %11516 = vmatprep.subr.mxu1 %v12218_v0 }
0x1d50   :  { %11517 = vmatpush3.msra.mxu1 %v13770_v54  ;;  %11512 = vmatpush3.msra.mxu0 %v13761_v61 }
0x1d51   :  { %11518 = vmatprep.subr.mxu1 %v12218_v0  ;;  %11513 = vmatprep.mubr.msk.f32.mxu0 %vm12219_vm0, %v12218_v0 }
0x1d52   :  { %11519 = vmatpush3.msra.mxu1 %v13777_v19  ;;  %11524 = vmatprep.mubr.msk.f32.mxu1 %vm12219_vm0, %v12218_v0 }
0x1d53   :  { %11520 = vmatprep.subr.mxu1 %v12218_v0  ;;  %11527 = vmatprep.subr.mxu0 %v12218_v0 }
0x1d54   :  { %11521 = vmatpush3.msra.mxu1 %v13786_v20 }
0x1d55   :  { %11522 = vmatprep.subr.mxu1 %v12218_v0 }
0x1d56   :  { %11523 = vmatpush3.msra.mxu1 %v13794_v3 }
0x1d57   :  { %11538 = vmatprep.subr.mxu1 %v12218_v0 }
0x1e07   :  { %v8646_v46 = vpop.f32.mrf.mxu1  ;;  %v8716_v30 = vpop.f32.mrf.mxu0 }
0x1e08   :  { %v8721_v36 = vrot.slane %v8646_v46, 4  ;;  %v8731_v49 = vrot.slane %v8716_v30, 4 }
0x1e09   :  { %v11482_v15 = vpop.f32.mrf.mxu1  ;;  %v11493_v52 = vpop.f32.mrf.mxu0 }
0x1e0a   :  { %v8723_v41 = vadd.f32 %v8721_v36, %v13835_v39  ;;  %v8733_v2 = vadd.f32 %v8731_v49, %v13841_v37 }
0x1e0c   :  { %v9860_v24 = vmul.f32 -1.442695, %v8723_v41  ;;  %v9861_v5 = vmul.f32 -1.442695, %v8733_v2 }
0x1e0e   :  { %11917 = vpow2.f32 %v9860_v24 }
0x1e0f   :  { %v8806_v1 = vpop.f32.mrf.mxu1  ;;  %11919 = vpow2.f32 %v9861_v5 }
0x1e10   :  { %v8807_v50 = vadd.f32 %v13847_v6, %v8806_v1 }
0x1e11   :  { %v11504_v55 = vpop.f32.mrf.mxu1 }
0x1e12   :  { %v8811_v16 = vrot.slane %v8807_v50, 4 }
0x1e1b   :  { %v11918_v59 = vpop.eup %11917 }
0x1e1c   :  { %v8727_v25 = vadd.f32 1.0, %v11918_v59  ;;  %v11920_v58 = vpop.eup %11919 }
0x1e1d   :  { %v8737_v42 = vadd.f32 1.0, %v11920_v58 }
0x1e1e   :  { %11921 = vrcp.f32 %v8727_v25 }
0x1e1f   :  { %11923 = vrcp.f32 %v8737_v42 }
0x1e2b   :  { %v11922_v60 = vpop.eup %11921 }
0x1e2c   :  { %v8813_v9 = vmul.f32 %v11922_v60, %v8811_v16  ;;  %v11924_v17 = vpop.eup %11923 }
0x1e2d   :  { %v8816_v40 = vsub.f32 1.0, %v11924_v17  ;;  %v8820_v48 = vmul.f32 %v11924_v17, %v8818_v62 }
0x1e2e   :  { %v8814_v8 = vadd.f32 %v8813_v9, %v13853_v44 }
0x1e30   :  { %11925 = vtanh.f32 %v8814_v8 }
0x1e3d   :  { %v11926_v43 = vpop.eup %11925 }
0x1e3e   :  { %v8817_v27 = vmul.f32 %v11926_v43, %v8816_v40 }
0x1e40   :  { %v8821_v22 = vadd.f32 %v8820_v48, %v8817_v27 }
0x1e42   :  { %v8823_v53 = vrot.slane %v8821_v22, 3 }
0x1e44   :  { %v14045_v33 = vsel %vm1970_vm8, %v8823_v53, %v13998_v23  ;;  %v8826_v11 = vsel %vm1970_vm8, %v8823_v53, 0.0 }
0x1e45   :  { %8827 = vst.msk [vmem:[#allocation2 + $0x3] sm:$0x2] %vm5575_vm5, %v8826_v11  ;;  %v8829_v57 = vrot.slane %v14045_v33, 1  ;;  %v9070_v5 = vrot.slane %v14045_v33, 4 }
0x1e47   :  { %11514 = vmatmul.mubr.msk.f32.vlgmr.msra.gmra.mxu0 %vm366_vm11, %v8829_v57  ;;  %11525 = vmatmul.mubr.msk.f32.vlgmr.msra.gmra.mxu1 %vm366_vm11, %v8829_v57 }
0x1e48   :  { %11528 = vmatpush3.msra.mxu0 %v13774_v18  ;;  %11535 = vmatprep.mubr.msk.f32.mxu0 %vm12219_vm0, %v12218_v0 }
0x1e49   :  { %11529 = vmatprep.subr.mxu0 %v12218_v0  ;;  %11539 = vmatpush3.msra.mxu1 %v13746_v51 }
0x1e4a   :  { %11530 = vmatpush3.msra.mxu0 %v13783_v56  ;;  %11540 = vmatprep.subr.mxu1 %v12218_v0 }
0x1e4b   :  { %11531 = vmatprep.subr.mxu0 %v12218_v0  ;;  %11541 = vmatpush3.msra.mxu1 %v13750_v26 }
0x1e4c   :  { %11532 = vmatpush3.msra.mxu0 %v13791_v21  ;;  %11542 = vmatprep.subr.mxu1 %v12218_v0 }
0x1e4d   :  { %11533 = vmatprep.subr.mxu0 %v12218_v0  ;;  %11543 = vmatpush3.msra.mxu1 %v13755_v12 }
0x1e4e   :  { %11534 = vmatpush3.msra.mxu0 %v13799_v32  ;;  %11544 = vmatprep.subr.mxu1 %v12218_v0 }
0x1e4f   :  { %11536 = vmatmul.mubr.msk.f32.vlgmr.msra.gmra.mxu0 %vm366_vm11, %v8829_v57  ;;  %11549 = vmatprep.subr.mxu0 %v12218_v0 }
0x1e50   :  { %11550 = vmatpush3.msra.mxu0 %v13770_v54  ;;  %11545 = vmatpush3.msra.mxu1 %v13761_v61 }
0x1e51   :  { %11551 = vmatprep.subr.mxu0 %v12218_v0  ;;  %11546 = vmatprep.mubr.msk.f32.mxu1 %vm12219_vm0, %v12218_v0 }
0x1e52   :  { %11552 = vmatpush3.msra.mxu0 %v13777_v19  ;;  %11557 = vmatprep.mubr.msk.f32.mxu0 %vm12219_vm0, %v12218_v0 }
0x1e53   :  { %11553 = vmatprep.subr.mxu0 %v12218_v0  ;;  %11560 = vmatprep.subr.mxu1 %v12218_v0 }
0x1e54   :  { %11554 = vmatpush3.msra.mxu0 %v13786_v20 }
0x1e55   :  { %11555 = vmatprep.subr.mxu0 %v12218_v0 }
0x1e56   :  { %11556 = vmatpush3.msra.mxu0 %v13794_v3 }
0x1e57   :  { %11571 = vmatprep.subr.mxu0 %v12218_v0 }
0x1f07   :  { %v8898_v35 = vpop.f32.mrf.mxu0  ;;  %v8968_v28 = vpop.f32.mrf.mxu1 }
0x1f08   :  { %v8973_v29 = vrot.slane %v8898_v35, 3  ;;  %v8983_v31 = vrot.slane %v8968_v28, 3 }
0x1f09   :  { %v11515_v13 = vpop.f32.mrf.mxu0  ;;  %v11526_v38 = vpop.f32.mrf.mxu1 }
0x1f0a   :  { %v8975_v14 = vadd.f32 %v8973_v29, %v13835_v39  ;;  %v8985_v4 = vadd.f32 %v8983_v31, %v13841_v37 }
0x1f0c   :  { %v9865_v45 = vmul.f32 -1.442695, %v8975_v14  ;;  %v9866_v46 = vmul.f32 -1.442695, %v8985_v4 }
0x1f0e   :  { %11927 = vpow2.f32 %v9865_v45 }
0x1f0f   :  { %v9058_v23 = vpop.f32.mrf.mxu0  ;;  %11929 = vpow2.f32 %v9866_v46 }
0x1f10   :  { %v9059_v52 = vadd.f32 %v13847_v6, %v9058_v23 }
0x1f11   :  { %v11537_v34 = vpop.f32.mrf.mxu0 }
0x1f12   :  { %v9063_v24 = vrot.slane %v9059_v52, 3 }
0x1f1b   :  { %v11928_v30 = vpop.eup %11927 }
0x1f1c   :  { %v8979_v36 = vadd.f32 1.0, %v11928_v30  ;;  %v11930_v15 = vpop.eup %11929  ;;  %v11964_v30 = vld [vmem:[#allocation17 + $0x18] sm:$0xff] }
0x1f1d   :  { %v8989_v41 = vadd.f32 1.0, %v11930_v15 }
0x1f1e   :  { %11931 = vrcp.f32 %v8979_v36 }
0x1f1f   :  { %11933 = vrcp.f32 %v8989_v41 }
0x1f2b   :  { %v11932_v49 = vpop.eup %11931 }
0x1f2c   :  { %v9065_v1 = vmul.f32 %v11932_v49, %v9063_v24  ;;  %v11934_v55 = vpop.eup %11933 }
0x1f2d   :  { %v9068_v59 = vsub.f32 1.0, %v11934_v55  ;;  %v9072_v50 = vmul.f32 %v11934_v55, %v9070_v5 }
0x1f2e   :  { %v9066_v2 = vadd.f32 %v9065_v1, %v13853_v44 }
0x1f30   :  { %11935 = vtanh.f32 %v9066_v2 }
0x1f3d   :  { %v11936_v25 = vpop.eup %11935 }
0x1f3e   :  { %v9069_v58 = vmul.f32 %v11936_v25, %v9068_v59 }
0x1f40   :  { %v9073_v42 = vadd.f32 %v9072_v50, %v9069_v58 }
0x1f42   :  { %v9075_v16 = vrot.slane %v9073_v42, 4 }
0x1f44   :  { %v14092_v60 = vsel %vm2226_vm9, %v9075_v16, %v14045_v33  ;;  %v9078_v9 = vsel %vm2226_vm9, %v9075_v16, 0.0 }
0x1f45   :  { %9079 = vst.msk [vmem:[#allocation2 + $0x4] sm:$0x2] %vm5575_vm5, %v9078_v9  ;;  %v9081_v8 = vrot.slane %v14092_v60, 1  ;;  %v9322_v29 = vrot.slane %v14092_v60, 3 }
0x1f47   :  { %11547 = vmatmul.mubr.msk.f32.vlgmr.msra.gmra.mxu1 %vm366_vm11, %v9081_v8  ;;  %11558 = vmatmul.mubr.msk.f32.vlgmr.msra.gmra.mxu0 %vm366_vm11, %v9081_v8 }
0x1f48   :  { %11561 = vmatpush3.msra.mxu1 %v13774_v18  ;;  %11568 = vmatprep.mubr.msk.f32.mxu1 %vm12219_vm0, %v12218_v0 }
0x1f49   :  { %11562 = vmatprep.subr.mxu1 %v12218_v0  ;;  %11572 = vmatpush3.msra.mxu0 %v13746_v51 }
0x1f4a   :  { %11563 = vmatpush3.msra.mxu1 %v13783_v56  ;;  %11573 = vmatprep.subr.mxu0 %v12218_v0 }
0x1f4b   :  { %11564 = vmatprep.subr.mxu1 %v12218_v0  ;;  %11574 = vmatpush3.msra.mxu0 %v13750_v26 }
0x1f4c   :  { %11565 = vmatpush3.msra.mxu1 %v13791_v21  ;;  %11575 = vmatprep.subr.mxu0 %v12218_v0 }
0x1f4d   :  { %11566 = vmatprep.subr.mxu1 %v12218_v0  ;;  %11576 = vmatpush3.msra.mxu0 %v13755_v12 }
0x1f4e   :  { %11567 = vmatpush3.msra.mxu1 %v13799_v32  ;;  %11577 = vmatprep.subr.mxu0 %v12218_v0 }
0x1f4f   :  { %11569 = vmatmul.mubr.msk.f32.vlgmr.msra.gmra.mxu1 %vm366_vm11, %v9081_v8  ;;  %11582 = vmatprep.subr.mxu1 %v12218_v0 }
0x1f50   :  { %11583 = vmatpush3.msra.mxu1 %v13770_v54  ;;  %11578 = vmatpush3.msra.mxu0 %v13761_v61 }
0x1f51   :  { %11584 = vmatprep.subr.mxu1 %v12218_v0  ;;  %11579 = vmatprep.mubr.msk.f32.mxu0 %vm12219_vm0, %v12218_v0 }
0x1f52   :  { %11585 = vmatpush3.msra.mxu1 %v13777_v19  ;;  %11590 = vmatprep.mubr.msk.f32.mxu1 %vm12219_vm0, %v12218_v0 }
0x1f53   :  { %11586 = vmatprep.subr.mxu1 %v12218_v0  ;;  %11593 = vmatprep.subr.mxu0 %v12218_v0 }
0x1f54   :  { %11587 = vmatpush3.msra.mxu1 %v13786_v20 }
0x1f55   :  { %11588 = vmatprep.subr.mxu1 %v12218_v0 }
0x1f56   :  { %11589 = vmatpush3.msra.mxu1 %v13794_v3 }
0x1f57   :  { %11604 = vmatprep.subr.mxu1 %v12218_v0 }
0x2007   :  { %v9150_v7 = vpop.f32.mrf.mxu1  ;;  %v9220_v51 = vpop.f32.mrf.mxu0 }
0x2008   :  { %v9225_v26 = vrot.slane %v9150_v7, 2  ;;  %v9235_v17 = vrot.slane %v9220_v51, 2 }
0x2009   :  { %v11548_v12 = vpop.f32.mrf.mxu1  ;;  %v11559_v61 = vpop.f32.mrf.mxu0 }
0x200a   :  { %v9227_v54 = vadd.f32 %v9225_v26, %v13835_v39  ;;  %v9237_v40 = vadd.f32 %v9235_v17, %v13841_v37 }
0x200c   :  { %v9870_v19 = vmul.f32 -1.442695, %v9227_v54  ;;  %v9871_v43 = vmul.f32 -1.442695, %v9237_v40 }
0x200e   :  { %11937 = vpow2.f32 %v9870_v19 }
0x200f   :  { %v9310_v62 = vpop.f32.mrf.mxu1  ;;  %11939 = vpow2.f32 %v9871_v43 }
0x2010   :  { %v9311_v22 = vadd.f32 %v13847_v6, %v9310_v62 }
0x2011   :  { %v11570_v20 = vpop.f32.mrf.mxu1 }
0x2012   :  { %v9315_v33 = vrot.slane %v9311_v22, 2 }
0x201b   :  { %v11938_v27 = vpop.eup %11937 }
0x201c   :  { %v9231_v3 = vadd.f32 1.0, %v11938_v27  ;;  %v11940_v48 = vpop.eup %11939 }
0x201d   :  { %v9241_v53 = vadd.f32 1.0, %v11940_v48 }
0x201e   :  { %11941 = vrcp.f32 %v9231_v3 }
0x201f   :  { %11943 = vrcp.f32 %v9241_v53 }
0x202b   :  { %v11942_v11 = vpop.eup %11941 }
0x202c   :  { %v9317_v57 = vmul.f32 %v11942_v11, %v9315_v33  ;;  %v11944_v28 = vpop.eup %11943 }
0x202d   :  { %v9320_v13 = vsub.f32 1.0, %v11944_v28  ;;  %v9324_v45 = vmul.f32 %v11944_v28, %v9322_v29 }
0x202e   :  { %v9318_v35 = vadd.f32 %v9317_v57, %v13853_v44 }
0x2030   :  { %11945 = vtanh.f32 %v9318_v35 }
0x203d   :  { %v11946_v38 = vpop.eup %11945 }
0x203e   :  { %v9321_v14 = vmul.f32 %v11946_v38, %v9320_v13 }
0x2040   :  { %v9325_v31 = vadd.f32 %v9324_v45, %v9321_v14 }
0x2042   :  { %v9327_v23 = vrot.slane %v9325_v31, 5 }
0x2044   :  { %v9329_v4 = vsel %vm2482_vm10, %v9327_v23, %v14092_v60  ;;  %v9330_v34 = vsel %vm2482_vm10, %v9327_v23, 0.0 }
0x2045   :  { %9331 = vst.msk [vmem:[#allocation2 + $0x5] sm:$0x2] %vm5575_vm5, %v9330_v34  ;;  %v9333_v46 = vrot.slane %v9329_v4, 1  ;;  %v9574_v8 = vrot.slane %v9329_v4, 2 }
0x2047   :  { %11580 = vmatmul.mubr.msk.f32.vlgmr.msra.gmra.mxu0 %vm366_vm11, %v9333_v46  ;;  %11591 = vmatmul.mubr.msk.f32.vlgmr.msra.gmra.mxu1 %vm366_vm11, %v9333_v46 }
0x2048   :  { %11594 = vmatpush3.msra.mxu0 %v13774_v18  ;;  %11601 = vmatprep.mubr.msk.f32.mxu0 %vm12219_vm0, %v12218_v0  ;;  %v11966_v18 = vld [vmem:[#allocation17 + $0x8] sm:$0xff] }
0x2049   :  { %11595 = vmatprep.subr.mxu0 %v12218_v0  ;;  %11605 = vmatpush3.msra.mxu1 %v11964_v30 }
0x204a   :  { %11596 = vmatpush3.msra.mxu0 %v13783_v56  ;;  %11606 = vmatprep.subr.mxu1 %v12218_v0  ;;  %v11967_v56 = vld [vmem:[#allocation17] sm:$0xff] }
0x204b   :  { %11597 = vmatprep.subr.mxu0 %v12218_v0  ;;  %11607 = vmatpush3.msra.mxu1 %v11965_v47 }
0x204c   :  { %11598 = vmatpush3.msra.mxu0 %v13791_v21  ;;  %11608 = vmatprep.subr.mxu1 %v12218_v0 }
0x204d   :  { %11599 = vmatprep.subr.mxu0 %v12218_v0  ;;  %11609 = vmatpush3.msra.mxu1 %v11966_v18 }
0x204e   :  { %11600 = vmatpush3.msra.mxu0 %v13799_v32  ;;  %11610 = vmatprep.subr.mxu1 %v12218_v0 }
0x204f   :  { %11602 = vmatmul.mubr.msk.f32.vlgmr.msra.gmra.mxu0 %vm366_vm11, %v9333_v46  ;;  %11611 = vmatpush3.msra.mxu1 %v11967_v56 }
0x2050   :  { %11612 = vmatprep.mubr.msk.f32.mxu1 %vm12219_vm0, %v12218_v0 }
0x2107   :  { %v9402_v36 = vpop.f32.mrf.mxu0  ;;  %v9472_v15 = vpop.f32.mrf.mxu1 }
0x2108   :  { %v9477_v21 = vrot.slane %v9402_v36, 1  ;;  %v9487_v1 = vrot.slane %v9472_v15, 1 }
0x2109   :  { %v11581_v52 = vpop.f32.mrf.mxu0  ;;  %v11592_v41 = vpop.f32.mrf.mxu1 }
0x210a   :  { %v9479_v24 = vadd.f32 %v9477_v21, %v13835_v39  ;;  %v9489_v2 = vadd.f32 %v9487_v1, %v13841_v37 }
0x210c   :  { %v9875_v49 = vmul.f32 -1.442695, %v9479_v24  ;;  %v9876_v5 = vmul.f32 -1.442695, %v9489_v2 }
0x210e   :  { %11947 = vpow2.f32 %v9875_v49 }
0x210f   :  { %v9562_v32 = vpop.f32.mrf.mxu0  ;;  %11949 = vpow2.f32 %v9876_v5 }
0x2110   :  { %v9563_v58 = vadd.f32 %v13847_v6, %v9562_v32 }
0x2111   :  { %v11603_v55 = vpop.f32.mrf.mxu0 }
0x2112   :  { %v9567_v42 = vrot.slane %v9563_v58, 1 }
0x211b   :  { %v11948_v59 = vpop.eup %11947 }
0x211c   :  { %v9483_v25 = vadd.f32 1.0, %v11948_v59  ;;  %v11950_v0 = vpop.eup %11949 }
0x211d   :  { %v9493_v50 = vadd.f32 1.0, %v11950_v0 }
0x211e   :  { %11951 = vrcp.f32 %v9483_v25 }
0x211f   :  { %11953 = vrcp.f32 %v9493_v50 }
0x212b   :  { %v11952_v16 = vpop.eup %11951 }
0x212c   :  { %v9569_v39 = vmul.f32 %v11952_v16, %v9567_v42  ;;  %v11954_v9 = vpop.eup %11953 }
0x212d   :  { %v9572_v37 = vsub.f32 1.0, %v11954_v9  ;;  %v9576_v51 = vmul.f32 %v11954_v9, %v9574_v8 }
0x212e   :  { %v9570_v60 = vadd.f32 %v9569_v39, %v13853_v44 }
0x2130   :  { %11955 = vtanh.f32 %v9570_v60 }
0x213d   :  { %v11956_v7 = vpop.eup %11955 }
0x213e   :  { %v9573_v26 = vmul.f32 %v11956_v7, %v9572_v37 }
0x2140   :  { %v9577_v12 = vadd.f32 %v9576_v51, %v9573_v26 }
0x2142   :  { %v9579_v61 = vrot.slane %v9577_v12, 6 }
0x2144   :  { %v9581_v54 = vsel %vm2738_vm14, %v9579_v61, 0.0 }
0x2145   :  { %9582 = vst.msk [vmem:[#allocation2 + $0x6] sm:$0x2] %vm5575_vm5, %v9581_v54 }
0x214c   :  { %v9583_v6 = vld [vmem:[#allocation2] sm:$0xff] }
0x214d   :  { %11613 = vmatmul.mubr.msk.f32.vlgmr.msra.gmra.mxu1 %vm366_vm11, %v9583_v6 }
0x220d   :  { %v9657_v44 = vpop.f32.mrf.mxu1 }
0x220e   :  { %v9658_v19 = vadd.f32 %v9657_v44, %v12509_v63 }
0x220f   :  { %v11614_v17 = vpop.f32.mrf.mxu1 }
0x2210   :  { %9662 = vst.msk [vmem:[#allocation20 + $0x8] sm:$0xff] %vm366_vm11, %v9658_v19 }
0x2211   :  { %12179 = shalt.err (!%p12176_p12)
}
0x2212   :  { %9674 = dma.vmem_to_hbm [thread:$0]  %s9669_s8, 256, %s14191_s16, [#allocation5], %s12203_s24, %s12203_s24, %s12204_s25  }
0x2213   :  { %12200 = dma.done.wait [#allocation5], 256  }
0x2214   :  { %12201 = vsyncadd [#allocation5], 4294967040 }
0x2215   :  { %9678 = vsyncpa [#allocation4], 1 }
0x2216   :  { %9679 = vsyncpa [#allocation7], 1 }
0x2217   :  { %9680 = vsyncpa [#allocation10], 1 }
0x2218   :  { %9681 = vsyncpa [#allocation13], 1 }
0x2219   :  { %9682 = vsyncpa [#allocation16], 1 }
0x221a   :  { %9683 = vsyncpa [#allocation19], 1 }
0x221b   :  { %9684 = vsyncpa [#allocation5], 1 }

</bundles_post_ra>
